<compile_context>
chip_gen: v5e
topology: v5e:2x2
jax: 0.10.0
libtpu: 0.0.40
codegen_flags: <defaults>
</compile_context>

<pallas_src>
import functools

import jax
import jax.numpy as jnp
from jax.experimental import pallas as pl
from jax.experimental.pallas import tpu as pltpu

DIM = 3          # input point dimension
C_DIM = 32       # latent code dimension
HIDDEN = 128     # hidden size
N_BLOCKS = 5
N_BN = 2 * N_BLOCKS + 1   # 11 conditional batch-norm layers
BN_EPS = 1e-5


# ------------------------------------------------------------------ shared math
# These helpers operate on jnp values, so they are used both inside the Pallas
# kernel and in the pure-JAX reference (identical math on identical packed params).

def _fc_p(p, w, b):
    """fc_p: Conv1d(dim, hidden, 1). K=DIM is tiny -> 3 VPU broadcast-FMAs, no MXU.

    p: (N, DIM) f32, w: (DIM, H) f32, b: (1, H) f32 -> (N, H) f32
    """
    net = p[:, 0:1] * w[0:1, :]
    for d in range(1, DIM):
        net = net + p[:, d:d + 1] * w[d:d + 1, :]
    return net + b


def _dense(x, w, b):
    """1x1 conv as a 2D matmul: bf16 inputs, f32 accumulation.

    x: (N, Cin) f32, w: (Cin, Cout) bf16, b: (1, Cout) f32 -> (N, Cout) f32
    """
    return jnp.dot(x.astype(w.dtype), w, preferred_element_type=jnp.float32) + b


def _gamma_beta_full(c, gb_w, gb_b, B, T):
    """Fused gamma/beta projection for all 11 CBN layers, broadcast to N=B*T rows.

    c: (B, C_DIM) f32, gb_w: (C_DIM, 2*N_BN*H) bf16, gb_b: (1, 2*N_BN*H) f32
    -> (B*T, 2*N_BN*H) f32
    """
    gb = jnp.dot(c.astype(gb_w.dtype), gb_w,
                 preferred_element_type=jnp.float32) + gb_b          # (B, 22*H)
    width = gb.shape[1]
    return jnp.concatenate(
        [jnp.broadcast_to(gb[b:b + 1, :], (T, width)) for b in range(B)], axis=0)


def _gamma_slice(gbf, layer):
    return gbf[:, layer * HIDDEN:(layer + 1) * HIDDEN]


def _beta_slice(gbf, layer):
    return gbf[:, (N_BN + layer) * HIDDEN:(N_BN + layer + 1) * HIDDEN]


def _cbn_relu(x, gamma, beta):
    """Conditional batch norm (training-mode batch stats, affine=False) + fused ReLU.

    x, gamma, beta: (N, H) f32 -> (N, H) f32
    """
    mean = jnp.mean(x, axis=0, keepdims=True)                         # (1, H)
    xc = x - mean                                                     # reused for var
    var = jnp.mean(xc * xc, axis=0, keepdims=True)                    # biased variance
    inv = jax.lax.rsqrt(var + BN_EPS)                                 # EUP slot
    return jnp.maximum(gamma * (xc * inv) + beta, 0.0)


# ----------------------------------------------------------------------- kernel
def decoder_cbn_kernel(p_ref, c_ref,
                       fcp_w_ref, fcp_b_ref,
                       gb_w_ref, gb_b_ref,
                       fc_w_ref, fc_b_ref,
                       head_w_ref, head_b_ref,
                       out_ref, *, B, T):
    # fc_p
    net = _fc_p(p_ref[...], fcp_w_ref[...], fcp_b_ref[...])           # (N, H) f32

    # all gamma/beta for all 11 CBN layers in one matmul, broadcast to N rows
    gbf = _gamma_beta_full(c_ref[...], gb_w_ref[...], gb_b_ref[...], B, T)

    # 5 x CResnetBlockConv1d: x + fc_1(relu(bn_1(fc_0(relu(bn_0(x,c))), c)))
    for blk in range(N_BLOCKS):
        l0, l1 = 2 * blk, 2 * blk + 1
        h = _dense(_cbn_relu(net, _gamma_slice(gbf, l0), _beta_slice(gbf, l0)),
                   fc_w_ref[l0], fc_b_ref[l0])
        dx = _dense(_cbn_relu(h, _gamma_slice(gbf, l1), _beta_slice(gbf, l1)),
                    fc_w_ref[l1], fc_b_ref[l1])
        net = net + dx                                                # identity shortcut

    # final CBN -> ReLU -> fc_out (hidden -> 1)
    fin = _cbn_relu(net, _gamma_slice(gbf, 2 * N_BLOCKS), _beta_slice(gbf, 2 * N_BLOCKS))
    out_ref[...] = (jnp.sum(fin * head_w_ref[...], axis=1, keepdims=True)
                    + head_b_ref[...])                                # (N, 1)


# ----------------------------------------------------------------- host wrapper
def decoder_cbatchnorm(p, c, params):
    B, T, _ = p.shape
    N = B * T
    p2 = p.reshape(N, DIM)

    args = (p2, c,
            params["fcp_w"], params["fcp_b"],
            params["gb_w"], params["gb_b"],
            params["fc_w"], params["fc_b"],
            params["head_w"], params["head_b"])

    in_specs = [pl.BlockSpec(a.shape, lambda i, _nd=a.ndim: (0,) * _nd) for a in args]

    out = pl.pallas_call(
        functools.partial(decoder_cbn_kernel, B=B, T=T),
        out_shape=jax.ShapeDtypeStruct((N, 1), jnp.float32),
        grid=(1,),
        in_specs=in_specs,
        out_specs=pl.BlockSpec((N, 1), lambda i: (0, 0)),
        compiler_params=pltpu.CompilerParams(
            dimension_semantics=("arbitrary",)),
    )(*args)
    return out.reshape(B, T)


# ---------------------------------------------------------- params (host packing)
def init_params(key):
    # NOTE: the torch module zero-inits the CBN conv weights and fc_1 weights; we use
    # small random values so the forward exercises every term (synthetic weights, not
    # a checkpoint load).
    ks = jax.random.split(key, 12)

    def rnd(k, shape, scale=0.1):
        return scale * jax.random.normal(k, shape, dtype=jnp.float32)

    # module-layout (PyTorch Conv1d weights are (out, in))
    fcp_w = rnd(ks[0], (HIDDEN, DIM))
    fcp_b = rnd(ks[1], (HIDDEN,))
    gamma_w = rnd(ks[2], (N_BN, HIDDEN, C_DIM))
    gamma_b = 1.0 + rnd(ks[3], (N_BN, HIDDEN))
    beta_w = rnd(ks[4], (N_BN, HIDDEN, C_DIM))
    beta_b = rnd(ks[5], (N_BN, HIDDEN))
    fc0_w = rnd(ks[6], (N_BLOCKS, HIDDEN, HIDDEN))
    fc0_b = rnd(ks[7], (N_BLOCKS, HIDDEN))
    fc1_w = rnd(ks[8], (N_BLOCKS, HIDDEN, HIDDEN))
    fc1_b = rnd(ks[9], (N_BLOCKS, HIDDEN))
    fcout_w = rnd(ks[10], (HIDDEN,))
    fcout_b = rnd(ks[11], (1,))

    # ---- host-side packing into MXU/DMA-friendly layouts ----
    # gamma/beta weights fused & pre-transposed: (C_DIM, 11*H gammas | 11*H betas)
    gammas_t = jnp.transpose(gamma_w, (2, 0, 1)).reshape(C_DIM, N_BN * HIDDEN)
    betas_t = jnp.transpose(beta_w, (2, 0, 1)).reshape(C_DIM, N_BN * HIDDEN)
    gb_w = jnp.concatenate([gammas_t, betas_t], axis=1).astype(jnp.bfloat16)
    gb_b = jnp.concatenate([gamma_b.reshape(-1), beta_b.reshape(-1)])[None, :]

    # residual-block weights pre-transposed to (H_in, H_out), interleaved fc0/fc1
    fc_w = jnp.stack([jnp.transpose(fc0_w, (0, 2, 1)),
                      jnp.transpose(fc1_w, (0, 2, 1))], axis=1)
    fc_w = fc_w.reshape(2 * N_BLOCKS, HIDDEN, HIDDEN).astype(jnp.bfloat16)
    fc_b = jnp.stack([fc0_b, fc1_b], axis=1).reshape(2 * N_BLOCKS, 1, HIDDEN)

    return dict(
        fcp_w=fcp_w.T,                  # (DIM, H)  f32  (used on VPU)
        fcp_b=fcp_b[None, :],           # (1, H)    f32
        gb_w=gb_w,                      # (C_DIM, 2*N_BN*H) bf16
        gb_b=gb_b,                      # (1, 2*N_BN*H)     f32
        fc_w=fc_w,                      # (2*N_BLOCKS, H_in, H_out) bf16
        fc_b=fc_b,                      # (2*N_BLOCKS, 1, H)        f32
        head_w=fcout_w[None, :],        # (1, H) f32
        head_b=fcout_b[None, :],        # (1, 1) f32
    )


# -------------------------------------------------------------- pure-JAX reference
def reference_forward(p, c, params):
    B, T, _ = p.shape
    p2 = p.reshape(B * T, DIM)
    net = _fc_p(p2, params["fcp_w"], params["fcp_b"])
    gbf = _gamma_beta_full(c, params["gb_w"], params["gb_b"], B, T)
    fc_w, fc_b = params["fc_w"], params["fc_b"]
    for blk in range(N_BLOCKS):
        l0, l1 = 2 * blk, 2 * blk + 1
        h = _dense(_cbn_relu(net, _gamma_slice(gbf, l0), _beta_slice(gbf, l0)),
                   fc_w[l0], fc_b[l0])
        dx = _dense(_cbn_relu(h, _gamma_slice(gbf, l1), _beta_slice(gbf, l1)),
                    fc_w[l1], fc_b[l1])
        net = net + dx
    fin = _cbn_relu(net, _gamma_slice(gbf, 2 * N_BLOCKS), _beta_slice(gbf, 2 * N_BLOCKS))
    out = jnp.sum(fin * params["head_w"], axis=1, keepdims=True) + params["head_b"]
    return out.reshape(B, T)


if __name__ == "__main__":
    key = jax.random.PRNGKey(0)
    kp, kc, kw = jax.random.split(key, 3)

    B, T = 2, 128
    p = jax.random.normal(kp, (B, T, DIM), dtype=jnp.float32)    # query points
    c = jax.random.normal(kc, (B, C_DIM), dtype=jnp.float32)     # latent codes
    params = init_params(kw)

    out = jax.block_until_ready(decoder_cbatchnorm(p, c, params))
    ref = reference_forward(p, c, params)

    assert out.shape == (B, T), out.shape
    if not jnp.allclose(out, ref, atol=2e-2, rtol=2e-2):
        raise AssertionError(
            f"Pallas kernel does not match reference "
            f"(max abs err {float(jnp.max(jnp.abs(out - ref)))})")
    print("KERNEL_OK")
</pallas_src>

<mosaic_0001>
module attributes {stable_mosaic.version = 11 : i64} {
  func.func @decoder_cbn_kernel(%arg0: i32, %arg1: memref<256x3xf32, #tpu.memory_space<vmem>>, %arg2: memref<2x32xf32, #tpu.memory_space<vmem>>, %arg3: memref<3x128xf32, #tpu.memory_space<vmem>>, %arg4: memref<1x128xf32, #tpu.memory_space<vmem>>, %arg5: memref<32x2816xbf16, #tpu.memory_space<vmem>>, %arg6: memref<1x2816xf32, #tpu.memory_space<vmem>>, %arg7: memref<10x128x128xbf16, #tpu.memory_space<vmem>>, %arg8: memref<10x1x128xf32, #tpu.memory_space<vmem>>, %arg9: memref<1x128xf32, #tpu.memory_space<vmem>>, %arg10: memref<1x1xf32, #tpu.memory_space<vmem>>, %arg11: memref<256x1xf32, #tpu.memory_space<vmem>>) attributes {dimension_semantics = [#tpu.dimension_semantics<arbitrary>], iteration_bounds = array<i64: 1>, scalar_prefetch = 0 : i64, scratch_operands = 0 : i64, tpu.core_type = #tpu.core_type<tc>, window_params = [{pipeline_mode = #tpu.pipeline_mode<synchronous>, transform_indices = @transform_0, window_bounds = array<i64: 256, 3>}, {pipeline_mode = #tpu.pipeline_mode<synchronous>, transform_indices = @transform_1, window_bounds = array<i64: 2, 32>}, {pipeline_mode = #tpu.pipeline_mode<synchronous>, transform_indices = @transform_2, window_bounds = array<i64: 3, 128>}, {pipeline_mode = #tpu.pipeline_mode<synchronous>, transform_indices = @transform_3, window_bounds = array<i64: 1, 128>}, {pipeline_mode = #tpu.pipeline_mode<synchronous>, transform_indices = @transform_4, window_bounds = array<i64: 32, 2816>}, {pipeline_mode = #tpu.pipeline_mode<synchronous>, transform_indices = @transform_5, window_bounds = array<i64: 1, 2816>}, {pipeline_mode = #tpu.pipeline_mode<synchronous>, transform_indices = @transform_6, window_bounds = array<i64: 10, 128, 128>}, {pipeline_mode = #tpu.pipeline_mode<synchronous>, transform_indices = @transform_7, window_bounds = array<i64: 10, 1, 128>}, {pipeline_mode = #tpu.pipeline_mode<synchronous>, transform_indices = @transform_8, window_bounds = array<i64: 1, 128>}, {pipeline_mode = #tpu.pipeline_mode<synchronous>, transform_indices = @transform_9, window_bounds = array<i64: 1, 1>}, {pipeline_mode = #tpu.pipeline_mode<synchronous>, transform_indices = @transform_10, window_bounds = array<i64: 256, 1>}]} {
    %c0 = arith.constant 0 : index
    %c0_0 = arith.constant 0 : index
    %0 = vector.load %arg1[%c0, %c0_0] : memref<256x3xf32, #tpu.memory_space<vmem>>, vector<256x3xf32>
    %c0_1 = arith.constant 0 : index
    %c0_2 = arith.constant 0 : index
    %1 = vector.load %arg3[%c0_1, %c0_2] : memref<3x128xf32, #tpu.memory_space<vmem>>, vector<3x128xf32>
    %c0_3 = arith.constant 0 : index
    %c0_4 = arith.constant 0 : index
    %2 = vector.load %arg4[%c0_3, %c0_4] : memref<1x128xf32, #tpu.memory_space<vmem>>, vector<1x128xf32>
    %3 = vector.extract_strided_slice %0 {offsets = [0, 0], sizes = [256, 1], strides = [1, 1]} : vector<256x3xf32> to vector<256x1xf32>
    %4 = vector.extract_strided_slice %1 {offsets = [0, 0], sizes = [1, 128], strides = [1, 1]} : vector<3x128xf32> to vector<1x128xf32>
    %5 = vector.broadcast %3 : vector<256x1xf32> to vector<256x128xf32>
    %6 = vector.broadcast %4 : vector<1x128xf32> to vector<256x128xf32>
    %7 = arith.mulf %5, %6 : vector<256x128xf32>
    %8 = vector.extract_strided_slice %0 {offsets = [0, 1], sizes = [256, 1], strides = [1, 1]} : vector<256x3xf32> to vector<256x1xf32>
    %9 = vector.extract_strided_slice %1 {offsets = [1, 0], sizes = [1, 128], strides = [1, 1]} : vector<3x128xf32> to vector<1x128xf32>
    %10 = vector.broadcast %8 : vector<256x1xf32> to vector<256x128xf32>
    %11 = vector.broadcast %9 : vector<1x128xf32> to vector<256x128xf32>
    %12 = arith.mulf %10, %11 : vector<256x128xf32>
    %13 = arith.addf %7, %12 : vector<256x128xf32>
    %14 = vector.extract_strided_slice %0 {offsets = [0, 2], sizes = [256, 1], strides = [1, 1]} : vector<256x3xf32> to vector<256x1xf32>
    %15 = vector.extract_strided_slice %1 {offsets = [2, 0], sizes = [1, 128], strides = [1, 1]} : vector<3x128xf32> to vector<1x128xf32>
    %16 = vector.broadcast %14 : vector<256x1xf32> to vector<256x128xf32>
    %17 = vector.broadcast %15 : vector<1x128xf32> to vector<256x128xf32>
    %18 = arith.mulf %16, %17 : vector<256x128xf32>
    %19 = arith.addf %13, %18 : vector<256x128xf32>
    %20 = vector.broadcast %2 : vector<1x128xf32> to vector<256x128xf32>
    %21 = arith.addf %19, %20 : vector<256x128xf32>
    %c0_5 = arith.constant 0 : index
    %c0_6 = arith.constant 0 : index
    %22 = vector.load %arg2[%c0_5, %c0_6] : memref<2x32xf32, #tpu.memory_space<vmem>>, vector<2x32xf32>
    %c0_7 = arith.constant 0 : index
    %c0_8 = arith.constant 0 : index
    %23 = vector.load %arg5[%c0_7, %c0_8] : memref<32x2816xbf16, #tpu.memory_space<vmem>>, vector<32x2816xbf16>
    %c0_9 = arith.constant 0 : index
    %c0_10 = arith.constant 0 : index
    %24 = vector.load %arg6[%c0_9, %c0_10] : memref<1x2816xf32, #tpu.memory_space<vmem>>, vector<1x2816xf32>
    %25 = arith.truncf %22 : vector<2x32xf32> to vector<2x32xbf16>
    %cst = arith.constant dense<0.000000e+00> : vector<2x2816xf32>
    %26 = tpu.matmul %25, %23, %cst {dimension_numbers = #tpu.dot_dimension_numbers<[1], [0], [0], [1], [0, 0, 1, 1], [], []>} : vector<2x32xbf16>, vector<32x2816xbf16>, vector<2x2816xf32> -> vector<2x2816xf32>
    %27 = vector.broadcast %24 : vector<1x2816xf32> to vector<2x2816xf32>
    %28 = arith.addf %26, %27 : vector<2x2816xf32>
    %29 = vector.extract_strided_slice %28 {offsets = [0, 0], sizes = [1, 2816], strides = [1, 1]} : vector<2x2816xf32> to vector<1x2816xf32>
    %30 = vector.shape_cast %29 : vector<1x2816xf32> to vector<1x2816xf32>
    %31 = vector.broadcast %30 : vector<1x2816xf32> to vector<128x2816xf32>
    %32 = vector.extract_strided_slice %28 {offsets = [1, 0], sizes = [1, 2816], strides = [1, 1]} : vector<2x2816xf32> to vector<1x2816xf32>
    %33 = vector.shape_cast %32 : vector<1x2816xf32> to vector<1x2816xf32>
    %34 = vector.broadcast %33 : vector<1x2816xf32> to vector<128x2816xf32>
    %35 = tpu.concatenate %31, %34 in 0 : vector<128x2816xf32>, vector<128x2816xf32> -> vector<256x2816xf32>
    %36 = vector.extract_strided_slice %35 {offsets = [0, 0], sizes = [256, 128], strides = [1, 1]} : vector<256x2816xf32> to vector<256x128xf32>
    %37 = vector.extract_strided_slice %35 {offsets = [0, 1408], sizes = [256, 128], strides = [1, 1]} : vector<256x2816xf32> to vector<256x128xf32>
    %cst_11 = arith.constant dense<0.000000e+00> : vector<128xf32>
    %38 = vector.multi_reduction <add>, %21, %cst_11 [0] : vector<256x128xf32> to vector<128xf32>
    %39 = vector.shape_cast %38 : vector<128xf32> to vector<1x128xf32>
    %cst_12 = arith.constant 2.560000e+02 : f32
    %40 = vector.broadcast %cst_12 : f32 to vector<1x128xf32>
    %41 = arith.divf %39, %40 : vector<1x128xf32>
    %42 = vector.broadcast %41 : vector<1x128xf32> to vector<256x128xf32>
    %43 = arith.subf %21, %42 : vector<256x128xf32>
    %44 = arith.mulf %43, %43 : vector<256x128xf32>
    %cst_13 = arith.constant dense<0.000000e+00> : vector<128xf32>
    %45 = vector.multi_reduction <add>, %44, %cst_13 [0] : vector<256x128xf32> to vector<128xf32>
    %46 = vector.shape_cast %45 : vector<128xf32> to vector<1x128xf32>
    %cst_14 = arith.constant 2.560000e+02 : f32
    %47 = vector.broadcast %cst_14 : f32 to vector<1x128xf32>
    %48 = arith.divf %46, %47 : vector<1x128xf32>
    %cst_15 = arith.constant 9.99999974E-6 : f32
    %49 = vector.broadcast %cst_15 : f32 to vector<1x128xf32>
    %50 = arith.addf %48, %49 : vector<1x128xf32>
    %51 = math.rsqrt %50 : vector<1x128xf32>
    %52 = vector.broadcast %51 : vector<1x128xf32> to vector<256x128xf32>
    %53 = arith.mulf %43, %52 : vector<256x128xf32>
    %54 = arith.mulf %36, %53 : vector<256x128xf32>
    %55 = arith.addf %54, %37 : vector<256x128xf32>
    %cst_16 = arith.constant 0.000000e+00 : f32
    %56 = vector.broadcast %cst_16 : f32 to vector<256x128xf32>
    %57 = arith.maximumf %55, %56 : vector<256x128xf32>
    %c0_17 = arith.constant 0 : index
    %c0_18 = arith.constant 0 : index
    %c0_19 = arith.constant 0 : index
    %58 = vector.load %arg7[%c0_17, %c0_18, %c0_19] : memref<10x128x128xbf16, #tpu.memory_space<vmem>>, vector<1x128x128xbf16>
    %59 = vector.shape_cast %58 : vector<1x128x128xbf16> to vector<128x128xbf16>
    %c0_20 = arith.constant 0 : index
    %c0_21 = arith.constant 0 : index
    %c0_22 = arith.constant 0 : index
    %60 = vector.load %arg8[%c0_20, %c0_21, %c0_22] : memref<10x1x128xf32, #tpu.memory_space<vmem>>, vector<1x1x128xf32>
    %61 = vector.shape_cast %60 : vector<1x1x128xf32> to vector<1x128xf32>
    %62 = arith.truncf %57 : vector<256x128xf32> to vector<256x128xbf16>
    %cst_23 = arith.constant dense<0.000000e+00> : vector<256x128xf32>
    %63 = tpu.matmul %62, %59, %cst_23 {dimension_numbers = #tpu.dot_dimension_numbers<[1], [0], [0], [1], [0, 0, 1, 1], [], []>} : vector<256x128xbf16>, vector<128x128xbf16>, vector<256x128xf32> -> vector<256x128xf32>
    %64 = vector.broadcast %61 : vector<1x128xf32> to vector<256x128xf32>
    %65 = arith.addf %63, %64 : vector<256x128xf32>
    %66 = vector.extract_strided_slice %35 {offsets = [0, 128], sizes = [256, 128], strides = [1, 1]} : vector<256x2816xf32> to vector<256x128xf32>
    %67 = vector.extract_strided_slice %35 {offsets = [0, 1536], sizes = [256, 128], strides = [1, 1]} : vector<256x2816xf32> to vector<256x128xf32>
    %cst_24 = arith.constant dense<0.000000e+00> : vector<128xf32>
    %68 = vector.multi_reduction <add>, %65, %cst_24 [0] : vector<256x128xf32> to vector<128xf32>
    %69 = vector.shape_cast %68 : vector<128xf32> to vector<1x128xf32>
    %cst_25 = arith.constant 2.560000e+02 : f32
    %70 = vector.broadcast %cst_25 : f32 to vector<1x128xf32>
    %71 = arith.divf %69, %70 : vector<1x128xf32>
    %72 = vector.broadcast %71 : vector<1x128xf32> to vector<256x128xf32>
    %73 = arith.subf %65, %72 : vector<256x128xf32>
    %74 = arith.mulf %73, %73 : vector<256x128xf32>
    %cst_26 = arith.constant dense<0.000000e+00> : vector<128xf32>
    %75 = vector.multi_reduction <add>, %74, %cst_26 [0] : vector<256x128xf32> to vector<128xf32>
    %76 = vector.shape_cast %75 : vector<128xf32> to vector<1x128xf32>
    %cst_27 = arith.constant 2.560000e+02 : f32
    %77 = vector.broadcast %cst_27 : f32 to vector<1x128xf32>
    %78 = arith.divf %76, %77 : vector<1x128xf32>
    %cst_28 = arith.constant 9.99999974E-6 : f32
    %79 = vector.broadcast %cst_28 : f32 to vector<1x128xf32>
    %80 = arith.addf %78, %79 : vector<1x128xf32>
    %81 = math.rsqrt %80 : vector<1x128xf32>
    %82 = vector.broadcast %81 : vector<1x128xf32> to vector<256x128xf32>
    %83 = arith.mulf %73, %82 : vector<256x128xf32>
    %84 = arith.mulf %66, %83 : vector<256x128xf32>
    %85 = arith.addf %84, %67 : vector<256x128xf32>
    %cst_29 = arith.constant 0.000000e+00 : f32
    %86 = vector.broadcast %cst_29 : f32 to vector<256x128xf32>
    %87 = arith.maximumf %85, %86 : vector<256x128xf32>
    %c1 = arith.constant 1 : index
    %c0_30 = arith.constant 0 : index
    %c0_31 = arith.constant 0 : index
    %88 = vector.load %arg7[%c1, %c0_30, %c0_31] : memref<10x128x128xbf16, #tpu.memory_space<vmem>>, vector<1x128x128xbf16>
    %89 = vector.shape_cast %88 : vector<1x128x128xbf16> to vector<128x128xbf16>
    %c1_32 = arith.constant 1 : index
    %c0_33 = arith.constant 0 : index
    %c0_34 = arith.constant 0 : index
    %90 = vector.load %arg8[%c1_32, %c0_33, %c0_34] : memref<10x1x128xf32, #tpu.memory_space<vmem>>, vector<1x1x128xf32>
    %91 = vector.shape_cast %90 : vector<1x1x128xf32> to vector<1x128xf32>
    %92 = arith.truncf %87 : vector<256x128xf32> to vector<256x128xbf16>
    %cst_35 = arith.constant dense<0.000000e+00> : vector<256x128xf32>
    %93 = tpu.matmul %92, %89, %cst_35 {dimension_numbers = #tpu.dot_dimension_numbers<[1], [0], [0], [1], [0, 0, 1, 1], [], []>} : vector<256x128xbf16>, vector<128x128xbf16>, vector<256x128xf32> -> vector<256x128xf32>
    %94 = vector.broadcast %91 : vector<1x128xf32> to vector<256x128xf32>
    %95 = arith.addf %93, %94 : vector<256x128xf32>
    %96 = arith.addf %21, %95 : vector<256x128xf32>
    %97 = vector.extract_strided_slice %35 {offsets = [0, 256], sizes = [256, 128], strides = [1, 1]} : vector<256x2816xf32> to vector<256x128xf32>
    %98 = vector.extract_strided_slice %35 {offsets = [0, 1664], sizes = [256, 128], strides = [1, 1]} : vector<256x2816xf32> to vector<256x128xf32>
    %cst_36 = arith.constant dense<0.000000e+00> : vector<128xf32>
    %99 = vector.multi_reduction <add>, %96, %cst_36 [0] : vector<256x128xf32> to vector<128xf32>
    %100 = vector.shape_cast %99 : vector<128xf32> to vector<1x128xf32>
    %cst_37 = arith.constant 2.560000e+02 : f32
    %101 = vector.broadcast %cst_37 : f32 to vector<1x128xf32>
    %102 = arith.divf %100, %101 : vector<1x128xf32>
    %103 = vector.broadcast %102 : vector<1x128xf32> to vector<256x128xf32>
    %104 = arith.subf %96, %103 : vector<256x128xf32>
    %105 = arith.mulf %104, %104 : vector<256x128xf32>
    %cst_38 = arith.constant dense<0.000000e+00> : vector<128xf32>
    %106 = vector.multi_reduction <add>, %105, %cst_38 [0] : vector<256x128xf32> to vector<128xf32>
    %107 = vector.shape_cast %106 : vector<128xf32> to vector<1x128xf32>
    %cst_39 = arith.constant 2.560000e+02 : f32
    %108 = vector.broadcast %cst_39 : f32 to vector<1x128xf32>
    %109 = arith.divf %107, %108 : vector<1x128xf32>
    %cst_40 = arith.constant 9.99999974E-6 : f32
    %110 = vector.broadcast %cst_40 : f32 to vector<1x128xf32>
    %111 = arith.addf %109, %110 : vector<1x128xf32>
    %112 = math.rsqrt %111 : vector<1x128xf32>
    %113 = vector.broadcast %112 : vector<1x128xf32> to vector<256x128xf32>
    %114 = arith.mulf %104, %113 : vector<256x128xf32>
    %115 = arith.mulf %97, %114 : vector<256x128xf32>
    %116 = arith.addf %115, %98 : vector<256x128xf32>
    %cst_41 = arith.constant 0.000000e+00 : f32
    %117 = vector.broadcast %cst_41 : f32 to vector<256x128xf32>
    %118 = arith.maximumf %116, %117 : vector<256x128xf32>
    %c2 = arith.constant 2 : index
    %c0_42 = arith.constant 0 : index
    %c0_43 = arith.constant 0 : index
    %119 = vector.load %arg7[%c2, %c0_42, %c0_43] : memref<10x128x128xbf16, #tpu.memory_space<vmem>>, vector<1x128x128xbf16>
    %120 = vector.shape_cast %119 : vector<1x128x128xbf16> to vector<128x128xbf16>
    %c2_44 = arith.constant 2 : index
    %c0_45 = arith.constant 0 : index
    %c0_46 = arith.constant 0 : index
    %121 = vector.load %arg8[%c2_44, %c0_45, %c0_46] : memref<10x1x128xf32, #tpu.memory_space<vmem>>, vector<1x1x128xf32>
    %122 = vector.shape_cast %121 : vector<1x1x128xf32> to vector<1x128xf32>
    %123 = arith.truncf %118 : vector<256x128xf32> to vector<256x128xbf16>
    %cst_47 = arith.constant dense<0.000000e+00> : vector<256x128xf32>
    %124 = tpu.matmul %123, %120, %cst_47 {dimension_numbers = #tpu.dot_dimension_numbers<[1], [0], [0], [1], [0, 0, 1, 1], [], []>} : vector<256x128xbf16>, vector<128x128xbf16>, vector<256x128xf32> -> vector<256x128xf32>
    %125 = vector.broadcast %122 : vector<1x128xf32> to vector<256x128xf32>
    %126 = arith.addf %124, %125 : vector<256x128xf32>
    %127 = vector.extract_strided_slice %35 {offsets = [0, 384], sizes = [256, 128], strides = [1, 1]} : vector<256x2816xf32> to vector<256x128xf32>
    %128 = vector.extract_strided_slice %35 {offsets = [0, 1792], sizes = [256, 128], strides = [1, 1]} : vector<256x2816xf32> to vector<256x128xf32>
    %cst_48 = arith.constant dense<0.000000e+00> : vector<128xf32>
    %129 = vector.multi_reduction <add>, %126, %cst_48 [0] : vector<256x128xf32> to vector<128xf32>
    %130 = vector.shape_cast %129 : vector<128xf32> to vector<1x128xf32>
    %cst_49 = arith.constant 2.560000e+02 : f32
    %131 = vector.broadcast %cst_49 : f32 to vector<1x128xf32>
    %132 = arith.divf %130, %131 : vector<1x128xf32>
    %133 = vector.broadcast %132 : vector<1x128xf32> to vector<256x128xf32>
    %134 = arith.subf %126, %133 : vector<256x128xf32>
    %135 = arith.mulf %134, %134 : vector<256x128xf32>
    %cst_50 = arith.constant dense<0.000000e+00> : vector<128xf32>
    %136 = vector.multi_reduction <add>, %135, %cst_50 [0] : vector<256x128xf32> to vector<128xf32>
    %137 = vector.shape_cast %136 : vector<128xf32> to vector<1x128xf32>
    %cst_51 = arith.constant 2.560000e+02 : f32
    %138 = vector.broadcast %cst_51 : f32 to vector<1x128xf32>
    %139 = arith.divf %137, %138 : vector<1x128xf32>
    %cst_52 = arith.constant 9.99999974E-6 : f32
    %140 = vector.broadcast %cst_52 : f32 to vector<1x128xf32>
    %141 = arith.addf %139, %140 : vector<1x128xf32>
    %142 = math.rsqrt %141 : vector<1x128xf32>
    %143 = vector.broadcast %142 : vector<1x128xf32> to vector<256x128xf32>
    %144 = arith.mulf %134, %143 : vector<256x128xf32>
    %145 = arith.mulf %127, %144 : vector<256x128xf32>
    %146 = arith.addf %145, %128 : vector<256x128xf32>
    %cst_53 = arith.constant 0.000000e+00 : f32
    %147 = vector.broadcast %cst_53 : f32 to vector<256x128xf32>
    %148 = arith.maximumf %146, %147 : vector<256x128xf32>
    %c3 = arith.constant 3 : index
    %c0_54 = arith.constant 0 : index
    %c0_55 = arith.constant 0 : index
    %149 = vector.load %arg7[%c3, %c0_54, %c0_55] : memref<10x128x128xbf16, #tpu.memory_space<vmem>>, vector<1x128x128xbf16>
    %150 = vector.shape_cast %149 : vector<1x128x128xbf16> to vector<128x128xbf16>
    %c3_56 = arith.constant 3 : index
    %c0_57 = arith.constant 0 : index
    %c0_58 = arith.constant 0 : index
    %151 = vector.load %arg8[%c3_56, %c0_57, %c0_58] : memref<10x1x128xf32, #tpu.memory_space<vmem>>, vector<1x1x128xf32>
    %152 = vector.shape_cast %151 : vector<1x1x128xf32> to vector<1x128xf32>
    %153 = arith.truncf %148 : vector<256x128xf32> to vector<256x128xbf16>
    %cst_59 = arith.constant dense<0.000000e+00> : vector<256x128xf32>
    %154 = tpu.matmul %153, %150, %cst_59 {dimension_numbers = #tpu.dot_dimension_numbers<[1], [0], [0], [1], [0, 0, 1, 1], [], []>} : vector<256x128xbf16>, vector<128x128xbf16>, vector<256x128xf32> -> vector<256x128xf32>
    %155 = vector.broadcast %152 : vector<1x128xf32> to vector<256x128xf32>
    %156 = arith.addf %154, %155 : vector<256x128xf32>
    %157 = arith.addf %96, %156 : vector<256x128xf32>
    %158 = vector.extract_strided_slice %35 {offsets = [0, 512], sizes = [256, 128], strides = [1, 1]} : vector<256x2816xf32> to vector<256x128xf32>
    %159 = vector.extract_strided_slice %35 {offsets = [0, 1920], sizes = [256, 128], strides = [1, 1]} : vector<256x2816xf32> to vector<256x128xf32>
    %cst_60 = arith.constant dense<0.000000e+00> : vector<128xf32>
    %160 = vector.multi_reduction <add>, %157, %cst_60 [0] : vector<256x128xf32> to vector<128xf32>
    %161 = vector.shape_cast %160 : vector<128xf32> to vector<1x128xf32>
    %cst_61 = arith.constant 2.560000e+02 : f32
    %162 = vector.broadcast %cst_61 : f32 to vector<1x128xf32>
    %163 = arith.divf %161, %162 : vector<1x128xf32>
    %164 = vector.broadcast %163 : vector<1x128xf32> to vector<256x128xf32>
    %165 = arith.subf %157, %164 : vector<256x128xf32>
    %166 = arith.mulf %165, %165 : vector<256x128xf32>
    %cst_62 = arith.constant dense<0.000000e+00> : vector<128xf32>
    %167 = vector.multi_reduction <add>, %166, %cst_62 [0] : vector<256x128xf32> to vector<128xf32>
    %168 = vector.shape_cast %167 : vector<128xf32> to vector<1x128xf32>
    %cst_63 = arith.constant 2.560000e+02 : f32
    %169 = vector.broadcast %cst_63 : f32 to vector<1x128xf32>
    %170 = arith.divf %168, %169 : vector<1x128xf32>
    %cst_64 = arith.constant 9.99999974E-6 : f32
    %171 = vector.broadcast %cst_64 : f32 to vector<1x128xf32>
    %172 = arith.addf %170, %171 : vector<1x128xf32>
    %173 = math.rsqrt %172 : vector<1x128xf32>
    %174 = vector.broadcast %173 : vector<1x128xf32> to vector<256x128xf32>
    %175 = arith.mulf %165, %174 : vector<256x128xf32>
    %176 = arith.mulf %158, %175 : vector<256x128xf32>
    %177 = arith.addf %176, %159 : vector<256x128xf32>
    %cst_65 = arith.constant 0.000000e+00 : f32
    %178 = vector.broadcast %cst_65 : f32 to vector<256x128xf32>
    %179 = arith.maximumf %177, %178 : vector<256x128xf32>
    %c4 = arith.constant 4 : index
    %c0_66 = arith.constant 0 : index
    %c0_67 = arith.constant 0 : index
    %180 = vector.load %arg7[%c4, %c0_66, %c0_67] : memref<10x128x128xbf16, #tpu.memory_space<vmem>>, vector<1x128x128xbf16>
    %181 = vector.shape_cast %180 : vector<1x128x128xbf16> to vector<128x128xbf16>
    %c4_68 = arith.constant 4 : index
    %c0_69 = arith.constant 0 : index
    %c0_70 = arith.constant 0 : index
    %182 = vector.load %arg8[%c4_68, %c0_69, %c0_70] : memref<10x1x128xf32, #tpu.memory_space<vmem>>, vector<1x1x128xf32>
    %183 = vector.shape_cast %182 : vector<1x1x128xf32> to vector<1x128xf32>
    %184 = arith.truncf %179 : vector<256x128xf32> to vector<256x128xbf16>
    %cst_71 = arith.constant dense<0.000000e+00> : vector<256x128xf32>
    %185 = tpu.matmul %184, %181, %cst_71 {dimension_numbers = #tpu.dot_dimension_numbers<[1], [0], [0], [1], [0, 0, 1, 1], [], []>} : vector<256x128xbf16>, vector<128x128xbf16>, vector<256x128xf32> -> vector<256x128xf32>
    %186 = vector.broadcast %183 : vector<1x128xf32> to vector<256x128xf32>
    %187 = arith.addf %185, %186 : vector<256x128xf32>
    %188 = vector.extract_strided_slice %35 {offsets = [0, 640], sizes = [256, 128], strides = [1, 1]} : vector<256x2816xf32> to vector<256x128xf32>
    %189 = vector.extract_strided_slice %35 {offsets = [0, 2048], sizes = [256, 128], strides = [1, 1]} : vector<256x2816xf32> to vector<256x128xf32>
    %cst_72 = arith.constant dense<0.000000e+00> : vector<128xf32>
    %190 = vector.multi_reduction <add>, %187, %cst_72 [0] : vector<256x128xf32> to vector<128xf32>
    %191 = vector.shape_cast %190 : vector<128xf32> to vector<1x128xf32>
    %cst_73 = arith.constant 2.560000e+02 : f32
    %192 = vector.broadcast %cst_73 : f32 to vector<1x128xf32>
    %193 = arith.divf %191, %192 : vector<1x128xf32>
    %194 = vector.broadcast %193 : vector<1x128xf32> to vector<256x128xf32>
    %195 = arith.subf %187, %194 : vector<256x128xf32>
    %196 = arith.mulf %195, %195 : vector<256x128xf32>
    %cst_74 = arith.constant dense<0.000000e+00> : vector<128xf32>
    %197 = vector.multi_reduction <add>, %196, %cst_74 [0] : vector<256x128xf32> to vector<128xf32>
    %198 = vector.shape_cast %197 : vector<128xf32> to vector<1x128xf32>
    %cst_75 = arith.constant 2.560000e+02 : f32
    %199 = vector.broadcast %cst_75 : f32 to vector<1x128xf32>
    %200 = arith.divf %198, %199 : vector<1x128xf32>
    %cst_76 = arith.constant 9.99999974E-6 : f32
    %201 = vector.broadcast %cst_76 : f32 to vector<1x128xf32>
    %202 = arith.addf %200, %201 : vector<1x128xf32>
    %203 = math.rsqrt %202 : vector<1x128xf32>
    %204 = vector.broadcast %203 : vector<1x128xf32> to vector<256x128xf32>
    %205 = arith.mulf %195, %204 : vector<256x128xf32>
    %206 = arith.mulf %188, %205 : vector<256x128xf32>
    %207 = arith.addf %206, %189 : vector<256x128xf32>
    %cst_77 = arith.constant 0.000000e+00 : f32
    %208 = vector.broadcast %cst_77 : f32 to vector<256x128xf32>
    %209 = arith.maximumf %207, %208 : vector<256x128xf32>
    %c5 = arith.constant 5 : index
    %c0_78 = arith.constant 0 : index
    %c0_79 = arith.constant 0 : index
    %210 = vector.load %arg7[%c5, %c0_78, %c0_79] : memref<10x128x128xbf16, #tpu.memory_space<vmem>>, vector<1x128x128xbf16>
    %211 = vector.shape_cast %210 : vector<1x128x128xbf16> to vector<128x128xbf16>
    %c5_80 = arith.constant 5 : index
    %c0_81 = arith.constant 0 : index
    %c0_82 = arith.constant 0 : index
    %212 = vector.load %arg8[%c5_80, %c0_81, %c0_82] : memref<10x1x128xf32, #tpu.memory_space<vmem>>, vector<1x1x128xf32>
    %213 = vector.shape_cast %212 : vector<1x1x128xf32> to vector<1x128xf32>
    %214 = arith.truncf %209 : vector<256x128xf32> to vector<256x128xbf16>
    %cst_83 = arith.constant dense<0.000000e+00> : vector<256x128xf32>
    %215 = tpu.matmul %214, %211, %cst_83 {dimension_numbers = #tpu.dot_dimension_numbers<[1], [0], [0], [1], [0, 0, 1, 1], [], []>} : vector<256x128xbf16>, vector<128x128xbf16>, vector<256x128xf32> -> vector<256x128xf32>
    %216 = vector.broadcast %213 : vector<1x128xf32> to vector<256x128xf32>
    %217 = arith.addf %215, %216 : vector<256x128xf32>
    %218 = arith.addf %157, %217 : vector<256x128xf32>
    %219 = vector.extract_strided_slice %35 {offsets = [0, 768], sizes = [256, 128], strides = [1, 1]} : vector<256x2816xf32> to vector<256x128xf32>
    %220 = vector.extract_strided_slice %35 {offsets = [0, 2176], sizes = [256, 128], strides = [1, 1]} : vector<256x2816xf32> to vector<256x128xf32>
    %cst_84 = arith.constant dense<0.000000e+00> : vector<128xf32>
    %221 = vector.multi_reduction <add>, %218, %cst_84 [0] : vector<256x128xf32> to vector<128xf32>
    %222 = vector.shape_cast %221 : vector<128xf32> to vector<1x128xf32>
    %cst_85 = arith.constant 2.560000e+02 : f32
    %223 = vector.broadcast %cst_85 : f32 to vector<1x128xf32>
    %224 = arith.divf %222, %223 : vector<1x128xf32>
    %225 = vector.broadcast %224 : vector<1x128xf32> to vector<256x128xf32>
    %226 = arith.subf %218, %225 : vector<256x128xf32>
    %227 = arith.mulf %226, %226 : vector<256x128xf32>
    %cst_86 = arith.constant dense<0.000000e+00> : vector<128xf32>
    %228 = vector.multi_reduction <add>, %227, %cst_86 [0] : vector<256x128xf32> to vector<128xf32>
    %229 = vector.shape_cast %228 : vector<128xf32> to vector<1x128xf32>
    %cst_87 = arith.constant 2.560000e+02 : f32
    %230 = vector.broadcast %cst_87 : f32 to vector<1x128xf32>
    %231 = arith.divf %229, %230 : vector<1x128xf32>
    %cst_88 = arith.constant 9.99999974E-6 : f32
    %232 = vector.broadcast %cst_88 : f32 to vector<1x128xf32>
    %233 = arith.addf %231, %232 : vector<1x128xf32>
    %234 = math.rsqrt %233 : vector<1x128xf32>
    %235 = vector.broadcast %234 : vector<1x128xf32> to vector<256x128xf32>
    %236 = arith.mulf %226, %235 : vector<256x128xf32>
    %237 = arith.mulf %219, %236 : vector<256x128xf32>
    %238 = arith.addf %237, %220 : vector<256x128xf32>
    %cst_89 = arith.constant 0.000000e+00 : f32
    %239 = vector.broadcast %cst_89 : f32 to vector<256x128xf32>
    %240 = arith.maximumf %238, %239 : vector<256x128xf32>
    %c6 = arith.constant 6 : index
    %c0_90 = arith.constant 0 : index
    %c0_91 = arith.constant 0 : index
    %241 = vector.load %arg7[%c6, %c0_90, %c0_91] : memref<10x128x128xbf16, #tpu.memory_space<vmem>>, vector<1x128x128xbf16>
    %242 = vector.shape_cast %241 : vector<1x128x128xbf16> to vector<128x128xbf16>
    %c6_92 = arith.constant 6 : index
    %c0_93 = arith.constant 0 : index
    %c0_94 = arith.constant 0 : index
    %243 = vector.load %arg8[%c6_92, %c0_93, %c0_94] : memref<10x1x128xf32, #tpu.memory_space<vmem>>, vector<1x1x128xf32>
    %244 = vector.shape_cast %243 : vector<1x1x128xf32> to vector<1x128xf32>
    %245 = arith.truncf %240 : vector<256x128xf32> to vector<256x128xbf16>
    %cst_95 = arith.constant dense<0.000000e+00> : vector<256x128xf32>
    %246 = tpu.matmul %245, %242, %cst_95 {dimension_numbers = #tpu.dot_dimension_numbers<[1], [0], [0], [1], [0, 0, 1, 1], [], []>} : vector<256x128xbf16>, vector<128x128xbf16>, vector<256x128xf32> -> vector<256x128xf32>
    %247 = vector.broadcast %244 : vector<1x128xf32> to vector<256x128xf32>
    %248 = arith.addf %246, %247 : vector<256x128xf32>
    %249 = vector.extract_strided_slice %35 {offsets = [0, 896], sizes = [256, 128], strides = [1, 1]} : vector<256x2816xf32> to vector<256x128xf32>
    %250 = vector.extract_strided_slice %35 {offsets = [0, 2304], sizes = [256, 128], strides = [1, 1]} : vector<256x2816xf32> to vector<256x128xf32>
    %cst_96 = arith.constant dense<0.000000e+00> : vector<128xf32>
    %251 = vector.multi_reduction <add>, %248, %cst_96 [0] : vector<256x128xf32> to vector<128xf32>
    %252 = vector.shape_cast %251 : vector<128xf32> to vector<1x128xf32>
    %cst_97 = arith.constant 2.560000e+02 : f32
    %253 = vector.broadcast %cst_97 : f32 to vector<1x128xf32>
    %254 = arith.divf %252, %253 : vector<1x128xf32>
    %255 = vector.broadcast %254 : vector<1x128xf32> to vector<256x128xf32>
    %256 = arith.subf %248, %255 : vector<256x128xf32>
    %257 = arith.mulf %256, %256 : vector<256x128xf32>
    %cst_98 = arith.constant dense<0.000000e+00> : vector<128xf32>
    %258 = vector.multi_reduction <add>, %257, %cst_98 [0] : vector<256x128xf32> to vector<128xf32>
    %259 = vector.shape_cast %258 : vector<128xf32> to vector<1x128xf32>
    %cst_99 = arith.constant 2.560000e+02 : f32
    %260 = vector.broadcast %cst_99 : f32 to vector<1x128xf32>
    %261 = arith.divf %259, %260 : vector<1x128xf32>
    %cst_100 = arith.constant 9.99999974E-6 : f32
    %262 = vector.broadcast %cst_100 : f32 to vector<1x128xf32>
    %263 = arith.addf %261, %262 : vector<1x128xf32>
    %264 = math.rsqrt %263 : vector<1x128xf32>
    %265 = vector.broadcast %264 : vector<1x128xf32> to vector<256x128xf32>
    %266 = arith.mulf %256, %265 : vector<256x128xf32>
    %267 = arith.mulf %249, %266 : vector<256x128xf32>
    %268 = arith.addf %267, %250 : vector<256x128xf32>
    %cst_101 = arith.constant 0.000000e+00 : f32
    %269 = vector.broadcast %cst_101 : f32 to vector<256x128xf32>
    %270 = arith.maximumf %268, %269 : vector<256x128xf32>
    %c7 = arith.constant 7 : index
    %c0_102 = arith.constant 0 : index
    %c0_103 = arith.constant 0 : index
    %271 = vector.load %arg7[%c7, %c0_102, %c0_103] : memref<10x128x128xbf16, #tpu.memory_space<vmem>>, vector<1x128x128xbf16>
    %272 = vector.shape_cast %271 : vector<1x128x128xbf16> to vector<128x128xbf16>
    %c7_104 = arith.constant 7 : index
    %c0_105 = arith.constant 0 : index
    %c0_106 = arith.constant 0 : index
    %273 = vector.load %arg8[%c7_104, %c0_105, %c0_106] : memref<10x1x128xf32, #tpu.memory_space<vmem>>, vector<1x1x128xf32>
    %274 = vector.shape_cast %273 : vector<1x1x128xf32> to vector<1x128xf32>
    %275 = arith.truncf %270 : vector<256x128xf32> to vector<256x128xbf16>
    %cst_107 = arith.constant dense<0.000000e+00> : vector<256x128xf32>
    %276 = tpu.matmul %275, %272, %cst_107 {dimension_numbers = #tpu.dot_dimension_numbers<[1], [0], [0], [1], [0, 0, 1, 1], [], []>} : vector<256x128xbf16>, vector<128x128xbf16>, vector<256x128xf32> -> vector<256x128xf32>
    %277 = vector.broadcast %274 : vector<1x128xf32> to vector<256x128xf32>
    %278 = arith.addf %276, %277 : vector<256x128xf32>
    %279 = arith.addf %218, %278 : vector<256x128xf32>
    %280 = vector.extract_strided_slice %35 {offsets = [0, 1024], sizes = [256, 128], strides = [1, 1]} : vector<256x2816xf32> to vector<256x128xf32>
    %281 = vector.extract_strided_slice %35 {offsets = [0, 2432], sizes = [256, 128], strides = [1, 1]} : vector<256x2816xf32> to vector<256x128xf32>
    %cst_108 = arith.constant dense<0.000000e+00> : vector<128xf32>
    %282 = vector.multi_reduction <add>, %279, %cst_108 [0] : vector<256x128xf32> to vector<128xf32>
    %283 = vector.shape_cast %282 : vector<128xf32> to vector<1x128xf32>
    %cst_109 = arith.constant 2.560000e+02 : f32
    %284 = vector.broadcast %cst_109 : f32 to vector<1x128xf32>
    %285 = arith.divf %283, %284 : vector<1x128xf32>
    %286 = vector.broadcast %285 : vector<1x128xf32> to vector<256x128xf32>
    %287 = arith.subf %279, %286 : vector<256x128xf32>
    %288 = arith.mulf %287, %287 : vector<256x128xf32>
    %cst_110 = arith.constant dense<0.000000e+00> : vector<128xf32>
    %289 = vector.multi_reduction <add>, %288, %cst_110 [0] : vector<256x128xf32> to vector<128xf32>
    %290 = vector.shape_cast %289 : vector<128xf32> to vector<1x128xf32>
    %cst_111 = arith.constant 2.560000e+02 : f32
    %291 = vector.broadcast %cst_111 : f32 to vector<1x128xf32>
    %292 = arith.divf %290, %291 : vector<1x128xf32>
    %cst_112 = arith.constant 9.99999974E-6 : f32
    %293 = vector.broadcast %cst_112 : f32 to vector<1x128xf32>
    %294 = arith.addf %292, %293 : vector<1x128xf32>
    %295 = math.rsqrt %294 : vector<1x128xf32>
    %296 = vector.broadcast %295 : vector<1x128xf32> to vector<256x128xf32>
    %297 = arith.mulf %287, %296 : vector<256x128xf32>
    %298 = arith.mulf %280, %297 : vector<256x128xf32>
    %299 = arith.addf %298, %281 : vector<256x128xf32>
    %cst_113 = arith.constant 0.000000e+00 : f32
    %300 = vector.broadcast %cst_113 : f32 to vector<256x128xf32>
    %301 = arith.maximumf %299, %300 : vector<256x128xf32>
    %c8 = arith.constant 8 : index
    %c0_114 = arith.constant 0 : index
    %c0_115 = arith.constant 0 : index
    %302 = vector.load %arg7[%c8, %c0_114, %c0_115] : memref<10x128x128xbf16, #tpu.memory_space<vmem>>, vector<1x128x128xbf16>
    %303 = vector.shape_cast %302 : vector<1x128x128xbf16> to vector<128x128xbf16>
    %c8_116 = arith.constant 8 : index
    %c0_117 = arith.constant 0 : index
    %c0_118 = arith.constant 0 : index
    %304 = vector.load %arg8[%c8_116, %c0_117, %c0_118] : memref<10x1x128xf32, #tpu.memory_space<vmem>>, vector<1x1x128xf32>
    %305 = vector.shape_cast %304 : vector<1x1x128xf32> to vector<1x128xf32>
    %306 = arith.truncf %301 : vector<256x128xf32> to vector<256x128xbf16>
    %cst_119 = arith.constant dense<0.000000e+00> : vector<256x128xf32>
    %307 = tpu.matmul %306, %303, %cst_119 {dimension_numbers = #tpu.dot_dimension_numbers<[1], [0], [0], [1], [0, 0, 1, 1], [], []>} : vector<256x128xbf16>, vector<128x128xbf16>, vector<256x128xf32> -> vector<256x128xf32>
    %308 = vector.broadcast %305 : vector<1x128xf32> to vector<256x128xf32>
    %309 = arith.addf %307, %308 : vector<256x128xf32>
    %310 = vector.extract_strided_slice %35 {offsets = [0, 1152], sizes = [256, 128], strides = [1, 1]} : vector<256x2816xf32> to vector<256x128xf32>
    %311 = vector.extract_strided_slice %35 {offsets = [0, 2560], sizes = [256, 128], strides = [1, 1]} : vector<256x2816xf32> to vector<256x128xf32>
    %cst_120 = arith.constant dense<0.000000e+00> : vector<128xf32>
    %312 = vector.multi_reduction <add>, %309, %cst_120 [0] : vector<256x128xf32> to vector<128xf32>
    %313 = vector.shape_cast %312 : vector<128xf32> to vector<1x128xf32>
    %cst_121 = arith.constant 2.560000e+02 : f32
    %314 = vector.broadcast %cst_121 : f32 to vector<1x128xf32>
    %315 = arith.divf %313, %314 : vector<1x128xf32>
    %316 = vector.broadcast %315 : vector<1x128xf32> to vector<256x128xf32>
    %317 = arith.subf %309, %316 : vector<256x128xf32>
    %318 = arith.mulf %317, %317 : vector<256x128xf32>
    %cst_122 = arith.constant dense<0.000000e+00> : vector<128xf32>
    %319 = vector.multi_reduction <add>, %318, %cst_122 [0] : vector<256x128xf32> to vector<128xf32>
    %320 = vector.shape_cast %319 : vector<128xf32> to vector<1x128xf32>
    %cst_123 = arith.constant 2.560000e+02 : f32
    %321 = vector.broadcast %cst_123 : f32 to vector<1x128xf32>
    %322 = arith.divf %320, %321 : vector<1x128xf32>
    %cst_124 = arith.constant 9.99999974E-6 : f32
    %323 = vector.broadcast %cst_124 : f32 to vector<1x128xf32>
    %324 = arith.addf %322, %323 : vector<1x128xf32>
    %325 = math.rsqrt %324 : vector<1x128xf32>
    %326 = vector.broadcast %325 : vector<1x128xf32> to vector<256x128xf32>
    %327 = arith.mulf %317, %326 : vector<256x128xf32>
    %328 = arith.mulf %310, %327 : vector<256x128xf32>
    %329 = arith.addf %328, %311 : vector<256x128xf32>
    %cst_125 = arith.constant 0.000000e+00 : f32
    %330 = vector.broadcast %cst_125 : f32 to vector<256x128xf32>
    %331 = arith.maximumf %329, %330 : vector<256x128xf32>
    %c9 = arith.constant 9 : index
    %c0_126 = arith.constant 0 : index
    %c0_127 = arith.constant 0 : index
    %332 = vector.load %arg7[%c9, %c0_126, %c0_127] : memref<10x128x128xbf16, #tpu.memory_space<vmem>>, vector<1x128x128xbf16>
    %333 = vector.shape_cast %332 : vector<1x128x128xbf16> to vector<128x128xbf16>
    %c9_128 = arith.constant 9 : index
    %c0_129 = arith.constant 0 : index
    %c0_130 = arith.constant 0 : index
    %334 = vector.load %arg8[%c9_128, %c0_129, %c0_130] : memref<10x1x128xf32, #tpu.memory_space<vmem>>, vector<1x1x128xf32>
    %335 = vector.shape_cast %334 : vector<1x1x128xf32> to vector<1x128xf32>
    %336 = arith.truncf %331 : vector<256x128xf32> to vector<256x128xbf16>
    %cst_131 = arith.constant dense<0.000000e+00> : vector<256x128xf32>
    %337 = tpu.matmul %336, %333, %cst_131 {dimension_numbers = #tpu.dot_dimension_numbers<[1], [0], [0], [1], [0, 0, 1, 1], [], []>} : vector<256x128xbf16>, vector<128x128xbf16>, vector<256x128xf32> -> vector<256x128xf32>
    %338 = vector.broadcast %335 : vector<1x128xf32> to vector<256x128xf32>
    %339 = arith.addf %337, %338 : vector<256x128xf32>
    %340 = arith.addf %279, %339 : vector<256x128xf32>
    %341 = vector.extract_strided_slice %35 {offsets = [0, 1280], sizes = [256, 128], strides = [1, 1]} : vector<256x2816xf32> to vector<256x128xf32>
    %342 = vector.extract_strided_slice %35 {offsets = [0, 2688], sizes = [256, 128], strides = [1, 1]} : vector<256x2816xf32> to vector<256x128xf32>
    %cst_132 = arith.constant dense<0.000000e+00> : vector<128xf32>
    %343 = vector.multi_reduction <add>, %340, %cst_132 [0] : vector<256x128xf32> to vector<128xf32>
    %344 = vector.shape_cast %343 : vector<128xf32> to vector<1x128xf32>
    %cst_133 = arith.constant 2.560000e+02 : f32
    %345 = vector.broadcast %cst_133 : f32 to vector<1x128xf32>
    %346 = arith.divf %344, %345 : vector<1x128xf32>
    %347 = vector.broadcast %346 : vector<1x128xf32> to vector<256x128xf32>
    %348 = arith.subf %340, %347 : vector<256x128xf32>
    %349 = arith.mulf %348, %348 : vector<256x128xf32>
    %cst_134 = arith.constant dense<0.000000e+00> : vector<128xf32>
    %350 = vector.multi_reduction <add>, %349, %cst_134 [0] : vector<256x128xf32> to vector<128xf32>
    %351 = vector.shape_cast %350 : vector<128xf32> to vector<1x128xf32>
    %cst_135 = arith.constant 2.560000e+02 : f32
    %352 = vector.broadcast %cst_135 : f32 to vector<1x128xf32>
    %353 = arith.divf %351, %352 : vector<1x128xf32>
    %cst_136 = arith.constant 9.99999974E-6 : f32
    %354 = vector.broadcast %cst_136 : f32 to vector<1x128xf32>
    %355 = arith.addf %353, %354 : vector<1x128xf32>
    %356 = math.rsqrt %355 : vector<1x128xf32>
    %357 = vector.broadcast %356 : vector<1x128xf32> to vector<256x128xf32>
    %358 = arith.mulf %348, %357 : vector<256x128xf32>
    %359 = arith.mulf %341, %358 : vector<256x128xf32>
    %360 = arith.addf %359, %342 : vector<256x128xf32>
    %cst_137 = arith.constant 0.000000e+00 : f32
    %361 = vector.broadcast %cst_137 : f32 to vector<256x128xf32>
    %362 = arith.maximumf %360, %361 : vector<256x128xf32>
    %c0_138 = arith.constant 0 : index
    %c0_139 = arith.constant 0 : index
    %363 = vector.load %arg9[%c0_138, %c0_139] : memref<1x128xf32, #tpu.memory_space<vmem>>, vector<1x128xf32>
    %364 = vector.broadcast %363 : vector<1x128xf32> to vector<256x128xf32>
    %365 = arith.mulf %362, %364 : vector<256x128xf32>
    %cst_140 = arith.constant dense<0.000000e+00> : vector<256xf32>
    %366 = vector.multi_reduction <add>, %365, %cst_140 [1] : vector<256x128xf32> to vector<256xf32>
    %367 = vector.shape_cast %366 : vector<256xf32> to vector<256x1xf32>
    %c0_141 = arith.constant 0 : index
    %c0_142 = arith.constant 0 : index
    %368 = vector.load %arg10[%c0_141, %c0_142] : memref<1x1xf32, #tpu.memory_space<vmem>>, vector<1x1xf32>
    %369 = vector.broadcast %368 : vector<1x1xf32> to vector<256x1xf32>
    %370 = arith.addf %367, %369 : vector<256x1xf32>
    %c0_143 = arith.constant 0 : index
    %c0_144 = arith.constant 0 : index
    %371 = vector.load %arg11[%c0_143, %c0_144] : memref<256x1xf32, #tpu.memory_space<vmem>>, vector<256x1xf32>
    tpu.vector_store %arg11[%c0_143, %c0_144], %370 {strides = array<i32>} : memref<256x1xf32, #tpu.memory_space<vmem>>, vector<256x1xf32>,
    return
  }
  func.func @transform_0(%arg0: i32) -> (i32, i32) {
    %c0_i32 = arith.constant 0 : i32
    %c0_i32_0 = arith.constant 0 : i32
    %c0_i32_1 = arith.constant 0 : i32
    return %c0_i32, %c0_i32_0 : i32, i32
  }
  func.func @transform_1(%arg0: i32) -> (i32, i32) {
    %c0_i32 = arith.constant 0 : i32
    %c0_i32_0 = arith.constant 0 : i32
    %c0_i32_1 = arith.constant 0 : i32
    return %c0_i32, %c0_i32_0 : i32, i32
  }
  func.func @transform_2(%arg0: i32) -> (i32, i32) {
    %c0_i32 = arith.constant 0 : i32
    %c0_i32_0 = arith.constant 0 : i32
    %c0_i32_1 = arith.constant 0 : i32
    return %c0_i32, %c0_i32_0 : i32, i32
  }
  func.func @transform_3(%arg0: i32) -> (i32, i32) {
    %c0_i32 = arith.constant 0 : i32
    %c0_i32_0 = arith.constant 0 : i32
    %c0_i32_1 = arith.constant 0 : i32
    return %c0_i32, %c0_i32_0 : i32, i32
  }
  func.func @transform_4(%arg0: i32) -> (i32, i32) {
    %c0_i32 = arith.constant 0 : i32
    %c0_i32_0 = arith.constant 0 : i32
    %c0_i32_1 = arith.constant 0 : i32
    return %c0_i32, %c0_i32_0 : i32, i32
  }
  func.func @transform_5(%arg0: i32) -> (i32, i32) {
    %c0_i32 = arith.constant 0 : i32
    %c0_i32_0 = arith.constant 0 : i32
    %c0_i32_1 = arith.constant 0 : i32
    return %c0_i32, %c0_i32_0 : i32, i32
  }
  func.func @transform_6(%arg0: i32) -> (i32, i32, i32) {
    %c0_i32 = arith.constant 0 : i32
    %c0_i32_0 = arith.constant 0 : i32
    %c0_i32_1 = arith.constant 0 : i32
    %c0_i32_2 = arith.constant 0 : i32
    return %c0_i32, %c0_i32_0, %c0_i32_1 : i32, i32, i32
  }
  func.func @transform_7(%arg0: i32) -> (i32, i32, i32) {
    %c0_i32 = arith.constant 0 : i32
    %c0_i32_0 = arith.constant 0 : i32
    %c0_i32_1 = arith.constant 0 : i32
    %c0_i32_2 = arith.constant 0 : i32
    return %c0_i32, %c0_i32_0, %c0_i32_1 : i32, i32, i32
  }
  func.func @transform_8(%arg0: i32) -> (i32, i32) {
    %c0_i32 = arith.constant 0 : i32
    %c0_i32_0 = arith.constant 0 : i32
    %c0_i32_1 = arith.constant 0 : i32
    return %c0_i32, %c0_i32_0 : i32, i32
  }
  func.func @transform_9(%arg0: i32) -> (i32, i32) {
    %c0_i32 = arith.constant 0 : i32
    %c0_i32_0 = arith.constant 0 : i32
    %c0_i32_1 = arith.constant 0 : i32
    return %c0_i32, %c0_i32_0 : i32, i32
  }
  func.func @transform_10(%arg0: i32) -> (i32, i32) {
    %c0_i32 = arith.constant 0 : i32
    %c0_i32_0 = arith.constant 0 : i32
    %c0_i32_1 = arith.constant 0 : i32
    return %c0_i32, %c0_i32_0 : i32, i32
  }
}

</mosaic_0001>

<bundles_post_ra>
// kernel: tpu_custom_call.1
= control target key start
LH: loop header
LB: loop body
LE: loop exit
PB: predicated region body
PF: predicated region fallthrough
CT: control target
= control target key end

     0   :  { %s13563_s0 = inlined_call_operand.vmem [shape: f32[256,3], index: 0, kind: input, shape index: {}]   ;;  %s13564_s1 = inlined_call_operand.vmem [shape: f32[2,32], index: 1, kind: input, shape index: {}]   ;;  %s13565_s2 = inlined_call_operand.vmem [shape: f32[3,128], index: 2, kind: input, shape index: {}]   ;;  %s13566_s3 = inlined_call_operand.vmem [shape: f32[1,128], index: 3, kind: input, shape index: {}]   ;;  %s13567_s4 = inlined_call_operand.hbm [shape: bf16[32,2816], index: 4, kind: input, shape index: {}]   ;;  %s13568_s5 = inlined_call_operand.vmem [shape: f32[1,2816], index: 5, kind: input, shape index: {}]   ;;  %s13569_s6 = inlined_call_operand.hbm [shape: bf16[10,128,128], index: 6, kind: input, shape index: {}]   ;;  %s13570_s7 = inlined_call_operand.vmem [shape: f32[10,1,128], index: 7, kind: input, shape index: {}]   ;;  %s13571_s8 = inlined_call_operand.vmem [shape: f32[1,128], index: 8, kind: input, shape index: {}]   ;;  %s13572_s9 = inlined_call_operand.<no memory space> [shape: f32[1,1], index: 9, kind: input, shape index: {}]   ;;  %s13573_s10 = inlined_call_operand.vmem [shape: f32[256,1], index: 10, kind: output, shape index: {}]  }
   0x1   :  { %v15_v0 = vstv %s13572_s9 }
   0x2   :  { %16 = vst [vmem:[#allocation2] sm:$0x1] %v15_v0 }
   0x3   :  { %17 = vsyncpa [#allocation4], 0  ;;  %s31_s17 = sshll.u32 %s13567_s4, 4  ;;  %s32_s17 = int_to_ptr.hbm [resolvable:$true] %s31_s17 }
   0x4   :  { %18 = vsyncpa [#allocation6], 0  ;;  %s7347_s18 = smov [#allocation3]   ;;  %s46_s22 = sshll.u32 %s13569_s6, 4  ;;  %s47_s22 = int_to_ptr.hbm [resolvable:$true] %s46_s22 }
   0x5   :  { %s33_s19 = sshll.u32 %s7347_s18, 4  ;;  %s7348_s23 = smov 1408   ;;  %s34_s19 = int_to_ptr.vmem [resolvable:$true] %s33_s19 }
   0x6   :  { %s7349_s24 = smov 88   ;;  %s7350_s9 = smov [#allocation5]  }
   0x7   :  { %39 = dma.hbm_to_vmem [thread:$0]  %s32_s17, 5632, %s34_s19, [#allocation4], %s7348_s23, %s7348_s23, %s7349_s24  }
   0x8   :  { %s48_s25 = sshll.u32 %s7350_s9, 4  ;;  %s7351_s26 = smov 64   ;;  %s49_s25 = int_to_ptr.vmem [resolvable:$true] %s48_s25 }
   0x9   :  { %s7352_s27 = smov 4  }
   0xa   :  { %54 = dma.hbm_to_vmem [thread:$0]  %s47_s22, 10240, %s49_s25, [#allocation6], %s7351_s26, %s7351_s26, %s7352_s27  }
   0xb   :  { %7343 = dma.done.wait [#allocation4], 5632  }
   0xc   :  { %7344 = vsyncadd [#allocation4], 4294961664 }
   0xd   :  { %7345 = dma.done.wait [#allocation6], 10240  }
   0xe   :  { %7346 = vsyncadd [#allocation6], 4294957056  ;;  %v7353_v1 = vmov 2   ;;  %v7354_v2 = vmov 1   ;;  %v7355_v3 = vmov 0   ;;  %v72_v4 = vld [vmem:[%s13563_s0 + $0x10] sm:$0xff] }
   0xf   :  { %7207 = vset.pattern.permute.xlu0 %v7353_v1  ;;  %7204 = vset.pattern.permute.xlu1 %v7354_v2  ;;  %v70_v5 = vld [vmem:[%s13563_s0] sm:$0xff]  ;;  %v7438_v7 = vld [vmem:[%s13563_s0 + $0x8] sm:$0xff]  ;;  %v73_v9 = vld [vmem:[%s13563_s0 + $0x18] sm:$0xff]  ;;  %vm1034_vm0 = vcmask 261120  }
  0x10   :  { %7205 = vset.pattern.permute.xlu2 %v7355_v3  ;;  %491 = vperm.xlu0 %7207, %v70_v5   ;;  %v7433_v6 = vld [vmem:[%s13563_s0 + $0x20] sm:$0xff]  ;;  %v7446_v8 = vld [vmem:[%s13563_s0 + $0x48] sm:$0xff]  ;;  %v7458_v10 = vld [vmem:[%s13563_s0 + $0x70] sm:$0xff] }
  0x11   :  { %116 = vperm.xlu2 %7205, %v72_v4   ;;  %298 = vperm.xlu1 %7204, %v70_v5   ;;  %v7466_v11 = vld [vmem:[%s13563_s0 + $0x98] sm:$0xff]  ;;  %v7473_v12 = vld [vmem:[%s13563_s0 + $0xc0] sm:$0xff]  ;;  %v75_v13 = vld [vmem:[%s13563_s0 + $0x28] sm:$0xff] }
  0x12   :  { %v77_v14 = vld [vmem:[%s13563_s0 + $0x38] sm:$0xff]  ;;  %v76_v15 = vld [vmem:[%s13563_s0 + $0x30] sm:$0xff]  ;;  %v82_v16 = vld [vmem:[%s13563_s0 + $0x60] sm:$0xff] }
  0x13   :  { %v7496_v17 = vld [vmem:[%s13563_s0 + $0x88] sm:$0xff]  ;;  %v78_v18 = vld [vmem:[%s13563_s0 + $0x40] sm:$0xff]  ;;  %v7505_v19 = vld [vmem:[%s13563_s0 + $0xb0] sm:$0xff] }
  0x14   :  { %v7513_v20 = vld [vmem:[%s13563_s0 + $0xd8] sm:$0xff]  ;;  %v102_v22 = vld [vmem:[%s13565_s2] sm:$0x7]  ;;  %v80_v23 = vld [vmem:[%s13563_s0 + $0x50] sm:$0xff] }
  0x15   :  { %v7524_v24 = vperm.slane %v102_v22, 0  ;;  %v7528_v25 = vperm.slane %v102_v22, 1  ;;  %v81_v29 = vld [vmem:[%s13563_s0 + $0x58] sm:$0xff]  ;;  %v7540_v32 = vperm.slane %v102_v22, 2  ;;  %v83_v36 = vld [vmem:[%s13563_s0 + $0x68] sm:$0xff]  ;;  %v86_v56 = vld [vmem:[%s13563_s0 + $0x80] sm:$0xff] }
  0x16   :  { %v85_v51 = vld [vmem:[%s13563_s0 + $0x78] sm:$0xff] }
  0x18   :  { %507 = vperm.xlu0 %7207, %v7433_v6  }
  0x19   :  { %7206 = vset.pattern.permute.xlu2 %v7354_v2  ;;  %302 = vperm.xlu1 %7204, %v7438_v7  }
  0x1a   :  { %306 = vperm.xlu2 %7206, %v72_v4  }
  0x20   :  { %527 = vperm.xlu0 %7207, %v7446_v8  }
  0x21   :  { %7208 = vset.pattern.permute.xlu1 %v7353_v1 }
  0x22   :  { %7209 = vset.pattern.permute.xlu2 %v7355_v3  ;;  %495 = vperm.xlu1 %7208, %v7438_v7  }
  0x23   :  { %121 = vperm.xlu2 %7209, %v73_v9  }
  0x28   :  { %547 = vperm.xlu0 %7207, %v7458_v10  }
  0x2a   :  { %7210 = vset.pattern.permute.xlu1 %v7354_v2 }
  0x2b   :  { %7211 = vset.pattern.permute.xlu2 %v7353_v1  ;;  %310 = vperm.xlu1 %7210, %v73_v9  }
  0x2c   :  { %499 = vperm.xlu2 %7211, %v72_v4  }
  0x30   :  { %567 = vperm.xlu0 %7207, %v7466_v11  }
  0x33   :  { %314 = vperm.xlu1 %7210, %v7433_v6  }
  0x34   :  { %503 = vperm.xlu2 %7211, %v73_v9  }
  0x38   :  { %587 = vperm.xlu0 %7207, %v7473_v12  }
  0x3b   :  { %7212 = vset.pattern.permute.xlu1 %v7355_v3 }
  0x3c   :  { %7213 = vset.pattern.permute.xlu2 %v7354_v2  ;;  %131 = vperm.xlu1 %7212, %v75_v13  }
  0x3d   :  { %318 = vperm.xlu2 %7213, %v75_v13  }
  0x40   :  { %7238 = vset.pattern.permute.xlu0 %v7354_v2 }
  0x41   :  { %326 = vperm.xlu0 %7238, %v77_v14  }
  0x44   :  { %136 = vperm.xlu1 %7212, %v76_v15  }
  0x45   :  { %322 = vperm.xlu2 %7213, %v76_v15  }
  0x49   :  { %346 = vperm.xlu0 %7238, %v82_v16  }
  0x4c   :  { %7214 = vset.pattern.permute.xlu1 %v7353_v1 }
  0x4d   :  { %7215 = vset.pattern.permute.xlu2 %v7355_v3  ;;  %511 = vperm.xlu1 %7214, %v75_v13  }
  0x4e   :  { %141 = vperm.xlu2 %7215, %v77_v14  }
  0x51   :  { %366 = vperm.xlu0 %7238, %v7496_v17  }
  0x55   :  { %515 = vperm.xlu1 %7214, %v76_v15  }
  0x56   :  { %146 = vperm.xlu2 %7215, %v78_v18  }
  0x59   :  { %386 = vperm.xlu0 %7238, %v7505_v19  }
  0x5d   :  { %7216 = vset.pattern.permute.xlu1 %v7354_v2 }
  0x5e   :  { %7217 = vset.pattern.permute.xlu2 %v7353_v1  ;;  %330 = vperm.xlu1 %7216, %v78_v18  }
  0x5f   :  { %519 = vperm.xlu2 %7217, %v77_v14  }
  0x61   :  { %406 = vperm.xlu0 %7238, %v7513_v20  }
  0x66   :  { %334 = vperm.xlu1 %7216, %v7446_v8  }
  0x67   :  { %523 = vperm.xlu2 %7217, %v78_v18  }
  0x69   :  { %7241 = vset.pattern.permute.xlu0 %v7355_v3 }
  0x6a   :  { %106 = vperm.xlu0 %7241, %v70_v5  }
  0x6b   :  { %v117_v21 = vpop.permute.xlu2 %116 }
  0x6c   :  { %v267_v26 = vmul.f32 %v7524_v24, %v117_v21 }
  0x6e   :  { %7218 = vset.pattern.permute.xlu1 %v7355_v3 }
  0x6f   :  { %7219 = vset.pattern.permute.xlu2 %v7354_v2  ;;  %156 = vperm.xlu1 %7218, %v80_v23  }
  0x70   :  { %338 = vperm.xlu2 %7219, %v80_v23  }
  0x72   :  { %111 = vperm.xlu0 %7241, %v7438_v7  }
  0x74   :  { %v307_v27 = vpop.permute.xlu2 %306 }
  0x75   :  { %v428_v28 = vmul.f32 %v7528_v25, %v307_v27 }
  0x77   :  { %v460_v30 = vadd.f32 %v428_v28, %v267_v26  ;;  %161 = vperm.xlu1 %7218, %v81_v29  }
  0x78   :  { %342 = vperm.xlu2 %7219, %v81_v29  }
  0x7a   :  { %126 = vperm.xlu0 %7241, %v7433_v6  }
  0x7d   :  { %v122_v31 = vpop.permute.xlu2 %121 }
  0x7e   :  { %v268_v47 = vmul.f32 %v7524_v24, %v122_v31 }
  0x7f   :  { %7220 = vset.pattern.permute.xlu1 %v7353_v1 }
  0x80   :  { %7221 = vset.pattern.permute.xlu2 %v7355_v3  ;;  %531 = vperm.xlu1 %7220, %v80_v23  }
  0x81   :  { %166 = vperm.xlu2 %7221, %v82_v16  }
  0x82   :  { %151 = vperm.xlu0 %7241, %v7446_v8   ;;  %v7542_v33 = vpop.permute.xlu0 %491 }
  0x83   :  { %v7544_v34 = vpop.permute.xlu1 %298 }
  0x86   :  { %v500_v35 = vpop.permute.xlu2 %499 }
  0x87   :  { %v621_v37 = vmul.f32 %v7540_v32, %v500_v35 }
  0x88   :  { %535 = vperm.xlu1 %7220, %v81_v29  }
  0x89   :  { %v7550_v38 = vadd.f32 %v621_v37, %v460_v30  ;;  %171 = vperm.xlu2 %7221, %v83_v36  }
  0x8a   :  { %v7552_v39 = vpop.permute.xlu0 %507  ;;  %176 = vperm.xlu0 %7241, %v7458_v10  }
  0x8b   :  { %v7555_v40 = vpop.permute.xlu1 %302 }
  0x8e   :  { %v504_v41 = vpop.permute.xlu2 %503 }
  0x8f   :  { %v622_v48 = vmul.f32 %v7540_v32, %v504_v41 }
  0x90   :  { %7222 = vset.pattern.permute.xlu1 %v7354_v2 }
  0x91   :  { %7223 = vset.pattern.permute.xlu2 %v7353_v1  ;;  %350 = vperm.xlu1 %7222, %v83_v36  }
  0x92   :  { %539 = vperm.xlu2 %7223, %v82_v16   ;;  %v7559_v42 = vpop.permute.xlu0 %527  ;;  %201 = vperm.xlu0 %7241, %v7466_v11  }
  0x94   :  { %v7562_v43 = vpop.permute.xlu1 %495 }
  0x97   :  { %v319_v44 = vpop.permute.xlu2 %318 }
  0x98   :  { %v431_v59 = vmul.f32 %v7528_v25, %v319_v44 }
  0x99   :  { %354 = vperm.xlu1 %7222, %v7458_v10   ;;  %v88_v10 = vld [vmem:[%s13563_s0 + $0x90] sm:$0xff] }
  0x9a   :  { %543 = vperm.xlu2 %7223, %v83_v36   ;;  %v7565_v45 = vpop.permute.xlu0 %547  ;;  %226 = vperm.xlu0 %7241, %v7473_v12  }
  0x9d   :  { %v311_v46 = vpop.permute.xlu1 %310 }
  0x9e   :  { %v429_v49 = vmul.f32 %v7528_v25, %v311_v46 }
  0x9f   :  { %v323_v50 = vpop.permute.xlu2 %322 }
  0xa0   :  { %v461_v52 = vadd.f32 %v429_v49, %v268_v47  ;;  %v432_v7 = vmul.f32 %v7528_v25, %v323_v50 }
  0xa1   :  { %7224 = vset.pattern.permute.xlu1 %v7355_v3 }
  0xa2   :  { %7225 = vset.pattern.permute.xlu2 %v7354_v2  ;;  %v7576_v53 = vadd.f32 %v622_v48, %v461_v52  ;;  %181 = vperm.xlu1 %7224, %v85_v51   ;;  %v7578_v54 = vpop.permute.xlu0 %567 }
  0xa3   :  { %358 = vperm.xlu2 %7225, %v85_v51  }
  0xa5   :  { %v7580_v55 = vpop.permute.xlu1 %314 }
  0xa8   :  { %v142_v57 = vpop.permute.xlu2 %141 }
  0xa9   :  { %v272_v0 = vmul.f32 %v7524_v24, %v142_v57  ;;  %v619_v57 = vmul.f32 %v7540_v32, %v7542_v33 }
  0xaa   :  { %186 = vperm.xlu1 %7224, %v86_v56   ;;  %v7585_v58 = vpop.permute.xlu0 %587 }
  0xab   :  { %362 = vperm.xlu2 %7225, %v86_v56  }
  0xae   :  { %v132_v60 = vpop.permute.xlu1 %131 }
  0xaf   :  { %v270_v61 = vmul.f32 %v7524_v24, %v132_v60  ;;  %v426_v60 = vmul.f32 %v7528_v25, %v7544_v34 }
  0xb0   :  { %v147_v62 = vpop.permute.xlu2 %146 }
  0xb1   :  { %v463_v63 = vadd.f32 %v431_v59, %v270_v61  ;;  %v273_v37 = vmul.f32 %v7524_v24, %v147_v62 }
  0xb2   :  { %7226 = vset.pattern.permute.xlu1 %v7353_v1 }
  0xb3   :  { %7227 = vset.pattern.permute.xlu2 %v7355_v3  ;;  %551 = vperm.xlu1 %7226, %v85_v51   ;;  %v327_v4 = vpop.permute.xlu0 %326  ;;  %v91_v51 = vld [vmem:[%s13563_s0 + $0xa8] sm:$0xff] }
  0xb4   :  { %191 = vperm.xlu2 %7227, %v7496_v17   ;;  %v433_v5 = vmul.f32 %v7528_v25, %v327_v4 }
  0xb6   :  { %v137_v6 = vpop.permute.xlu1 %136  ;;  %v465_v8 = vadd.f32 %v433_v5, %v272_v0 }
  0xb7   :  { %v271_v9 = vmul.f32 %v7524_v24, %v137_v6 }
  0xb9   :  { %v520_v13 = vpop.permute.xlu2 %519  ;;  %v464_v14 = vadd.f32 %v432_v7, %v271_v9  ;;  %v427_v9 = vmul.f32 %v7528_v25, %v7555_v40 }
  0xba   :  { %v626_v15 = vmul.f32 %v7540_v32, %v520_v13  ;;  %v620_v13 = vmul.f32 %v7540_v32, %v7562_v43  ;;  %v623_v43 = vmul.f32 %v7540_v32, %v7552_v39 }
  0xbb   :  { %555 = vperm.xlu1 %7226, %v86_v56   ;;  %v347_v16 = vpop.permute.xlu0 %346 }
  0xbc   :  { %196 = vperm.xlu2 %7227, %v88_v10   ;;  %v7600_v18 = vadd.f32 %v626_v15, %v465_v8  ;;  %v438_v50 = vmul.f32 %v7528_v25, %v347_v16 }
  0xbf   :  { %v512_v21 = vpop.permute.xlu1 %511 }
  0xc0   :  { %v624_v22 = vmul.f32 %v7540_v32, %v512_v21 }
  0xc1   :  { %v524_v23 = vpop.permute.xlu2 %523 }
  0xc2   :  { %v7603_v26 = vadd.f32 %v624_v22, %v463_v63  ;;  %v627_v41 = vmul.f32 %v7540_v32, %v524_v23  ;;  %v93_v22 = vld [vmem:[%s13563_s0 + $0xb8] sm:$0xff] }
  0xc3   :  { %7228 = vset.pattern.permute.xlu1 %v7354_v2  ;;  %v7607_v27 = vpop.permute.xlu0 %366 }
  0xc4   :  { %7229 = vset.pattern.permute.xlu2 %v7353_v1  ;;  %370 = vperm.xlu1 %7228, %v88_v10  }
  0xc5   :  { %559 = vperm.xlu2 %7229, %v7496_v17   ;;  %v90_v17 = vld [vmem:[%s13563_s0 + $0xa0] sm:$0xff] }
  0xc7   :  { %v516_v28 = vpop.permute.xlu1 %515 }
  0xc8   :  { %v625_v29 = vmul.f32 %v7540_v32, %v516_v28 }
  0xca   :  { %v339_v30 = vpop.permute.xlu2 %338  ;;  %v7611_v31 = vadd.f32 %v625_v29, %v464_v14 }
  0xcb   :  { %v7613_v35 = vpop.permute.xlu0 %386  ;;  %v436_v0 = vmul.f32 %v7528_v25, %v339_v30 }
  0xcc   :  { %374 = vperm.xlu1 %7228, %v7466_v11  }
  0xcd   :  { %563 = vperm.xlu2 %7229, %v88_v10   ;;  %v7650_v10 = vld [vmem:[%s13563_s0 + $0xe8] sm:$0xff] }
  0xce   :  { %251 = vperm.xlu0 %7241, %v7650_v10  }
  0xd0   :  { %v331_v36 = vpop.permute.xlu1 %330 }
  0xd1   :  { %v434_v44 = vmul.f32 %v7528_v25, %v331_v36  ;;  %v430_v36 = vmul.f32 %v7528_v25, %v7580_v55  ;;  %v628_v55 = vmul.f32 %v7540_v32, %v7559_v42 }
  0xd2   :  { %v343_v46 = vpop.permute.xlu2 %342 }
  0xd3   :  { %v466_v47 = vadd.f32 %v434_v44, %v273_v37  ;;  %v7622_v48 = vpop.permute.xlu0 %406  ;;  %v437_v16 = vmul.f32 %v7528_v25, %v343_v46 }
  0xd4   :  { %7230 = vset.pattern.permute.xlu1 %v7355_v3 }
  0xd5   :  { %7231 = vset.pattern.permute.xlu2 %v7354_v2  ;;  %v7626_v11 = vadd.f32 %v627_v41, %v466_v47  ;;  %206 = vperm.xlu1 %7230, %v90_v17  }
  0xd6   :  { %378 = vperm.xlu2 %7231, %v90_v17   ;;  %7246 = vset.pattern.permute.xlu0 %v7353_v1 }
  0xd7   :  { %607 = vperm.xlu0 %7246, %v7650_v10  }
  0xd8   :  { %v335_v49 = vpop.permute.xlu1 %334 }
  0xdb   :  { %v167_v52 = vpop.permute.xlu2 %166 }
  0xdc   :  { %v277_v56 = vmul.f32 %v7524_v24, %v167_v52  ;;  %v107_v59 = vpop.permute.xlu0 %106 }
  0xdd   :  { %v265_v61 = vmul.f32 %v7524_v24, %v107_v59  ;;  %211 = vperm.xlu1 %7230, %v91_v51  }
  0xde   :  { %382 = vperm.xlu2 %7231, %v91_v51   ;;  %v470_v62 = vadd.f32 %v438_v50, %v277_v56 }
  0xdf   :  { %v458_v63 = vadd.f32 %v426_v60, %v265_v61 }
  0xe1   :  { %v7639_v4 = vadd.f32 %v619_v57, %v458_v63  ;;  %v157_v5 = vpop.permute.xlu1 %156 }
  0xe2   :  { %v275_v6 = vmul.f32 %v7524_v24, %v157_v5 }
  0xe3   :  { %v172_v7 = vpop.permute.xlu2 %171 }
  0xe4   :  { %v468_v8 = vadd.f32 %v436_v0, %v275_v6  ;;  %v112_v33 = vpop.permute.xlu0 %111  ;;  %v278_v63 = vmul.f32 %v7524_v24, %v172_v7 }
  0xe5   :  { %v266_v34 = vmul.f32 %v7524_v24, %v112_v33  ;;  %7232 = vset.pattern.permute.xlu1 %v7353_v1 }
  0xe6   :  { %7233 = vset.pattern.permute.xlu2 %v7355_v3  ;;  %571 = vperm.xlu1 %7232, %v90_v17  }
  0xe7   :  { %216 = vperm.xlu2 %7233, %v7505_v19   ;;  %v459_v14 = vadd.f32 %v427_v9, %v266_v34  ;;  %v633_v34 = vmul.f32 %v7540_v32, %v7565_v45 }
  0xe9   :  { %v7656_v40 = vadd.f32 %v620_v13, %v459_v14  ;;  %v162_v15 = vpop.permute.xlu1 %161  ;;  %v443_v13 = vmul.f32 %v7528_v25, %v7607_v27 }
  0xea   :  { %v276_v21 = vmul.f32 %v7524_v24, %v162_v15  ;;  %v96_v15 = vld [vmem:[%s13563_s0 + $0xd0] sm:$0xff] }
  0xec   :  { %v540_v23 = vpop.permute.xlu2 %539  ;;  %v469_v28 = vadd.f32 %v437_v16, %v276_v21  ;;  %v127_v29 = vpop.permute.xlu0 %126 }
  0xed   :  { %v631_v30 = vmul.f32 %v7540_v32, %v540_v23  ;;  %v269_v37 = vmul.f32 %v7524_v24, %v127_v29 }
  0xee   :  { %575 = vperm.xlu1 %7232, %v91_v51   ;;  %v435_v51 = vmul.f32 %v7528_v25, %v335_v49 }
  0xef   :  { %221 = vperm.xlu2 %7233, %v93_v22   ;;  %v7669_v41 = vadd.f32 %v631_v30, %v470_v62  ;;  %v462_v44 = vadd.f32 %v430_v36, %v269_v37 }
  0xf1   :  { %v7673_v46 = vadd.f32 %v623_v43, %v462_v44 }
  0xf2   :  { %v532_v17 = vpop.permute.xlu1 %531 }
  0xf3   :  { %v629_v47 = vmul.f32 %v7540_v32, %v532_v17  ;;  %v98_v17 = vld [vmem:[%s13563_s0 + $0xe0] sm:$0xff] }
  0xf4   :  { %v544_v39 = vpop.permute.xlu2 %543  ;;  %v152_v50 = vpop.permute.xlu0 %151 }
  0xf5   :  { %v7679_v52 = vadd.f32 %v629_v47, %v468_v8  ;;  %v274_v56 = vmul.f32 %v7524_v24, %v152_v50  ;;  %v632_v0 = vmul.f32 %v7540_v32, %v544_v39 }
  0xf6   :  { %7234 = vset.pattern.permute.xlu1 %v7354_v2 }
  0xf7   :  { %7235 = vset.pattern.permute.xlu2 %v7353_v1  ;;  %v467_v57 = vadd.f32 %v435_v51, %v274_v56  ;;  %390 = vperm.xlu1 %7234, %v93_v22  }
  0xf8   :  { %579 = vperm.xlu2 %7235, %v7505_v19   ;;  %v95_v19 = vld [vmem:[%s13563_s0 + $0xc8] sm:$0xff] }
  0xf9   :  { %v7685_v59 = vadd.f32 %v628_v55, %v467_v57 }
  0xfa   :  { %v536_v60 = vpop.permute.xlu1 %535 }
  0xfb   :  { %v630_v61 = vmul.f32 %v7540_v32, %v536_v60 }
  0xfc   :  { %v177_v33 = vpop.permute.xlu0 %176 }
  0xfd   :  { %v359_v42 = vpop.permute.xlu2 %358  ;;  %v7688_v62 = vadd.f32 %v630_v61, %v469_v28  ;;  %v279_v7 = vmul.f32 %v7524_v24, %v177_v33 }
  0xfe   :  { %v441_v45 = vmul.f32 %v7528_v25, %v359_v42 }
  0xff   :  { %394 = vperm.xlu1 %7234, %v7473_v12  }
 0x100   :  { %583 = vperm.xlu2 %7235, %v93_v22  }
 0x103   :  { %v351_v49 = vpop.permute.xlu1 %350 }
 0x104   :  { %v439_v5 = vmul.f32 %v7528_v25, %v351_v49 }
 0x105   :  { %v363_v6 = vpop.permute.xlu2 %362 }
 0x106   :  { %v471_v8 = vadd.f32 %v439_v5, %v278_v63  ;;  %v442_v37 = vmul.f32 %v7528_v25, %v363_v6 }
 0x107   :  { %7236 = vset.pattern.permute.xlu1 %v7355_v3 }
 0x108   :  { %7237 = vset.pattern.permute.xlu2 %v7354_v2  ;;  %v7699_v12 = vadd.f32 %v632_v0, %v471_v8  ;;  %231 = vperm.xlu1 %7236, %v95_v19  }
 0x109   :  { %398 = vperm.xlu2 %7237, %v95_v19  }
 0x10b   :  { %v355_v9 = vpop.permute.xlu1 %354 }
 0x10c   :  { %v440_v14 = vmul.f32 %v7528_v25, %v355_v9 }
 0x10e   :  { %v192_v16 = vpop.permute.xlu2 %191  ;;  %v472_v21 = vadd.f32 %v440_v14, %v279_v7  ;;  %v202_v7 = vpop.permute.xlu0 %201 }
 0x10f   :  { %v282_v22 = vmul.f32 %v7524_v24, %v192_v16  ;;  %v284_v9 = vmul.f32 %v7524_v24, %v202_v7 }
 0x110   :  { %v7711_v23 = vadd.f32 %v633_v34, %v472_v21  ;;  %236 = vperm.xlu1 %7236, %v96_v15  }
 0x111   :  { %402 = vperm.xlu2 %7237, %v96_v15   ;;  %v475_v28 = vadd.f32 %v443_v13, %v282_v22  ;;  %v448_v13 = vmul.f32 %v7528_v25, %v7613_v35 }
 0x114   :  { %v182_v29 = vpop.permute.xlu1 %181 }
 0x115   :  { %v280_v27 = vmul.f32 %v7524_v24, %v182_v29 }
 0x116   :  { %v197_v30 = vpop.permute.xlu2 %196 }
 0x117   :  { %v473_v43 = vadd.f32 %v441_v45, %v280_v27  ;;  %v283_v5 = vmul.f32 %v7524_v24, %v197_v30 }
 0x118   :  { %7239 = vset.pattern.permute.xlu1 %v7353_v1 }
 0x119   :  { %7240 = vset.pattern.permute.xlu2 %v7355_v3  ;;  %591 = vperm.xlu1 %7239, %v95_v19  }
 0x11a   :  { %241 = vperm.xlu2 %7240, %v7513_v20  }
 0x11c   :  { %v187_v36 = vpop.permute.xlu1 %186 }
 0x11d   :  { %v281_v44 = vmul.f32 %v7524_v24, %v187_v36 }
 0x11f   :  { %v560_v47 = vpop.permute.xlu2 %559  ;;  %v474_v39 = vadd.f32 %v442_v37, %v281_v44 }
 0x120   :  { %v636_v50 = vmul.f32 %v7540_v32, %v560_v47 }
 0x121   :  { %595 = vperm.xlu1 %7239, %v96_v15  }
 0x122   :  { %246 = vperm.xlu2 %7240, %v98_v17   ;;  %v7724_v55 = vadd.f32 %v636_v50, %v475_v28 }
 0x125   :  { %v552_v51 = vpop.permute.xlu1 %551 }
 0x126   :  { %v634_v56 = vmul.f32 %v7540_v32, %v552_v51 }
 0x127   :  { %v564_v57 = vpop.permute.xlu2 %563 }
 0x128   :  { %v7727_v60 = vadd.f32 %v634_v56, %v473_v43  ;;  %v637_v6 = vmul.f32 %v7540_v32, %v564_v57  ;;  %v7077_v57 = vld [vmem:[#allocation3 + $0xbc] sm:$0xf] }
 0x129   :  { %7242 = vset.pattern.permute.xlu1 %v7354_v2 }
 0x12a   :  { %7243 = vset.pattern.permute.xlu2 %v7353_v1  ;;  %410 = vperm.xlu1 %7242, %v98_v17  }
 0x12b   :  { %599 = vperm.xlu2 %7243, %v7513_v20   ;;  %v100_v20 = vld [vmem:[%s13563_s0 + $0xf0] sm:$0xff] }
 0x12d   :  { %v556_v61 = vpop.permute.xlu1 %555 }
 0x12e   :  { %v635_v42 = vmul.f32 %v7540_v32, %v556_v61  ;;  %v6627_v61 = vld [vmem:[#allocation3 + $0x110] sm:$0xf0] }
 0x130   :  { %v379_v49 = vpop.permute.xlu2 %378  ;;  %v7733_v63 = vadd.f32 %v635_v42, %v474_v39  ;;  %v6630_v42 = vor.u32 %v7077_v57, %v6627_v61  ;;  %v7081_v57 = vld [vmem:[#allocation3 + $0xdc] sm:$0xf]  ;;  %v6659_v61 = vld [vmem:[#allocation3 + $0x130] sm:$0xf0] }
 0x131   :  { %v446_v35 = vmul.f32 %v7528_v25, %v379_v49  ;;  %v7779_v49 = vld [vmem:[%s13566_s3] ss:$0 sm:$0xff] }
 0x132   :  { %414 = vperm.xlu1 %7242, %v7650_v10   ;;  %1083 = vmatpush.bf16.msra.mxu3 %v6630_v42  ;;  %v6662_v42 = vor.u32 %v7081_v57, %v6659_v61  ;;  %v7888_v57 = vadd.f32 %v7779_v49, %v7727_v60 }
 0x133   :  { %603 = vperm.xlu2 %7243, %v98_v17  }
 0x134   :  { %13706 = vst [vmem:[#allocation16_spill] sm:$0xff] %v7888_v57 }
 0x136   :  { %v371_v0 = vpop.permute.xlu1 %370 }
 0x137   :  { %v444_v19 = vmul.f32 %v7528_v25, %v371_v0 }
 0x138   :  { %v383_v8 = vpop.permute.xlu2 %382 }
 0x139   :  { %v476_v33 = vadd.f32 %v444_v19, %v283_v5  ;;  %v447_v30 = vmul.f32 %v7528_v25, %v383_v8  ;;  %v7055_v5 = vld [vmem:[#allocation3 + $0xc] sm:$0xf] }
 0x13a   :  { %7244 = vset.pattern.permute.xlu1 %v7355_v3  ;;  %v101_v3 = vld [vmem:[%s13563_s0 + $0xf8] sm:$0xff] }
 0x13b   :  { %7245 = vset.pattern.permute.xlu2 %v7354_v2  ;;  %v7744_v10 = vadd.f32 %v637_v6, %v476_v33  ;;  %256 = vperm.xlu1 %7244, %v100_v20   ;;  %v638_v2 = vmul.f32 %v7540_v32, %v7578_v54  ;;  %v6539_v6 = vld [vmem:[#allocation3 + $0x60] sm:$0xf0]  ;;  %v7785_v33 = vadd.f32 %v7779_v49, %v7656_v40 }
 0x13c   :  { %418 = vperm.xlu2 %7245, %v100_v20  }
 0x13d   :  { %v7903_v60 = vadd.f32 %v7779_v49, %v7744_v10 }
 0x13e   :  { %v375_v34 = vpop.permute.xlu1 %374 }
 0x13f   :  { %v445_v14 = vmul.f32 %v7528_v25, %v375_v34  ;;  %v718_v34 = vld [vmem:[%s13564_s1] sm:$0x3]  ;;  %13709 = vst [vmem:[#allocation19_spill] sm:$0xff] %v7903_v60 }
 0x141   :  { %v217_v15 = vpop.permute.xlu2 %216  ;;  %v477_v16 = vadd.f32 %v445_v14, %v284_v9  ;;  %v7798_v14 = vpack.c.bf16 %v718_v34, %v718_v34  ;;  %v7855_v34 = vadd.f32 %v7779_v49, %v7685_v59 }
 0x142   :  { %v287_v21 = vmul.f32 %v7524_v24, %v217_v15  ;;  %v7806_v15 = vadd.f32 %v7779_v49, %v7550_v38 }
 0x143   :  { %v7756_v22 = vadd.f32 %v638_v2, %v477_v16  ;;  %261 = vperm.xlu1 %7244, %v101_v3   ;;  %v7817_v16 = vadd.f32 %v7779_v49, %v7673_v46  ;;  %13700 = vst [vmem:[#allocation10_spill] sm:$0xff] %v7855_v34 }
 0x144   :  { %v7758_v28 = vadd.f32 %v448_v13, %v287_v21  ;;  %422 = vperm.xlu2 %7245, %v101_v3   ;;  %v7796_v13 = vadd.f32 %v7779_v49, %v7639_v4  ;;  %v7813_v4 = vadd.f32 %v7779_v49, %v7576_v53  ;;  %v7079_v21 = vld [vmem:[#allocation3 + $0xcc] sm:$0xf] }
 0x146   :  { %v1368_v40 = vadd.f32 %v7785_v33, %v7796_v13 }
 0x147   :  { %v207_v45 = vpop.permute.xlu1 %206 }
 0x148   :  { %v285_v29 = vmul.f32 %v7524_v24, %v207_v45  ;;  %v1369_v2 = vadd.f32 %v1368_v40, %v7806_v15 }
 0x149   :  { %v222_v43 = vpop.permute.xlu2 %221 }
 0x14a   :  { %v478_v27 = vadd.f32 %v446_v35, %v285_v29  ;;  %v288_v19 = vmul.f32 %v7524_v24, %v222_v43  ;;  %v6643_v35 = vld [vmem:[#allocation3 + $0x120] sm:$0xf0]  ;;  %v1370_v38 = vadd.f32 %v1369_v2, %v7813_v4 }
 0x14b   :  { %7247 = vset.pattern.permute.xlu1 %v7353_v1  ;;  %v6646_v29 = vor.u32 %v7079_v21, %v6643_v35  ;;  %v6529_v21 = vld [vmem:[#allocation3] sm:$0xf]  ;;  %v7065_v35 = vld [vmem:[#allocation3 + $0x54] sm:$0xf0] }
 0x14c   :  { %7248 = vset.pattern.permute.xlu2 %v7353_v1  ;;  %611 = vperm.xlu1 %7247, %v100_v20   ;;  %v6542_v20 = vor.u32 %v7055_v5, %v6539_v6  ;;  %v6617_v5 = vld [vmem:[#allocation3 + $0xb0] sm:$0xf]  ;;  %v7087_v6 = vld [vmem:[#allocation3 + $0x104] sm:$0xf0] }
 0x14d   :  { %615 = vperm.xlu2 %7248, %v101_v3  }
 0x14e   :  { %1084 = vmatpush.bf16.msra.mxu3 %v6542_v20  ;;  %v6618_v20 = vor.u32 %v7087_v6, %v6617_v5  ;;  %v7899_v6 = vadd.f32 %v7779_v49, %v7724_v55 }
 0x14f   :  { %v212_v54 = vpop.permute.xlu1 %211 }
 0x150   :  { %v286_v36 = vmul.f32 %v7524_v24, %v212_v54  ;;  %v7057_v54 = vld [vmem:[#allocation3 + $0x1c] sm:$0xf]  ;;  %1044 = vmatpush.bf16.msra.mxu0 %v6618_v20  ;;  %13708 = vst [vmem:[#allocation18_spill] sm:$0xff] %v7899_v6 }
 0x151   :  { %6706 = vmatmul.msk.bf16.vlgmr.msra.gmra.mxu3 %vm1034_vm0, %v7798_v14 }
 0x152   :  { %v479_v37 = vadd.f32 %v447_v30, %v286_v36  ;;  %v7767_v47 = vpop.permute.xlu2 %579  ;;  %1135 = vmatpush.bf16.msrb.mxu3 %v6646_v29  ;;  %v6555_v30 = vld [vmem:[#allocation3 + $0x70] sm:$0xf0]  ;;  %v7827_v36 = vadd.f32 %v7779_v49, %v7603_v26  ;;  %v7843_v26 = vadd.f32 %v7779_v49, %v7600_v18  ;;  %v6571_v18 = vld [vmem:[#allocation3 + $0x80] sm:$0xf0]  ;;  %v6530_v29 = vor.u32 %v7065_v35, %v6529_v21 }
 0x153   :  { %v6558_v53 = vor.u32 %v7057_v54, %v6555_v30  ;;  %v641_v10 = vmul.f32 %v7540_v32, %v7767_v47 }
 0x154   :  { %1045 = vmatpush.bf16.msra.mxu0 %v6530_v29 }
 0x156   :  { %1136 = vmatpush.bf16.msrb.mxu3 %v6558_v53 }
 0x157   :  { %6703 = vmatmul.msk.bf16.vlgmr.msra.gmra.mxu0 %vm1034_vm0, %v7798_v14 }
 0x158   :  { %v572_v44 = vpop.permute.xlu1 %571 }
 0x159   :  { %v639_v17 = vmul.f32 %v7540_v32, %v572_v44 }
 0x15a   :  { %v7772_v1 = vpop.permute.xlu2 %583  ;;  %1187 = vmatpush.bf16.msra.mxu3 %v6662_v42 }
 0x15b   :  { %v7769_v39 = vadd.f32 %v639_v17, %v478_v27  ;;  %v1371_v27 = vadd.f32 %v1370_v38, %v7817_v16  ;;  %v7860_v38 = vadd.f32 %v7779_v49, %v7679_v52  ;;  %v7874_v52 = vadd.f32 %v7779_v49, %v7669_v41 }
 0x15c   :  { %v642_v35 = vmul.f32 %v7540_v32, %v7772_v1  ;;  %v673_v1 = vadd.f32 %v641_v10, %v7758_v28 }
 0x15d   :  { %v1372_v46 = vadd.f32 %v1371_v27, %v7827_v36  ;;  %13701 = vst [vmem:[#allocation11_spill] sm:$0xff] %v7860_v38  ;;  %v7867_v27 = vadd.f32 %v7779_v49, %v7688_v62  ;;  %v7883_v62 = vadd.f32 %v7779_v49, %v7711_v23  ;;  %v227_v23 = vpop.permute.xlu0 %226  ;;  %v7916_v21 = vadd.f32 %v7779_v49, %v7769_v39 }
 0x15e   :  { %13703 = vst [vmem:[#allocation13_spill] sm:$0xff] %v7874_v52  ;;  %v7944_v28 = vadd.f32 %v7779_v49, %v673_v1 }
 0x15f   :  { %13702 = vst [vmem:[#allocation12_spill] sm:$0xff] %v7867_v27 }
 0x160   :  { %v576_v50 = vpop.permute.xlu1 %575  ;;  %13705 = vst [vmem:[#allocation15_spill] sm:$0xff] %v7883_v62 }
 0x161   :  { %v640_v51 = vmul.f32 %v7540_v32, %v576_v50  ;;  %6710 = vmatmul.msk.bf16.vlgmr.msrb.gmra.mxu3 %vm1034_vm0, %v7798_v14  ;;  %13711 = vst [vmem:[#allocation21_spill] sm:$0xff] %v7916_v21 }
 0x162   :  { %13713 = vst [vmem:[#allocation23_spill] sm:$0xff] %v7944_v28 }
 0x163   :  { %v7774_v56 = vadd.f32 %v640_v51, %v479_v37  ;;  %v7787_v7 = vpop.permute.xlu2 %398  ;;  %v7832_v37 = vadd.f32 %v7779_v49, %v7611_v31  ;;  %v7848_v31 = vadd.f32 %v7779_v49, %v7626_v11 }
 0x165   :  { %v1373_v17 = vadd.f32 %v1372_v46, %v7832_v37  ;;  %13699 = vst [vmem:[#allocation9_spill] sm:$0xff] %v7848_v31  ;;  %v7878_v46 = vadd.f32 %v7779_v49, %v7699_v12  ;;  %v7893_v12 = vadd.f32 %v7779_v49, %v7733_v63  ;;  %v7908_v63 = vadd.f32 %v7779_v49, %v7756_v22 }
 0x166   :  { %v7925_v29 = vadd.f32 %v7779_v49, %v7774_v56 }
 0x167   :  { %v1374_v51 = vadd.f32 %v1373_v17, %v7843_v26  ;;  %13704 = vst [vmem:[#allocation14_spill] sm:$0xff] %v7878_v46 }
 0x168   :  { %13707 = vst [vmem:[#allocation17_spill] sm:$0xff] %v7893_v12 }
 0x169   :  { %v391_v0 = vpop.permute.xlu1 %390  ;;  %13710 = vst [vmem:[#allocation20_spill] sm:$0xff] %v7908_v63 }
 0x16a   :  { %v449_v8 = vmul.f32 %v7528_v25, %v391_v0  ;;  %v1375_v0 = vadd.f32 %v1374_v51, %v7848_v31  ;;  %13712 = vst [vmem:[#allocation22_spill] sm:$0xff] %v7925_v29 }
 0x16b   :  { %v7819_v45 = vpop.permute.xlu2 %402 }
 0x16c   :  { %v7789_v9 = vadd.f32 %v449_v8, %v288_v19  ;;  %v7059_v19 = vld [vmem:[#allocation3 + $0x2c] sm:$0xf]  ;;  %v1376_v11 = vadd.f32 %v1375_v0, %v7855_v34 }
 0x16d   :  { %v6574_v2 = vor.u32 %v7059_v19, %v6571_v18  ;;  %v289_v18 = vmul.f32 %v7524_v24, %v227_v23 }
 0x16e   :  { %v1377_v59 = vadd.f32 %v1376_v11, %v7860_v38 }
 0x16f   :  { %1188 = vmatpush.bf16.msra.mxu3 %v6574_v2 }
 0x170   :  { %v1378_v53 = vadd.f32 %v1377_v59, %v7867_v27 }
 0x171   :  { %v7808_v3 = vpop.permute.xlu1 %394 }
 0x172   :  { %6714 = vmatmul.msk.bf16.vlgmr.msra.gmra.mxu3 %vm1034_vm0, %v7798_v14  ;;  %v1379_v17 = vadd.f32 %v1378_v53, %v7874_v52  ;;  %v450_v2 = vmul.f32 %v7528_v25, %v7808_v3  ;;  %v451_v3 = vmul.f32 %v7528_v25, %v7787_v7  ;;  %v643_v53 = vmul.f32 %v7540_v32, %v7585_v58 }
 0x174   :  { %v7836_v44 = vpop.permute.xlu2 %241  ;;  %v1380_v51 = vadd.f32 %v1379_v17, %v7878_v46  ;;  %v482_v59 = vadd.f32 %v450_v2, %v289_v18  ;;  %v674_v17 = vadd.f32 %v642_v35, %v7789_v9 }
 0x176   :  { %v1381_v41 = vadd.f32 %v1380_v51, %v7883_v62  ;;  %v252_v51 = vpop.permute.xlu0 %251  ;;  %v7947_v9 = vadd.f32 %v7779_v49, %v674_v17 }
 0x178   :  { %v1382_v0 = vadd.f32 %v1381_v41, %v7888_v57  ;;  %13714 = vst [vmem:[#allocation24_spill] sm:$0xff] %v7947_v9 }
 0x17a   :  { %v7823_v43 = vpop.permute.xlu1 %231  ;;  %v1383_v5 = vadd.f32 %v1382_v0, %v7893_v12 }
 0x17b   :  { %v290_v39 = vmul.f32 %v7524_v24, %v7823_v43  ;;  %v452_v43 = vmul.f32 %v7528_v25, %v7819_v45  ;;  %v292_v45 = vmul.f32 %v7524_v24, %v7836_v44 }
 0x17c   :  { %v7851_v8 = vpop.permute.xlu2 %246  ;;  %v1384_v20 = vadd.f32 %v1383_v5, %v7899_v6  ;;  %v675_v5 = vadd.f32 %v643_v53, %v482_v59  ;;  %v294_v53 = vmul.f32 %v7524_v24, %v252_v51 }
 0x17d   :  { %v483_v58 = vadd.f32 %v451_v3, %v290_v39  ;;  %v293_v10 = vmul.f32 %v7524_v24, %v7851_v8 }
 0x17e   :  { %v1385_v55 = vadd.f32 %v1384_v20, %v7903_v60  ;;  %v608_v39 = vpop.permute.xlu0 %607 }
 0x180   :  { %v1386_v22 = vadd.f32 %v1385_v55, %v7908_v63  ;;  %v7952_v55 = vadd.f32 %v7779_v49, %v675_v5 }
 0x182   :  { %v7839_v50 = vpop.permute.xlu1 %236  ;;  %v1387_v47 = vadd.f32 %v1386_v22, %v7916_v21  ;;  %13715 = vst [vmem:[#allocation25_spill] sm:$0xff] %v7952_v55  ;;  %v453_v22 = vmul.f32 %v7528_v25, %v7622_v48 }
 0x183   :  { %v291_v56 = vmul.f32 %v7524_v24, %v7839_v50 }
 0x184   :  { %v1388_v7 = vadd.f32 %v1387_v47, %v7925_v29  ;;  %v485_v8 = vadd.f32 %v453_v22, %v292_v45  ;;  %v7356_v22 = vmov 256.0  }
 0x185   :  { %v600_v30 = vpop.permute.xlu2 %599  ;;  %v484_v20 = vadd.f32 %v452_v43, %v291_v56  ;;  %v648_v56 = vmul.f32 %v7540_v32, %v608_v39  ;;  %7262 = vrcp.f32 %v7356_v22 }
 0x186   :  { %v1389_v2 = vadd.f32 %v1388_v7, %v7944_v28 }
 0x188   :  { %v1390_v3 = vadd.f32 %v1389_v2, %v7947_v9 }
 0x18b   :  { %v592_v40 = vpop.permute.xlu1 %591  ;;  %v7263_v39 = vpop.eup %7262 }
 0x18c   :  { %v644_v41 = vmul.f32 %v7540_v32, %v592_v40  ;;  %vm1410_vm1 = vweird.f32 %v7263_v39 }
 0x18d   :  { %v604_v42 = vpop.permute.xlu2 %603 }
 0x18e   :  { %v676_v50 = vadd.f32 %v644_v41, %v483_v58  ;;  %v647_v47 = vmul.f32 %v7540_v32, %v604_v42 }
 0x190   :  { %v7964_v59 = vadd.f32 %v7779_v49, %v676_v50 }
 0x192   :  { %13716 = vst [vmem:[#allocation26_spill] sm:$0xff] %v7964_v59 }
 0x193   :  { %v596_v54 = vpop.permute.xlu1 %595 }
 0x194   :  { %v645_v23 = vmul.f32 %v7540_v32, %v596_v54 }
 0x196   :  { %v419_v11 = vpop.permute.xlu2 %418  ;;  %v677_v54 = vadd.f32 %v645_v23, %v484_v20 }
 0x197   :  { %v456_v58 = vmul.f32 %v7528_v25, %v419_v11 }
 0x198   :  { %v7970_v17 = vadd.f32 %v7779_v49, %v677_v54 }
 0x19a   :  { %13717 = vst [vmem:[#allocation27_spill] sm:$0xff] %v7970_v17 }
 0x19c   :  { %v411_v61 = vpop.permute.xlu1 %410 }
 0x19d   :  { %v454_v40 = vmul.f32 %v7528_v25, %v411_v61  ;;  %v646_v61 = vmul.f32 %v7540_v32, %v600_v30 }
 0x19e   :  { %v423_v18 = vpop.permute.xlu2 %422 }
 0x19f   :  { %v486_v44 = vadd.f32 %v454_v40, %v293_v10  ;;  %v678_v30 = vadd.f32 %v646_v61, %v485_v8  ;;  %v457_v20 = vmul.f32 %v7528_v25, %v423_v18 }
 0x1a1   :  { %v679_v7 = vadd.f32 %v647_v47, %v486_v44  ;;  %v7980_v50 = vadd.f32 %v7779_v49, %v678_v30 }
 0x1a3   :  { %13718 = vst [vmem:[#allocation28_spill] sm:$0xff] %v7980_v50  ;;  %v7983_v40 = vadd.f32 %v7779_v49, %v679_v7  ;;  %v7088_v7 = vld [vmem:[#allocation3 + $0x10c] sm:$0xf0] }
 0x1a4   :  { %v415_v19 = vpop.permute.xlu1 %414 }
 0x1a5   :  { %v455_v35 = vmul.f32 %v7528_v25, %v415_v19  ;;  %v1391_v19 = vadd.f32 %v1390_v3, %v7952_v55  ;;  %13719 = vst [vmem:[#allocation29_spill] sm:$0xff] %v7983_v40 }
 0x1a7   :  { %v487_v48 = vadd.f32 %v455_v35, %v294_v53  ;;  %v1392_v41 = vadd.f32 %v1391_v19, %v7964_v59  ;;  %v616_v5 = vpop.permute.xlu2 %615 }
 0x1a8   :  { %v650_v45 = vmul.f32 %v7540_v32, %v616_v5  ;;  %v7089_v5 = vld [vmem:[#allocation3 + $0x114] sm:$0xf0] }
 0x1a9   :  { %v1393_v51 = vadd.f32 %v1392_v41, %v7970_v17  ;;  %v680_v42 = vadd.f32 %v648_v56, %v487_v48  ;;  %v6625_v41 = vld [vmem:[#allocation3 + $0xb8] sm:$0xf] }
 0x1ab   :  { %v1394_v54 = vadd.f32 %v1393_v51, %v7980_v50  ;;  %v7988_v35 = vadd.f32 %v7779_v49, %v680_v42  ;;  %v6633_v51 = vld [vmem:[#allocation3 + $0xc0] sm:$0xf] }
 0x1ad   :  { %v257_v0 = vpop.permute.xlu1 %256  ;;  %13720 = vst [vmem:[#allocation30_spill] sm:$0xff] %v7988_v35  ;;  %v1395_v25 = vadd.f32 %v1394_v54, %v7983_v40 }
 0x1ae   :  { %v295_v23 = vmul.f32 %v7524_v24, %v257_v0 }
 0x1af   :  { %v1396_v3 = vadd.f32 %v1395_v25, %v7988_v35 }
 0x1b0   :  { %v488_v11 = vadd.f32 %v456_v58, %v295_v23  ;;  %v6537_v23 = vld [vmem:[#allocation3 + $0x8] sm:$0xf] }
 0x1b5   :  { %v262_v1 = vpop.permute.xlu1 %261 }
 0x1b6   :  { %v296_v43 = vmul.f32 %v7524_v24, %v262_v1  ;;  %v1406_v1 = vmul.f32 256.0, %v7263_v39 }
 0x1b8   :  { %v489_v2 = vadd.f32 %v457_v20, %v296_v43  ;;  %v1407_v19 = vsub.f32 1.0, %v1406_v1  ;;  %v6626_v43 = vor.u32 %v7088_v7, %v6625_v41  ;;  %v7066_v20 = vld [vmem:[#allocation3 + $0x5c] sm:$0xf0]  ;;  %v7091_v1 = vld [vmem:[#allocation3 + $0x124] sm:$0xf0] }
 0x1ba   :  { %v682_v0 = vadd.f32 %v650_v45, %v489_v2  ;;  %v1408_v30 = vmul.f32 %v7263_v39, %v1407_v19  ;;  %1070 = vmatpush.bf16.msra.mxu2 %v6626_v43  ;;  %v6538_v2 = vor.u32 %v7066_v20, %v6537_v23 }
 0x1bc   :  { %v7997_v53 = vadd.f32 %v7779_v49, %v682_v0  ;;  %v1409_v58 = vadd.f32 %v7263_v39, %v1408_v30 }
 0x1be   :  { %v612_v10 = vpop.permute.xlu1 %611  ;;  %13722 = vst [vmem:[#allocation32_spill] sm:$0xff] %v7997_v53  ;;  %1071 = vmatpush.bf16.msra.mxu2 %v6538_v2  ;;  %v8001_v54 = vsel %vm1410_vm1, %v7263_v39, %v1409_v58  ;;  %v6641_v39 = vld [vmem:[#allocation3 + $0xc8] sm:$0xf] }
 0x1bf   :  { %v649_v24 = vmul.f32 %v7540_v32, %v612_v10  ;;  %13723 = vst [vmem:[#allocation33_spill] sm:$0xff] %v8001_v54 }
 0x1c1   :  { %v681_v18 = vadd.f32 %v649_v24, %v488_v11  ;;  %6705 = vmatmul.msk.bf16.vlgmr.msra.gmra.mxu2 %vm1034_vm0, %v7798_v14 }
 0x1c3   :  { %v7994_v61 = vadd.f32 %v7779_v49, %v681_v18  ;;  %v6634_v49 = vor.u32 %v7089_v5, %v6633_v51  ;;  %v6545_v18 = vld [vmem:[#allocation3 + $0x10] sm:$0xf]  ;;  %v6561_v51 = vld [vmem:[#allocation3 + $0x20] sm:$0xf]  ;;  %v7069_v5 = vld [vmem:[#allocation3 + $0x74] sm:$0xf0] }
 0x1c4   :  { %v6562_v20 = vor.u32 %v7069_v5, %v6561_v51 }
 0x1c5   :  { %13721 = vst [vmem:[#allocation31_spill] sm:$0xff] %v7994_v61  ;;  %v1397_v44 = vadd.f32 %v1396_v3, %v7994_v61  ;;  %1096 = vmatpush.bf16.msrb.mxu0 %v6634_v49  ;;  %v7067_v3 = vld [vmem:[#allocation3 + $0x64] sm:$0xf0] }
 0x1c6   :  { %v6546_v41 = vor.u32 %v7067_v3, %v6545_v18 }
 0x1c7   :  { %v1398_v47 = vadd.f32 %v1397_v44, %v7997_v53  ;;  %v7090_v44 = vld [vmem:[#allocation3 + $0x11c] sm:$0xf0] }
 0x1c8   :  { %v6642_v7 = vor.u32 %v7090_v44, %v6641_v39 }
 0x1c9   :  { %v1399_v8 = vrot.slane %v1398_v47, 4  ;;  %1097 = vmatpush.bf16.msrb.mxu0 %v6546_v41 }
 0x1ca   :  { %1122 = vmatpush.bf16.msrb.mxu2 %v6642_v7  ;;  %v6665_v7 = vld [vmem:[#allocation3 + $0xe0] sm:$0xf] }
 0x1cb   :  { %v1400_v32 = vadd.f32 %v1399_v8, %v1398_v47  ;;  %v6649_v47 = vld [vmem:[#allocation3 + $0xd0] sm:$0xf] }
 0x1cc   :  { %v6650_v43 = vor.u32 %v7091_v1, %v6649_v47  ;;  %6707 = vmatmul.msk.bf16.vlgmr.msrb.gmra.mxu0 %vm1034_vm0, %v7798_v14  ;;  %v6657_v1 = vld [vmem:[#allocation3 + $0xd8] sm:$0xf] }
 0x1cd   :  { %v1401_v48 = vrot.slane %v1400_v32, 2 }
 0x1ce   :  { %1148 = vmatpush.bf16.msra.mxu0 %v6650_v43  ;;  %v7093_v43 = vld [vmem:[#allocation3 + $0x134] sm:$0xf0] }
 0x1cf   :  { %v1402_v56 = vadd.f32 %v1401_v48, %v1400_v32  ;;  %v6553_v48 = vld [vmem:[#allocation3 + $0x18] sm:$0xf] }
 0x1d1   :  { %v1403_v42 = vrot.slane %v1402_v56, 1 }
 0x1d2   :  { %1149 = vmatpush.bf16.msra.mxu0 %v6562_v20  ;;  %v7070_v20 = vld [vmem:[#allocation3 + $0x7c] sm:$0xf0] }
 0x1d3   :  { %v1404_v45 = vadd.f32 %v1403_v42, %v1402_v56  ;;  %v7068_v56 = vld [vmem:[#allocation3 + $0x6c] sm:$0xf0] }
 0x1d4   :  { %v6554_v23 = vor.u32 %v7068_v56, %v6553_v48 }
 0x1d5   :  { %v8006_v10 = vmul.f32 %v8001_v54, %v1404_v45 }
 0x1d6   :  { %1123 = vmatpush.bf16.msrb.mxu2 %v6554_v23  ;;  %v6569_v23 = vld [vmem:[#allocation3 + $0x28] sm:$0xf] }
 0x1d7   :  { %v8010_v11 = vsub.f32 %v7796_v13, %v8006_v10  ;;  %v8014_v22 = vsub.f32 %v7785_v33, %v8006_v10  ;;  %v8018_v24 = vsub.f32 %v7806_v15, %v8006_v10  ;;  %v8026_v8 = vsub.f32 %v7813_v4, %v8006_v10 }
 0x1d8   :  { %v8030_v32 = vsub.f32 %v7817_v16, %v8006_v10  ;;  %v8036_v42 = vsub.f32 %v7827_v36, %v8006_v10  ;;  %v8042_v2 = vsub.f32 %v7832_v37, %v8006_v10  ;;  %v8056_v39 = vsub.f32 %v7848_v31, %v8006_v10 }
 0x1d9   :  { %v1445_v25 = vmul.f32 %v8010_v11, %v8010_v11  ;;  %v1446_v0 = vmul.f32 %v8014_v22, %v8014_v22  ;;  %v1447_v19 = vmul.f32 %v8018_v24, %v8018_v24  ;;  %v1448_v49 = vmul.f32 %v8026_v8, %v8026_v8  ;;  %6709 = vmatmul.msk.bf16.vlgmr.msrb.gmra.mxu2 %vm1034_vm0, %v7798_v14 }
 0x1da   :  { %v1449_v45 = vmul.f32 %v8030_v32, %v8030_v32  ;;  %v1450_v18 = vmul.f32 %v8036_v42, %v8036_v42  ;;  %v1451_v44 = vmul.f32 %v8042_v2, %v8042_v2  ;;  %v8064_v48 = vsub.f32 %v7855_v34, %v8006_v10  ;;  %v6595_v34 = vld [vmem:[#allocation3 + $0x98] sm:$0xf0] }
 0x1db   :  { %v1477_v30 = vadd.f32 %v1446_v0, %v1445_v25  ;;  %v8050_v0 = vsub.f32 %v7843_v26, %v8006_v10  ;;  %v8070_v51 = vsub.f32 %v7860_v38, %v8006_v10  ;;  %v1453_v5 = vmul.f32 %v8056_v39, %v8056_v39  ;;  %v7098_v38 = vld [vmem:[#allocation5] sm:$0xff] }
 0x1dc   :  { %6711 = vmatmul.msk.bf16.vlgmr.msra.gmra.mxu0 %vm1034_vm0, %v7798_v14 }
 0x1dd   :  { %v1478_v58 = vadd.f32 %v1477_v30, %v1447_v19  ;;  %v7092_v19 = vld [vmem:[#allocation3 + $0x12c] sm:$0xf0]  ;;  %v1452_v56 = vmul.f32 %v8050_v0, %v8050_v0 }
 0x1de   :  { %v6658_v41 = vor.u32 %v7092_v19, %v6657_v1  ;;  %v8082_v1 = vsub.f32 %v7874_v52, %v8006_v10  ;;  %v1455_v19 = vmul.f32 %v8070_v51, %v8070_v51  ;;  %v8136_v52 = vsub.f32 %v7916_v21, %v8006_v10 }
 0x1df   :  { %v1479_v25 = vadd.f32 %v1478_v58, %v1448_v49  ;;  %v6666_v58 = vor.u32 %v7093_v43, %v6665_v7 }
 0x1e0   :  { %1174 = vmatpush.bf16.msra.mxu2 %v6658_v41  ;;  %v8088_v41 = vsub.f32 %v7878_v46, %v8006_v10  ;;  %v8130_v46 = vsub.f32 %v7908_v63, %v8006_v10 }
 0x1e1   :  { %v1480_v3 = vadd.f32 %v1479_v25, %v1449_v45  ;;  %v8076_v45 = vsub.f32 %v7867_v27, %v8006_v10  ;;  %v1454_v25 = vmul.f32 %v8064_v48, %v8064_v48  ;;  %1200 = vmatpush.bf16.msrb.mxu0 %v6666_v58 }
 0x1e3   :  { %v1481_v47 = vadd.f32 %v1480_v3, %v1450_v18  ;;  %v6570_v3 = vor.u32 %v7070_v20, %v6569_v23  ;;  %v1456_v7 = vmul.f32 %v8076_v45, %v8076_v45  ;;  %v8102_v23 = vsub.f32 %v7888_v57, %v8006_v10 }
 0x1e4   :  { %v1458_v20 = vmul.f32 %v8088_v41, %v8088_v41 }
 0x1e5   :  { %v1482_v30 = vadd.f32 %v1481_v47, %v1451_v44  ;;  %v6577_v44 = vld [vmem:[#allocation3 + $0x30] sm:$0xf]  ;;  %v7071_v47 = vld [vmem:[#allocation3 + $0x84] sm:$0xf0]  ;;  %1175 = vmatpush.bf16.msra.mxu2 %v6570_v3 }
 0x1e7   :  { %v1483_v49 = vadd.f32 %v1482_v30, %v1452_v56  ;;  %v6578_v30 = vor.u32 %v7071_v47, %v6577_v44  ;;  %v8112_v47 = vpop.f32.mrf.mxu3 }
 0x1e8   :  { %13724 = vst [vmem:[#allocation34_spill] sm:$0xff] %v8112_v47 }
 0x1e9   :  { %v1484_v18 = vadd.f32 %v1483_v49, %v1453_v5  ;;  %1201 = vmatpush.bf16.msrb.mxu0 %v6578_v30  ;;  %v8094_v5 = vsub.f32 %v7883_v62, %v8006_v10  ;;  %v1457_v49 = vmul.f32 %v8082_v1, %v8082_v1  ;;  %6713 = vmatmul.msk.bf16.vlgmr.msra.gmra.mxu2 %vm1034_vm0, %v7798_v14  ;;  %v6585_v62 = vld [vmem:[#allocation3 + $0x38] sm:$0xf] }
 0x1ea   :  { %v8118_v30 = vsub.f32 %v7899_v6, %v8006_v10  ;;  %v7072_v6 = vld [vmem:[#allocation3 + $0x8c] sm:$0xf0] }
 0x1eb   :  { %v1485_v56 = vadd.f32 %v1484_v18, %v1454_v25  ;;  %v8108_v18 = vsub.f32 %v7893_v12, %v8006_v10  ;;  %v1459_v3 = vmul.f32 %v8094_v5, %v8094_v5  ;;  %v7095_v12 = vld [vmem:[#allocation3 + $0x144] sm:$0xf0] }
 0x1ec   :  { %6715 = vmatmul.msk.bf16.vlgmr.msrb.gmra.mxu0 %vm1034_vm0, %v7798_v14 }
 0x1ed   :  { %v1486_v43 = vadd.f32 %v1485_v56, %v1455_v19  ;;  %v6673_v19 = vld [vmem:[#allocation3 + $0xe8] sm:$0xf]  ;;  %v7094_v56 = vld [vmem:[#allocation3 + $0x13c] sm:$0xf0] }
 0x1ef   :  { %v1487_v58 = vadd.f32 %v1486_v43, %v1456_v7  ;;  %v1460_v7 = vmul.f32 %v8102_v23, %v8102_v23 }
 0x1f1   :  { %v1488_v25 = vadd.f32 %v1487_v58, %v1457_v49  ;;  %v6674_v49 = vor.u32 %v7094_v56, %v6673_v19  ;;  %v6681_v58 = vld [vmem:[#allocation3 + $0xf0] sm:$0xf]  ;;  %v6586_v19 = vor.u32 %v7072_v6, %v6585_v62  ;;  %v6593_v56 = vld [vmem:[#allocation3 + $0x40] sm:$0xf]  ;;  %v1464_v62 = vmul.f32 %v8130_v46, %v8130_v46 }
 0x1f2   :  { %v6682_v57 = vor.u32 %v7095_v12, %v6681_v58  ;;  %v8142_v58 = vsub.f32 %v7925_v29, %v8006_v10  ;;  %v8148_v6 = vsub.f32 %v7944_v28, %v8006_v10  ;;  %v6609_v29 = vld [vmem:[#allocation3 + $0x50] sm:$0xf] }
 0x1f3   :  { %v1489_v44 = vadd.f32 %v1488_v25, %v1458_v20  ;;  %v8124_v20 = vsub.f32 %v7903_v60, %v8006_v10  ;;  %v1461_v25 = vmul.f32 %v8108_v18, %v8108_v18  ;;  %1226 = vmatpush.bf16.msrb.mxu2 %v6674_v49  ;;  %v7073_v60 = vld [vmem:[#allocation3 + $0x94] sm:$0xf0] }
 0x1f4   :  { %1252 = vmatpush.bf16.msra.mxu0 %v6682_v57  ;;  %v6594_v49 = vor.u32 %v7073_v60, %v6593_v56  ;;  %v6697_v60 = vld [vmem:[#allocation3 + $0x100] sm:$0xf]  ;;  %v7097_v56 = vld [vmem:[#allocation3 + $0x154] sm:$0xf0] }
 0x1f5   :  { %v1490_v43 = vadd.f32 %v1489_v44, %v1459_v3  ;;  %v1462_v3 = vmul.f32 %v8118_v30, %v8118_v30  ;;  %v1463_v12 = vmul.f32 %v8124_v20, %v8124_v20 }
 0x1f7   :  { %v1491_v47 = vadd.f32 %v1490_v43, %v1460_v7  ;;  %v1088_v43 = vpop.f32.mrf.mxu3  ;;  %1227 = vmatpush.bf16.msrb.mxu2 %v6586_v19 }
 0x1f8   :  { %1253 = vmatpush.bf16.msra.mxu0 %v6594_v49  ;;  %v6698_v49 = vor.u32 %v7097_v56, %v6697_v60  ;;  %v8172_v60 = vsub.f32 %v7964_v59, %v8006_v10 }
 0x1f9   :  { %v1492_v44 = vadd.f32 %v1491_v47, %v1461_v25  ;;  %v1465_v47 = vmul.f32 %v8136_v52, %v8136_v52 }
 0x1fa   :  { %6717 = vmatmul.msk.bf16.vlgmr.msrb.gmra.mxu2 %vm1034_vm0, %v7798_v14 }
 0x1fb   :  { %v1493_v7 = vadd.f32 %v1492_v44, %v1462_v3  ;;  %v6689_v3 = vld [vmem:[#allocation3 + $0xf8] sm:$0xf]  ;;  %v7096_v44 = vld [vmem:[#allocation3 + $0x14c] sm:$0xf0] }
 0x1fc   :  { %v6690_v19 = vor.u32 %v7096_v44, %v6689_v3  ;;  %1304 = vmatpush.bf16.msrb.mxu0 %v6698_v49  ;;  %v6601_v44 = vld [vmem:[#allocation3 + $0x48] sm:$0xf]  ;;  %v8178_v49 = vsub.f32 %v7970_v17, %v8006_v10 }
 0x1fd   :  { %v1494_v57 = vadd.f32 %v1493_v7, %v1463_v12  ;;  %v8156_v12 = vsub.f32 %v7947_v9, %v8006_v10  ;;  %v1466_v7 = vmul.f32 %v8142_v58, %v8142_v58  ;;  %v7074_v9 = vld [vmem:[#allocation3 + $0x9c] sm:$0xf0]  ;;  %6719 = vmatmul.msk.bf16.vlgmr.msra.gmra.mxu0 %vm1034_vm0, %v7798_v14 }
 0x1fe   :  { %1278 = vmatpush.bf16.msra.mxu2 %v6690_v19 }
 0x1ff   :  { %v1495_v25 = vadd.f32 %v1494_v57, %v1464_v62  ;;  %v8162_v62 = vsub.f32 %v7952_v55, %v8006_v10  ;;  %v1467_v57 = vmul.f32 %v8148_v6, %v8148_v6  ;;  %v8166_v3 = vpop.f32.mrf.mxu3  ;;  %v1468_v19 = vmul.f32 %v8156_v12, %v8156_v12 }
 0x200   :  { %13725 = vst [vmem:[#allocation35_spill] sm:$0xff] %v8166_v3 }
 0x201   :  { %v1496_v43 = vadd.f32 %v1495_v25, %v1465_v47  ;;  %v6602_v47 = vor.u32 %v7074_v9, %v6601_v44  ;;  %v7075_v25 = vld [vmem:[#allocation3 + $0xa4] sm:$0xf0]  ;;  %v1469_v3 = vmul.f32 %v8162_v62, %v8162_v62  ;;  %v8184_v44 = vsub.f32 %v7980_v50, %v8006_v10 }
 0x203   :  { %v1497_v28 = vadd.f32 %v1496_v43, %v1466_v7  ;;  %v6610_v7 = vor.u32 %v7075_v25, %v6609_v29  ;;  %v7105_v43 = vld [vmem:[#allocation5 + $0x38] sm:$0xff]  ;;  %1279 = vmatpush.bf16.msra.mxu2 %v6602_v47  ;;  %v8190_v47 = vsub.f32 %v7983_v40, %v8006_v10  ;;  %v1471_v25 = vmul.f32 %v8178_v49, %v8178_v49 }
 0x205   :  { %v1498_v56 = vadd.f32 %v1497_v28, %v1467_v57  ;;  %1305 = vmatpush.bf16.msrb.mxu0 %v6610_v7  ;;  %v1470_v28 = vmul.f32 %v8172_v60, %v8172_v60  ;;  %v7104_v57 = vld [vmem:[#allocation5 + $0x30] sm:$0xff]  ;;  %v1472_v7 = vmul.f32 %v8184_v44, %v8184_v44  ;;  %v1473_v40 = vmul.f32 %v8190_v47, %v8190_v47 }
 0x207   :  { %v1499_v9 = vadd.f32 %v1498_v56, %v1468_v19  ;;  %7178 = vmatpush.bf16.msrb.mxu2 %v7105_v43  ;;  %v1140_v19 = vpop.f32.mrf.mxu3  ;;  %v8196_v56 = vsub.f32 %v7988_v35, %v8006_v10 }
 0x208   :  { %v7102_v19 = vld [vmem:[#allocation5 + $0x20] sm:$0xff] }
 0x209   :  { %v1500_v29 = vadd.f32 %v1499_v9, %v1469_v3  ;;  %v7103_v3 = vld [vmem:[#allocation5 + $0x28] sm:$0xff]  ;;  %v8202_v9 = vsub.f32 %v7994_v61, %v8006_v10  ;;  %1738 = vmatpush.bf16.msra.mxu0 %v7105_v43  ;;  %v7100_v43 = vld [vmem:[#allocation5 + $0x10] sm:$0xff] }
 0x20a   :  { %6721 = vmatmul.msk.bf16.vlgmr.msra.gmra.mxu2 %vm1034_vm0, %v7798_v14 }
 0x20b   :  { %v1501_v17 = vadd.f32 %v1500_v29, %v1470_v28  ;;  %7179 = vmatpush.bf16.msrb.mxu2 %v7104_v57  ;;  %v8210_v28 = vsub.f32 %v7997_v53, %v8006_v10  ;;  %v1475_v61 = vmul.f32 %v8202_v9, %v8202_v9  ;;  %v7101_v53 = vld [vmem:[#allocation5 + $0x18] sm:$0xff] }
 0x20d   :  { %v1502_v50 = vadd.f32 %v1501_v17, %v1471_v25  ;;  %v1474_v17 = vmul.f32 %v8196_v56, %v8196_v56  ;;  %v1047_v25 = vpop.f32.mrf.mxu0  ;;  %v1476_v10 = vmul.f32 %v8210_v28, %v8210_v28  ;;  %1739 = vmatpush.bf16.msra.mxu0 %v7104_v57 }
 0x20e   :  { %6723 = vmatmul.msk.bf16.vlgmr.msrb.gmra.mxu0 %vm1034_vm0, %v7798_v14 }
 0x20f   :  { %v1503_v59 = vadd.f32 %v1502_v50, %v1472_v7  ;;  %7180 = vmatpush.bf16.msrb.mxu2 %v7103_v3  ;;  %v1190_v50 = vpop.f32.mrf.mxu3 }
 0x211   :  { %v1504_v29 = vadd.f32 %v1503_v59, %v1473_v40  ;;  %1740 = vmatpush.bf16.msra.mxu0 %v7103_v3 }
 0x213   :  { %v1505_v35 = vadd.f32 %v1504_v29, %v1474_v17  ;;  %7181 = vmatpush.bf16.msrb.mxu2 %v7102_v19  ;;  %v7099_v17 = vld [vmem:[#allocation5 + $0x8] sm:$0xff] }
 0x215   :  { %v1506_v7 = vadd.f32 %v1505_v35, %v1475_v61  ;;  %v1049_v40 = vpop.f32.mrf.mxu0  ;;  %1741 = vmatpush.bf16.msra.mxu0 %v7102_v19  ;;  %v8229_v19 = vld [vmem:[%s13568_s5] sm:$0xff] }
 0x217   :  { %v1507_v55 = vadd.f32 %v1506_v7, %v1476_v10  ;;  %7182 = vmatpush.bf16.msrb.mxu2 %v7101_v53  ;;  %v1192_v63 = vpop.f32.mrf.mxu3 }
 0x219   :  { %v1508_v59 = vrot.slane %v1507_v55, 4  ;;  %1742 = vmatpush.bf16.msra.mxu0 %v7101_v53 }
 0x21b   :  { %v1509_v21 = vadd.f32 %v1508_v59, %v1507_v55  ;;  %7183 = vmatpush.bf16.msrb.mxu2 %v7100_v43 }
 0x21d   :  { %v1510_v29 = vrot.slane %v1509_v21, 2  ;;  %1743 = vmatpush.bf16.msra.mxu0 %v7100_v43 }
 0x21f   :  { %v1511_v27 = vadd.f32 %v1510_v29, %v1509_v21  ;;  %7184 = vmatpush.bf16.msrb.mxu2 %v7099_v17  ;;  %v764_v21 = vld [vmem:[%s13568_s5 + $0x8] sm:$0xff] }
 0x220   :  { %v781_v10 = vperm.slane %v764_v21, 3 }
 0x221   :  { %v1512_v35 = vrot.slane %v1511_v27, 1  ;;  %1744 = vmatpush.bf16.msra.mxu0 %v7099_v17 }
 0x223   :  { %v1513_v61 = vadd.f32 %v1512_v35, %v1511_v27  ;;  %7185 = vmatpush.bf16.msrb.mxu2 %v7098_v38  ;;  %v770_v27 = vperm.slane %v8229_v19, 0 }
 0x225   :  { %v1514_v57 = vmul.f32 %v1513_v61, %v8001_v54  ;;  %1745 = vmatpush.bf16.msra.mxu0 %v7098_v38  ;;  %v1048_v59 = vadd.f32 %v1047_v25, %v770_v27  ;;  %v1191_v38 = vadd.f32 %v1190_v50, %v781_v10 }
 0x227   :  { %v1515_v3 = vadd.f32 1e-05, %v1514_v57  ;;  %v8232_v17 = vperm.slane %v1048_v59, 0  ;;  %v8236_v35 = vperm.slane %v1191_v38, 0 }
 0x229   :  { %7264 = vrsqrt.f32 %v1515_v3  ;;  %vm1522_vm3 = vweird.f32 %v1515_v3 }
 0x22f   :  { %v7265_v63 = vpop.eup %7264 }
 0x230   :  { %v1517_v55 = vmul.f32 %v7265_v63, %v1515_v3  ;;  %vm1523_vm2 = vweird.f32 %v7265_v63 }
 0x231   :  { %vm1524_vm4 = vmor %vm1522_vm3, %vm1523_vm2 }
 0x232   :  { %v1518_v53 = vmul.f32 %v7265_v63, %v1517_v55 }
 0x234   :  { %v1519_v7 = vmul.f32 0.5, %v1518_v53 }
 0x236   :  { %v1520_v40 = vsub.f32 1.5, %v1519_v7 }
 0x238   :  { %v1521_v43 = vmul.f32 %v7265_v63, %v1520_v40 }
 0x23a   :  { %v8234_v29 = vsel %vm1524_vm4, %v7265_v63, %v1521_v43 }
 0x23b   :  { %v1526_v61 = vmul.f32 %v8234_v29, %v8010_v11  ;;  %v1527_v57 = vmul.f32 %v8234_v29, %v8014_v22  ;;  %v1540_v25 = vmul.f32 %v8234_v29, %v8094_v5  ;;  %v1541_v50 = vmul.f32 %v8234_v29, %v8102_v23 }
 0x23c   :  { %v1528_v5 = vmul.f32 %v8234_v29, %v8018_v24  ;;  %v1529_v23 = vmul.f32 %v8234_v29, %v8026_v8 }
 0x23d   :  { %v1558_v3 = vmul.f32 %v1526_v61, %v8232_v17  ;;  %v1559_v21 = vmul.f32 %v1527_v57, %v8232_v17  ;;  %v1572_v63 = vmul.f32 %v1540_v25, %v8232_v17  ;;  %v1573_v55 = vmul.f32 %v1541_v50, %v8232_v17 }
 0x23e   :  { %v8258_v61 = vperm.slane %v1048_v59, 1  ;;  %v1542_v57 = vmul.f32 %v8234_v29, %v8108_v18  ;;  %v1560_v24 = vmul.f32 %v1528_v5, %v8232_v17  ;;  %v1561_v8 = vmul.f32 %v1529_v23, %v8232_v17 }
 0x23f   :  { %v1590_v27 = vadd.f32 %v1558_v3, %v8236_v35  ;;  %v1591_v11 = vadd.f32 %v1559_v21, %v8236_v35  ;;  %v1604_v22 = vadd.f32 %v1572_v63, %v8236_v35  ;;  %v1605_v53 = vadd.f32 %v1573_v55, %v8236_v35 }
 0x240   :  { %v1543_v3 = vmul.f32 %v8234_v29, %v8118_v30  ;;  %v8266_v21 = vperm.slane %v1191_v38, 1  ;;  %v1574_v63 = vmul.f32 %v1542_v57, %v8258_v61  ;;  %v1592_v55 = vadd.f32 %v1560_v24, %v8236_v35 }
 0x241   :  { %v1622_v10 = vmax.f32 %v1590_v27, 0.0  ;;  %v1623_v7 = vmax.f32 %v1591_v11, 0.0  ;;  %v1636_v40 = vmax.f32 %v1604_v22, 0.0  ;;  %v1637_v43 = vmax.f32 %v1605_v53, 0.0 }
 0x242   :  { %v1575_v59 = vmul.f32 %v1543_v3, %v8258_v61  ;;  %v1593_v18 = vadd.f32 %v1561_v8, %v8236_v35  ;;  %v1530_v27 = vmul.f32 %v8234_v29, %v8030_v32  ;;  %v1606_v30 = vadd.f32 %v1574_v63, %v8266_v21 }
 0x243   :  { %v1671_v25 = vpack.c.bf16 %v1623_v7, %v1622_v10  ;;  %v1678_v50 = vpack.c.bf16 %v1637_v43, %v1636_v40  ;;  %v1531_v11 = vmul.f32 %v8234_v29, %v8036_v42  ;;  %v1544_v38 = vmul.f32 %v8234_v29, %v8124_v20 }
 0x244   :  { %v1607_v22 = vadd.f32 %v1575_v59, %v8266_v21  ;;  %v1534_v53 = vmul.f32 %v8234_v29, %v8056_v39  ;;  %v1545_v5 = vmul.f32 %v8234_v29, %v8130_v46  ;;  %v1535_v23 = vmul.f32 %v8234_v29, %v8064_v48 }
 0x245   :  { %1746 = vmatmul.bf16.vlgmr.msra.gmra.mxu0 %v1671_v25  ;;  %1781 = vmatmul.bf16.vlgmr.msrb.gmra.mxu2 %v1678_v50  ;;  %v1624_v32 = vmax.f32 %v1592_v55, 0.0  ;;  %v1625_v10 = vmax.f32 %v1593_v18, 0.0  ;;  %v1562_v7 = vmul.f32 %v1530_v27, %v8232_v17  ;;  %v1638_v40 = vmax.f32 %v1606_v30, 0.0 }
 0x246   :  { %v1566_v42 = vmul.f32 %v1534_v53, %v8232_v17  ;;  %v1563_v43 = vmul.f32 %v1531_v11, %v8232_v17  ;;  %v1567_v20 = vmul.f32 %v1535_v23, %v8232_v17  ;;  %v1536_v39 = vmul.f32 %v8234_v29, %v8070_v51  ;;  %v8304_v51 = vpop.f32.mrf.mxu2 }
 0x247   :  { %v1639_v57 = vmax.f32 %v1607_v22, 0.0  ;;  %v1576_v46 = vmul.f32 %v1544_v38, %v8258_v61  ;;  %v1537_v48 = vmul.f32 %v8234_v29, %v8076_v45  ;;  %v1577_v50 = vmul.f32 %v1545_v5, %v8258_v61  ;;  %13726 = vst [vmem:[#allocation36_spill] sm:$0xff] %v8304_v51  ;;  %v7062_v51 = vld [vmem:[#allocation3 + $0x44] sm:$0xf] }
 0x248   :  { %v1598_v25 = vadd.f32 %v1566_v42, %v8236_v35  ;;  %v1599_v3 = vadd.f32 %v1567_v20, %v8236_v35  ;;  %v1568_v24 = vmul.f32 %v1536_v39, %v8232_v17  ;;  %v1550_v8 = vmul.f32 %v8234_v29, %v8162_v62 }
 0x249   :  { %v8302_v63 = vadd.f32 %v1562_v7, %v8236_v35  ;;  %v1569_v55 = vmul.f32 %v1537_v48, %v8232_v17  ;;  %v1551_v45 = vmul.f32 %v8234_v29, %v8172_v60  ;;  %v1672_v18 = vpack.c.bf16 %v1625_v10, %v1624_v32 }
 0x24a   :  { %v1630_v59 = vmax.f32 %v1598_v25, 0.0  ;;  %v8310_v27 = vadd.f32 %v1563_v43, %v8236_v35  ;;  %v1631_v30 = vmax.f32 %v1599_v3, 0.0  ;;  %v1600_v11 = vadd.f32 %v1568_v24, %v8236_v35 }
 0x24b   :  { %v1679_v22 = vpack.c.bf16 %v1639_v57, %v1638_v40  ;;  %v1601_v62 = vadd.f32 %v1569_v55, %v8236_v35  ;;  %v1582_v38 = vmul.f32 %v1550_v8, %v8258_v61  ;;  %v1583_v53 = vmul.f32 %v1551_v45, %v8258_v61 }
 0x24c   :  { %v1608_v5 = vadd.f32 %v1576_v46, %v8266_v21  ;;  %v8317_v23 = vpack.c.bf16 %v1631_v30, %v1630_v59  ;;  %v1626_v60 = vmax.f32 %v8302_v63, 0.0  ;;  %v1609_v32 = vadd.f32 %v1577_v50, %v8266_v21 }
 0x24d   :  { %v1632_v10 = vmax.f32 %v1600_v11, 0.0  ;;  %v1633_v7 = vmax.f32 %v1601_v62, 0.0  ;;  %v1627_v42 = vmax.f32 %v8310_v27, 0.0  ;;  %v1614_v40 = vadd.f32 %v1582_v38, %v8266_v21  ;;  %v8356_v38 = vpop.f32.mrf.mxu0 }
 0x24e   :  { %v1615_v43 = vadd.f32 %v1583_v53, %v8266_v21  ;;  %v1538_v20 = vmul.f32 %v8234_v29, %v8082_v1  ;;  %v1539_v57 = vmul.f32 %v8234_v29, %v8088_v41  ;;  %v1552_v46 = vmul.f32 %v8234_v29, %v8178_v49  ;;  %v1075_v8 = vpop.f32.mrf.mxu2  ;;  %13727 = vst [vmem:[#allocation37_spill] sm:$0xff] %v8356_v38 }
 0x24f   :  { %v8326_v39 = vpack.c.bf16 %v1633_v7, %v1632_v10  ;;  %v1553_v25 = vmul.f32 %v8234_v29, %v8184_v44  ;;  %v1646_v48 = vmax.f32 %v1614_v40, 0.0  ;;  %v1554_v24 = vmul.f32 %v8234_v29, %v8190_v47 }
 0x250   :  { %v1647_v50 = vmax.f32 %v1615_v43, 0.0  ;;  %v1570_v3 = vmul.f32 %v1538_v20, %v8232_v17  ;;  %v1571_v1 = vmul.f32 %v1539_v57, %v8232_v17  ;;  %v1584_v63 = vmul.f32 %v1552_v46, %v8258_v61 }
 0x251   :  { %v1585_v41 = vmul.f32 %v1553_v25, %v8258_v61  ;;  %v1555_v49 = vmul.f32 %v8234_v29, %v8196_v56  ;;  %v1586_v55 = vmul.f32 %v1554_v24, %v8258_v61  ;;  %v1556_v45 = vmul.f32 %v8234_v29, %v8202_v9 }
 0x252   :  { %v8342_v59 = vpack.c.bf16 %v1647_v50, %v1646_v48  ;;  %v1602_v44 = vadd.f32 %v1570_v3, %v8236_v35  ;;  %v1603_v47 = vadd.f32 %v1571_v1, %v8236_v35  ;;  %v1640_v40 = vmax.f32 %v1608_v5, 0.0 }
 0x253   :  { %v1617_v27 = vadd.f32 %v1585_v41, %v8266_v21  ;;  %v1587_v30 = vmul.f32 %v1555_v49, %v8258_v61  ;;  %v1618_v56 = vadd.f32 %v1586_v55, %v8266_v21  ;;  %v1588_v62 = vmul.f32 %v1556_v45, %v8258_v61 }
 0x254   :  { %v1634_v11 = vmax.f32 %v1602_v44, 0.0  ;;  %v1635_v53 = vmax.f32 %v1603_v47, 0.0  ;;  %v1641_v46 = vmax.f32 %v1609_v32, 0.0  ;;  %v1532_v8 = vmul.f32 %v8234_v29, %v8042_v2 }
 0x255   :  { %1751 = vmatmul.bf16.gmra.mxu0 %v1672_v18  ;;  %1786 = vmatmul.bf16.gmra.mxu2 %v1679_v22  ;;  %v1616_v18 = vadd.f32 %v1584_v63, %v8266_v21  ;;  %v1557_v22 = vmul.f32 %v8234_v29, %v8210_v28  ;;  %v1649_v10 = vmax.f32 %v1617_v27, 0.0  ;;  %v1619_v7 = vadd.f32 %v1587_v30, %v8266_v21  ;;  %v1101_v55 = vpop.f32.mrf.mxu0 }
 0x256   :  { %v1650_v43 = vmax.f32 %v1618_v56, 0.0  ;;  %v1620_v57 = vadd.f32 %v1588_v62, %v8266_v21  ;;  %v1677_v25 = vpack.c.bf16 %v1635_v53, %v1634_v11  ;;  %v1533_v1 = vmul.f32 %v8234_v29, %v8050_v0 }
 0x257   :  { %v1648_v9 = vmax.f32 %v1616_v18, 0.0  ;;  %v1589_v20 = vmul.f32 %v1557_v22, %v8258_v61  ;;  %v1651_v50 = vmax.f32 %v1619_v7, 0.0  ;;  %v1673_v63 = vpack.c.bf16 %v1627_v42, %v1626_v60 }
 0x258   :  { %v1652_v3 = vmax.f32 %v1620_v57, 0.0  ;;  %v1680_v41 = vpack.c.bf16 %v1641_v46, %v1640_v40  ;;  %v1546_v49 = vmul.f32 %v8234_v29, %v8136_v52  ;;  %v1547_v32 = vmul.f32 %v8234_v29, %v8142_v58 }
 0x259   :  { %v1684_v48 = vpack.c.bf16 %v1649_v10, %v1648_v9  ;;  %v1621_v28 = vadd.f32 %v1589_v20, %v8266_v21  ;;  %v1685_v24 = vpack.c.bf16 %v1651_v50, %v1650_v43  ;;  %v1564_v45 = vmul.f32 %v1532_v8, %v8232_v17 }
 0x25a   :  { %v1565_v2 = vmul.f32 %v1533_v1, %v8232_v17  ;;  %v1578_v47 = vmul.f32 %v1546_v49, %v8258_v61  ;;  %v1579_v0 = vmul.f32 %v1547_v32, %v8258_v61  ;;  %v1548_v9 = vmul.f32 %v8234_v29, %v8148_v6 }
 0x25b   :  { %v1653_v5 = vmax.f32 %v1621_v28, 0.0  ;;  %v1596_v42 = vadd.f32 %v1564_v45, %v8236_v35  ;;  %v1549_v10 = vmul.f32 %v8234_v29, %v8156_v12 }
 0x25c   :  { %v8374_v60 = vpop.f32.mrf.mxu2  ;;  %v1597_v52 = vadd.f32 %v1565_v2, %v8236_v35  ;;  %v1610_v58 = vadd.f32 %v1578_v47, %v8266_v21  ;;  %v1611_v18 = vadd.f32 %v1579_v0, %v8266_v21  ;;  %v1580_v7 = vmul.f32 %v1548_v9, %v8258_v61 }
 0x25d   :  { %v1686_v44 = vpack.c.bf16 %v1653_v5, %v1652_v3  ;;  %13728 = vst [vmem:[#allocation38_spill] sm:$0xff] %v8374_v60  ;;  %v8380_v27 = vpop.f32.mrf.mxu0  ;;  %v1628_v30 = vmax.f32 %v1596_v42, 0.0  ;;  %v1581_v40 = vmul.f32 %v1549_v10, %v8258_v61 }
 0x25e   :  { %13729 = vst [vmem:[#allocation39_spill] sm:$0xff] %v8380_v27  ;;  %v1629_v11 = vmax.f32 %v1597_v52, 0.0  ;;  %v1642_v56 = vmax.f32 %v1610_v58, 0.0  ;;  %v1643_v17 = vmax.f32 %v1611_v18, 0.0  ;;  %v1612_v20 = vadd.f32 %v1580_v7, %v8266_v21 }
 0x25f   :  { %v1613_v57 = vadd.f32 %v1581_v40, %v8266_v21 }
 0x260   :  { %v1674_v62 = vpack.c.bf16 %v1629_v11, %v1628_v30  ;;  %v1681_v53 = vpack.c.bf16 %v1643_v17, %v1642_v56  ;;  %v1644_v50 = vmax.f32 %v1612_v20, 0.0  ;;  %v8418_v11 = vld [vmem:[%s13570_s7] ss:$0 sm:$0xff] }
 0x261   :  { %v1645_v6 = vmax.f32 %v1613_v57, 0.0 }
 0x263   :  { %v1682_v3 = vpack.c.bf16 %v1645_v6, %v1644_v50 }
 0x264   :  { %v1127_v22 = vpop.f32.mrf.mxu2 }
 0x265   :  { %1756 = vmatmul.bf16.gmra.mxu0 %v1673_v63  ;;  %1791 = vmatmul.bf16.gmra.mxu2 %v1680_v41  ;;  %v1153_v35 = vpop.f32.mrf.mxu0 }
 0x26c   :  { %v8388_v43 = vpop.f32.mrf.mxu2 }
 0x26d   :  { %13730 = vst [vmem:[#allocation40_spill] sm:$0xff] %v8388_v43  ;;  %v8392_v46 = vpop.f32.mrf.mxu0 }
 0x274   :  { %v1179_v28 = vpop.f32.mrf.mxu2 }
 0x275   :  { %1761 = vmatmul.bf16.gmra.mxu0 %v1674_v62  ;;  %1796 = vmatmul.bf16.gmra.mxu2 %v1681_v53  ;;  %v1205_v12 = vpop.f32.mrf.mxu0 }
 0x27d   :  { %v8395_v29 = vpop.f32.mrf.mxu2  ;;  %v8397_v8 = vpop.f32.mrf.mxu0 }
 0x27e   :  { %13731 = vst [vmem:[#allocation41_spill] sm:$0xff] %v8395_v29 }
 0x27f   :  { %13732 = vst [vmem:[#allocation42_spill] sm:$0xff] %v8397_v8 }
 0x285   :  { %1766 = vmatmul.bf16.gmra.mxu0 %v8317_v23  ;;  %1801 = vmatmul.bf16.gmra.mxu2 %v1682_v3  ;;  %v1231_v61 = vpop.f32.mrf.mxu2  ;;  %v1257_v21 = vpop.f32.mrf.mxu0 }
 0x28d   :  { %v8401_v1 = vpop.f32.mrf.mxu2  ;;  %v8403_v5 = vpop.f32.mrf.mxu0 }
 0x28e   :  { %13733 = vst [vmem:[#allocation43_spill] sm:$0xff] %v8401_v1 }
 0x28f   :  { %13734 = vst [vmem:[#allocation44_spill] sm:$0xff] %v8403_v5 }
 0x295   :  { %1771 = vmatmul.bf16.gmra.mxu0 %v8326_v39  ;;  %1806 = vmatmul.bf16.gmra.mxu2 %v8342_v59  ;;  %v1283_v63 = vpop.f32.mrf.mxu2  ;;  %v1309_v23 = vpop.f32.mrf.mxu0 }
 0x2a5   :  { %1776 = vmatmul.bf16.gmra.mxu0 %v1677_v25  ;;  %1811 = vmatmul.bf16.gmra.mxu2 %v1684_v48 }
 0x2b5   :  { %1816 = vmatmul.bf16.gmra.mxu2 %v1685_v24 }
 0x2c2   :  { %v1747_v41 = vpop.f32.mrf.mxu0 }
 0x2c3   :  { %v8426_v62 = vadd.f32 %v8418_v11, %v1747_v41 }
 0x2c5   :  { %1821 = vmatmul.bf16.gmra.mxu2 %v1686_v44 }
 0x2c8   :  { %v1782_v49 = vpop.f32.mrf.mxu2 }
 0x2ca   :  { %v1749_v32 = vpop.f32.mrf.mxu0 }
 0x2cb   :  { %v8423_v17 = vadd.f32 %v8418_v11, %v1749_v32 }
 0x2cd   :  { %v1827_v9 = vadd.f32 %v8423_v17, %v8426_v62 }
 0x2d0   :  { %v1784_v55 = vpop.f32.mrf.mxu2 }
 0x2d2   :  { %v1752_v45 = vpop.f32.mrf.mxu0 }
 0x2d3   :  { %v8429_v53 = vadd.f32 %v8418_v11, %v1752_v45 }
 0x2d5   :  { %v1828_v35 = vadd.f32 %v1827_v9, %v8429_v53  ;;  %v7076_v9 = vld [vmem:[#allocation3 + $0xb4] sm:$0xf] }
 0x2d8   :  { %v1787_v2 = vpop.f32.mrf.mxu2 }
 0x2da   :  { %v1754_v39 = vpop.f32.mrf.mxu0 }
 0x2db   :  { %v8434_v10 = vadd.f32 %v8418_v11, %v1754_v39 }
 0x2dd   :  { %v1829_v20 = vadd.f32 %v1828_v35, %v8434_v10  ;;  %v6619_v35 = vld [vmem:[#allocation3 + $0x108] sm:$0xf0] }
 0x2e0   :  { %v1789_v47 = vpop.f32.mrf.mxu2 }
 0x2e2   :  { %v1757_v59 = vpop.f32.mrf.mxu0 }
 0x2e3   :  { %v8438_v7 = vadd.f32 %v8418_v11, %v1757_v59 }
 0x2e5   :  { %v1830_v6 = vadd.f32 %v1829_v20, %v8438_v7 }
 0x2e8   :  { %v8405_v0 = vpop.f32.mrf.mxu2 }
 0x2ea   :  { %v1759_v42 = vpop.f32.mrf.mxu0 }
 0x2eb   :  { %v8442_v57 = vadd.f32 %v8418_v11, %v1759_v42 }
 0x2ed   :  { %v1831_v3 = vadd.f32 %v1830_v6, %v8442_v57  ;;  %v6622_v6 = vor.u32 %v7076_v9, %v6619_v35  ;;  %v1790_v9 = vadd.f32 %v8418_v11, %v1789_v47  ;;  %v1793_v35 = vadd.f32 %v8418_v11, %v8405_v0 }
 0x2ef   :  { %1057 = vmatpush.bf16.msra.mxu1 %v6622_v6 }
 0x2f0   :  { %v8407_v52 = vpop.f32.mrf.mxu2 }
 0x2f2   :  { %v1762_v58 = vpop.f32.mrf.mxu0 }
 0x2f3   :  { %v8446_v28 = vadd.f32 %v8418_v11, %v1762_v58 }
 0x2f5   :  { %v1832_v61 = vadd.f32 %v1831_v3, %v8446_v28 }
 0x2f8   :  { %v8409_v25 = vpop.f32.mrf.mxu2 }
 0x2fa   :  { %v1764_v48 = vpop.f32.mrf.mxu0 }
 0x2fb   :  { %v8450_v12 = vadd.f32 %v8418_v11, %v1764_v48 }
 0x2fd   :  { %v1833_v23 = vadd.f32 %v1832_v61, %v8450_v12  ;;  %v7054_v61 = vld [vmem:[#allocation3 + $0x4] sm:$0xf] }
 0x300   :  { %v8411_v24 = vpop.f32.mrf.mxu2 }
 0x302   :  { %v1767_v44 = vpop.f32.mrf.mxu0 }
 0x303   :  { %v8454_v21 = vadd.f32 %v8418_v11, %v1767_v44 }
 0x305   :  { %v1834_v45 = vadd.f32 %v1833_v23, %v8454_v21  ;;  %v6531_v23 = vld [vmem:[#allocation3 + $0x58] sm:$0xf0] }
 0x308   :  { %v8413_v18 = vpop.f32.mrf.mxu2 }
 0x309   :  { %v1803_v47 = vadd.f32 %v8418_v11, %v8413_v18 }
 0x30a   :  { %v1769_v30 = vpop.f32.mrf.mxu0 }
 0x30b   :  { %v8458_v41 = vadd.f32 %v8418_v11, %v1769_v30 }
 0x30d   :  { %v1835_v59 = vadd.f32 %v1834_v45, %v8458_v41  ;;  %v1783_v45 = vadd.f32 %v8418_v11, %v1782_v49  ;;  %v1795_v49 = vadd.f32 %v8418_v11, %v8407_v52 }
 0x310   :  { %v8420_v56 = vpop.f32.mrf.mxu2 }
 0x311   :  { %v1805_v0 = vadd.f32 %v8418_v11, %v8420_v56 }
 0x312   :  { %v1772_v22 = vpop.f32.mrf.mxu0 }
 0x313   :  { %v8462_v39 = vadd.f32 %v8418_v11, %v1772_v22 }
 0x315   :  { %v1836_v58 = vadd.f32 %v1835_v59, %v8462_v39 }
 0x318   :  { %v1807_v40 = vpop.f32.mrf.mxu2 }
 0x319   :  { %v1808_v52 = vadd.f32 %v8418_v11, %v1807_v40 }
 0x31a   :  { %v1774_v50 = vpop.f32.mrf.mxu0 }
 0x31b   :  { %v8466_v42 = vadd.f32 %v8418_v11, %v1774_v50  ;;  %v6534_v50 = vor.u32 %v7054_v61, %v6531_v23 }
 0x31d   :  { %v1837_v30 = vadd.f32 %v1836_v58, %v8466_v42  ;;  %1058 = vmatpush.bf16.msra.mxu1 %v6534_v50  ;;  %v1788_v58 = vadd.f32 %v8418_v11, %v1787_v2 }
 0x320   :  { %v1809_v63 = vpop.f32.mrf.mxu2  ;;  %6704 = vmatmul.msk.bf16.vlgmr.msra.gmra.mxu1 %vm1034_vm0, %v7798_v14 }
 0x322   :  { %v1777_v32 = vpop.f32.mrf.mxu0 }
 0x323   :  { %v8470_v48 = vadd.f32 %v8418_v11, %v1777_v32  ;;  %v1785_v32 = vadd.f32 %v8418_v11, %v1784_v55 }
 0x325   :  { %v1838_v22 = vadd.f32 %v1837_v30, %v8470_v48 }
 0x328   :  { %v1812_v44 = vpop.f32.mrf.mxu2 }
 0x32a   :  { %v1779_v20 = vpop.f32.mrf.mxu0 }
 0x32b   :  { %v1780_v3 = vadd.f32 %v8418_v11, %v1779_v20 }
 0x32d   :  { %v1839_v59 = vadd.f32 %v1838_v22, %v1780_v3  ;;  %v1798_v22 = vadd.f32 %v8418_v11, %v8409_v25 }
 0x32f   :  { %v1840_v43 = vadd.f32 %v1839_v59, %v1783_v45 }
 0x330   :  { %v1814_v5 = vpop.f32.mrf.mxu2 }
 0x331   :  { %v1841_v27 = vadd.f32 %v1840_v43, %v1785_v32  ;;  %v1800_v43 = vadd.f32 %v8418_v11, %v8411_v24  ;;  %v1815_v24 = vadd.f32 %v8418_v11, %v1814_v5 }
 0x333   :  { %v1842_v30 = vadd.f32 %v1841_v27, %v1788_v58 }
 0x335   :  { %v1843_v20 = vadd.f32 %v1842_v30, %v1790_v9  ;;  %v1810_v30 = vadd.f32 %v8418_v11, %v1809_v63 }
 0x337   :  { %v1844_v55 = vadd.f32 %v1843_v20, %v1793_v35  ;;  %v1813_v20 = vadd.f32 %v8418_v11, %v1812_v44 }
 0x338   :  { %v1817_v6 = vpop.f32.mrf.mxu2 }
 0x339   :  { %v1845_v2 = vadd.f32 %v1844_v55, %v1795_v49 }
 0x33b   :  { %v1846_v27 = vadd.f32 %v1845_v2, %v1798_v22 }
 0x33d   :  { %v1847_v61 = vadd.f32 %v1846_v27, %v1800_v43  ;;  %v1818_v27 = vadd.f32 %v8418_v11, %v1817_v6 }
 0x33f   :  { %v1848_v23 = vadd.f32 %v1847_v61, %v1803_v47 }
 0x340   :  { %v1819_v50 = vpop.f32.mrf.mxu2 }
 0x341   :  { %v1849_v59 = vadd.f32 %v1848_v23, %v1805_v0  ;;  %v1820_v56 = vadd.f32 %v8418_v11, %v1819_v50 }
 0x343   :  { %v1850_v25 = vadd.f32 %v1849_v59, %v1808_v52 }
 0x345   :  { %v1851_v55 = vadd.f32 %v1850_v25, %v1810_v30 }
 0x347   :  { %v1852_v2 = vadd.f32 %v1851_v55, %v1813_v20 }
 0x348   :  { %v1822_v1 = vpop.f32.mrf.mxu2 }
 0x349   :  { %v1853_v18 = vadd.f32 %v1852_v2, %v1815_v24  ;;  %v1823_v40 = vadd.f32 %v8418_v11, %v1822_v1 }
 0x34b   :  { %v1854_v60 = vadd.f32 %v1853_v18, %v1818_v27 }
 0x34d   :  { %v1855_v61 = vadd.f32 %v1854_v60, %v1820_v56 }
 0x34f   :  { %v1856_v8 = vadd.f32 %v1855_v61, %v1823_v40 }
 0x350   :  { %v1824_v23 = vpop.f32.mrf.mxu2 }
 0x351   :  { %v1825_v63 = vadd.f32 %v8418_v11, %v1824_v23 }
 0x353   :  { %v1857_v59 = vadd.f32 %v1856_v8, %v1825_v63 }
 0x355   :  { %v1858_v44 = vrot.slane %v1857_v59, 4 }
 0x357   :  { %v1859_v25 = vadd.f32 %v1858_v44, %v1857_v59  ;;  %v6547_v44 = vld [vmem:[#allocation3 + $0x68] sm:$0xf0] }
 0x359   :  { %v1860_v38 = vrot.slane %v1859_v25, 2 }
 0x35b   :  { %v1861_v5 = vadd.f32 %v1860_v38, %v1859_v25 }
 0x35d   :  { %v1862_v55 = vrot.slane %v1861_v5, 1 }
 0x35f   :  { %v1863_v29 = vadd.f32 %v1862_v55, %v1861_v5 }
 0x361   :  { %v1864_v2 = vmul.f32 %v1863_v29, %v8001_v54 }
 0x363   :  { %v8502_v6 = vsub.f32 %v1780_v3, %v1864_v2  ;;  %v8504_v18 = vsub.f32 %v1783_v45, %v1864_v2  ;;  %v8506_v60 = vsub.f32 %v1785_v32, %v1864_v2  ;;  %v8508_v1 = vsub.f32 %v1788_v58, %v1864_v2 }
 0x364   :  { %v8510_v50 = vsub.f32 %v1790_v9, %v1864_v2  ;;  %v8512_v11 = vsub.f32 %v1793_v35, %v1864_v2  ;;  %v8514_v8 = vsub.f32 %v1795_v49, %v1864_v2  ;;  %v8516_v61 = vsub.f32 %v1798_v22, %v1864_v2 }
 0x365   :  { %v8518_v38 = vsub.f32 %v1800_v43, %v1864_v2  ;;  %v8520_v23 = vsub.f32 %v1803_v47, %v1864_v2  ;;  %v8522_v29 = vsub.f32 %v1805_v0, %v1864_v2  ;;  %v8524_v3 = vsub.f32 %v1808_v52, %v1864_v2 }
 0x366   :  { %v8526_v45 = vsub.f32 %v1810_v30, %v1864_v2  ;;  %v8528_v32 = vsub.f32 %v1813_v20, %v1864_v2  ;;  %v8530_v58 = vsub.f32 %v1815_v24, %v1864_v2  ;;  %v8532_v9 = vsub.f32 %v1818_v27, %v1864_v2  ;;  %v7078_v24 = vld [vmem:[#allocation3 + $0xc4] sm:$0xf]  ;;  %v6635_v27 = vld [vmem:[#allocation3 + $0x118] sm:$0xf0] }
 0x367   :  { %v8534_v35 = vsub.f32 %v1820_v56, %v1864_v2  ;;  %v8536_v49 = vsub.f32 %v1823_v40, %v1864_v2  ;;  %v8538_v22 = vsub.f32 %v1825_v63, %v1864_v2  ;;  %v8541_v43 = vsub.f32 %v8426_v62, %v1864_v2 }
 0x368   :  { %v8544_v47 = vsub.f32 %v8423_v17, %v1864_v2  ;;  %v8547_v0 = vsub.f32 %v8429_v53, %v1864_v2  ;;  %v8554_v20 = vsub.f32 %v8434_v10, %v1864_v2  ;;  %v8557_v62 = vsub.f32 %v8438_v7, %v1864_v2  ;;  %v7056_v10 = vld [vmem:[#allocation3 + $0x14] sm:$0xf] }
 0x369   :  { %v1897_v52 = vmul.f32 %v8541_v43, %v8541_v43  ;;  %v6638_v53 = vor.u32 %v7078_v24, %v6635_v27  ;;  %v8562_v40 = vsub.f32 %v8442_v57, %v1864_v2  ;;  %v8567_v25 = vsub.f32 %v8446_v28, %v1864_v2 }
 0x36a   :  { %v1898_v30 = vmul.f32 %v8544_v47, %v8544_v47  ;;  %v1899_v17 = vmul.f32 %v8547_v0, %v8547_v0  ;;  %v1900_v63 = vmul.f32 %v8554_v20, %v8554_v20  ;;  %v1901_v7 = vmul.f32 %v8557_v62, %v8557_v62 }
 0x36b   :  { %1109 = vmatpush.bf16.msrb.mxu1 %v6638_v53  ;;  %v6550_v55 = vor.u32 %v7056_v10, %v6547_v44  ;;  %v1902_v57 = vmul.f32 %v8562_v40, %v8562_v40  ;;  %v8577_v24 = vsub.f32 %v8454_v21, %v1864_v2  ;;  %v1903_v28 = vmul.f32 %v8567_v25, %v8567_v25 }
 0x36c   :  { %v1929_v56 = vadd.f32 %v1898_v30, %v1897_v52  ;;  %v8572_v52 = vsub.f32 %v8450_v12, %v1864_v2  ;;  %v8589_v53 = vsub.f32 %v8462_v39, %v1864_v2 }
 0x36d   :  { %v1905_v21 = vmul.f32 %v8577_v24, %v8577_v24 }
 0x36e   :  { %v1930_v59 = vadd.f32 %v1929_v56, %v1899_v17  ;;  %v8584_v17 = vsub.f32 %v8458_v41, %v1864_v2  ;;  %v1904_v12 = vmul.f32 %v8572_v52, %v8572_v52  ;;  %v7080_v41 = vld [vmem:[#allocation3 + $0xd4] sm:$0xf]  ;;  %v1907_v39 = vmul.f32 %v8589_v53, %v8589_v53 }
 0x36f   :  { %1110 = vmatpush.bf16.msrb.mxu1 %v6550_v55 }
 0x370   :  { %v1931_v5 = vadd.f32 %v1930_v59, %v1900_v63  ;;  %v8594_v59 = vsub.f32 %v8466_v42, %v1864_v2  ;;  %v1906_v10 = vmul.f32 %v8584_v17, %v8584_v17  ;;  %v7058_v42 = vld [vmem:[#allocation3 + $0x24] sm:$0xf] }
 0x372   :  { %v1932_v30 = vadd.f32 %v1931_v5, %v1901_v7  ;;  %6708 = vmatmul.msk.bf16.vlgmr.msrb.gmra.mxu1 %vm1034_vm0, %v7798_v14  ;;  %v6651_v7 = vld [vmem:[#allocation3 + $0x128] sm:$0xf0]  ;;  %v8599_v5 = vsub.f32 %v8470_v48, %v1864_v2  ;;  %v1910_v48 = vmul.f32 %v8502_v6, %v8502_v6 }
 0x374   :  { %v1933_v27 = vadd.f32 %v1932_v30, %v1902_v57  ;;  %v6654_v57 = vor.u32 %v7080_v41, %v6651_v7  ;;  %v1908_v30 = vmul.f32 %v8594_v59, %v8594_v59  ;;  %v1913_v7 = vmul.f32 %v8508_v1, %v8508_v1 }
 0x376   :  { %v1934_v56 = vadd.f32 %v1933_v27, %v1903_v28  ;;  %1161 = vmatpush.bf16.msra.mxu1 %v6654_v57  ;;  %v6563_v27 = vld [vmem:[#allocation3 + $0x78] sm:$0xf0] }
 0x378   :  { %v1935_v63 = vadd.f32 %v1934_v56, %v1904_v12  ;;  %v1909_v12 = vmul.f32 %v8599_v5, %v8599_v5 }
 0x37a   :  { %v1936_v44 = vadd.f32 %v1935_v63, %v1905_v21  ;;  %v6566_v21 = vor.u32 %v7058_v42, %v6563_v27  ;;  %v1911_v63 = vmul.f32 %v8504_v18, %v8504_v18  ;;  %v1915_v42 = vmul.f32 %v8512_v11, %v8512_v11 }
 0x37c   :  { %v1937_v55 = vadd.f32 %v1936_v44, %v1906_v10  ;;  %1162 = vmatpush.bf16.msra.mxu1 %v6566_v21  ;;  %v1912_v44 = vmul.f32 %v8506_v60, %v8506_v60 }
 0x37e   :  { %v1938_v28 = vadd.f32 %v1937_v55, %v1907_v39  ;;  %v1914_v55 = vmul.f32 %v8510_v50, %v8510_v50 }
 0x380   :  { %v1939_v56 = vadd.f32 %v1938_v28, %v1908_v30  ;;  %v7082_v30 = vld [vmem:[#allocation3 + $0xe4] sm:$0xf]  ;;  %v6667_v28 = vld [vmem:[#allocation3 + $0x138] sm:$0xf0] }
 0x382   :  { %v1940_v2 = vadd.f32 %v1939_v56, %v1909_v12  ;;  %6712 = vmatmul.msk.bf16.vlgmr.msra.gmra.mxu1 %vm1034_vm0, %v7798_v14  ;;  %v6670_v12 = vor.u32 %v7082_v30, %v6667_v28  ;;  %v1916_v56 = vmul.f32 %v8514_v8, %v8514_v8  ;;  %v1921_v28 = vmul.f32 %v8524_v3, %v8524_v3 }
 0x384   :  { %v1941_v10 = vadd.f32 %v1940_v2, %v1910_v48  ;;  %1213 = vmatpush.bf16.msrb.mxu1 %v6670_v12  ;;  %v7060_v48 = vld [vmem:[#allocation3 + $0x34] sm:$0xf]  ;;  %v6579_v2 = vld [vmem:[#allocation3 + $0x88] sm:$0xf0]  ;;  %v6675_v12 = vld [vmem:[#allocation3 + $0x140] sm:$0xf0] }
 0x386   :  { %v1942_v41 = vadd.f32 %v1941_v10, %v1911_v63  ;;  %v1917_v63 = vmul.f32 %v8516_v61, %v8516_v61 }
 0x388   :  { %v1943_v39 = vadd.f32 %v1942_v41, %v1912_v44  ;;  %v6582_v44 = vor.u32 %v7060_v48, %v6579_v2  ;;  %v1918_v41 = vmul.f32 %v8518_v38, %v8518_v38  ;;  %v7084_v2 = vld [vmem:[#allocation3 + $0xf4] sm:$0xf] }
 0x38a   :  { %v1944_v57 = vadd.f32 %v1943_v39, %v1913_v7  ;;  %1214 = vmatpush.bf16.msrb.mxu1 %v6582_v44  ;;  %v1919_v39 = vmul.f32 %v8520_v23, %v8520_v23 }
 0x38c   :  { %v1945_v27 = vadd.f32 %v1944_v57, %v1914_v55  ;;  %v1920_v57 = vmul.f32 %v8522_v29, %v8522_v29 }
 0x38e   :  { %v1946_v21 = vadd.f32 %v1945_v27, %v1915_v42  ;;  %v7083_v27 = vld [vmem:[#allocation3 + $0xec] sm:$0xf] }
 0x38f   :  { %v6678_v48 = vor.u32 %v7083_v27, %v6675_v12  ;;  %v6598_v27 = vor.u32 %v7062_v51, %v6595_v34  ;;  %v1926_v12 = vmul.f32 %v8534_v35, %v8534_v35  ;;  %v6699_v34 = vld [vmem:[#allocation3 + $0x158] sm:$0xf0]  ;;  %v1928_v51 = vmul.f32 %v8538_v22, %v8538_v22 }
 0x390   :  { %v1947_v10 = vadd.f32 %v1946_v21, %v1916_v56  ;;  %v1922_v56 = vmul.f32 %v8526_v45, %v8526_v45 }
 0x391   :  { %1239 = vmatpush.bf16.msrb.mxu3 %v6678_v48 }
 0x392   :  { %v1948_v7 = vadd.f32 %v1947_v10, %v1917_v63  ;;  %6716 = vmatmul.msk.bf16.vlgmr.msrb.gmra.mxu1 %vm1034_vm0, %v7798_v14  ;;  %v6683_v63 = vld [vmem:[#allocation3 + $0x148] sm:$0xf0]  ;;  %v1923_v10 = vmul.f32 %v8528_v32, %v8528_v32 }
 0x394   :  { %v1949_v55 = vadd.f32 %v1948_v7, %v1918_v41  ;;  %v6686_v41 = vor.u32 %v7084_v2, %v6683_v63  ;;  %v7061_v7 = vld [vmem:[#allocation3 + $0x3c] sm:$0xf]  ;;  %v6691_v63 = vld [vmem:[#allocation3 + $0x150] sm:$0xf0] }
 0x395   :  { %v7085_v2 = vld [vmem:[#allocation3 + $0xfc] sm:$0xf] }
 0x396   :  { %v1950_v30 = vadd.f32 %v1949_v55, %v1919_v39  ;;  %v6587_v39 = vld [vmem:[#allocation3 + $0x90] sm:$0xf0]  ;;  %v1924_v55 = vmul.f32 %v8530_v58, %v8530_v58  ;;  %1265 = vmatpush.bf16.msra.mxu1 %v6686_v41 }
 0x398   :  { %v1951_v42 = vadd.f32 %v1950_v30, %v1920_v57  ;;  %v6590_v30 = vor.u32 %v7061_v7, %v6587_v39 }
 0x39a   :  { %v1952_v21 = vadd.f32 %v1951_v42, %v1921_v28  ;;  %v1925_v28 = vmul.f32 %v8532_v9, %v8532_v9  ;;  %1240 = vmatpush.bf16.msrb.mxu3 %v6590_v30  ;;  %1266 = vmatpush.bf16.msra.mxu1 %v6598_v27  ;;  %v7064_v30 = vld [vmem:[#allocation3 + $0x54] sm:$0xf] }
 0x39c   :  { %v1953_v44 = vadd.f32 %v1952_v21, %v1922_v56  ;;  %v1927_v21 = vmul.f32 %v8536_v49, %v8536_v49 }
 0x39d   :  { %6718 = vmatmul.msk.bf16.vlgmr.msrb.gmra.mxu3 %vm1034_vm0, %v7798_v14 }
 0x39e   :  { %v1954_v57 = vadd.f32 %v1953_v44, %v1923_v10  ;;  %v7086_v10 = vld [vmem:[#allocation3 + $0x104] sm:$0xf]  ;;  %v6694_v44 = vor.u32 %v7085_v2, %v6691_v63  ;;  %v7112_v63 = vld [vmem:[#allocation5 + $0x70] sm:$0xff] }
 0x39f   :  { %v6702_v7 = vor.u32 %v7086_v10, %v6699_v34  ;;  %v7111_v10 = vld [vmem:[#allocation5 + $0x68] sm:$0xff] }
 0x3a0   :  { %v1955_v42 = vadd.f32 %v1954_v57, %v1924_v55  ;;  %1291 = vmatpush.bf16.msra.mxu3 %v6694_v44  ;;  %v7063_v55 = vld [vmem:[#allocation3 + $0x4c] sm:$0xf]  ;;  %v6603_v57 = vld [vmem:[#allocation3 + $0xa0] sm:$0xf0]  ;;  %v1060_v44 = vpop.f32.mrf.mxu1 }
 0x3a1   :  { %1317 = vmatpush.bf16.msrb.mxu1 %v6702_v7 }
 0x3a2   :  { %v1956_v56 = vadd.f32 %v1955_v42, %v1925_v28  ;;  %6720 = vmatmul.msk.bf16.vlgmr.msra.gmra.mxu1 %vm1034_vm0, %v7798_v14  ;;  %v6606_v28 = vor.u32 %v7063_v55, %v6603_v57  ;;  %v6611_v42 = vld [vmem:[#allocation3 + $0xa8] sm:$0xf0]  ;;  %v7108_v55 = vld [vmem:[#allocation5 + $0x50] sm:$0xff] }
 0x3a4   :  { %v1957_v48 = vadd.f32 %v1956_v56, %v1926_v12  ;;  %v6614_v12 = vor.u32 %v7064_v30, %v6611_v42  ;;  %v7113_v56 = vld [vmem:[#allocation5 + $0x78] sm:$0xff]  ;;  %1292 = vmatpush.bf16.msra.mxu3 %v6606_v28  ;;  %v7107_v30 = vld [vmem:[#allocation5 + $0x48] sm:$0xff] }
 0x3a6   :  { %v1958_v41 = vadd.f32 %v1957_v48, %v1927_v21  ;;  %1318 = vmatpush.bf16.msrb.mxu1 %v6614_v12 }
 0x3a8   :  { %v1959_v39 = vadd.f32 %v1958_v41, %v1928_v51  ;;  %7186 = vmatpush.bf16.msrb.mxu3 %v7113_v56  ;;  %v7110_v51 = vld [vmem:[#allocation5 + $0x60] sm:$0xff] }
 0x3aa   :  { %v1960_v27 = vrot.slane %v1959_v39, 4  ;;  %2192 = vmatpush.bf16.msra.mxu1 %v7113_v56  ;;  %v771_v56 = vperm.slane %v8229_v19, 1 }
 0x3ac   :  { %v1961_v31 = vadd.f32 %v1960_v27, %v1959_v39  ;;  %7187 = vmatpush.bf16.msrb.mxu3 %v7112_v63  ;;  %v1062_v39 = vpop.f32.mrf.mxu1  ;;  %v7106_v27 = vld [vmem:[#allocation5 + $0x40] sm:$0xff] }
 0x3ad   :  { %6722 = vmatmul.msk.bf16.vlgmr.msra.gmra.mxu3 %vm1034_vm0, %v7798_v14 }
 0x3ae   :  { %v1962_v2 = vrot.slane %v1961_v31, 2  ;;  %2193 = vmatpush.bf16.msra.mxu1 %v7112_v63  ;;  %v8662_v63 = vld [vmem:[%s13568_s5 + $0x8] sm:$0xff] }
 0x3b0   :  { %v1963_v21 = vadd.f32 %v1962_v2, %v1961_v31  ;;  %7188 = vmatpush.bf16.msrb.mxu3 %v7111_v10  ;;  %v7109_v31 = vld [vmem:[#allocation5 + $0x58] sm:$0xff] }
 0x3b2   :  { %v1964_v48 = vrot.slane %v1963_v21, 1  ;;  %2194 = vmatpush.bf16.msra.mxu1 %v7111_v10 }
 0x3b3   :  { %6724 = vmatmul.msk.bf16.vlgmr.msrb.gmra.mxu1 %vm1034_vm0, %v7798_v14 }
 0x3b4   :  { %v1965_v34 = vadd.f32 %v1964_v48, %v1963_v21  ;;  %7189 = vmatpush.bf16.msrb.mxu3 %v7110_v51  ;;  %v782_v21 = vperm.slane %v8662_v63, 4  ;;  %v1061_v48 = vadd.f32 %v1060_v44, %v771_v56 }
 0x3b6   :  { %v1966_v41 = vmul.f32 %v1965_v34, %v8001_v54  ;;  %2195 = vmatpush.bf16.msra.mxu1 %v7110_v51  ;;  %v1204_v34 = vadd.f32 %v8392_v46, %v782_v21  ;;  %v8668_v51 = vperm.slane %v1061_v48, 0  ;;  %v8680_v39 = vperm.slane %v1061_v48, 1 }
 0x3b8   :  { %v1967_v7 = vadd.f32 1e-05, %v1966_v41  ;;  %7190 = vmatpush.bf16.msrb.mxu3 %v7109_v31  ;;  %v8678_v44 = vperm.slane %v1204_v34, 0  ;;  %v8702_v48 = vperm.slane %v1204_v34, 1 }
 0x3ba   :  { %7266 = vrsqrt.f32 %v1967_v7  ;;  %2196 = vmatpush.bf16.msra.mxu1 %v7109_v31  ;;  %vm1974_vm6 = vweird.f32 %v1967_v7 }
 0x3bc   :  { %7191 = vmatpush.bf16.msrb.mxu3 %v7108_v55 }
 0x3be   :  { %2197 = vmatpush.bf16.msra.mxu1 %v7108_v55 }
 0x3c0   :  { %v7267_v57 = vpop.eup %7266  ;;  %7192 = vmatpush.bf16.msrb.mxu3 %v7107_v30 }
 0x3c1   :  { %v1969_v28 = vmul.f32 %v7267_v57, %v1967_v7  ;;  %vm1975_vm5 = vweird.f32 %v7267_v57 }
 0x3c2   :  { %2198 = vmatpush.bf16.msra.mxu1 %v7107_v30  ;;  %vm1976_vm7 = vmor %vm1974_vm6, %vm1975_vm5 }
 0x3c3   :  { %v1970_v42 = vmul.f32 %v7267_v57, %v1969_v28 }
 0x3c4   :  { %7193 = vmatpush.bf16.msrb.mxu3 %v7106_v27 }
 0x3c5   :  { %v1971_v12 = vmul.f32 0.5, %v1970_v42 }
 0x3c6   :  { %2199 = vmatpush.bf16.msra.mxu1 %v7106_v27 }
 0x3c7   :  { %v1972_v14 = vsub.f32 1.5, %v1971_v12 }
 0x3c9   :  { %v1973_v2 = vmul.f32 %v7267_v57, %v1972_v14 }
 0x3cb   :  { %v8665_v10 = vsel %vm1976_vm7, %v7267_v57, %v1973_v2 }
 0x3cc   :  { %v1978_v19 = vmul.f32 %v8665_v10, %v8541_v43  ;;  %v1979_v41 = vmul.f32 %v8665_v10, %v8544_v47  ;;  %v1992_v31 = vmul.f32 %v8665_v10, %v8504_v18  ;;  %v1993_v7 = vmul.f32 %v8665_v10, %v8506_v60 }
 0x3cd   :  { %v1980_v46 = vmul.f32 %v8665_v10, %v8547_v0  ;;  %v1981_v55 = vmul.f32 %v8665_v10, %v8554_v20  ;;  %v1994_v43 = vmul.f32 %v8665_v10, %v8508_v1  ;;  %v1995_v47 = vmul.f32 %v8665_v10, %v8510_v50 }
 0x3ce   :  { %v2010_v18 = vmul.f32 %v1978_v19, %v8668_v51  ;;  %v2011_v60 = vmul.f32 %v1979_v41, %v8668_v51  ;;  %v2024_v57 = vmul.f32 %v1992_v31, %v8668_v51  ;;  %v2025_v30 = vmul.f32 %v1993_v7, %v8668_v51 }
 0x3cf   :  { %v2012_v1 = vmul.f32 %v1980_v46, %v8668_v51  ;;  %v2013_v50 = vmul.f32 %v1981_v55, %v8668_v51  ;;  %v2026_v27 = vmul.f32 %v1994_v43, %v8680_v39  ;;  %v2027_v12 = vmul.f32 %v1995_v47, %v8680_v39 }
 0x3d0   :  { %v2042_v28 = vadd.f32 %v2010_v18, %v8678_v44  ;;  %v2043_v0 = vadd.f32 %v2011_v60, %v8678_v44  ;;  %v2056_v20 = vadd.f32 %v2024_v57, %v8678_v44  ;;  %v2057_v42 = vadd.f32 %v2025_v30, %v8678_v44 }
 0x3d1   :  { %v8706_v19 = vmul.f32 %v8665_v10, %v8538_v22  ;;  %v1982_v41 = vmul.f32 %v8665_v10, %v8557_v62  ;;  %v1983_v31 = vmul.f32 %v8665_v10, %v8562_v40  ;;  %v1986_v7 = vmul.f32 %v8665_v10, %v8577_v24 }
 0x3d2   :  { %v2074_v14 = vmax.f32 %v2042_v28, 0.0  ;;  %v2075_v56 = vmax.f32 %v2043_v0, 0.0  ;;  %v2088_v2 = vmax.f32 %v2056_v20, 0.0  ;;  %v2089_v21 = vmax.f32 %v2057_v42, 0.0 }
 0x3d3   :  { %v1987_v43 = vmul.f32 %v8665_v10, %v8584_v17  ;;  %v1988_v34 = vmul.f32 %v8665_v10, %v8589_v53  ;;  %v2044_v22 = vadd.f32 %v2012_v1, %v8678_v44  ;;  %v2045_v47 = vadd.f32 %v2013_v50, %v8678_v44 }
 0x3d4   :  { %v2125_v46 = vpack.c.bf16 %v2075_v56, %v2074_v14  ;;  %v2132_v55 = vpack.c.bf16 %v2089_v21, %v2088_v2  ;;  %v1989_v62 = vmul.f32 %v8665_v10, %v8594_v59  ;;  %v2058_v40 = vadd.f32 %v2026_v27, %v8702_v48 }
 0x3d5   :  { %v2059_v24 = vadd.f32 %v2027_v12, %v8702_v48  ;;  %v1990_v18 = vmul.f32 %v8665_v10, %v8599_v5  ;;  %v1991_v17 = vmul.f32 %v8665_v10, %v8502_v6  ;;  %v1996_v53 = vmul.f32 %v8665_v10, %v8512_v11 }
 0x3d6   :  { %2200 = vmatmul.bf16.vlgmr.msra.gmra.mxu1 %v2125_v46  ;;  %2235 = vmatmul.bf16.vlgmr.msrb.gmra.mxu3 %v2132_v55  ;;  %v8732_v60 = vmul.f32 %v8665_v10, %v8514_v8  ;;  %v2000_v59 = vmul.f32 %v8665_v10, %v8520_v23  ;;  %v2001_v57 = vmul.f32 %v8665_v10, %v8522_v29  ;;  %v2076_v8 = vmax.f32 %v2044_v22, 0.0 }
 0x3d7   :  { %v2002_v30 = vmul.f32 %v8665_v10, %v8524_v3  ;;  %v2003_v5 = vmul.f32 %v8665_v10, %v8526_v45  ;;  %v2004_v6 = vmul.f32 %v8665_v10, %v8528_v32  ;;  %v2005_v11 = vmul.f32 %v8665_v10, %v8530_v58 }
 0x3d8   :  { %v2077_v28 = vmax.f32 %v2045_v47, 0.0  ;;  %v2006_v23 = vmul.f32 %v8665_v10, %v8532_v9  ;;  %v2090_v0 = vmax.f32 %v2058_v40, 0.0  ;;  %v2091_v20 = vmax.f32 %v2059_v24, 0.0 }
 0x3d9   :  { %v2018_v29 = vmul.f32 %v1986_v7, %v8668_v51  ;;  %v2007_v3 = vmul.f32 %v8665_v10, %v8534_v35  ;;  %v2008_v45 = vmul.f32 %v8665_v10, %v8536_v49  ;;  %v2014_v32 = vmul.f32 %v1982_v41, %v8668_v51 }
 0x3da   :  { %v2019_v42 = vmul.f32 %v1987_v43, %v8668_v51  ;;  %v2015_v58 = vmul.f32 %v1983_v31, %v8668_v51  ;;  %v2032_v9 = vmul.f32 %v2000_v59, %v8680_v39  ;;  %v2033_v50 = vmul.f32 %v2001_v57, %v8680_v39 }
 0x3db   :  { %v2050_v1 = vadd.f32 %v2018_v29, %v8678_v44  ;;  %v2126_v27 = vpack.c.bf16 %v2077_v28, %v2076_v8  ;;  %v2020_v35 = vmul.f32 %v1988_v34, %v8668_v51  ;;  %v2021_v14 = vmul.f32 %v1989_v62, %v8668_v51 }
 0x3dc   :  { %v2051_v12 = vadd.f32 %v2019_v42, %v8678_v44  ;;  %v2133_v49 = vpack.c.bf16 %v2091_v20, %v2090_v0  ;;  %v2064_v2 = vadd.f32 %v2032_v9, %v8702_v48  ;;  %v2065_v21 = vadd.f32 %v2033_v50, %v8702_v48 }
 0x3dd   :  { %v2082_v56 = vmax.f32 %v2050_v1, 0.0  ;;  %v2052_v31 = vadd.f32 %v2020_v35, %v8678_v44  ;;  %v2053_v7 = vadd.f32 %v2021_v14, %v8678_v44  ;;  %v2034_v46 = vmul.f32 %v2002_v30, %v8680_v39 }
 0x3de   :  { %v2083_v41 = vmax.f32 %v2051_v12, 0.0  ;;  %v2096_v55 = vmax.f32 %v2064_v2, 0.0  ;;  %v2097_v43 = vmax.f32 %v2065_v21, 0.0  ;;  %v2035_v22 = vmul.f32 %v2003_v5, %v8680_v39 }
 0x3df   :  { %v2022_v34 = vmul.f32 %v1990_v18, %v8668_v51  ;;  %v2084_v62 = vmax.f32 %v2052_v31, 0.0  ;;  %v2085_v40 = vmax.f32 %v2053_v7, 0.0  ;;  %v2066_v24 = vadd.f32 %v2034_v46, %v8702_v48 }
 0x3e0   :  { %v8769_v47 = vpack.c.bf16 %v2083_v41, %v2082_v56  ;;  %v8772_v59 = vpack.c.bf16 %v2097_v43, %v2096_v55  ;;  %v2067_v57 = vadd.f32 %v2035_v22, %v8702_v48  ;;  %v2023_v8 = vmul.f32 %v1991_v17, %v8668_v51 }
 0x3e1   :  { %v2054_v30 = vadd.f32 %v2022_v34, %v8678_v44  ;;  %v8777_v28 = vpack.c.bf16 %v2085_v40, %v2084_v62  ;;  %v2098_v0 = vmax.f32 %v2066_v24, 0.0  ;;  %v2036_v5 = vmul.f32 %v2004_v6, %v8680_v39 }
 0x3e2   :  { %v2037_v18 = vmul.f32 %v2005_v11, %v8680_v39  ;;  %v2099_v20 = vmax.f32 %v2067_v57, 0.0  ;;  %v2055_v29 = vadd.f32 %v2023_v8, %v8678_v44  ;;  %v2038_v1 = vmul.f32 %v2006_v23, %v8680_v39 }
 0x3e3   :  { %v2086_v42 = vmax.f32 %v2054_v30, 0.0  ;;  %v2068_v9 = vadd.f32 %v2036_v5, %v8702_v48  ;;  %v2039_v17 = vmul.f32 %v2007_v3, %v8680_v39  ;;  %v2040_v12 = vmul.f32 %v2008_v45, %v8680_v39 }
 0x3e4   :  { %v2069_v50 = vadd.f32 %v2037_v18, %v8702_v48  ;;  %v2028_v6 = vmul.f32 %v1996_v53, %v8680_v39  ;;  %v2137_v35 = vpack.c.bf16 %v2099_v20, %v2098_v0  ;;  %v2087_v11 = vmax.f32 %v2055_v29, 0.0 }
 0x3e5   :  { %v2070_v14 = vadd.f32 %v2038_v1, %v8702_v48  ;;  %v2100_v56 = vmax.f32 %v2068_v9, 0.0  ;;  %v2071_v23 = vadd.f32 %v2039_v17, %v8702_v48  ;;  %v2041_v21 = vmul.f32 %v8706_v19, %v8680_v39 }
 0x3e6   :  { %2205 = vmatmul.bf16.gmra.mxu1 %v2126_v27  ;;  %2240 = vmatmul.bf16.gmra.mxu3 %v2133_v49  ;;  %v2101_v2 = vmax.f32 %v2069_v50, 0.0  ;;  %v2029_v3 = vmul.f32 %v8732_v60, %v8680_v39  ;;  %v2131_v41 = vpack.c.bf16 %v2087_v11, %v2086_v42  ;;  %v2072_v27 = vadd.f32 %v2040_v12, %v8702_v48 }
 0x3e7   :  { %v2102_v45 = vmax.f32 %v2070_v14, 0.0  ;;  %v2103_v53 = vmax.f32 %v2071_v23, 0.0  ;;  %v2073_v31 = vadd.f32 %v2041_v21, %v8702_v48  ;;  %v2046_v43 = vadd.f32 %v2014_v32, %v8678_v44 }
 0x3e8   :  { %v2138_v49 = vpack.c.bf16 %v2101_v2, %v2100_v56  ;;  %v2104_v7 = vmax.f32 %v2072_v27, 0.0  ;;  %v2047_v22 = vadd.f32 %v2015_v58, %v8678_v44  ;;  %v2060_v19 = vadd.f32 %v2028_v6, %v8702_v48 }
 0x3e9   :  { %v2139_v46 = vpack.c.bf16 %v2103_v53, %v2102_v45  ;;  %v2105_v55 = vmax.f32 %v2073_v31, 0.0  ;;  %v2061_v34 = vadd.f32 %v2029_v3, %v8702_v48  ;;  %v2078_v40 = vmax.f32 %v2046_v43, 0.0 }
 0x3ea   :  { %v2079_v24 = vmax.f32 %v2047_v22, 0.0  ;;  %v2092_v57 = vmax.f32 %v2060_v19, 0.0  ;;  %v1984_v30 = vmul.f32 %v8665_v10, %v8567_v25  ;;  %v1985_v0 = vmul.f32 %v8665_v10, %v8572_v52 }
 0x3eb   :  { %v2140_v62 = vpack.c.bf16 %v2105_v55, %v2104_v7  ;;  %v2093_v8 = vmax.f32 %v2061_v34, 0.0  ;;  %v1998_v32 = vmul.f32 %v8665_v10, %v8516_v61  ;;  %v1999_v58 = vmul.f32 %v8665_v10, %v8518_v38 }
 0x3ec   :  { %v2127_v5 = vpack.c.bf16 %v2079_v24, %v2078_v40  ;;  %v2016_v29 = vmul.f32 %v1984_v30, %v8668_v51  ;;  %v2017_v42 = vmul.f32 %v1985_v0, %v8668_v51 }
 0x3ed   :  { %v2134_v18 = vpack.c.bf16 %v2093_v8, %v2092_v57  ;;  %v2030_v25 = vmul.f32 %v1998_v32, %v8680_v39  ;;  %v2031_v1 = vmul.f32 %v1999_v58, %v8680_v39  ;;  %v8854_v8 = vld [vmem:[%s13570_s7 + $0x1] ss:$0 sm:$0xff] }
 0x3ee   :  { %v2048_v52 = vadd.f32 %v2016_v29, %v8678_v44  ;;  %v2049_v61 = vadd.f32 %v2017_v42, %v8678_v44 }
 0x3ef   :  { %v8800_v60 = vpop.f32.mrf.mxu1  ;;  %v2062_v9 = vadd.f32 %v2030_v25, %v8702_v48  ;;  %v2063_v38 = vadd.f32 %v2031_v1, %v8702_v48 }
 0x3f0   :  { %13735 = vst [vmem:[#allocation45_spill] sm:$0xff] %v8800_v60  ;;  %v2080_v50 = vmax.f32 %v2048_v52, 0.0  ;;  %v2081_v17 = vmax.f32 %v2049_v61, 0.0 }
 0x3f1   :  { %v2094_v12 = vmax.f32 %v2062_v9, 0.0  ;;  %v2095_v6 = vmax.f32 %v2063_v38, 0.0 }
 0x3f2   :  { %v2128_v11 = vpack.c.bf16 %v2081_v17, %v2080_v50 }
 0x3f3   :  { %v2135_v51 = vpack.c.bf16 %v2095_v6, %v2094_v12 }
 0x3f6   :  { %2210 = vmatmul.bf16.gmra.mxu1 %v2127_v5  ;;  %2245 = vmatmul.bf16.gmra.mxu3 %v2134_v18 }
 0x3f7   :  { %v1114_v20 = vpop.f32.mrf.mxu1 }
 0x3ff   :  { %v8818_v10 = vpop.f32.mrf.mxu1 }
 0x400   :  { %13736 = vst [vmem:[#allocation46_spill] sm:$0xff] %v8818_v10 }
 0x406   :  { %2215 = vmatmul.bf16.gmra.mxu1 %v2128_v11  ;;  %2250 = vmatmul.bf16.gmra.mxu3 %v2135_v51 }
 0x407   :  { %v1166_v14 = vpop.f32.mrf.mxu1 }
 0x40f   :  { %v8820_v39 = vpop.f32.mrf.mxu1 }
 0x416   :  { %2220 = vmatmul.bf16.gmra.mxu1 %v8769_v47  ;;  %2255 = vmatmul.bf16.gmra.mxu3 %v8772_v59 }
 0x417   :  { %v1218_v56 = vpop.f32.mrf.mxu1 }
 0x41f   :  { %v8824_v44 = vpop.f32.mrf.mxu1 }
 0x420   :  { %13737 = vst [vmem:[#allocation47_spill] sm:$0xff] %v8824_v44  ;;  %v8826_v48 = vpop.f32.mrf.mxu3 }
 0x421   :  { %13738 = vst [vmem:[#allocation48_spill] sm:$0xff] %v8826_v48 }
 0x426   :  { %2225 = vmatmul.bf16.gmra.mxu1 %v8777_v28  ;;  %2260 = vmatmul.bf16.gmra.mxu3 %v2137_v35 }
 0x427   :  { %v1270_v2 = vpop.f32.mrf.mxu1 }
 0x428   :  { %v1244_v23 = vpop.f32.mrf.mxu3  ;;  %v13741_v2 = vld [vmem:[#allocation9_spill] sm:$0xff] }
 0x430   :  { %v8829_v21 = vpop.f32.mrf.mxu1  ;;  %v8831_v3 = vpop.f32.mrf.mxu3 }
 0x431   :  { %13739 = vst [vmem:[#allocation49_spill] sm:$0xff] %v8829_v21 }
 0x432   :  { %13740 = vst [vmem:[#allocation50_spill] sm:$0xff] %v8831_v3 }
 0x436   :  { %2230 = vmatmul.bf16.gmra.mxu1 %v2131_v41  ;;  %2265 = vmatmul.bf16.gmra.mxu3 %v2138_v49 }
 0x438   :  { %v1322_v45 = vpop.f32.mrf.mxu1  ;;  %v1296_v27 = vpop.f32.mrf.mxu3 }
 0x446   :  { %2270 = vmatmul.bf16.gmra.mxu3 %v2139_v46 }
 0x453   :  { %v2201_v47 = vpop.f32.mrf.mxu1 }
 0x454   :  { %v2202_v32 = vadd.f32 %v8854_v8, %v2201_v47  ;;  %v13742_v47 = vld [vmem:[#allocation10_spill] sm:$0xff] }
 0x456   :  { %2275 = vmatmul.bf16.gmra.mxu3 %v2140_v62  ;;  %v8866_v29 = vadd.f32 %v2202_v32, %v7796_v13  ;;  %v13748_v32 = vld [vmem:[#allocation13_spill] sm:$0xff] }
 0x459   :  { %v8833_v59 = vpop.f32.mrf.mxu3 }
 0x45b   :  { %v2203_v53 = vpop.f32.mrf.mxu1 }
 0x45c   :  { %v2204_v30 = vadd.f32 %v8854_v8, %v2203_v53 }
 0x45e   :  { %v8862_v18 = vadd.f32 %v2204_v30, %v7785_v33 }
 0x460   :  { %v2313_v1 = vadd.f32 %v8862_v18, %v8866_v29 }
 0x461   :  { %v8835_v31 = vpop.f32.mrf.mxu3 }
 0x463   :  { %v2206_v7 = vpop.f32.mrf.mxu1 }
 0x464   :  { %v2207_v58 = vadd.f32 %v8854_v8, %v2206_v7 }
 0x466   :  { %v8869_v42 = vadd.f32 %v2207_v58, %v7806_v15 }
 0x468   :  { %v2314_v9 = vadd.f32 %v2313_v1, %v8869_v42 }
 0x469   :  { %v8837_v28 = vpop.f32.mrf.mxu3 }
 0x46b   :  { %v2208_v35 = vpop.f32.mrf.mxu1 }
 0x46c   :  { %v2209_v20 = vadd.f32 %v8854_v8, %v2208_v35  ;;  %v13744_v35 = vld [vmem:[#allocation11_spill] sm:$0xff] }
 0x46e   :  { %v8875_v52 = vadd.f32 %v2209_v20, %v7813_v4  ;;  %v2237_v20 = vadd.f32 %v8854_v8, %v8833_v59 }
 0x470   :  { %v2315_v50 = vadd.f32 %v2314_v9, %v8875_v52 }
 0x471   :  { %v8839_v55 = vpop.f32.mrf.mxu3 }
 0x473   :  { %v2211_v43 = vpop.f32.mrf.mxu1 }
 0x474   :  { %v2212_v25 = vadd.f32 %v8854_v8, %v2211_v43 }
 0x476   :  { %v8882_v13 = vadd.f32 %v2212_v25, %v7817_v16 }
 0x478   :  { %v2316_v12 = vadd.f32 %v2315_v50, %v8882_v13  ;;  %v13752_v50 = vld [vmem:[#allocation15_spill] sm:$0xff] }
 0x479   :  { %v8841_v22 = vpop.f32.mrf.mxu3 }
 0x47b   :  { %v2213_v41 = vpop.f32.mrf.mxu1 }
 0x47c   :  { %v2214_v61 = vadd.f32 %v8854_v8, %v2213_v41 }
 0x47e   :  { %v8887_v17 = vadd.f32 %v2214_v61, %v7827_v36  ;;  %v2239_v61 = vadd.f32 %v8854_v8, %v8835_v31  ;;  %v2244_v31 = vadd.f32 %v8854_v8, %v8839_v55 }
 0x480   :  { %v2317_v16 = vadd.f32 %v2316_v12, %v8887_v17  ;;  %v2242_v12 = vadd.f32 %v8854_v8, %v8837_v28  ;;  %v13758_v28 = vld [vmem:[#allocation18_spill] sm:$0xff] }
 0x481   :  { %v8843_v49 = vpop.f32.mrf.mxu3 }
 0x483   :  { %v2216_v46 = vpop.f32.mrf.mxu1 }
 0x484   :  { %v2217_v15 = vadd.f32 %v8854_v8, %v2216_v46 }
 0x486   :  { %v8892_v6 = vadd.f32 %v2217_v15, %v7832_v37  ;;  %v13750_v15 = vld [vmem:[#allocation14_spill] sm:$0xff] }
 0x488   :  { %v2318_v36 = vadd.f32 %v2317_v16, %v8892_v6  ;;  %v13754_v16 = vld [vmem:[#allocation16_spill] sm:$0xff] }
 0x489   :  { %v8845_v19 = vpop.f32.mrf.mxu3 }
 0x48b   :  { %v2218_v34 = vpop.f32.mrf.mxu1 }
 0x48c   :  { %v2219_v4 = vadd.f32 %v8854_v8, %v2218_v34  ;;  %v13746_v34 = vld [vmem:[#allocation12_spill] sm:$0xff] }
 0x48e   :  { %v8897_v51 = vadd.f32 %v2219_v4, %v7843_v26  ;;  %v8934_v4 = vadd.f32 %v2237_v20, %v13752_v50  ;;  %v13768_v50 = vld [vmem:[#allocation23_spill] sm:$0xff] }
 0x490   :  { %v2319_v37 = vadd.f32 %v2318_v36, %v8897_v51  ;;  %13753 = vst [vmem:[#allocation14_spill] sm:$0xff] %v8934_v4 }
 0x491   :  { %v8847_v62 = vpop.f32.mrf.mxu3 }
 0x493   :  { %v2221_v40 = vpop.f32.mrf.mxu1 }
 0x494   :  { %v2222_v11 = vadd.f32 %v8854_v8, %v2221_v40 }
 0x496   :  { %v8902_v23 = vadd.f32 %v2222_v11, %v13741_v2  ;;  %v13756_v2 = vld [vmem:[#allocation17_spill] sm:$0xff] }
 0x498   :  { %v2320_v26 = vadd.f32 %v2319_v37, %v8902_v23 }
 0x499   :  { %v8849_v24 = vpop.f32.mrf.mxu3 }
 0x49b   :  { %v2223_v57 = vpop.f32.mrf.mxu1 }
 0x49c   :  { %v2224_v14 = vadd.f32 %v8854_v8, %v2223_v57 }
 0x49e   :  { %v8907_v53 = vadd.f32 %v2224_v14, %v13742_v47  ;;  %v8940_v14 = vadd.f32 %v2239_v61, %v13754_v16  ;;  %v8952_v47 = vadd.f32 %v2244_v31, %v13758_v28 }
 0x4a0   :  { %13743 = vst [vmem:[#allocation9_spill] sm:$0xff] %v8907_v53  ;;  %v2321_v46 = vadd.f32 %v2320_v26, %v8907_v53 }
 0x4a1   :  { %v8857_v0 = vpop.f32.mrf.mxu3  ;;  %13755 = vst [vmem:[#allocation15_spill] sm:$0xff] %v8940_v14 }
 0x4a2   :  { %13759 = vst [vmem:[#allocation17_spill] sm:$0xff] %v8952_v47 }
 0x4a3   :  { %v2226_v5 = vpop.f32.mrf.mxu1 }
 0x4a4   :  { %v2227_v45 = vadd.f32 %v8854_v8, %v2226_v5 }
 0x4a6   :  { %v8912_v43 = vadd.f32 %v2227_v45, %v13744_v35  ;;  %v8946_v45 = vadd.f32 %v2242_v12, %v13756_v2  ;;  %v13760_v35 = vld [vmem:[#allocation19_spill] sm:$0xff] }
 0x4a8   :  { %13745 = vst [vmem:[#allocation10_spill] sm:$0xff] %v8912_v43  ;;  %v2322_v30 = vadd.f32 %v2321_v46, %v8912_v43 }
 0x4a9   :  { %v8878_v33 = vpop.f32.mrf.mxu3  ;;  %13757 = vst [vmem:[#allocation16_spill] sm:$0xff] %v8946_v45 }
 0x4aa   :  { %v2262_v12 = vadd.f32 %v8854_v8, %v8878_v33 }
 0x4ab   :  { %v2228_v38 = vpop.f32.mrf.mxu1 }
 0x4ac   :  { %v2229_v7 = vadd.f32 %v8854_v8, %v2228_v38 }
 0x4ae   :  { %v8917_v40 = vadd.f32 %v2229_v7, %v13746_v34  ;;  %v2249_v7 = vadd.f32 %v8854_v8, %v8843_v49  ;;  %v13764_v49 = vld [vmem:[#allocation21_spill] sm:$0xff] }
 0x4b0   :  { %13747 = vst [vmem:[#allocation11_spill] sm:$0xff] %v8917_v40  ;;  %v2323_v25 = vadd.f32 %v2322_v30, %v8917_v40 }
 0x4b1   :  { %v2263_v56 = vpop.f32.mrf.mxu3 }
 0x4b3   :  { %v2231_v27 = vpop.f32.mrf.mxu1 }
 0x4b4   :  { %v2232_v41 = vadd.f32 %v8854_v8, %v2231_v27  ;;  %v2247_v27 = vadd.f32 %v8854_v8, %v8841_v22  ;;  %v13762_v22 = vld [vmem:[#allocation20_spill] sm:$0xff] }
 0x4b5   :  { %v8964_v30 = vadd.f32 %v2249_v7, %v13762_v22  ;;  %v13774_v7 = vld [vmem:[#allocation26_spill] sm:$0xff] }
 0x4b6   :  { %v8921_v58 = vadd.f32 %v2232_v41, %v13748_v32  ;;  %v8958_v55 = vadd.f32 %v2247_v27, %v13760_v35  ;;  %v2252_v41 = vadd.f32 %v8854_v8, %v8845_v19  ;;  %v2254_v32 = vadd.f32 %v8854_v8, %v8847_v62  ;;  %v13766_v19 = vld [vmem:[#allocation22_spill] sm:$0xff]  ;;  %v13772_v27 = vld [vmem:[#allocation25_spill] sm:$0xff] }
 0x4b7   :  { %13763 = vst [vmem:[#allocation19_spill] sm:$0xff] %v8964_v30 }
 0x4b8   :  { %13749 = vst [vmem:[#allocation12_spill] sm:$0xff] %v8921_v58  ;;  %v2324_v9 = vadd.f32 %v2323_v25, %v8921_v58  ;;  %v8970_v20 = vadd.f32 %v2252_v41, %v13764_v49  ;;  %v2257_v25 = vadd.f32 %v8854_v8, %v8849_v24  ;;  %v8976_v61 = vadd.f32 %v2254_v32, %v13766_v19  ;;  %v13770_v24 = vld [vmem:[#allocation24_spill] sm:$0xff]  ;;  %v13776_v41 = vld [vmem:[#allocation27_spill] sm:$0xff] }
 0x4b9   :  { %v2266_v57 = vpop.f32.mrf.mxu3  ;;  %13761 = vst [vmem:[#allocation18_spill] sm:$0xff] %v8958_v55 }
 0x4ba   :  { %13765 = vst [vmem:[#allocation20_spill] sm:$0xff] %v8970_v20  ;;  %v8982_v62 = vadd.f32 %v2257_v25, %v13768_v50 }
 0x4bb   :  { %v2233_v5 = vpop.f32.mrf.mxu1  ;;  %13767 = vst [vmem:[#allocation21_spill] sm:$0xff] %v8976_v61 }
 0x4bc   :  { %v2234_v1 = vadd.f32 %v8854_v8, %v2233_v5  ;;  %13769 = vst [vmem:[#allocation22_spill] sm:$0xff] %v8982_v62 }
 0x4be   :  { %v8931_v38 = vadd.f32 %v2234_v1, %v13750_v15 }
 0x4c0   :  { %13751 = vst [vmem:[#allocation13_spill] sm:$0xff] %v8931_v38  ;;  %v2325_v59 = vadd.f32 %v2324_v9, %v8931_v38  ;;  %v2259_v9 = vadd.f32 %v8854_v8, %v8857_v0  ;;  %v8993_v0 = vadd.f32 %v2262_v12, %v13772_v27  ;;  %v13786_v27 = vld [vmem:[#allocation32_spill] sm:$0xff] }
 0x4c1   :  { %v2268_v11 = vpop.f32.mrf.mxu3 }
 0x4c2   :  { %v2326_v36 = vadd.f32 %v2325_v59, %v8934_v4  ;;  %v8988_v31 = vadd.f32 %v2259_v9, %v13770_v24  ;;  %13773 = vst [vmem:[#allocation24_spill] sm:$0xff] %v8993_v0  ;;  %v2269_v33 = vadd.f32 %v8854_v8, %v2268_v11  ;;  %v13780_v11 = vld [vmem:[#allocation29_spill] sm:$0xff]  ;;  %v13784_v24 = vld [vmem:[#allocation31_spill] sm:$0xff] }
 0x4c4   :  { %v2327_v37 = vadd.f32 %v2326_v36, %v8940_v14  ;;  %13771 = vst [vmem:[#allocation23_spill] sm:$0xff] %v8988_v31  ;;  %v2264_v36 = vadd.f32 %v8854_v8, %v2263_v56 }
 0x4c6   :  { %v2328_v26 = vadd.f32 %v2327_v37, %v8946_v45  ;;  %v2267_v37 = vadd.f32 %v8854_v8, %v2266_v57 }
 0x4c8   :  { %v2329_v46 = vadd.f32 %v2328_v26, %v8952_v47  ;;  %v8998_v26 = vadd.f32 %v2264_v36, %v13774_v7 }
 0x4c9   :  { %v2271_v34 = vpop.f32.mrf.mxu3 }
 0x4ca   :  { %v2330_v5 = vadd.f32 %v2329_v46, %v8958_v55  ;;  %13775 = vst [vmem:[#allocation25_spill] sm:$0xff] %v8998_v26  ;;  %v9003_v46 = vadd.f32 %v2267_v37, %v13776_v41  ;;  %v2272_v22 = vadd.f32 %v8854_v8, %v2271_v34 }
 0x4cc   :  { %v2331_v1 = vadd.f32 %v2330_v5, %v8964_v30  ;;  %13777 = vst [vmem:[#allocation26_spill] sm:$0xff] %v9003_v46  ;;  %v13778_v5 = vld [vmem:[#allocation28_spill] sm:$0xff]  ;;  %v9014_v19 = vadd.f32 %v2272_v22, %v13780_v11 }
 0x4cd   :  { %v9008_v49 = vadd.f32 %v2269_v33, %v13778_v5 }
 0x4ce   :  { %v2332_v15 = vadd.f32 %v2331_v1, %v8970_v20  ;;  %13781 = vst [vmem:[#allocation28_spill] sm:$0xff] %v9014_v19 }
 0x4cf   :  { %13779 = vst [vmem:[#allocation27_spill] sm:$0xff] %v9008_v49 }
 0x4d0   :  { %v2333_v59 = vadd.f32 %v2332_v15, %v8976_v61  ;;  %v13782_v15 = vld [vmem:[#allocation30_spill] sm:$0xff] }
 0x4d1   :  { %v2273_v16 = vpop.f32.mrf.mxu3 }
 0x4d2   :  { %v2334_v2 = vadd.f32 %v2333_v59, %v8982_v62  ;;  %v2274_v25 = vadd.f32 %v8854_v8, %v2273_v16 }
 0x4d4   :  { %v2335_v28 = vadd.f32 %v2334_v2, %v8988_v31  ;;  %v9018_v50 = vadd.f32 %v2274_v25, %v13782_v15 }
 0x4d6   :  { %v2336_v35 = vadd.f32 %v2335_v28, %v8993_v0  ;;  %13783 = vst [vmem:[#allocation29_spill] sm:$0xff] %v9018_v50 }
 0x4d8   :  { %v2337_v56 = vadd.f32 %v2336_v35, %v8998_v26 }
 0x4d9   :  { %v2276_v32 = vpop.f32.mrf.mxu3 }
 0x4da   :  { %v2338_v57 = vadd.f32 %v2337_v56, %v9003_v46  ;;  %v2277_v34 = vadd.f32 %v8854_v8, %v2276_v32 }
 0x4dc   :  { %v2339_v1 = vadd.f32 %v2338_v57, %v9008_v49  ;;  %v9023_v36 = vadd.f32 %v2277_v34, %v13784_v24 }
 0x4de   :  { %v2340_v9 = vadd.f32 %v2339_v1, %v9014_v19  ;;  %13785 = vst [vmem:[#allocation30_spill] sm:$0xff] %v9023_v36 }
 0x4e0   :  { %v2341_v12 = vadd.f32 %v2340_v9, %v9018_v50 }
 0x4e1   :  { %v2278_v59 = vpop.f32.mrf.mxu3 }
 0x4e2   :  { %v2279_v16 = vadd.f32 %v8854_v8, %v2278_v59  ;;  %v2342_v2 = vadd.f32 %v2341_v12, %v9023_v36 }
 0x4e4   :  { %v9028_v37 = vadd.f32 %v2279_v16, %v13786_v27 }
 0x4e6   :  { %13787 = vst [vmem:[#allocation31_spill] sm:$0xff] %v9028_v37  ;;  %v2343_v28 = vadd.f32 %v2342_v2, %v9028_v37 }
 0x4e8   :  { %v2344_v7 = vrot.slane %v2343_v28, 4 }
 0x4ea   :  { %v2345_v33 = vadd.f32 %v2344_v7, %v2343_v28 }
 0x4ec   :  { %v2346_v35 = vrot.slane %v2345_v33, 2 }
 0x4ee   :  { %v2347_v41 = vadd.f32 %v2346_v35, %v2345_v33 }
 0x4f0   :  { %v2348_v56 = vrot.slane %v2347_v41, 1 }
 0x4f2   :  { %v2349_v22 = vadd.f32 %v2348_v56, %v2347_v41 }
 0x4f4   :  { %v9032_v32 = vmul.f32 %v2349_v22, %v8001_v54 }
 0x4f6   :  { %v9036_v5 = vsub.f32 %v8866_v29, %v9032_v32  ;;  %v9040_v8 = vsub.f32 %v8862_v18, %v9032_v32  ;;  %v9044_v57 = vsub.f32 %v8869_v42, %v9032_v32  ;;  %v9052_v11 = vsub.f32 %v8875_v52, %v9032_v32 }
 0x4f7   :  { %v9056_v9 = vsub.f32 %v8882_v13, %v9032_v32  ;;  %v9062_v12 = vsub.f32 %v8887_v17, %v9032_v32  ;;  %v9068_v16 = vsub.f32 %v8892_v6, %v9032_v32  ;;  %v9074_v28 = vsub.f32 %v8897_v51, %v9032_v32 }
 0x4f8   :  { %v2383_v25 = vmul.f32 %v9036_v5, %v9036_v5  ;;  %v2384_v1 = vmul.f32 %v9040_v8, %v9040_v8  ;;  %v2385_v15 = vmul.f32 %v9044_v57, %v9044_v57  ;;  %v2386_v59 = vmul.f32 %v9052_v11, %v9052_v11 }
 0x4f9   :  { %v2387_v2 = vmul.f32 %v9056_v9, %v9056_v9  ;;  %v2388_v7 = vmul.f32 %v9062_v12, %v9062_v12  ;;  %v9080_v35 = vsub.f32 %v8902_v23, %v9032_v32  ;;  %v2389_v41 = vmul.f32 %v9068_v16, %v9068_v16 }
 0x4fa   :  { %v2415_v34 = vadd.f32 %v2384_v1, %v2383_v25  ;;  %v9086_v22 = vsub.f32 %v8907_v53, %v9032_v32  ;;  %v2390_v25 = vmul.f32 %v9074_v28, %v9074_v28  ;;  %v9116_v21 = vsub.f32 %v8934_v4, %v9032_v32 }
 0x4fb   :  { %v9122_v10 = vsub.f32 %v8940_v14, %v9032_v32  ;;  %v9128_v3 = vsub.f32 %v8946_v45, %v9032_v32  ;;  %v9134_v44 = vsub.f32 %v8952_v47, %v9032_v32  ;;  %v9140_v60 = vsub.f32 %v8958_v55, %v9032_v32  ;;  %v7120_v14 = vld [vmem:[#allocation5 + $0xb0] sm:$0xff] }
 0x4fc   :  { %v2416_v24 = vadd.f32 %v2415_v34, %v2385_v15  ;;  %v9092_v15 = vsub.f32 %v8912_v43, %v9032_v32  ;;  %v2391_v34 = vmul.f32 %v9080_v35, %v9080_v35  ;;  %v9146_v48 = vsub.f32 %v8964_v30, %v9032_v32 }
 0x4fd   :  { %v9152_v47 = vsub.f32 %v8970_v20, %v9032_v32  ;;  %v9158_v55 = vsub.f32 %v8976_v61, %v9032_v32  ;;  %v9164_v30 = vsub.f32 %v8982_v62, %v9032_v32  ;;  %v9170_v20 = vsub.f32 %v8988_v31, %v9032_v32 }
 0x4fe   :  { %v2417_v27 = vadd.f32 %v2416_v24, %v2386_v59  ;;  %v9098_v24 = vsub.f32 %v8917_v40, %v9032_v32  ;;  %v9176_v61 = vsub.f32 %v8993_v0, %v9032_v32  ;;  %v9182_v62 = vsub.f32 %v8998_v26, %v9032_v32 }
 0x4ff   :  { %v9188_v31 = vsub.f32 %v9003_v46, %v9032_v32  ;;  %v9194_v0 = vsub.f32 %v9008_v49, %v9032_v32  ;;  %v9200_v26 = vsub.f32 %v9014_v19, %v9032_v32  ;;  %v9206_v46 = vsub.f32 %v9018_v50, %v9032_v32  ;;  %v7121_v50 = vld [vmem:[#allocation5 + $0xb8] sm:$0xff] }
 0x500   :  { %v2418_v33 = vadd.f32 %v2417_v27, %v2387_v2  ;;  %v2392_v2 = vmul.f32 %v9086_v22, %v9086_v22  ;;  %v9212_v49 = vsub.f32 %v9023_v36, %v9032_v32  ;;  %v2382_v19 = vsub.f32 %v9028_v37, %v9032_v32  ;;  %2678 = vmatpush.bf16.msrb.mxu0 %v7121_v50  ;;  %v7118_v37 = vld [vmem:[#allocation5 + $0xa0] sm:$0xff]  ;;  %v7116_v50 = vld [vmem:[#allocation5 + $0x90] sm:$0xff] }
 0x502   :  { %v2419_v56 = vadd.f32 %v2418_v33, %v2388_v7  ;;  %v9104_v7 = vsub.f32 %v8921_v58, %v9032_v32  ;;  %v2393_v33 = vmul.f32 %v9092_v15, %v9092_v15  ;;  %v2413_v45 = vmul.f32 %v9212_v49, %v9212_v49 }
 0x504   :  { %v2420_v1 = vadd.f32 %v2419_v56, %v2389_v41  ;;  %v9110_v56 = vsub.f32 %v8931_v38, %v9032_v32  ;;  %2679 = vmatpush.bf16.msrb.mxu0 %v7120_v14  ;;  %v7114_v14 = vld [vmem:[#allocation5 + $0x80] sm:$0xff] }
 0x506   :  { %v2421_v59 = vadd.f32 %v2420_v1, %v2390_v25  ;;  %v2394_v25 = vmul.f32 %v9098_v24, %v9098_v24 }
 0x508   :  { %v2422_v27 = vadd.f32 %v2421_v59, %v2391_v34  ;;  %v2395_v34 = vmul.f32 %v9104_v7, %v9104_v7 }
 0x50a   :  { %v2423_v41 = vadd.f32 %v2422_v27, %v2392_v2  ;;  %v2396_v2 = vmul.f32 %v9110_v56, %v9110_v56 }
 0x50c   :  { %v2424_v1 = vadd.f32 %v2423_v41, %v2393_v33  ;;  %v2397_v33 = vmul.f32 %v9116_v21, %v9116_v21 }
 0x50e   :  { %v2425_v59 = vadd.f32 %v2424_v1, %v2394_v25  ;;  %v2398_v25 = vmul.f32 %v9122_v10, %v9122_v10 }
 0x510   :  { %v2426_v27 = vadd.f32 %v2425_v59, %v2395_v34  ;;  %v2399_v34 = vmul.f32 %v9128_v3, %v9128_v3 }
 0x512   :  { %v2427_v41 = vadd.f32 %v2426_v27, %v2396_v2  ;;  %v2400_v2 = vmul.f32 %v9134_v44, %v9134_v44 }
 0x514   :  { %v2428_v1 = vadd.f32 %v2427_v41, %v2397_v33  ;;  %v2401_v33 = vmul.f32 %v9140_v60, %v9140_v60 }
 0x516   :  { %v2429_v59 = vadd.f32 %v2428_v1, %v2398_v25  ;;  %v2402_v25 = vmul.f32 %v9146_v48, %v9146_v48 }
 0x518   :  { %v2430_v27 = vadd.f32 %v2429_v59, %v2399_v34  ;;  %v2403_v34 = vmul.f32 %v9152_v47, %v9152_v47 }
 0x51a   :  { %v2431_v41 = vadd.f32 %v2430_v27, %v2400_v2  ;;  %v2404_v2 = vmul.f32 %v9158_v55, %v9158_v55 }
 0x51c   :  { %v2432_v1 = vadd.f32 %v2431_v41, %v2401_v33  ;;  %v2405_v33 = vmul.f32 %v9164_v30, %v9164_v30 }
 0x51e   :  { %v2433_v59 = vadd.f32 %v2432_v1, %v2402_v25  ;;  %v2406_v25 = vmul.f32 %v9170_v20, %v9170_v20 }
 0x520   :  { %v2434_v27 = vadd.f32 %v2433_v59, %v2403_v34  ;;  %v2407_v34 = vmul.f32 %v9176_v61, %v9176_v61 }
 0x522   :  { %v2435_v41 = vadd.f32 %v2434_v27, %v2404_v2  ;;  %v2408_v2 = vmul.f32 %v9182_v62, %v9182_v62 }
 0x524   :  { %v2436_v1 = vadd.f32 %v2435_v41, %v2405_v33  ;;  %v2409_v33 = vmul.f32 %v9188_v31, %v9188_v31 }
 0x526   :  { %v2437_v59 = vadd.f32 %v2436_v1, %v2406_v25  ;;  %v2410_v25 = vmul.f32 %v9194_v0, %v9194_v0 }
 0x528   :  { %v2438_v27 = vadd.f32 %v2437_v59, %v2407_v34  ;;  %v2411_v34 = vmul.f32 %v9200_v26, %v9200_v26 }
 0x52a   :  { %v2439_v41 = vadd.f32 %v2438_v27, %v2408_v2  ;;  %v2412_v2 = vmul.f32 %v9206_v46, %v9206_v46 }
 0x52c   :  { %v2440_v1 = vadd.f32 %v2439_v41, %v2409_v33  ;;  %v2414_v41 = vmul.f32 %v2382_v19, %v2382_v19 }
 0x52e   :  { %v2441_v59 = vadd.f32 %v2440_v1, %v2410_v25  ;;  %v7119_v25 = vld [vmem:[#allocation5 + $0xa8] sm:$0xff] }
 0x52f   :  { %2680 = vmatpush.bf16.msrb.mxu0 %v7119_v25 }
 0x530   :  { %v2442_v27 = vadd.f32 %v2441_v59, %v2411_v34  ;;  %v7117_v59 = vld [vmem:[#allocation5 + $0x98] sm:$0xff] }
 0x532   :  { %v2443_v33 = vadd.f32 %v2442_v27, %v2412_v2 }
 0x533   :  { %2681 = vmatpush.bf16.msrb.mxu0 %v7118_v37  ;;  %v783_v37 = vperm.slane %v8662_v63, 5 }
 0x534   :  { %v2444_v36 = vadd.f32 %v2443_v33, %v2413_v45  ;;  %v7115_v45 = vld [vmem:[#allocation5 + $0x88] sm:$0xff] }
 0x536   :  { %v2445_v4 = vadd.f32 %v2444_v36, %v2414_v41  ;;  %v13788_v41 = vld [vmem:[#allocation36_spill] sm:$0xff] }
 0x537   :  { %2682 = vmatpush.bf16.msrb.mxu0 %v7117_v59 }
 0x538   :  { %v2446_v38 = vrot.slane %v2445_v4, 4 }
 0x53a   :  { %v2447_v1 = vadd.f32 %v2446_v38, %v2445_v4  ;;  %v9226_v4 = vld [vmem:[%s13568_s5] sm:$0xff] }
 0x53b   :  { %2683 = vmatpush.bf16.msrb.mxu0 %v7116_v50 }
 0x53c   :  { %v2448_v32 = vrot.slane %v2447_v1, 2 }
 0x53e   :  { %v2449_v58 = vadd.f32 %v2448_v32, %v2447_v1  ;;  %v1217_v1 = vadd.f32 %v8820_v39, %v783_v37 }
 0x53f   :  { %2684 = vmatpush.bf16.msrb.mxu0 %v7115_v45 }
 0x540   :  { %v2450_v34 = vrot.slane %v2449_v58, 1  ;;  %v9236_v50 = vperm.slane %v1217_v1, 0  ;;  %v9238_v45 = vperm.slane %v1217_v1, 1 }
 0x542   :  { %v2451_v40 = vadd.f32 %v2450_v34, %v2449_v58  ;;  %v772_v58 = vperm.slane %v9226_v4, 2 }
 0x543   :  { %2685 = vmatpush.bf16.msrb.mxu0 %v7114_v14 }
 0x544   :  { %v2452_v2 = vmul.f32 %v2451_v40, %v8001_v54  ;;  %v1074_v25 = vadd.f32 %v13788_v41, %v772_v58 }
 0x546   :  { %v2453_v27 = vadd.f32 1e-05, %v2452_v2  ;;  %v9232_v59 = vperm.slane %v1074_v25, 0  ;;  %v9234_v2 = vperm.slane %v1074_v25, 1 }
 0x548   :  { %7268 = vrsqrt.f32 %v2453_v27  ;;  %vm2460_vm9 = vweird.f32 %v2453_v27 }
 0x54e   :  { %v7269_v36 = vpop.eup %7268 }
 0x54f   :  { %v2455_v38 = vmul.f32 %v7269_v36, %v2453_v27  ;;  %vm2461_vm8 = vweird.f32 %v7269_v36 }
 0x550   :  { %vm2462_vm10 = vmor %vm2460_vm9, %vm2461_vm8 }
 0x551   :  { %v2456_v40 = vmul.f32 %v7269_v36, %v2455_v38 }
 0x553   :  { %v2457_v33 = vmul.f32 0.5, %v2456_v40 }
 0x555   :  { %v2458_v32 = vsub.f32 1.5, %v2457_v33 }
 0x557   :  { %v2459_v34 = vmul.f32 %v7269_v36, %v2458_v32 }
 0x559   :  { %v2463_v63 = vsel %vm2462_vm10, %v7269_v36, %v2459_v34 }
 0x55a   :  { %v9240_v14 = vmul.f32 %v2463_v63, %v2382_v19  ;;  %v2464_v38 = vmul.f32 %v2463_v63, %v9036_v5  ;;  %v2465_v39 = vmul.f32 %v2463_v63, %v9040_v8  ;;  %v2466_v58 = vmul.f32 %v2463_v63, %v9044_v57 }
 0x55b   :  { %v2467_v27 = vmul.f32 %v2463_v63, %v9052_v11  ;;  %v2468_v37 = vmul.f32 %v2463_v63, %v9056_v9  ;;  %v2469_v40 = vmul.f32 %v2463_v63, %v9062_v12  ;;  %v2470_v33 = vmul.f32 %v2463_v63, %v9068_v16 }
 0x55c   :  { %v2471_v41 = vmul.f32 %v2463_v63, %v9074_v28  ;;  %v2472_v36 = vmul.f32 %v2463_v63, %v9080_v35  ;;  %v2473_v19 = vmul.f32 %v2463_v63, %v9086_v22  ;;  %v2474_v5 = vmul.f32 %v2463_v63, %v9092_v15 }
 0x55d   :  { %v2475_v8 = vmul.f32 %v2463_v63, %v9098_v24  ;;  %v2476_v57 = vmul.f32 %v2463_v63, %v9104_v7  ;;  %v2477_v11 = vmul.f32 %v2463_v63, %v9110_v56  ;;  %v2478_v9 = vmul.f32 %v2463_v63, %v9116_v21 }
 0x55e   :  { %v2479_v12 = vmul.f32 %v2463_v63, %v9122_v10  ;;  %v9259_v16 = vmul.f32 %v2463_v63, %v9128_v3  ;;  %v9262_v28 = vmul.f32 %v2463_v63, %v9134_v44  ;;  %v9265_v35 = vmul.f32 %v2463_v63, %v9140_v60 }
 0x55f   :  { %v9268_v22 = vmul.f32 %v2463_v63, %v9146_v48  ;;  %v9271_v15 = vmul.f32 %v2463_v63, %v9152_v47  ;;  %v9274_v24 = vmul.f32 %v2463_v63, %v9158_v55  ;;  %v9277_v10 = vmul.f32 %v2463_v63, %v9164_v30 }
 0x560   :  { %v9280_v21 = vmul.f32 %v2463_v63, %v9170_v20  ;;  %v9283_v44 = vmul.f32 %v2463_v63, %v9176_v61  ;;  %v9286_v60 = vmul.f32 %v2463_v63, %v9182_v62  ;;  %v9289_v48 = vmul.f32 %v2463_v63, %v9188_v31 }
 0x561   :  { %v9292_v3 = vmul.f32 %v2463_v63, %v9194_v0  ;;  %v9295_v47 = vmul.f32 %v2463_v63, %v9200_v26  ;;  %v9298_v55 = vmul.f32 %v2463_v63, %v9206_v46  ;;  %v9301_v30 = vmul.f32 %v2463_v63, %v9212_v49 }
 0x562   :  { %v2496_v20 = vmul.f32 %v2464_v38, %v9232_v59  ;;  %v2497_v61 = vmul.f32 %v2465_v39, %v9232_v59  ;;  %v2498_v62 = vmul.f32 %v2466_v58, %v9232_v59  ;;  %v2499_v31 = vmul.f32 %v2467_v27, %v9232_v59 }
 0x563   :  { %v2500_v0 = vmul.f32 %v2468_v37, %v9232_v59  ;;  %v2501_v7 = vmul.f32 %v2469_v40, %v9232_v59  ;;  %v2502_v26 = vmul.f32 %v2470_v33, %v9232_v59  ;;  %v2503_v46 = vmul.f32 %v2471_v41, %v9232_v59 }
 0x564   :  { %v2528_v56 = vadd.f32 %v2496_v20, %v9236_v50  ;;  %v2529_v49 = vadd.f32 %v2497_v61, %v9236_v50  ;;  %v2530_v25 = vadd.f32 %v2498_v62, %v9236_v50  ;;  %v2531_v1 = vadd.f32 %v2499_v31, %v9236_v50 }
 0x565   :  { %v2532_v32 = vadd.f32 %v2500_v0, %v9236_v50  ;;  %v2533_v34 = vadd.f32 %v2501_v7, %v9236_v50  ;;  %v2534_v63 = vadd.f32 %v2502_v26, %v9236_v50  ;;  %v2535_v38 = vadd.f32 %v2503_v46, %v9236_v50 }
 0x566   :  { %v2560_v39 = vmax.f32 %v2528_v56, 0.0  ;;  %v2561_v58 = vmax.f32 %v2529_v49, 0.0  ;;  %v2562_v27 = vmax.f32 %v2530_v25, 0.0  ;;  %v2563_v37 = vmax.f32 %v2531_v1, 0.0 }
 0x567   :  { %v2564_v40 = vmax.f32 %v2532_v32, 0.0  ;;  %v2565_v33 = vmax.f32 %v2533_v34, 0.0  ;;  %v2566_v41 = vmax.f32 %v2534_v63, 0.0  ;;  %v2567_v20 = vmax.f32 %v2535_v38, 0.0 }
 0x568   :  { %v2611_v61 = vpack.c.bf16 %v2561_v58, %v2560_v39  ;;  %v9319_v62 = vpack.c.bf16 %v2563_v37, %v2562_v27  ;;  %v2504_v31 = vmul.f32 %v2472_v36, %v9232_v59  ;;  %v2505_v0 = vmul.f32 %v2473_v19, %v9232_v59 }
 0x569   :  { %v9323_v7 = vpack.c.bf16 %v2565_v33, %v2564_v40  ;;  %v9325_v26 = vpack.c.bf16 %v2567_v20, %v2566_v41  ;;  %v2506_v46 = vmul.f32 %v2474_v5, %v9232_v59  ;;  %v2507_v56 = vmul.f32 %v2475_v8, %v9232_v59 }
 0x56a   :  { %2686 = vmatmul.bf16.vlgmr.msrb.gmra.mxu0 %v2611_v61  ;;  %v2536_v49 = vadd.f32 %v2504_v31, %v9236_v50  ;;  %v2537_v25 = vadd.f32 %v2505_v0, %v9236_v50  ;;  %v2508_v1 = vmul.f32 %v2476_v57, %v9232_v59  ;;  %v2509_v32 = vmul.f32 %v2477_v11, %v9232_v59 }
 0x56b   :  { %v2538_v36 = vadd.f32 %v2506_v46, %v9236_v50  ;;  %v2539_v19 = vadd.f32 %v2507_v56, %v9236_v50  ;;  %v2510_v34 = vmul.f32 %v2478_v9, %v9232_v59  ;;  %v2511_v63 = vmul.f32 %v2479_v12, %v9232_v59 }
 0x56c   :  { %v2568_v5 = vmax.f32 %v2536_v49, 0.0  ;;  %v2569_v38 = vmax.f32 %v2537_v25, 0.0  ;;  %v2540_v8 = vadd.f32 %v2508_v1, %v9236_v50  ;;  %v2541_v39 = vadd.f32 %v2509_v32, %v9236_v50 }
 0x56d   :  { %v2570_v58 = vmax.f32 %v2538_v36, 0.0  ;;  %v2571_v27 = vmax.f32 %v2539_v19, 0.0  ;;  %v2542_v57 = vadd.f32 %v2510_v34, %v9236_v50  ;;  %v2543_v11 = vadd.f32 %v2511_v63, %v9236_v50 }
 0x56e   :  { %v9341_v37 = vpack.c.bf16 %v2569_v38, %v2568_v5  ;;  %v2572_v40 = vmax.f32 %v2540_v8, 0.0  ;;  %v2573_v33 = vmax.f32 %v2541_v39, 0.0  ;;  %v2512_v9 = vmul.f32 %v9259_v16, %v9234_v2 }
 0x56f   :  { %v9345_v59 = vpack.c.bf16 %v2571_v27, %v2570_v58  ;;  %v2574_v12 = vmax.f32 %v2542_v57, 0.0  ;;  %v2575_v41 = vmax.f32 %v2543_v11, 0.0  ;;  %v2513_v20 = vmul.f32 %v9262_v28, %v9234_v2 }
 0x570   :  { %v2617_v61 = vpack.c.bf16 %v2573_v33, %v2572_v40  ;;  %v2544_v31 = vadd.f32 %v2512_v9, %v9238_v45  ;;  %v2514_v50 = vmul.f32 %v9265_v35, %v9234_v2  ;;  %v2515_v0 = vmul.f32 %v9268_v22, %v9234_v2 }
 0x571   :  { %v2618_v46 = vpack.c.bf16 %v2575_v41, %v2574_v12  ;;  %v2545_v56 = vadd.f32 %v2513_v20, %v9238_v45  ;;  %v2516_v16 = vmul.f32 %v9271_v15, %v9234_v2  ;;  %v2517_v49 = vmul.f32 %v9274_v24, %v9234_v2 }
 0x572   :  { %v2576_v25 = vmax.f32 %v2544_v31, 0.0  ;;  %v2546_v28 = vadd.f32 %v2514_v50, %v9238_v45  ;;  %v2547_v1 = vadd.f32 %v2515_v0, %v9238_v45  ;;  %v2518_v35 = vmul.f32 %v9277_v10, %v9234_v2 }
 0x573   :  { %v2577_v32 = vmax.f32 %v2545_v56, 0.0  ;;  %v2548_v22 = vadd.f32 %v2516_v16, %v9238_v45  ;;  %v2549_v36 = vadd.f32 %v2517_v49, %v9238_v45  ;;  %v2519_v19 = vmul.f32 %v9280_v21, %v9234_v2 }
 0x574   :  { %v2578_v15 = vmax.f32 %v2546_v28, 0.0  ;;  %v2579_v34 = vmax.f32 %v2547_v1, 0.0  ;;  %v2550_v24 = vadd.f32 %v2518_v35, %v9238_v45  ;;  %v2520_v63 = vmul.f32 %v9283_v44, %v9234_v2 }
 0x575   :  { %v2619_v5 = vpack.c.bf16 %v2577_v32, %v2576_v25  ;;  %v2580_v38 = vmax.f32 %v2548_v22, 0.0  ;;  %v2581_v8 = vmax.f32 %v2549_v36, 0.0  ;;  %v2551_v10 = vadd.f32 %v2519_v19, %v9238_v45 }
 0x576   :  { %v2620_v39 = vpack.c.bf16 %v2579_v34, %v2578_v15  ;;  %v2582_v58 = vmax.f32 %v2550_v24, 0.0  ;;  %v2521_v27 = vmul.f32 %v9286_v60, %v9234_v2  ;;  %v2552_v57 = vadd.f32 %v2520_v63, %v9238_v45 }
 0x577   :  { %v2621_v21 = vpack.c.bf16 %v2581_v8, %v2580_v38  ;;  %v2583_v11 = vmax.f32 %v2551_v10, 0.0  ;;  %v2522_v40 = vmul.f32 %v9289_v48, %v9234_v2  ;;  %v2523_v44 = vmul.f32 %v9292_v3, %v9234_v2 }
 0x578   :  { %v2553_v33 = vadd.f32 %v2521_v27, %v9238_v45  ;;  %v2584_v9 = vmax.f32 %v2552_v57, 0.0  ;;  %v2524_v12 = vmul.f32 %v9295_v47, %v9234_v2  ;;  %v2525_v41 = vmul.f32 %v9298_v55, %v9234_v2 }
 0x579   :  { %v2622_v60 = vpack.c.bf16 %v2583_v11, %v2582_v58  ;;  %v2554_v20 = vadd.f32 %v2522_v40, %v9238_v45  ;;  %v2555_v31 = vadd.f32 %v2523_v44, %v9238_v45  ;;  %v2526_v48 = vmul.f32 %v9301_v30, %v9234_v2  ;;  %v9401_v11 = vld [vmem:[%s13570_s7 + $0x2] ss:$0 sm:$0xff] }
 0x57a   :  { %2691 = vmatmul.bf16.gmra.mxu0 %v9319_v62  ;;  %v2585_v3 = vmax.f32 %v2553_v33, 0.0  ;;  %v2556_v50 = vadd.f32 %v2524_v12, %v9238_v45  ;;  %v2557_v0 = vadd.f32 %v2525_v41, %v9238_v45  ;;  %v2527_v47 = vmul.f32 %v9240_v14, %v9234_v2 }
 0x57b   :  { %v2586_v56 = vmax.f32 %v2554_v20, 0.0  ;;  %v2587_v55 = vmax.f32 %v2555_v31, 0.0  ;;  %v2558_v16 = vadd.f32 %v2526_v48, %v9238_v45 }
 0x57c   :  { %v2623_v49 = vpack.c.bf16 %v2585_v3, %v2584_v9  ;;  %v2588_v25 = vmax.f32 %v2556_v50, 0.0  ;;  %v2589_v28 = vmax.f32 %v2557_v0, 0.0  ;;  %v2559_v1 = vadd.f32 %v2527_v47, %v9238_v45 }
 0x57d   :  { %v2624_v30 = vpack.c.bf16 %v2587_v55, %v2586_v56  ;;  %v2590_v35 = vmax.f32 %v2558_v16, 0.0 }
 0x57e   :  { %v2625_v62 = vpack.c.bf16 %v2589_v28, %v2588_v25  ;;  %v2591_v32 = vmax.f32 %v2559_v1, 0.0 }
 0x580   :  { %v2626_v22 = vpack.c.bf16 %v2591_v32, %v2590_v35 }
 0x58a   :  { %2696 = vmatmul.bf16.gmra.mxu0 %v9323_v7 }
 0x59a   :  { %2701 = vmatmul.bf16.gmra.mxu0 %v9325_v26 }
 0x5aa   :  { %2706 = vmatmul.bf16.gmra.mxu0 %v9341_v37 }
 0x5ba   :  { %2711 = vmatmul.bf16.gmra.mxu0 %v9345_v59 }
 0x5ca   :  { %2716 = vmatmul.bf16.gmra.mxu0 %v2617_v61 }
 0x5da   :  { %2721 = vmatmul.bf16.gmra.mxu0 %v2618_v46 }
 0x5e7   :  { %v2687_v2 = vpop.f32.mrf.mxu0 }
 0x5e8   :  { %v9407_v44 = vadd.f32 %v9401_v11, %v2687_v2 }
 0x5ea   :  { %2726 = vmatmul.bf16.gmra.mxu0 %v2619_v5 }
 0x5ef   :  { %v2689_v14 = vpop.f32.mrf.mxu0 }
 0x5f0   :  { %v9404_v40 = vadd.f32 %v9401_v11, %v2689_v14 }
 0x5f2   :  { %v2767_v9 = vadd.f32 %v9404_v40, %v9407_v44 }
 0x5f7   :  { %v2692_v36 = vpop.f32.mrf.mxu0 }
 0x5f8   :  { %v9410_v33 = vadd.f32 %v9401_v11, %v2692_v36 }
 0x5fa   :  { %2731 = vmatmul.bf16.gmra.mxu0 %v2620_v39 }
 0x5ff   :  { %v2694_v45 = vpop.f32.mrf.mxu0 }
 0x600   :  { %v9415_v12 = vadd.f32 %v9401_v11, %v2694_v45 }
 0x607   :  { %v2697_v19 = vpop.f32.mrf.mxu0 }
 0x608   :  { %v9419_v20 = vadd.f32 %v9401_v11, %v2697_v19 }
 0x60a   :  { %2736 = vmatmul.bf16.gmra.mxu0 %v2621_v21 }
 0x60f   :  { %v2699_v15 = vpop.f32.mrf.mxu0 }
 0x610   :  { %v9423_v48 = vadd.f32 %v9401_v11, %v2699_v15 }
 0x617   :  { %v2702_v34 = vpop.f32.mrf.mxu0 }
 0x618   :  { %v9427_v50 = vadd.f32 %v9401_v11, %v2702_v34 }
 0x61a   :  { %2741 = vmatmul.bf16.gmra.mxu0 %v2622_v60  ;;  %v2768_v60 = vadd.f32 %v2767_v9, %v9410_v33 }
 0x61c   :  { %v2769_v31 = vadd.f32 %v2768_v60, %v9415_v12 }
 0x61e   :  { %v2770_v3 = vadd.f32 %v2769_v31, %v9419_v20 }
 0x61f   :  { %v2704_v7 = vpop.f32.mrf.mxu0 }
 0x620   :  { %v2771_v0 = vadd.f32 %v2770_v3, %v9423_v48  ;;  %v9431_v47 = vadd.f32 %v9401_v11, %v2704_v7 }
 0x622   :  { %v2772_v55 = vadd.f32 %v2771_v0, %v9427_v50 }
 0x627   :  { %v2707_v24 = vpop.f32.mrf.mxu0 }
 0x628   :  { %v9435_v16 = vadd.f32 %v9401_v11, %v2707_v24 }
 0x62a   :  { %2746 = vmatmul.bf16.gmra.mxu0 %v2623_v49  ;;  %v2773_v49 = vadd.f32 %v2772_v55, %v9431_v47 }
 0x62c   :  { %v2774_v28 = vadd.f32 %v2773_v49, %v9435_v16 }
 0x62f   :  { %v2709_v26 = vpop.f32.mrf.mxu0 }
 0x630   :  { %v9439_v25 = vadd.f32 %v9401_v11, %v2709_v26 }
 0x637   :  { %v2712_v37 = vpop.f32.mrf.mxu0 }
 0x638   :  { %v9443_v1 = vadd.f32 %v9401_v11, %v2712_v37 }
 0x63a   :  { %2751 = vmatmul.bf16.gmra.mxu0 %v2624_v30  ;;  %v2775_v30 = vadd.f32 %v2774_v28, %v9439_v25 }
 0x63c   :  { %v2776_v32 = vadd.f32 %v2775_v30, %v9443_v1 }
 0x63f   :  { %v2714_v59 = vpop.f32.mrf.mxu0 }
 0x640   :  { %v9447_v35 = vadd.f32 %v9401_v11, %v2714_v59 }
 0x642   :  { %v2777_v2 = vadd.f32 %v2776_v32, %v9447_v35 }
 0x647   :  { %v2717_v61 = vpop.f32.mrf.mxu0 }
 0x64a   :  { %2756 = vmatmul.bf16.gmra.mxu0 %v2625_v62 }
 0x64f   :  { %v2719_v46 = vpop.f32.mrf.mxu0 }
 0x650   :  { %v9455_v14 = vadd.f32 %v9401_v11, %v2719_v46 }
 0x657   :  { %v2722_v63 = vpop.f32.mrf.mxu0 }
 0x658   :  { %v9459_v45 = vadd.f32 %v9401_v11, %v2722_v63 }
 0x65a   :  { %2761 = vmatmul.bf16.gmra.mxu0 %v2626_v22  ;;  %v9451_v22 = vadd.f32 %v9401_v11, %v2717_v61 }
 0x65c   :  { %v2778_v36 = vadd.f32 %v2777_v2, %v9451_v22 }
 0x65e   :  { %v2779_v19 = vadd.f32 %v2778_v36, %v9455_v14 }
 0x65f   :  { %v2724_v5 = vpop.f32.mrf.mxu0 }
 0x660   :  { %v9463_v15 = vadd.f32 %v9401_v11, %v2724_v5  ;;  %v2780_v7 = vadd.f32 %v2779_v19, %v9459_v45 }
 0x662   :  { %v2781_v26 = vadd.f32 %v2780_v7, %v9463_v15 }
 0x667   :  { %v2727_v38 = vpop.f32.mrf.mxu0 }
 0x668   :  { %v9467_v24 = vadd.f32 %v9401_v11, %v2727_v38 }
 0x66a   :  { %v2782_v59 = vadd.f32 %v2781_v26, %v9467_v24 }
 0x66f   :  { %v2729_v8 = vpop.f32.mrf.mxu0 }
 0x670   :  { %v9471_v37 = vadd.f32 %v9401_v11, %v2729_v8 }
 0x672   :  { %v2783_v46 = vadd.f32 %v2782_v59, %v9471_v37 }
 0x677   :  { %v2732_v10 = vpop.f32.mrf.mxu0 }
 0x678   :  { %v9475_v61 = vadd.f32 %v9401_v11, %v2732_v10 }
 0x67a   :  { %v2784_v9 = vadd.f32 %v2783_v46, %v9475_v61 }
 0x67f   :  { %v2734_v39 = vpop.f32.mrf.mxu0 }
 0x680   :  { %v9479_v63 = vadd.f32 %v9401_v11, %v2734_v39 }
 0x682   :  { %v2785_v60 = vadd.f32 %v2784_v9, %v9479_v63 }
 0x687   :  { %v2737_v58 = vpop.f32.mrf.mxu0 }
 0x688   :  { %v9483_v38 = vadd.f32 %v9401_v11, %v2737_v58 }
 0x68a   :  { %v2786_v31 = vadd.f32 %v2785_v60, %v9483_v38 }
 0x68f   :  { %v2739_v27 = vpop.f32.mrf.mxu0 }
 0x690   :  { %v9487_v8 = vadd.f32 %v9401_v11, %v2739_v27 }
 0x692   :  { %v2787_v3 = vadd.f32 %v2786_v31, %v9487_v8 }
 0x697   :  { %v2742_v57 = vpop.f32.mrf.mxu0 }
 0x698   :  { %v9491_v10 = vadd.f32 %v9401_v11, %v2742_v57 }
 0x69a   :  { %v2788_v55 = vadd.f32 %v2787_v3, %v9491_v10 }
 0x69f   :  { %v2744_v21 = vpop.f32.mrf.mxu0 }
 0x6a0   :  { %v9495_v39 = vadd.f32 %v9401_v11, %v2744_v21 }
 0x6a2   :  { %v2789_v49 = vadd.f32 %v2788_v55, %v9495_v39 }
 0x6a7   :  { %v2747_v41 = vpop.f32.mrf.mxu0 }
 0x6a8   :  { %v9499_v58 = vadd.f32 %v9401_v11, %v2747_v41 }
 0x6aa   :  { %v2790_v28 = vadd.f32 %v2789_v49, %v9499_v58 }
 0x6af   :  { %v2749_v56 = vpop.f32.mrf.mxu0 }
 0x6b0   :  { %v9503_v27 = vadd.f32 %v9401_v11, %v2749_v56 }
 0x6b2   :  { %v2791_v30 = vadd.f32 %v2790_v28, %v9503_v27 }
 0x6b7   :  { %v2752_v62 = vpop.f32.mrf.mxu0 }
 0x6b8   :  { %v9507_v57 = vadd.f32 %v9401_v11, %v2752_v62 }
 0x6ba   :  { %v2792_v2 = vadd.f32 %v2791_v30, %v9507_v57 }
 0x6bf   :  { %v2754_v34 = vpop.f32.mrf.mxu0 }
 0x6c0   :  { %v9511_v21 = vadd.f32 %v9401_v11, %v2754_v34 }
 0x6c2   :  { %v2793_v36 = vadd.f32 %v2792_v2, %v9511_v21 }
 0x6c7   :  { %v2757_v5 = vpop.f32.mrf.mxu0 }
 0x6c8   :  { %v9515_v41 = vadd.f32 %v9401_v11, %v2757_v5 }
 0x6ca   :  { %v2794_v19 = vadd.f32 %v2793_v36, %v9515_v41 }
 0x6cf   :  { %v2759_v0 = vpop.f32.mrf.mxu0 }
 0x6d0   :  { %v9519_v56 = vadd.f32 %v9401_v11, %v2759_v0 }
 0x6d2   :  { %v2795_v7 = vadd.f32 %v2794_v19, %v9519_v56 }
 0x6d7   :  { %v2762_v32 = vpop.f32.mrf.mxu0 }
 0x6d8   :  { %v9523_v62 = vadd.f32 %v9401_v11, %v2762_v32 }
 0x6da   :  { %v2796_v26 = vadd.f32 %v2795_v7, %v9523_v62 }
 0x6df   :  { %v2764_v34 = vpop.f32.mrf.mxu0 }
 0x6e0   :  { %v9528_v59 = vadd.f32 %v9401_v11, %v2764_v34 }
 0x6e2   :  { %v2797_v46 = vadd.f32 %v2796_v26, %v9528_v59 }
 0x6e4   :  { %v2798_v5 = vrot.slane %v2797_v46, 4 }
 0x6e6   :  { %v2799_v9 = vadd.f32 %v2798_v5, %v2797_v46 }
 0x6e8   :  { %v2800_v60 = vrot.slane %v2799_v9, 2 }
 0x6ea   :  { %v2801_v31 = vadd.f32 %v2800_v60, %v2799_v9 }
 0x6ec   :  { %v2802_v3 = vrot.slane %v2801_v31, 1 }
 0x6ee   :  { %v2803_v0 = vadd.f32 %v2802_v3, %v2801_v31 }
 0x6f0   :  { %v9532_v55 = vmul.f32 %v2803_v0, %v8001_v54 }
 0x6f2   :  { %v9536_v49 = vsub.f32 %v9407_v44, %v9532_v55  ;;  %v9540_v28 = vsub.f32 %v9404_v40, %v9532_v55  ;;  %v9544_v11 = vsub.f32 %v9410_v33, %v9532_v55  ;;  %v9552_v2 = vsub.f32 %v9415_v12, %v9532_v55 }
 0x6f3   :  { %v9556_v44 = vsub.f32 %v9419_v20, %v9532_v55  ;;  %v9562_v33 = vsub.f32 %v9423_v48, %v9532_v55  ;;  %v9568_v12 = vsub.f32 %v9427_v50, %v9532_v55  ;;  %v9574_v26 = vsub.f32 %v9431_v47, %v9532_v55 }
 0x6f4   :  { %v2837_v30 = vmul.f32 %v9536_v49, %v9536_v49  ;;  %v2838_v32 = vmul.f32 %v9540_v28, %v9540_v28  ;;  %v2839_v40 = vmul.f32 %v9544_v11, %v9544_v11  ;;  %v2840_v19 = vmul.f32 %v9552_v2, %v9552_v2 }
 0x6f5   :  { %v2841_v20 = vmul.f32 %v9556_v44, %v9556_v44  ;;  %v2842_v48 = vmul.f32 %v9562_v33, %v9562_v33  ;;  %v9580_v5 = vsub.f32 %v9435_v16, %v9532_v55  ;;  %v2843_v50 = vmul.f32 %v9568_v12, %v9568_v12 }
 0x6f6   :  { %v2869_v36 = vadd.f32 %v2838_v32, %v2837_v30  ;;  %v9586_v60 = vsub.f32 %v9439_v25, %v9532_v55  ;;  %v2844_v47 = vmul.f32 %v9574_v26, %v9574_v26  ;;  %v9592_v3 = vsub.f32 %v9443_v1, %v9532_v55 }
 0x6f7   :  { %v2845_v16 = vmul.f32 %v9580_v5, %v9580_v5  ;;  %v9598_v30 = vsub.f32 %v9447_v35, %v9532_v55 }
 0x6f8   :  { %v2870_v7 = vadd.f32 %v2869_v36, %v2839_v40  ;;  %v2846_v25 = vmul.f32 %v9586_v60, %v9586_v60  ;;  %v9604_v40 = vsub.f32 %v9451_v22, %v9532_v55  ;;  %v2847_v1 = vmul.f32 %v9592_v3, %v9592_v3 }
 0x6f9   :  { %v2848_v35 = vmul.f32 %v9598_v30, %v9598_v30 }
 0x6fa   :  { %v2871_v34 = vadd.f32 %v2870_v7, %v2840_v19  ;;  %v9610_v19 = vsub.f32 %v9455_v14, %v9532_v55  ;;  %v2849_v22 = vmul.f32 %v9604_v40, %v9604_v40 }
 0x6fc   :  { %v2872_v46 = vadd.f32 %v2871_v34, %v2841_v20  ;;  %v9616_v20 = vsub.f32 %v9459_v45, %v9532_v55  ;;  %v2850_v14 = vmul.f32 %v9610_v19, %v9610_v19 }
 0x6fe   :  { %v2873_v9 = vadd.f32 %v2872_v46, %v2842_v48  ;;  %v9622_v48 = vsub.f32 %v9463_v15, %v9532_v55  ;;  %v2851_v45 = vmul.f32 %v9616_v20, %v9616_v20 }
 0x700   :  { %v2874_v31 = vadd.f32 %v2873_v9, %v2843_v50  ;;  %v9628_v50 = vsub.f32 %v9467_v24, %v9532_v55  ;;  %v2852_v15 = vmul.f32 %v9622_v48, %v9622_v48 }
 0x702   :  { %v2875_v0 = vadd.f32 %v2874_v31, %v2844_v47  ;;  %v9634_v47 = vsub.f32 %v9471_v37, %v9532_v55  ;;  %v2853_v24 = vmul.f32 %v9628_v50, %v9628_v50 }
 0x704   :  { %v2876_v32 = vadd.f32 %v2875_v0, %v2845_v16  ;;  %v9640_v16 = vsub.f32 %v9475_v61, %v9532_v55  ;;  %v2854_v37 = vmul.f32 %v9634_v47, %v9634_v47 }
 0x706   :  { %v2877_v36 = vadd.f32 %v2876_v32, %v2846_v25  ;;  %v9646_v25 = vsub.f32 %v9479_v63, %v9532_v55  ;;  %v2855_v61 = vmul.f32 %v9640_v16, %v9640_v16 }
 0x708   :  { %v2878_v7 = vadd.f32 %v2877_v36, %v2847_v1  ;;  %v9652_v1 = vsub.f32 %v9483_v38, %v9532_v55  ;;  %v2856_v63 = vmul.f32 %v9646_v25, %v9646_v25 }
 0x70a   :  { %v2879_v34 = vadd.f32 %v2878_v7, %v2848_v35  ;;  %v9658_v35 = vsub.f32 %v9487_v8, %v9532_v55  ;;  %v2857_v38 = vmul.f32 %v9652_v1, %v9652_v1 }
 0x70c   :  { %v2880_v46 = vadd.f32 %v2879_v34, %v2849_v22  ;;  %v9664_v22 = vsub.f32 %v9491_v10, %v9532_v55  ;;  %v2858_v8 = vmul.f32 %v9658_v35, %v9658_v35 }
 0x70e   :  { %v2881_v9 = vadd.f32 %v2880_v46, %v2850_v14  ;;  %v9670_v14 = vsub.f32 %v9495_v39, %v9532_v55  ;;  %v2859_v10 = vmul.f32 %v9664_v22, %v9664_v22 }
 0x710   :  { %v2882_v31 = vadd.f32 %v2881_v9, %v2851_v45  ;;  %v9676_v45 = vsub.f32 %v9499_v58, %v9532_v55  ;;  %v2860_v39 = vmul.f32 %v9670_v14, %v9670_v14 }
 0x712   :  { %v2883_v0 = vadd.f32 %v2882_v31, %v2852_v15  ;;  %v9682_v15 = vsub.f32 %v9503_v27, %v9532_v55  ;;  %v2861_v58 = vmul.f32 %v9676_v45, %v9676_v45 }
 0x714   :  { %v2884_v32 = vadd.f32 %v2883_v0, %v2853_v24  ;;  %v9688_v24 = vsub.f32 %v9507_v57, %v9532_v55  ;;  %v2862_v27 = vmul.f32 %v9682_v15, %v9682_v15 }
 0x716   :  { %v2885_v36 = vadd.f32 %v2884_v32, %v2854_v37  ;;  %v9694_v37 = vsub.f32 %v9511_v21, %v9532_v55  ;;  %v2863_v57 = vmul.f32 %v9688_v24, %v9688_v24 }
 0x718   :  { %v2886_v7 = vadd.f32 %v2885_v36, %v2855_v61  ;;  %v9700_v61 = vsub.f32 %v9515_v41, %v9532_v55  ;;  %v2864_v21 = vmul.f32 %v9694_v37, %v9694_v37 }
 0x71a   :  { %v2887_v34 = vadd.f32 %v2886_v7, %v2856_v63  ;;  %v9706_v63 = vsub.f32 %v9519_v56, %v9532_v55  ;;  %v2865_v41 = vmul.f32 %v9700_v61, %v9700_v61 }
 0x71c   :  { %v2888_v46 = vadd.f32 %v2887_v34, %v2857_v38  ;;  %v9712_v38 = vsub.f32 %v9523_v62, %v9532_v55 }
 0x71e   :  { %v2889_v9 = vadd.f32 %v2888_v46, %v2858_v8  ;;  %v2836_v8 = vsub.f32 %v9528_v59, %v9532_v55  ;;  %v2866_v46 = vmul.f32 %v9706_v63, %v9706_v63  ;;  %v7126_v55 = vld [vmem:[#allocation5 + $0xe0] sm:$0xff] }
 0x720   :  { %v2890_v31 = vadd.f32 %v2889_v9, %v2859_v10  ;;  %v7129_v10 = vld [vmem:[#allocation5 + $0xf8] sm:$0xff]  ;;  %v2867_v9 = vmul.f32 %v9712_v38, %v9712_v38 }
 0x721   :  { %3132 = vmatpush.bf16.msrb.mxu1 %v7129_v10  ;;  %v7123_v10 = vld [vmem:[#allocation5 + $0xc8] sm:$0xff] }
 0x722   :  { %v2891_v0 = vadd.f32 %v2890_v31, %v2860_v39  ;;  %v2868_v31 = vmul.f32 %v2836_v8, %v2836_v8 }
 0x724   :  { %v2892_v32 = vadd.f32 %v2891_v0, %v2861_v58  ;;  %v7128_v58 = vld [vmem:[#allocation5 + $0xf0] sm:$0xff] }
 0x725   :  { %3133 = vmatpush.bf16.msrb.mxu1 %v7128_v58  ;;  %v9727_v58 = vld [vmem:[%s13568_s5 + $0x8] sm:$0xff] }
 0x726   :  { %v2893_v36 = vadd.f32 %v2892_v32, %v2862_v27  ;;  %v7127_v32 = vld [vmem:[#allocation5 + $0xe8] sm:$0xff]  ;;  %13789 = vst [vmem:[#allocation32_spill] sm:$0xff] %v9727_v58 }
 0x728   :  { %v2894_v7 = vadd.f32 %v2893_v36, %v2863_v57 }
 0x729   :  { %3134 = vmatpush.bf16.msrb.mxu1 %v7127_v32 }
 0x72a   :  { %v2895_v34 = vadd.f32 %v2894_v7, %v2864_v21  ;;  %v7125_v7 = vld [vmem:[#allocation5 + $0xd8] sm:$0xff] }
 0x72c   :  { %v2896_v56 = vadd.f32 %v2895_v34, %v2865_v41 }
 0x72d   :  { %3135 = vmatpush.bf16.msrb.mxu1 %v7126_v55  ;;  %v13791_v55 = vld [vmem:[#allocation41_spill] sm:$0xff] }
 0x72e   :  { %v2897_v39 = vadd.f32 %v2896_v56, %v2866_v46  ;;  %v7124_v46 = vld [vmem:[#allocation5 + $0xd0] sm:$0xff] }
 0x730   :  { %v2898_v62 = vadd.f32 %v2897_v39, %v2867_v9  ;;  %v7122_v9 = vld [vmem:[#allocation5 + $0xc0] sm:$0xff] }
 0x731   :  { %3136 = vmatpush.bf16.msrb.mxu1 %v7125_v7 }
 0x732   :  { %v2899_v0 = vadd.f32 %v2898_v62, %v2868_v31  ;;  %v773_v62 = vperm.slane %v9226_v4, 3 }
 0x734   :  { %v2900_v27 = vrot.slane %v2899_v0, 4 }
 0x735   :  { %3137 = vmatpush.bf16.msrb.mxu1 %v7124_v46 }
 0x736   :  { %v2901_v57 = vadd.f32 %v2900_v27, %v2899_v0  ;;  %v784_v0 = vperm.slane %v9727_v58, 6 }
 0x738   :  { %v2902_v59 = vrot.slane %v2901_v57, 2 }
 0x739   :  { %3138 = vmatpush.bf16.msrb.mxu1 %v7123_v10 }
 0x73a   :  { %v2903_v36 = vadd.f32 %v2902_v59, %v2901_v57  ;;  %v13790_v57 = vld [vmem:[#allocation34_spill] sm:$0xff] }
 0x73b   :  { %v1087_v59 = vadd.f32 %v13790_v57, %v773_v62 }
 0x73c   :  { %v2904_v21 = vrot.slane %v2903_v36, 1 }
 0x73d   :  { %3139 = vmatpush.bf16.msrb.mxu1 %v7122_v9  ;;  %v9732_v4 = vperm.slane %v1087_v59, 1 }
 0x73e   :  { %v2905_v41 = vadd.f32 %v2904_v21, %v2903_v36  ;;  %v1230_v36 = vadd.f32 %v13791_v55, %v784_v0 }
 0x740   :  { %v2906_v34 = vmul.f32 %v2905_v41, %v8001_v54  ;;  %v1327_v41 = vperm.slane %v1087_v59, 0  ;;  %v9736_v46 = vperm.slane %v1230_v36, 1 }
 0x742   :  { %v2907_v56 = vadd.f32 1e-05, %v2906_v34  ;;  %v9734_v34 = vperm.slane %v1230_v36, 0 }
 0x744   :  { %7270 = vrsqrt.f32 %v2907_v56  ;;  %vm2914_vm12 = vweird.f32 %v2907_v56 }
 0x74a   :  { %v7271_v39 = vpop.eup %7270 }
 0x74b   :  { %v2909_v31 = vmul.f32 %v7271_v39, %v2907_v56  ;;  %vm2915_vm11 = vweird.f32 %v7271_v39 }
 0x74c   :  { %vm2916_vm13 = vmor %vm2914_vm12, %vm2915_vm11 }
 0x74d   :  { %v2910_v27 = vmul.f32 %v7271_v39, %v2909_v31 }
 0x74f   :  { %v2911_v32 = vmul.f32 0.5, %v2910_v27 }
 0x751   :  { %v2912_v21 = vsub.f32 1.5, %v2911_v32 }
 0x753   :  { %v2913_v7 = vmul.f32 %v7271_v39, %v2912_v21 }
 0x755   :  { %v2917_v10 = vsel %vm2916_vm13, %v7271_v39, %v2913_v7 }
 0x756   :  { %v2949_v9 = vmul.f32 %v2917_v10, %v2836_v8  ;;  %v2918_v31 = vmul.f32 %v2917_v10, %v9536_v49  ;;  %v2919_v62 = vmul.f32 %v2917_v10, %v9540_v28  ;;  %v2920_v0 = vmul.f32 %v2917_v10, %v9544_v11 }
 0x757   :  { %v2921_v27 = vmul.f32 %v2917_v10, %v9552_v2  ;;  %v2922_v56 = vmul.f32 %v2917_v10, %v9556_v44  ;;  %v2923_v32 = vmul.f32 %v2917_v10, %v9562_v33  ;;  %v2924_v57 = vmul.f32 %v2917_v10, %v9568_v12 }
 0x758   :  { %v9746_v59 = vmul.f32 %v2949_v9, %v9732_v4  ;;  %v2925_v39 = vmul.f32 %v2917_v10, %v9574_v26  ;;  %v2926_v8 = vmul.f32 %v2917_v10, %v9580_v5  ;;  %v2927_v49 = vmul.f32 %v2917_v10, %v9586_v60 }
 0x759   :  { %v2928_v28 = vmul.f32 %v2917_v10, %v9592_v3  ;;  %v2929_v11 = vmul.f32 %v2917_v10, %v9598_v30  ;;  %v2930_v2 = vmul.f32 %v2917_v10, %v9604_v40  ;;  %v2931_v44 = vmul.f32 %v2917_v10, %v9610_v19 }
 0x75a   :  { %v2932_v33 = vmul.f32 %v2917_v10, %v9616_v20  ;;  %v2933_v12 = vmul.f32 %v2917_v10, %v9622_v48  ;;  %v2934_v55 = vmul.f32 %v2917_v10, %v9628_v50  ;;  %v2935_v26 = vmul.f32 %v2917_v10, %v9634_v47 }
 0x75b   :  { %v2936_v5 = vmul.f32 %v2917_v10, %v9640_v16  ;;  %v2937_v60 = vmul.f32 %v2917_v10, %v9646_v25  ;;  %v2938_v3 = vmul.f32 %v2917_v10, %v9652_v1  ;;  %v2939_v30 = vmul.f32 %v2917_v10, %v9658_v35 }
 0x75c   :  { %v2940_v40 = vmul.f32 %v2917_v10, %v9664_v22  ;;  %v2941_v19 = vmul.f32 %v2917_v10, %v9670_v14  ;;  %v2942_v20 = vmul.f32 %v2917_v10, %v9676_v45  ;;  %v2943_v48 = vmul.f32 %v2917_v10, %v9682_v15 }
 0x75d   :  { %v2944_v50 = vmul.f32 %v2917_v10, %v9688_v24  ;;  %v2945_v47 = vmul.f32 %v2917_v10, %v9694_v37  ;;  %v2946_v16 = vmul.f32 %v2917_v10, %v9700_v61  ;;  %v2947_v25 = vmul.f32 %v2917_v10, %v9706_v63 }
 0x75e   :  { %v2948_v1 = vmul.f32 %v2917_v10, %v9712_v38  ;;  %v2950_v36 = vmul.f32 %v2918_v31, %v1327_v41  ;;  %v2951_v35 = vmul.f32 %v2919_v62, %v1327_v41  ;;  %v2952_v21 = vmul.f32 %v2920_v0, %v1327_v41 }
 0x75f   :  { %v2953_v22 = vmul.f32 %v2921_v27, %v1327_v41  ;;  %v2954_v7 = vmul.f32 %v2922_v56, %v1327_v41  ;;  %v2955_v14 = vmul.f32 %v2923_v32, %v1327_v41  ;;  %v2956_v9 = vmul.f32 %v2924_v57, %v1327_v41 }
 0x760   :  { %v2957_v45 = vmul.f32 %v2925_v39, %v1327_v41  ;;  %v2958_v58 = vmul.f32 %v2926_v8, %v1327_v41  ;;  %v2959_v15 = vmul.f32 %v2927_v49, %v1327_v41  ;;  %v2960_v54 = vmul.f32 %v2928_v28, %v1327_v41 }
 0x761   :  { %v2961_v24 = vmul.f32 %v2929_v11, %v1327_v41  ;;  %v2962_v43 = vmul.f32 %v2930_v2, %v1327_v41  ;;  %v2963_v37 = vmul.f32 %v2931_v44, %v1327_v41  ;;  %v2964_v53 = vmul.f32 %v2932_v33, %v1327_v41 }
 0x762   :  { %v2965_v61 = vmul.f32 %v2933_v12, %v1327_v41  ;;  %v2966_v63 = vmul.f32 %v2934_v55, %v9732_v4  ;;  %v2967_v38 = vmul.f32 %v2935_v26, %v9732_v4  ;;  %v2968_v10 = vmul.f32 %v2936_v5, %v9732_v4 }
 0x763   :  { %v2969_v31 = vmul.f32 %v2937_v60, %v9732_v4  ;;  %v2970_v62 = vmul.f32 %v2938_v3, %v9732_v4  ;;  %v2971_v0 = vmul.f32 %v2939_v30, %v9732_v4  ;;  %v2972_v27 = vmul.f32 %v2940_v40, %v9732_v4 }
 0x764   :  { %v2973_v56 = vmul.f32 %v2941_v19, %v9732_v4  ;;  %v9781_v32 = vmul.f32 %v2942_v20, %v9732_v4  ;;  %v9784_v41 = vmul.f32 %v2943_v48, %v9732_v4  ;;  %v9787_v57 = vmul.f32 %v2944_v50, %v9732_v4 }
 0x765   :  { %v9790_v39 = vmul.f32 %v2945_v47, %v9732_v4  ;;  %v9793_v8 = vmul.f32 %v2946_v16, %v9732_v4  ;;  %v9796_v49 = vmul.f32 %v2947_v25, %v9732_v4  ;;  %v9799_v28 = vmul.f32 %v2948_v1, %v9732_v4 }
 0x766   :  { %v2982_v11 = vadd.f32 %v2950_v36, %v9734_v34  ;;  %v2983_v2 = vadd.f32 %v2951_v35, %v9734_v34  ;;  %v2984_v44 = vadd.f32 %v2952_v21, %v9734_v34  ;;  %v2985_v33 = vadd.f32 %v2953_v22, %v9734_v34 }
 0x767   :  { %v2986_v12 = vadd.f32 %v2954_v7, %v9734_v34  ;;  %v2987_v55 = vadd.f32 %v2955_v14, %v9734_v34  ;;  %v2988_v26 = vadd.f32 %v2956_v9, %v9734_v34  ;;  %v2989_v5 = vadd.f32 %v2957_v45, %v9734_v34 }
 0x768   :  { %v3014_v60 = vmax.f32 %v2982_v11, 0.0  ;;  %v3015_v3 = vmax.f32 %v2983_v2, 0.0  ;;  %v3016_v4 = vmax.f32 %v2984_v44, 0.0  ;;  %v3017_v30 = vmax.f32 %v2985_v33, 0.0 }
 0x769   :  { %v3018_v40 = vmax.f32 %v2986_v12, 0.0  ;;  %v3019_v19 = vmax.f32 %v2987_v55, 0.0  ;;  %v3020_v20 = vmax.f32 %v2988_v26, 0.0  ;;  %v3021_v48 = vmax.f32 %v2989_v5, 0.0 }
 0x76a   :  { %v3065_v50 = vpack.c.bf16 %v3015_v3, %v3014_v60  ;;  %v9809_v47 = vpack.c.bf16 %v3017_v30, %v3016_v4  ;;  %v2990_v16 = vadd.f32 %v2958_v58, %v9734_v34  ;;  %v2991_v25 = vadd.f32 %v2959_v15, %v9734_v34 }
 0x76b   :  { %v3067_v1 = vpack.c.bf16 %v3019_v19, %v3018_v40  ;;  %v3068_v36 = vpack.c.bf16 %v3021_v48, %v3020_v20  ;;  %v2992_v35 = vadd.f32 %v2960_v54, %v9734_v34  ;;  %v2993_v21 = vadd.f32 %v2961_v24, %v9734_v34 }
 0x76c   :  { %3140 = vmatmul.bf16.vlgmr.msrb.gmra.mxu1 %v3065_v50  ;;  %v3022_v22 = vmax.f32 %v2990_v16, 0.0  ;;  %v3023_v7 = vmax.f32 %v2991_v25, 0.0  ;;  %v2994_v14 = vadd.f32 %v2962_v43, %v9734_v34  ;;  %v2995_v9 = vadd.f32 %v2963_v37, %v9734_v34 }
 0x76d   :  { %v3024_v45 = vmax.f32 %v2992_v35, 0.0  ;;  %v3025_v11 = vmax.f32 %v2993_v21, 0.0  ;;  %v2996_v2 = vadd.f32 %v2964_v53, %v9734_v34  ;;  %v2997_v58 = vadd.f32 %v2965_v61, %v9734_v34 }
 0x76e   :  { %v3069_v15 = vpack.c.bf16 %v3023_v7, %v3022_v22  ;;  %v3026_v44 = vmax.f32 %v2994_v14, 0.0  ;;  %v3027_v33 = vmax.f32 %v2995_v9, 0.0  ;;  %v2998_v54 = vadd.f32 %v2966_v63, %v9736_v46 }
 0x76f   :  { %v3070_v12 = vpack.c.bf16 %v3025_v11, %v3024_v45  ;;  %v3028_v24 = vmax.f32 %v2996_v2, 0.0  ;;  %v3029_v55 = vmax.f32 %v2997_v58, 0.0  ;;  %v2999_v26 = vadd.f32 %v2967_v38, %v9736_v46 }
 0x770   :  { %v3071_v5 = vpack.c.bf16 %v3027_v33, %v3026_v44  ;;  %v3030_v43 = vmax.f32 %v2998_v54, 0.0  ;;  %v3000_v37 = vadd.f32 %v2968_v10, %v9736_v46  ;;  %v3001_v60 = vadd.f32 %v2969_v31, %v9736_v46 }
 0x771   :  { %v3072_v3 = vpack.c.bf16 %v3029_v55, %v3028_v24  ;;  %v3031_v53 = vmax.f32 %v2999_v26, 0.0  ;;  %v3002_v34 = vadd.f32 %v2970_v62, %v9736_v46  ;;  %v3003_v61 = vadd.f32 %v2971_v0, %v9736_v46 }
 0x772   :  { %v3032_v4 = vmax.f32 %v3000_v37, 0.0  ;;  %v3033_v30 = vmax.f32 %v3001_v60, 0.0  ;;  %v3004_v63 = vadd.f32 %v2972_v27, %v9736_v46  ;;  %v3005_v40 = vadd.f32 %v2973_v56, %v9736_v46 }
 0x773   :  { %v3073_v19 = vpack.c.bf16 %v3031_v53, %v3030_v43  ;;  %v3034_v38 = vmax.f32 %v3002_v34, 0.0  ;;  %v3035_v20 = vmax.f32 %v3003_v61, 0.0  ;;  %v3006_v10 = vadd.f32 %v9781_v32, %v9736_v46 }
 0x774   :  { %v3074_v48 = vpack.c.bf16 %v3033_v30, %v3032_v4  ;;  %v3036_v31 = vmax.f32 %v3004_v63, 0.0  ;;  %v3037_v50 = vmax.f32 %v3005_v40, 0.0  ;;  %v3007_v62 = vadd.f32 %v9784_v41, %v9736_v46  ;;  %v9855_v4 = vld [vmem:[%s13570_s7 + $0x3] ss:$0 sm:$0xff] }
 0x775   :  { %v3075_v16 = vpack.c.bf16 %v3035_v20, %v3034_v38  ;;  %v3038_v0 = vmax.f32 %v3006_v10, 0.0  ;;  %v3008_v25 = vadd.f32 %v9787_v57, %v9736_v46  ;;  %v3009_v27 = vadd.f32 %v9790_v39, %v9736_v46 }
 0x776   :  { %v3076_v56 = vpack.c.bf16 %v3037_v50, %v3036_v31  ;;  %v3039_v35 = vmax.f32 %v3007_v62, 0.0  ;;  %v3010_v21 = vadd.f32 %v9793_v8, %v9736_v46  ;;  %v3011_v32 = vadd.f32 %v9796_v49, %v9736_v46 }
 0x777   :  { %v3040_v22 = vmax.f32 %v3008_v25, 0.0  ;;  %v3041_v7 = vmax.f32 %v3009_v27, 0.0  ;;  %v3012_v41 = vadd.f32 %v9799_v28, %v9736_v46  ;;  %v3013_v14 = vadd.f32 %v9746_v59, %v9736_v46 }
 0x778   :  { %v3077_v57 = vpack.c.bf16 %v3039_v35, %v3038_v0  ;;  %v3042_v9 = vmax.f32 %v3010_v21, 0.0  ;;  %v3043_v45 = vmax.f32 %v3011_v32, 0.0 }
 0x779   :  { %v3078_v39 = vpack.c.bf16 %v3041_v7, %v3040_v22  ;;  %v3044_v11 = vmax.f32 %v3012_v41, 0.0  ;;  %v3045_v2 = vmax.f32 %v3013_v14, 0.0 }
 0x77a   :  { %v3079_v58 = vpack.c.bf16 %v3043_v45, %v3042_v9 }
 0x77b   :  { %v3080_v44 = vpack.c.bf16 %v3045_v2, %v3044_v11  ;;  %v13794_v11 = vld [vmem:[#allocation10_spill] sm:$0xff] }
 0x77c   :  { %3145 = vmatmul.bf16.gmra.mxu1 %v9809_v47 }
 0x78c   :  { %3150 = vmatmul.bf16.gmra.mxu1 %v3067_v1 }
 0x79c   :  { %3155 = vmatmul.bf16.gmra.mxu1 %v3068_v36 }
 0x7ac   :  { %3160 = vmatmul.bf16.gmra.mxu1 %v3069_v15 }
 0x7bc   :  { %3165 = vmatmul.bf16.gmra.mxu1 %v3070_v12 }
 0x7cc   :  { %3170 = vmatmul.bf16.gmra.mxu1 %v3071_v5 }
 0x7dc   :  { %3175 = vmatmul.bf16.gmra.mxu1 %v3072_v3 }
 0x7e9   :  { %v3141_v8 = vpop.f32.mrf.mxu1 }
 0x7ea   :  { %v3142_v40 = vadd.f32 %v9855_v4, %v3141_v8  ;;  %v13796_v8 = vld [vmem:[#allocation11_spill] sm:$0xff] }
 0x7ec   :  { %3180 = vmatmul.bf16.gmra.mxu1 %v3073_v19  ;;  %v9867_v10 = vadd.f32 %v3142_v40, %v8866_v29 }
 0x7f1   :  { %v3143_v49 = vpop.f32.mrf.mxu1 }
 0x7f2   :  { %v3144_v63 = vadd.f32 %v9855_v4, %v3143_v49 }
 0x7f4   :  { %v9863_v38 = vadd.f32 %v3144_v63, %v8862_v18 }
 0x7f6   :  { %v3253_v62 = vadd.f32 %v9863_v38, %v9867_v10 }
 0x7f9   :  { %v3146_v46 = vpop.f32.mrf.mxu1 }
 0x7fa   :  { %v3147_v19 = vadd.f32 %v9855_v4, %v3146_v46 }
 0x7fc   :  { %3185 = vmatmul.bf16.gmra.mxu1 %v3074_v48  ;;  %v9870_v48 = vadd.f32 %v3147_v19, %v8869_v42 }
 0x7fe   :  { %v3254_v0 = vadd.f32 %v3253_v62, %v9870_v48 }
 0x801   :  { %v3148_v59 = vpop.f32.mrf.mxu1 }
 0x802   :  { %v3149_v20 = vadd.f32 %v9855_v4, %v3148_v59 }
 0x809   :  { %v3151_v28 = vpop.f32.mrf.mxu1 }
 0x80a   :  { %v3152_v31 = vadd.f32 %v9855_v4, %v3151_v28  ;;  %v13798_v28 = vld [vmem:[#allocation12_spill] sm:$0xff] }
 0x80c   :  { %3190 = vmatmul.bf16.gmra.mxu1 %v3075_v16  ;;  %v9878_v16 = vadd.f32 %v3149_v20, %v8875_v52  ;;  %v9883_v29 = vadd.f32 %v3152_v31, %v8882_v13  ;;  %v13804_v20 = vld [vmem:[#allocation15_spill] sm:$0xff] }
 0x80e   :  { %v3255_v25 = vadd.f32 %v3254_v0, %v9878_v16 }
 0x810   :  { %v3256_v35 = vadd.f32 %v3255_v25, %v9883_v29  ;;  %v13808_v25 = vld [vmem:[#allocation17_spill] sm:$0xff] }
 0x811   :  { %v3153_v33 = vpop.f32.mrf.mxu1 }
 0x812   :  { %v3154_v18 = vadd.f32 %v9855_v4, %v3153_v33 }
 0x814   :  { %v9888_v27 = vadd.f32 %v3154_v18, %v8887_v17  ;;  %v13806_v18 = vld [vmem:[#allocation16_spill] sm:$0xff] }
 0x816   :  { %v3257_v13 = vadd.f32 %v3256_v35, %v9888_v27 }
 0x819   :  { %v3156_v54 = vpop.f32.mrf.mxu1 }
 0x81a   :  { %v3157_v42 = vadd.f32 %v9855_v4, %v3156_v54 }
 0x81c   :  { %3195 = vmatmul.bf16.gmra.mxu1 %v3076_v56  ;;  %v9893_v52 = vadd.f32 %v3157_v42, %v8892_v6 }
 0x81e   :  { %v3258_v17 = vadd.f32 %v3257_v13, %v9893_v52 }
 0x821   :  { %v3158_v24 = vpop.f32.mrf.mxu1 }
 0x822   :  { %v3159_v56 = vadd.f32 %v9855_v4, %v3158_v24 }
 0x824   :  { %v9898_v22 = vadd.f32 %v3159_v56, %v8897_v51 }
 0x826   :  { %v3259_v6 = vadd.f32 %v3258_v17, %v9898_v22 }
 0x829   :  { %v3161_v55 = vpop.f32.mrf.mxu1 }
 0x82a   :  { %v3162_v21 = vadd.f32 %v9855_v4, %v3161_v55  ;;  %v13800_v55 = vld [vmem:[#allocation13_spill] sm:$0xff] }
 0x82c   :  { %3200 = vmatmul.bf16.gmra.mxu1 %v3077_v57  ;;  %v9903_v41 = vadd.f32 %v3162_v21, %v8902_v23  ;;  %v13792_v57 = vld [vmem:[#allocation9_spill] sm:$0xff]  ;;  %v13810_v21 = vld [vmem:[#allocation18_spill] sm:$0xff] }
 0x82e   :  { %v3260_v51 = vadd.f32 %v3259_v6, %v9903_v41 }
 0x831   :  { %v3163_v47 = vpop.f32.mrf.mxu1 }
 0x832   :  { %v3164_v7 = vadd.f32 %v9855_v4, %v3163_v47 }
 0x834   :  { %v9908_v9 = vadd.f32 %v3164_v7, %v13792_v57 }
 0x836   :  { %13793 = vst [vmem:[#allocation36_spill] sm:$0xff] %v9908_v9 }
 0x839   :  { %v3166_v1 = vpop.f32.mrf.mxu1 }
 0x83a   :  { %v3167_v14 = vadd.f32 %v9855_v4, %v3166_v1 }
 0x83c   :  { %3205 = vmatmul.bf16.gmra.mxu1 %v3078_v39  ;;  %v7137_v39 = vld [vmem:[#allocation5 + $0x138] sm:$0xff]  ;;  %v9913_v2 = vadd.f32 %v3167_v14, %v13794_v11 }
 0x83d   :  { %3618 = vmatpush.bf16.msra.mxu2 %v7137_v39 }
 0x83e   :  { %13795 = vst [vmem:[#allocation34_spill] sm:$0xff] %v9913_v2 }
 0x841   :  { %v3168_v36 = vpop.f32.mrf.mxu1 }
 0x842   :  { %v3169_v45 = vadd.f32 %v9855_v4, %v3168_v36 }
 0x844   :  { %v9918_v49 = vadd.f32 %v3169_v45, %v13796_v8  ;;  %v13818_v8 = vld [vmem:[#allocation22_spill] sm:$0xff] }
 0x846   :  { %13797 = vst [vmem:[#allocation41_spill] sm:$0xff] %v9918_v49 }
 0x849   :  { %v3171_v15 = vpop.f32.mrf.mxu1 }
 0x84c   :  { %3210 = vmatmul.bf16.gmra.mxu1 %v3079_v58  ;;  %v3172_v58 = vadd.f32 %v9855_v4, %v3171_v15  ;;  %v13802_v15 = vld [vmem:[#allocation14_spill] sm:$0xff] }
 0x84e   :  { %v9923_v33 = vadd.f32 %v3172_v58, %v13798_v28 }
 0x850   :  { %13799 = vst [vmem:[#allocation9_spill] sm:$0xff] %v9923_v33 }
 0x851   :  { %v3173_v12 = vpop.f32.mrf.mxu1 }
 0x852   :  { %v3174_v46 = vadd.f32 %v9855_v4, %v3173_v12 }
 0x854   :  { %v9928_v47 = vadd.f32 %v3174_v46, %v13800_v55 }
 0x856   :  { %13801 = vst [vmem:[#allocation10_spill] sm:$0xff] %v9928_v47 }
 0x859   :  { %v3176_v26 = vpop.f32.mrf.mxu1 }
 0x85a   :  { %v3177_v54 = vadd.f32 %v9855_v4, %v3176_v26 }
 0x85c   :  { %3215 = vmatmul.bf16.gmra.mxu1 %v3080_v44  ;;  %v3261_v44 = vadd.f32 %v3260_v51, %v9908_v9  ;;  %v9933_v63 = vadd.f32 %v3177_v54, %v13802_v15 }
 0x85e   :  { %v3262_v59 = vadd.f32 %v3261_v44, %v9913_v2  ;;  %13803 = vst [vmem:[#allocation11_spill] sm:$0xff] %v9933_v63 }
 0x860   :  { %v3263_v24 = vadd.f32 %v3262_v59, %v9918_v49 }
 0x861   :  { %v3178_v5 = vpop.f32.mrf.mxu1 }
 0x862   :  { %v3179_v1 = vadd.f32 %v9855_v4, %v3178_v5  ;;  %v3264_v36 = vadd.f32 %v3263_v24, %v9923_v33 }
 0x864   :  { %v3265_v19 = vadd.f32 %v3264_v36, %v9928_v47  ;;  %v9938_v31 = vadd.f32 %v3179_v1, %v13804_v20  ;;  %v13822_v1 = vld [vmem:[#allocation24_spill] sm:$0xff] }
 0x866   :  { %13805 = vst [vmem:[#allocation12_spill] sm:$0xff] %v9938_v31  ;;  %v3266_v62 = vadd.f32 %v3265_v19, %v9933_v63 }
 0x868   :  { %v3267_v42 = vadd.f32 %v3266_v62, %v9938_v31 }
 0x869   :  { %v3181_v43 = vpop.f32.mrf.mxu1 }
 0x86a   :  { %v3182_v12 = vadd.f32 %v9855_v4, %v3181_v43 }
 0x86c   :  { %v9943_v0 = vadd.f32 %v3182_v12, %v13806_v18  ;;  %v13824_v12 = vld [vmem:[#allocation25_spill] sm:$0xff] }
 0x86e   :  { %13807 = vst [vmem:[#allocation13_spill] sm:$0xff] %v9943_v0  ;;  %v3268_v35 = vadd.f32 %v3267_v42, %v9943_v0  ;;  %v13828_v42 = vld [vmem:[#allocation27_spill] sm:$0xff] }
 0x871   :  { %v3183_v37 = vpop.f32.mrf.mxu1 }
 0x872   :  { %v3184_v26 = vadd.f32 %v9855_v4, %v3183_v37 }
 0x874   :  { %v9948_v56 = vadd.f32 %v3184_v26, %v13808_v25  ;;  %v13826_v26 = vld [vmem:[#allocation26_spill] sm:$0xff] }
 0x876   :  { %13809 = vst [vmem:[#allocation14_spill] sm:$0xff] %v9948_v56  ;;  %v3269_v17 = vadd.f32 %v3268_v35, %v9948_v56  ;;  %v13830_v35 = vld [vmem:[#allocation28_spill] sm:$0xff] }
 0x879   :  { %v3186_v60 = vpop.f32.mrf.mxu1 }
 0x87a   :  { %v3187_v5 = vadd.f32 %v9855_v4, %v3186_v60  ;;  %v13812_v60 = vld [vmem:[#allocation19_spill] sm:$0xff] }
 0x87c   :  { %v9954_v13 = vadd.f32 %v3187_v5, %v13810_v21 }
 0x87e   :  { %13811 = vst [vmem:[#allocation15_spill] sm:$0xff] %v9954_v13  ;;  %v3270_v57 = vadd.f32 %v3269_v17, %v9954_v13  ;;  %v13832_v17 = vld [vmem:[#allocation29_spill] sm:$0xff] }
 0x881   :  { %v9844_v3 = vpop.f32.mrf.mxu1 }
 0x882   :  { %v3189_v43 = vadd.f32 %v9855_v4, %v9844_v3  ;;  %v13814_v3 = vld [vmem:[#allocation20_spill] sm:$0xff] }
 0x884   :  { %v9960_v14 = vadd.f32 %v3189_v43, %v13812_v60 }
 0x886   :  { %13813 = vst [vmem:[#allocation16_spill] sm:$0xff] %v9960_v14  ;;  %v3271_v51 = vadd.f32 %v3270_v57, %v9960_v14 }
 0x889   :  { %v9846_v53 = vpop.f32.mrf.mxu1 }
 0x88a   :  { %v3192_v37 = vadd.f32 %v9855_v4, %v9846_v53  ;;  %v13816_v53 = vld [vmem:[#allocation21_spill] sm:$0xff] }
 0x88c   :  { %v9966_v45 = vadd.f32 %v3192_v37, %v13814_v3 }
 0x88e   :  { %13815 = vst [vmem:[#allocation17_spill] sm:$0xff] %v9966_v45  ;;  %v3272_v44 = vadd.f32 %v3271_v51, %v9966_v45 }
 0x891   :  { %v9848_v34 = vpop.f32.mrf.mxu1 }
 0x892   :  { %v3194_v6 = vadd.f32 %v9855_v4, %v9848_v34 }
 0x894   :  { %v9972_v11 = vadd.f32 %v3194_v6, %v13816_v53  ;;  %v13834_v6 = vld [vmem:[#allocation30_spill] sm:$0xff] }
 0x896   :  { %13817 = vst [vmem:[#allocation18_spill] sm:$0xff] %v9972_v11  ;;  %v3273_v28 = vadd.f32 %v3272_v44, %v9972_v11 }
 0x899   :  { %v9850_v61 = vpop.f32.mrf.mxu1 }
 0x89a   :  { %v3197_v39 = vadd.f32 %v9855_v4, %v9850_v61  ;;  %v13820_v61 = vld [vmem:[#allocation23_spill] sm:$0xff] }
 0x89c   :  { %v9978_v34 = vadd.f32 %v3197_v39, %v13818_v8 }
 0x89e   :  { %13819 = vst [vmem:[#allocation19_spill] sm:$0xff] %v9978_v34  ;;  %v3274_v55 = vadd.f32 %v3273_v28, %v9978_v34 }
 0x8a1   :  { %v9857_v30 = vpop.f32.mrf.mxu1 }
 0x8a2   :  { %v3199_v58 = vadd.f32 %v9855_v4, %v9857_v30 }
 0x8a4   :  { %v9984_v54 = vadd.f32 %v3199_v58, %v13820_v61  ;;  %v13836_v58 = vld [vmem:[#allocation31_spill] sm:$0xff] }
 0x8a6   :  { %13821 = vst [vmem:[#allocation20_spill] sm:$0xff] %v9984_v54  ;;  %v3275_v15 = vadd.f32 %v3274_v55, %v9984_v54 }
 0x8a9   :  { %v9873_v50 = vpop.f32.mrf.mxu1 }
 0x8aa   :  { %v3202_v46 = vadd.f32 %v9855_v4, %v9873_v50 }
 0x8ac   :  { %v9989_v30 = vadd.f32 %v3202_v46, %v13822_v1  ;;  %v13838_v1 = vld [vmem:[#allocation33_spill] sm:$0xff] }
 0x8ae   :  { %13823 = vst [vmem:[#allocation21_spill] sm:$0xff] %v9989_v30  ;;  %v3276_v20 = vadd.f32 %v3275_v15, %v9989_v30 }
 0x8b1   :  { %v3203_v32 = vpop.f32.mrf.mxu1 }
 0x8b2   :  { %v3204_v24 = vadd.f32 %v9855_v4, %v3203_v32 }
 0x8b4   :  { %v9994_v19 = vadd.f32 %v3204_v24, %v13824_v12 }
 0x8b6   :  { %13825 = vst [vmem:[#allocation22_spill] sm:$0xff] %v9994_v19  ;;  %v3277_v5 = vadd.f32 %v3276_v20, %v9994_v19 }
 0x8b9   :  { %v3206_v23 = vpop.f32.mrf.mxu1 }
 0x8ba   :  { %v3207_v36 = vadd.f32 %v9855_v4, %v3206_v23 }
 0x8bc   :  { %v9999_v62 = vadd.f32 %v3207_v36, %v13826_v26 }
 0x8be   :  { %13827 = vst [vmem:[#allocation23_spill] sm:$0xff] %v9999_v62  ;;  %v3278_v43 = vadd.f32 %v3277_v5, %v9999_v62 }
 0x8c1   :  { %v3208_v40 = vpop.f32.mrf.mxu1 }
 0x8c2   :  { %v3209_v50 = vadd.f32 %v9855_v4, %v3208_v40 }
 0x8c4   :  { %v10004_v25 = vadd.f32 %v3209_v50, %v13828_v42 }
 0x8c6   :  { %13829 = vst [vmem:[#allocation24_spill] sm:$0xff] %v10004_v25  ;;  %v3279_v37 = vadd.f32 %v3278_v43, %v10004_v25 }
 0x8c9   :  { %v3211_v7 = vpop.f32.mrf.mxu1 }
 0x8ca   :  { %v3212_v32 = vadd.f32 %v9855_v4, %v3211_v7 }
 0x8cc   :  { %v10009_v21 = vadd.f32 %v3212_v32, %v13830_v35 }
 0x8ce   :  { %13831 = vst [vmem:[#allocation25_spill] sm:$0xff] %v10009_v21  ;;  %v3280_v7 = vadd.f32 %v3279_v37, %v10009_v21 }
 0x8d1   :  { %v3213_v59 = vpop.f32.mrf.mxu1 }
 0x8d2   :  { %v3214_v23 = vadd.f32 %v9855_v4, %v3213_v59 }
 0x8d4   :  { %v10014_v60 = vadd.f32 %v3214_v23, %v13832_v17 }
 0x8d6   :  { %13833 = vst [vmem:[#allocation26_spill] sm:$0xff] %v10014_v60  ;;  %v3281_v39 = vadd.f32 %v3280_v7, %v10014_v60 }
 0x8d9   :  { %v3216_v18 = vpop.f32.mrf.mxu1 }
 0x8da   :  { %v3217_v40 = vadd.f32 %v9855_v4, %v3216_v18 }
 0x8dc   :  { %v10018_v57 = vadd.f32 %v3217_v40, %v13834_v6 }
 0x8de   :  { %13835 = vst [vmem:[#allocation27_spill] sm:$0xff] %v10018_v57  ;;  %v3282_v53 = vadd.f32 %v3281_v39, %v10018_v57 }
 0x8e1   :  { %v3218_v3 = vpop.f32.mrf.mxu1 }
 0x8e2   :  { %v3219_v51 = vadd.f32 %v9855_v4, %v3218_v3 }
 0x8e4   :  { %v10024_v44 = vadd.f32 %v3219_v51, %v13836_v58 }
 0x8e6   :  { %13837 = vst [vmem:[#allocation28_spill] sm:$0xff] %v10024_v44  ;;  %v3283_v8 = vadd.f32 %v3282_v53, %v10024_v44 }
 0x8e8   :  { %v3284_v46 = vrot.slane %v3283_v8, 4 }
 0x8ea   :  { %v3285_v59 = vadd.f32 %v3284_v46, %v3283_v8 }
 0x8ec   :  { %v3286_v28 = vrot.slane %v3285_v59, 2 }
 0x8ee   :  { %v3287_v61 = vadd.f32 %v3286_v28, %v3285_v59 }
 0x8f0   :  { %v3288_v24 = vrot.slane %v3287_v61, 1 }
 0x8f2   :  { %v3289_v55 = vadd.f32 %v3288_v24, %v3287_v61 }
 0x8f4   :  { %v10028_v36 = vmul.f32 %v3289_v55, %v13838_v1 }
 0x8f6   :  { %v10032_v15 = vsub.f32 %v9867_v10, %v10028_v36  ;;  %v10036_v4 = vsub.f32 %v9863_v38, %v10028_v36  ;;  %v10040_v12 = vsub.f32 %v9870_v48, %v10028_v36  ;;  %v10048_v26 = vsub.f32 %v9878_v16, %v10028_v36 }
 0x8f7   :  { %v10052_v32 = vsub.f32 %v9883_v29, %v10028_v36  ;;  %v10058_v42 = vsub.f32 %v9888_v27, %v10028_v36  ;;  %v10064_v35 = vsub.f32 %v9893_v52, %v10028_v36  ;;  %v10070_v17 = vsub.f32 %v9898_v22, %v10028_v36 }
 0x8f8   :  { %v3323_v50 = vmul.f32 %v10032_v15, %v10032_v15  ;;  %v3324_v20 = vmul.f32 %v10036_v4, %v10036_v4  ;;  %v3325_v18 = vmul.f32 %v10040_v12, %v10040_v12  ;;  %v3326_v23 = vmul.f32 %v10048_v26, %v10048_v26 }
 0x8f9   :  { %v3327_v40 = vmul.f32 %v10052_v32, %v10052_v32  ;;  %v3328_v7 = vmul.f32 %v10058_v42, %v10058_v42  ;;  %v10076_v3 = vsub.f32 %v9903_v41, %v10028_v36  ;;  %v3329_v39 = vmul.f32 %v10064_v35, %v10064_v35 }
 0x8fa   :  { %v3355_v5 = vadd.f32 %v3324_v20, %v3323_v50  ;;  %v10082_v53 = vsub.f32 %v9908_v9, %v10028_v36  ;;  %v3330_v58 = vmul.f32 %v10070_v17, %v10070_v17  ;;  %v10088_v46 = vsub.f32 %v9913_v2, %v10028_v36 }
 0x8fb   :  { %v3331_v59 = vmul.f32 %v10076_v3, %v10076_v3  ;;  %v10094_v61 = vsub.f32 %v9918_v49, %v10028_v36  ;;  %v10100_v50 = vsub.f32 %v9923_v33, %v10028_v36 }
 0x8fc   :  { %v3356_v43 = vadd.f32 %v3355_v5, %v3325_v18  ;;  %v3332_v24 = vmul.f32 %v10082_v53, %v10082_v53  ;;  %v3333_v20 = vmul.f32 %v10088_v46, %v10088_v46  ;;  %v10106_v5 = vsub.f32 %v9928_v47, %v10028_v36  ;;  %v7132_v47 = vld [vmem:[#allocation5 + $0x110] sm:$0xff] }
 0x8fe   :  { %v3357_v37 = vadd.f32 %v3356_v43, %v3326_v23  ;;  %v3334_v23 = vmul.f32 %v10094_v61, %v10094_v61 }
 0x900   :  { %v3358_v6 = vadd.f32 %v3357_v37, %v3327_v40  ;;  %v10112_v40 = vsub.f32 %v9933_v63, %v10028_v36  ;;  %v3335_v37 = vmul.f32 %v10100_v50, %v10100_v50  ;;  %v7133_v63 = vld [vmem:[#allocation5 + $0x118] sm:$0xff] }
 0x902   :  { %v3359_v51 = vadd.f32 %v3358_v6, %v3328_v7  ;;  %v10118_v6 = vsub.f32 %v9938_v31, %v10028_v36  ;;  %v7134_v31 = vld [vmem:[#allocation5 + $0x120] sm:$0xff] }
 0x904   :  { %v3360_v8 = vadd.f32 %v3359_v51, %v3329_v39  ;;  %v3336_v39 = vmul.f32 %v10106_v5, %v10106_v5 }
 0x906   :  { %v3361_v28 = vadd.f32 %v3360_v8, %v3330_v58  ;;  %v10124_v58 = vsub.f32 %v9943_v0, %v10028_v36  ;;  %v3337_v8 = vmul.f32 %v10112_v40, %v10112_v40 }
 0x908   :  { %v3362_v55 = vadd.f32 %v3361_v28, %v3331_v59  ;;  %v10130_v28 = vsub.f32 %v9948_v56, %v10028_v36 }
 0x90a   :  { %v3363_v18 = vadd.f32 %v3362_v55, %v3332_v24  ;;  %v3338_v24 = vmul.f32 %v10118_v6, %v10118_v6 }
 0x90c   :  { %v3364_v43 = vadd.f32 %v3363_v18, %v3333_v20  ;;  %v10136_v20 = vsub.f32 %v9954_v13, %v10028_v36  ;;  %v3339_v18 = vmul.f32 %v10124_v58, %v10124_v58  ;;  %v7135_v13 = vld [vmem:[#allocation5 + $0x128] sm:$0xff] }
 0x90e   :  { %v3365_v7 = vadd.f32 %v3364_v43, %v3334_v23  ;;  %v10142_v43 = vsub.f32 %v9960_v14, %v10028_v36  ;;  %v10160_v14 = vsub.f32 %v9978_v34, %v10028_v36  ;;  %v10178_v34 = vsub.f32 %v9994_v19, %v10028_v36 }
 0x90f   :  { %v10196_v19 = vsub.f32 %v10009_v21, %v10028_v36  ;;  %v7136_v21 = vld [vmem:[#allocation5 + $0x130] sm:$0xff] }
 0x910   :  { %v3366_v51 = vadd.f32 %v3365_v7, %v3335_v37  ;;  %v3340_v37 = vmul.f32 %v10130_v28, %v10130_v28  ;;  %3619 = vmatpush.bf16.msra.mxu2 %v7136_v21 }
 0x912   :  { %v3367_v59 = vadd.f32 %v3366_v51, %v3336_v39  ;;  %v10148_v39 = vsub.f32 %v9966_v45, %v10028_v36  ;;  %v3341_v51 = vmul.f32 %v10136_v20, %v10136_v20  ;;  %v10166_v45 = vsub.f32 %v9984_v54, %v10028_v36 }
 0x913   :  { %v10184_v54 = vsub.f32 %v9999_v62, %v10028_v36  ;;  %v10202_v62 = vsub.f32 %v10014_v60, %v10028_v36 }
 0x914   :  { %v3368_v55 = vadd.f32 %v3367_v59, %v3337_v8  ;;  %v10154_v59 = vsub.f32 %v9972_v11, %v10028_v36  ;;  %v10172_v11 = vsub.f32 %v9989_v30, %v10028_v36  ;;  %v10190_v30 = vsub.f32 %v10004_v25, %v10028_v36  ;;  %3620 = vmatpush.bf16.msra.mxu2 %v7135_v13 }
 0x915   :  { %v10208_v25 = vsub.f32 %v10018_v57, %v10028_v36 }
 0x916   :  { %v3369_v23 = vadd.f32 %v3368_v55, %v3338_v24  ;;  %v3342_v24 = vmul.f32 %v10142_v43, %v10142_v43 }
 0x918   :  { %v3370_v7 = vadd.f32 %v3369_v23, %v3339_v18  ;;  %v3343_v18 = vmul.f32 %v10148_v39, %v10148_v39  ;;  %3621 = vmatpush.bf16.msra.mxu2 %v7134_v31  ;;  %v10222_v31 = vld [vmem:[%s13568_s5] sm:$0xff] }
 0x91a   :  { %v3371_v8 = vadd.f32 %v3370_v7, %v3340_v37  ;;  %v3344_v37 = vmul.f32 %v10154_v59, %v10154_v59 }
 0x91c   :  { %v3372_v55 = vadd.f32 %v3371_v8, %v3341_v51  ;;  %v3345_v51 = vmul.f32 %v10160_v14, %v10160_v14  ;;  %3622 = vmatpush.bf16.msra.mxu2 %v7133_v63  ;;  %v774_v63 = vperm.slane %v10222_v31, 4 }
 0x91e   :  { %v3373_v23 = vadd.f32 %v3372_v55, %v3342_v24  ;;  %v3346_v24 = vmul.f32 %v10166_v45, %v10166_v45 }
 0x920   :  { %v3374_v7 = vadd.f32 %v3373_v23, %v3343_v18  ;;  %v3347_v18 = vmul.f32 %v10172_v11, %v10172_v11  ;;  %3623 = vmatpush.bf16.msra.mxu2 %v7132_v47 }
 0x922   :  { %v3375_v8 = vadd.f32 %v3374_v7, %v3344_v37  ;;  %v3348_v37 = vmul.f32 %v10178_v34, %v10178_v34 }
 0x924   :  { %v3376_v55 = vadd.f32 %v3375_v8, %v3345_v51  ;;  %v3349_v51 = vmul.f32 %v10184_v54, %v10184_v54 }
 0x926   :  { %v3377_v23 = vadd.f32 %v3376_v55, %v3346_v24  ;;  %v3350_v24 = vmul.f32 %v10190_v30, %v10190_v30 }
 0x928   :  { %v3378_v7 = vadd.f32 %v3377_v23, %v3347_v18  ;;  %v3351_v18 = vmul.f32 %v10196_v19, %v10196_v19 }
 0x92a   :  { %v3379_v8 = vadd.f32 %v3378_v7, %v3348_v37  ;;  %v3322_v37 = vsub.f32 %v10024_v44, %v10028_v36  ;;  %v3352_v7 = vmul.f32 %v10202_v62, %v10202_v62 }
 0x92c   :  { %v3380_v55 = vadd.f32 %v3379_v8, %v3349_v51  ;;  %v3353_v51 = vmul.f32 %v10208_v25, %v10208_v25  ;;  %v3354_v57 = vmul.f32 %v3322_v37, %v3322_v37 }
 0x92e   :  { %v3381_v23 = vadd.f32 %v3380_v55, %v3350_v24 }
 0x930   :  { %v3382_v60 = vadd.f32 %v3381_v23, %v3351_v18  ;;  %v7131_v23 = vld [vmem:[#allocation5 + $0x108] sm:$0xff] }
 0x931   :  { %3624 = vmatpush.bf16.msra.mxu2 %v7131_v23 }
 0x932   :  { %v3383_v8 = vadd.f32 %v3382_v60, %v3352_v7 }
 0x934   :  { %v3384_v56 = vadd.f32 %v3383_v8, %v3353_v51  ;;  %v7130_v51 = vld [vmem:[#allocation5 + $0x100] sm:$0xff] }
 0x935   :  { %3625 = vmatpush.bf16.msra.mxu2 %v7130_v51  ;;  %v13840_v8 = vld [vmem:[#allocation37_spill] sm:$0xff] }
 0x936   :  { %v3385_v0 = vadd.f32 %v3384_v56, %v3354_v57 }
 0x938   :  { %v3386_v24 = vrot.slane %v3385_v0, 4 }
 0x93a   :  { %v3387_v55 = vadd.f32 %v3386_v24, %v3385_v0  ;;  %v13839_v0 = vld [vmem:[#allocation32_spill] sm:$0xff]  ;;  %v1100_v24 = vadd.f32 %v13840_v8, %v774_v63 }
 0x93b   :  { %v785_v47 = vperm.slane %v13839_v0, 7 }
 0x93c   :  { %v3388_v36 = vrot.slane %v3387_v55, 2  ;;  %v10228_v23 = vperm.slane %v1100_v24, 0 }
 0x93e   :  { %v3389_v44 = vadd.f32 %v3388_v36, %v3387_v55  ;;  %v13841_v55 = vld [vmem:[#allocation48_spill] sm:$0xff] }
 0x93f   :  { %v1243_v36 = vadd.f32 %v13841_v55, %v785_v47 }
 0x940   :  { %v3390_v18 = vrot.slane %v3389_v44, 1 }
 0x941   :  { %v10232_v51 = vperm.slane %v1243_v36, 0  ;;  %v10234_v33 = vperm.slane %v1243_v36, 1 }
 0x942   :  { %v3391_v21 = vadd.f32 %v3390_v18, %v3389_v44 }
 0x944   :  { %v3392_v60 = vmul.f32 %v3391_v21, %v13838_v1 }
 0x946   :  { %v3393_v7 = vadd.f32 1e-05, %v3392_v60  ;;  %v10230_v60 = vperm.slane %v1100_v24, 1 }
 0x948   :  { %7272 = vrsqrt.f32 %v3393_v7  ;;  %vm3400_vm15 = vweird.f32 %v3393_v7 }
 0x94e   :  { %v7273_v56 = vpop.eup %7272 }
 0x94f   :  { %v3395_v13 = vmul.f32 %v7273_v56, %v3393_v7  ;;  %vm3401_vm14 = vweird.f32 %v7273_v56 }
 0x950   :  { %vm3402_vm0 = vmor %vm3400_vm15, %vm3401_vm14 }
 0x951   :  { %v3396_v57 = vmul.f32 %v7273_v56, %v3395_v13 }
 0x953   :  { %v3397_v44 = vmul.f32 0.5, %v3396_v57 }
 0x955   :  { %v3398_v18 = vsub.f32 1.5, %v3397_v44 }
 0x957   :  { %v3399_v21 = vmul.f32 %v7273_v56, %v3398_v18 }
 0x959   :  { %v3403_v0 = vsel %vm3402_vm0, %v7273_v56, %v3399_v21 }
 0x95a   :  { %v10236_v13 = vmul.f32 %v3403_v0, %v3322_v37  ;;  %v3404_v63 = vmul.f32 %v3403_v0, %v10032_v15  ;;  %v3405_v47 = vmul.f32 %v3403_v0, %v10036_v4  ;;  %v3406_v57 = vmul.f32 %v3403_v0, %v10040_v12 }
 0x95b   :  { %v3407_v7 = vmul.f32 %v3403_v0, %v10048_v26  ;;  %v3408_v44 = vmul.f32 %v3403_v0, %v10052_v32  ;;  %v3409_v8 = vmul.f32 %v3403_v0, %v10058_v42  ;;  %v3410_v24 = vmul.f32 %v3403_v0, %v10064_v35 }
 0x95c   :  { %v3411_v55 = vmul.f32 %v3403_v0, %v10070_v17  ;;  %v3412_v56 = vmul.f32 %v3403_v0, %v10076_v3  ;;  %v3413_v37 = vmul.f32 %v3403_v0, %v10082_v53  ;;  %v3414_v15 = vmul.f32 %v3403_v0, %v10088_v46 }
 0x95d   :  { %v3415_v4 = vmul.f32 %v3403_v0, %v10094_v61  ;;  %v3416_v12 = vmul.f32 %v3403_v0, %v10100_v50  ;;  %v3417_v26 = vmul.f32 %v3403_v0, %v10106_v5  ;;  %v3418_v32 = vmul.f32 %v3403_v0, %v10112_v40 }
 0x95e   :  { %v3419_v42 = vmul.f32 %v3403_v0, %v10118_v6  ;;  %v10255_v35 = vmul.f32 %v3403_v0, %v10124_v58  ;;  %v10258_v17 = vmul.f32 %v3403_v0, %v10130_v28  ;;  %v10261_v3 = vmul.f32 %v3403_v0, %v10136_v20 }
 0x95f   :  { %v10264_v53 = vmul.f32 %v3403_v0, %v10142_v43  ;;  %v10267_v46 = vmul.f32 %v3403_v0, %v10148_v39  ;;  %v10270_v61 = vmul.f32 %v3403_v0, %v10154_v59  ;;  %v10273_v50 = vmul.f32 %v3403_v0, %v10160_v14 }
 0x960   :  { %v10276_v5 = vmul.f32 %v3403_v0, %v10166_v45  ;;  %v10279_v40 = vmul.f32 %v3403_v0, %v10172_v11  ;;  %v10282_v6 = vmul.f32 %v3403_v0, %v10178_v34  ;;  %v10285_v58 = vmul.f32 %v3403_v0, %v10184_v54 }
 0x961   :  { %v10288_v28 = vmul.f32 %v3403_v0, %v10190_v30  ;;  %v10291_v20 = vmul.f32 %v3403_v0, %v10196_v19  ;;  %v10294_v14 = vmul.f32 %v3403_v0, %v10202_v62  ;;  %v10297_v45 = vmul.f32 %v3403_v0, %v10208_v25 }
 0x962   :  { %v3436_v11 = vmul.f32 %v3404_v63, %v10228_v23  ;;  %v3437_v34 = vmul.f32 %v3405_v47, %v10228_v23  ;;  %v3438_v43 = vmul.f32 %v3406_v57, %v10228_v23  ;;  %v3439_v54 = vmul.f32 %v3407_v7, %v10228_v23 }
 0x963   :  { %v3440_v30 = vmul.f32 %v3408_v44, %v10228_v23  ;;  %v3441_v39 = vmul.f32 %v3409_v8, %v10228_v23  ;;  %v3442_v19 = vmul.f32 %v3410_v24, %v10228_v23  ;;  %v3443_v62 = vmul.f32 %v3411_v55, %v10228_v23 }
 0x964   :  { %v3468_v59 = vadd.f32 %v3436_v11, %v10232_v51  ;;  %v3469_v25 = vadd.f32 %v3437_v34, %v10232_v51  ;;  %v3470_v36 = vadd.f32 %v3438_v43, %v10232_v51  ;;  %v3471_v18 = vadd.f32 %v3439_v54, %v10232_v51 }
 0x965   :  { %v3472_v21 = vadd.f32 %v3440_v30, %v10232_v51  ;;  %v3473_v0 = vadd.f32 %v3441_v39, %v10232_v51  ;;  %v3474_v63 = vadd.f32 %v3442_v19, %v10232_v51  ;;  %v3475_v47 = vadd.f32 %v3443_v62, %v10232_v51 }
 0x966   :  { %v3500_v57 = vmax.f32 %v3468_v59, 0.0  ;;  %v3501_v7 = vmax.f32 %v3469_v25, 0.0  ;;  %v3502_v44 = vmax.f32 %v3470_v36, 0.0  ;;  %v3503_v8 = vmax.f32 %v3471_v18, 0.0 }
 0x967   :  { %v3504_v24 = vmax.f32 %v3472_v21, 0.0  ;;  %v3505_v55 = vmax.f32 %v3473_v0, 0.0  ;;  %v3506_v11 = vmax.f32 %v3474_v63, 0.0  ;;  %v3507_v34 = vmax.f32 %v3475_v47, 0.0 }
 0x968   :  { %v3551_v49 = vpack.c.bf16 %v3501_v7, %v3500_v57  ;;  %v10315_v43 = vpack.c.bf16 %v3503_v8, %v3502_v44  ;;  %v3444_v54 = vmul.f32 %v3412_v56, %v10228_v23  ;;  %v3445_v30 = vmul.f32 %v3413_v37, %v10228_v23 }
 0x969   :  { %v10319_v39 = vpack.c.bf16 %v3505_v55, %v3504_v24  ;;  %v10321_v19 = vpack.c.bf16 %v3507_v34, %v3506_v11  ;;  %v3446_v62 = vmul.f32 %v3414_v15, %v10228_v23  ;;  %v3447_v59 = vmul.f32 %v3415_v4, %v10228_v23 }
 0x96a   :  { %3626 = vmatmul.bf16.vlgmr.msra.gmra.mxu2 %v3551_v49  ;;  %v3476_v25 = vadd.f32 %v3444_v54, %v10232_v51  ;;  %v3477_v36 = vadd.f32 %v3445_v30, %v10232_v51  ;;  %v3448_v18 = vmul.f32 %v3416_v12, %v10228_v23  ;;  %v3449_v21 = vmul.f32 %v3417_v26, %v10228_v23 }
 0x96b   :  { %v3478_v56 = vadd.f32 %v3446_v62, %v10232_v51  ;;  %v3479_v37 = vadd.f32 %v3447_v59, %v10232_v51  ;;  %v3450_v0 = vmul.f32 %v3418_v32, %v10228_v23  ;;  %v3451_v63 = vmul.f32 %v3419_v42, %v10228_v23 }
 0x96c   :  { %v3508_v15 = vmax.f32 %v3476_v25, 0.0  ;;  %v3509_v47 = vmax.f32 %v3477_v36, 0.0  ;;  %v3480_v49 = vadd.f32 %v3448_v18, %v10232_v51  ;;  %v3481_v4 = vadd.f32 %v3449_v21, %v10232_v51 }
 0x96d   :  { %v3510_v57 = vmax.f32 %v3478_v56, 0.0  ;;  %v3511_v7 = vmax.f32 %v3479_v37, 0.0  ;;  %v3482_v12 = vadd.f32 %v3450_v0, %v10232_v51  ;;  %v3483_v26 = vadd.f32 %v3451_v63, %v10232_v51 }
 0x96e   :  { %v10337_v44 = vpack.c.bf16 %v3509_v47, %v3508_v15  ;;  %v3512_v8 = vmax.f32 %v3480_v49, 0.0  ;;  %v3513_v24 = vmax.f32 %v3481_v4, 0.0  ;;  %v3452_v32 = vmul.f32 %v10255_v35, %v10230_v60 }
 0x96f   :  { %v10341_v23 = vpack.c.bf16 %v3511_v7, %v3510_v57  ;;  %v3514_v42 = vmax.f32 %v3482_v12, 0.0  ;;  %v3515_v55 = vmax.f32 %v3483_v26, 0.0  ;;  %v3453_v11 = vmul.f32 %v10258_v17, %v10230_v60 }
 0x970   :  { %v3557_v34 = vpack.c.bf16 %v3513_v24, %v3512_v8  ;;  %v3484_v54 = vadd.f32 %v3452_v32, %v10234_v33  ;;  %v3454_v51 = vmul.f32 %v10261_v3, %v10230_v60  ;;  %v3455_v30 = vmul.f32 %v10264_v53, %v10230_v60 }
 0x971   :  { %v3558_v62 = vpack.c.bf16 %v3515_v55, %v3514_v42  ;;  %v3485_v59 = vadd.f32 %v3453_v11, %v10234_v33  ;;  %v3456_v35 = vmul.f32 %v10267_v46, %v10230_v60  ;;  %v3457_v25 = vmul.f32 %v10270_v61, %v10230_v60 }
 0x972   :  { %v3516_v36 = vmax.f32 %v3484_v54, 0.0  ;;  %v3486_v17 = vadd.f32 %v3454_v51, %v10234_v33  ;;  %v3487_v18 = vadd.f32 %v3455_v30, %v10234_v33  ;;  %v3458_v3 = vmul.f32 %v10273_v50, %v10230_v60 }
 0x973   :  { %v3517_v21 = vmax.f32 %v3485_v59, 0.0  ;;  %v3488_v53 = vadd.f32 %v3456_v35, %v10234_v33  ;;  %v3489_v56 = vadd.f32 %v3457_v25, %v10234_v33  ;;  %v3459_v37 = vmul.f32 %v10276_v5, %v10230_v60 }
 0x974   :  { %v3518_v46 = vmax.f32 %v3486_v17, 0.0  ;;  %v3519_v0 = vmax.f32 %v3487_v18, 0.0  ;;  %v3490_v61 = vadd.f32 %v3458_v3, %v10234_v33  ;;  %v3460_v63 = vmul.f32 %v10279_v40, %v10230_v60 }
 0x975   :  { %v3559_v15 = vpack.c.bf16 %v3517_v21, %v3516_v36  ;;  %v3520_v47 = vmax.f32 %v3488_v53, 0.0  ;;  %v3521_v49 = vmax.f32 %v3489_v56, 0.0  ;;  %v3491_v50 = vadd.f32 %v3459_v37, %v10234_v33 }
 0x976   :  { %v3560_v4 = vpack.c.bf16 %v3519_v0, %v3518_v46  ;;  %v3522_v57 = vmax.f32 %v3490_v61, 0.0  ;;  %v3461_v7 = vmul.f32 %v10282_v6, %v10230_v60  ;;  %v3492_v12 = vadd.f32 %v3460_v63, %v10234_v33 }
 0x977   :  { %v3561_v5 = vpack.c.bf16 %v3521_v49, %v3520_v47  ;;  %v3523_v26 = vmax.f32 %v3491_v50, 0.0  ;;  %v3462_v8 = vmul.f32 %v10285_v58, %v10230_v60  ;;  %v3463_v40 = vmul.f32 %v10288_v28, %v10230_v60 }
 0x978   :  { %v3493_v24 = vadd.f32 %v3461_v7, %v10234_v33  ;;  %v3524_v32 = vmax.f32 %v3492_v12, 0.0  ;;  %v3464_v42 = vmul.f32 %v10291_v20, %v10230_v60  ;;  %v3465_v55 = vmul.f32 %v10294_v14, %v10230_v60 }
 0x979   :  { %v3562_v6 = vpack.c.bf16 %v3523_v26, %v3522_v57  ;;  %v3494_v11 = vadd.f32 %v3462_v8, %v10234_v33  ;;  %v3495_v54 = vadd.f32 %v3463_v40, %v10234_v33  ;;  %v3466_v58 = vmul.f32 %v10297_v45, %v10230_v60  ;;  %v10397_v26 = vld [vmem:[%s13570_s7 + $0x4] ss:$0 sm:$0xff] }
 0x97a   :  { %3631 = vmatmul.bf16.gmra.mxu2 %v10315_v43  ;;  %v3525_v28 = vmax.f32 %v3493_v24, 0.0  ;;  %v3496_v51 = vadd.f32 %v3464_v42, %v10234_v33  ;;  %v3497_v30 = vadd.f32 %v3465_v55, %v10234_v33  ;;  %v3467_v20 = vmul.f32 %v10236_v13, %v10230_v60 }
 0x97b   :  { %v3526_v59 = vmax.f32 %v3494_v11, 0.0  ;;  %v3527_v14 = vmax.f32 %v3495_v54, 0.0  ;;  %v3498_v35 = vadd.f32 %v3466_v58, %v10234_v33 }
 0x97c   :  { %v3563_v25 = vpack.c.bf16 %v3525_v28, %v3524_v32  ;;  %v3528_v36 = vmax.f32 %v3496_v51, 0.0  ;;  %v3529_v17 = vmax.f32 %v3497_v30, 0.0  ;;  %v3499_v18 = vadd.f32 %v3467_v20, %v10234_v33 }
 0x97d   :  { %v3564_v45 = vpack.c.bf16 %v3527_v14, %v3526_v59  ;;  %v3530_v3 = vmax.f32 %v3498_v35, 0.0 }
 0x97e   :  { %v3565_v43 = vpack.c.bf16 %v3529_v17, %v3528_v36  ;;  %v3531_v21 = vmax.f32 %v3499_v18, 0.0  ;;  %v7145_v17 = vld [vmem:[#allocation5 + $0x178] sm:$0xff] }
 0x97f   :  { %4072 = vmatpush.bf16.msra.mxu3 %v7145_v17 }
 0x980   :  { %v3566_v53 = vpack.c.bf16 %v3531_v21, %v3530_v3 }
 0x98a   :  { %3636 = vmatmul.bf16.gmra.mxu2 %v10319_v39 }
 0x99a   :  { %3641 = vmatmul.bf16.gmra.mxu2 %v10321_v19 }
 0x9aa   :  { %3646 = vmatmul.bf16.gmra.mxu2 %v10337_v44 }
 0x9ba   :  { %3651 = vmatmul.bf16.gmra.mxu2 %v10341_v23 }
 0x9ca   :  { %3656 = vmatmul.bf16.gmra.mxu2 %v3557_v34 }
 0x9da   :  { %3661 = vmatmul.bf16.gmra.mxu2 %v3558_v62 }
 0x9ea   :  { %3666 = vmatmul.bf16.gmra.mxu2 %v3559_v15 }
 0x9ed   :  { %v3627_v60 = vpop.f32.mrf.mxu2 }
 0x9ee   :  { %v10403_v40 = vadd.f32 %v10397_v26, %v3627_v60 }
 0x9f5   :  { %v3629_v13 = vpop.f32.mrf.mxu2 }
 0x9f6   :  { %v10400_v8 = vadd.f32 %v10397_v26, %v3629_v13 }
 0x9f8   :  { %v3707_v32 = vadd.f32 %v10400_v8, %v10403_v40 }
 0x9fa   :  { %3671 = vmatmul.bf16.gmra.mxu2 %v3560_v4 }
 0x9fd   :  { %v3632_v33 = vpop.f32.mrf.mxu2 }
 0x9fe   :  { %v10406_v24 = vadd.f32 %v10397_v26, %v3632_v33 }
 0xa05   :  { %v3634_v56 = vpop.f32.mrf.mxu2 }
 0xa06   :  { %v10411_v42 = vadd.f32 %v10397_v26, %v3634_v56 }
 0xa0a   :  { %3676 = vmatmul.bf16.gmra.mxu2 %v3561_v5 }
 0xa0d   :  { %v3637_v37 = vpop.f32.mrf.mxu2 }
 0xa0e   :  { %v10415_v11 = vadd.f32 %v10397_v26, %v3637_v37 }
 0xa15   :  { %v3639_v46 = vpop.f32.mrf.mxu2 }
 0xa16   :  { %v10419_v58 = vadd.f32 %v10397_v26, %v3639_v46 }
 0xa1a   :  { %3681 = vmatmul.bf16.gmra.mxu2 %v3562_v6  ;;  %v3708_v6 = vadd.f32 %v3707_v32, %v10406_v24 }
 0xa1c   :  { %v3709_v54 = vadd.f32 %v3708_v6, %v10411_v42 }
 0xa1d   :  { %v3642_v0 = vpop.f32.mrf.mxu2 }
 0xa1e   :  { %v3710_v28 = vadd.f32 %v3709_v54, %v10415_v11  ;;  %v10423_v51 = vadd.f32 %v10397_v26, %v3642_v0 }
 0xa20   :  { %v3711_v30 = vadd.f32 %v3710_v28, %v10419_v58 }
 0xa22   :  { %v3712_v14 = vadd.f32 %v3711_v30, %v10423_v51 }
 0xa25   :  { %v3644_v39 = vpop.f32.mrf.mxu2 }
 0xa26   :  { %v10427_v20 = vadd.f32 %v10397_v26, %v3644_v39 }
 0xa2a   :  { %3686 = vmatmul.bf16.gmra.mxu2 %v3563_v25  ;;  %v3713_v25 = vadd.f32 %v3712_v14, %v10427_v20 }
 0xa2d   :  { %v3647_v19 = vpop.f32.mrf.mxu2 }
 0xa2e   :  { %v10431_v35 = vadd.f32 %v10397_v26, %v3647_v19 }
 0xa30   :  { %v3714_v18 = vadd.f32 %v3713_v25, %v10431_v35 }
 0xa35   :  { %v3649_v61 = vpop.f32.mrf.mxu2 }
 0xa36   :  { %v10435_v36 = vadd.f32 %v10397_v26, %v3649_v61 }
 0xa38   :  { %v3715_v3 = vadd.f32 %v3714_v18, %v10435_v36 }
 0xa3a   :  { %3691 = vmatmul.bf16.gmra.mxu2 %v3564_v45 }
 0xa3d   :  { %v3652_v44 = vpop.f32.mrf.mxu2 }
 0xa3e   :  { %v10439_v45 = vadd.f32 %v10397_v26, %v3652_v44 }
 0xa45   :  { %v3654_v23 = vpop.f32.mrf.mxu2 }
 0xa4a   :  { %3696 = vmatmul.bf16.gmra.mxu2 %v3565_v43  ;;  %v10443_v43 = vadd.f32 %v10397_v26, %v3654_v23 }
 0xa4d   :  { %v3657_v34 = vpop.f32.mrf.mxu2 }
 0xa4e   :  { %v10447_v60 = vadd.f32 %v10397_v26, %v3657_v34 }
 0xa55   :  { %v3659_v62 = vpop.f32.mrf.mxu2 }
 0xa56   :  { %v10451_v33 = vadd.f32 %v10397_v26, %v3659_v62 }
 0xa5a   :  { %3701 = vmatmul.bf16.gmra.mxu2 %v3566_v53  ;;  %v3716_v53 = vadd.f32 %v3715_v3, %v10439_v45 }
 0xa5c   :  { %v3717_v13 = vadd.f32 %v3716_v53, %v10443_v43 }
 0xa5d   :  { %v3662_v63 = vpop.f32.mrf.mxu2 }
 0xa5e   :  { %v3718_v56 = vadd.f32 %v3717_v13, %v10447_v60  ;;  %v10455_v37 = vadd.f32 %v10397_v26, %v3662_v63 }
 0xa60   :  { %v3719_v46 = vadd.f32 %v3718_v56, %v10451_v33 }
 0xa62   :  { %v3720_v19 = vadd.f32 %v3719_v46, %v10455_v37 }
 0xa65   :  { %v3664_v15 = vpop.f32.mrf.mxu2 }
 0xa66   :  { %v10459_v0 = vadd.f32 %v10397_v26, %v3664_v15 }
 0xa68   :  { %v3721_v44 = vadd.f32 %v3720_v19, %v10459_v0 }
 0xa6d   :  { %v3667_v47 = vpop.f32.mrf.mxu2 }
 0xa6e   :  { %v10463_v61 = vadd.f32 %v10397_v26, %v3667_v47 }
 0xa70   :  { %v3722_v34 = vadd.f32 %v3721_v44, %v10463_v61 }
 0xa75   :  { %v3669_v49 = vpop.f32.mrf.mxu2 }
 0xa76   :  { %v10467_v23 = vadd.f32 %v10397_v26, %v3669_v49 }
 0xa78   :  { %v3723_v63 = vadd.f32 %v3722_v34, %v10467_v23 }
 0xa7d   :  { %v3672_v50 = vpop.f32.mrf.mxu2 }
 0xa7e   :  { %v10471_v62 = vadd.f32 %v10397_v26, %v3672_v50 }
 0xa80   :  { %v3724_v6 = vadd.f32 %v3723_v63, %v10471_v62 }
 0xa85   :  { %v3674_v4 = vpop.f32.mrf.mxu2 }
 0xa86   :  { %v10475_v15 = vadd.f32 %v10397_v26, %v3674_v4 }
 0xa88   :  { %v3725_v54 = vadd.f32 %v3724_v6, %v10475_v15 }
 0xa8d   :  { %v3677_v57 = vpop.f32.mrf.mxu2 }
 0xa8e   :  { %v10479_v47 = vadd.f32 %v10397_v26, %v3677_v57 }
 0xa90   :  { %v3726_v28 = vadd.f32 %v3725_v54, %v10479_v47 }
 0xa95   :  { %v3679_v7 = vpop.f32.mrf.mxu2 }
 0xa96   :  { %v10483_v49 = vadd.f32 %v10397_v26, %v3679_v7 }
 0xa98   :  { %v3727_v30 = vadd.f32 %v3726_v28, %v10483_v49 }
 0xa9d   :  { %v3682_v12 = vpop.f32.mrf.mxu2 }
 0xa9e   :  { %v10487_v50 = vadd.f32 %v10397_v26, %v3682_v12 }
 0xaa0   :  { %v3728_v25 = vadd.f32 %v3727_v30, %v10487_v50 }
 0xaa5   :  { %v3684_v5 = vpop.f32.mrf.mxu2 }
 0xaa6   :  { %v10491_v4 = vadd.f32 %v10397_v26, %v3684_v5 }
 0xaa8   :  { %v3729_v17 = vadd.f32 %v3728_v25, %v10491_v4 }
 0xaad   :  { %v3687_v55 = vpop.f32.mrf.mxu2 }
 0xaae   :  { %v10495_v57 = vadd.f32 %v10397_v26, %v3687_v55 }
 0xab0   :  { %v3730_v18 = vadd.f32 %v3729_v17, %v10495_v57 }
 0xab5   :  { %v3689_v59 = vpop.f32.mrf.mxu2 }
 0xab6   :  { %v10499_v7 = vadd.f32 %v10397_v26, %v3689_v59 }
 0xab8   :  { %v3731_v3 = vadd.f32 %v3730_v18, %v10499_v7 }
 0xabd   :  { %v3692_v21 = vpop.f32.mrf.mxu2 }
 0xabe   :  { %v10503_v12 = vadd.f32 %v10397_v26, %v3692_v21 }
 0xac0   :  { %v3732_v13 = vadd.f32 %v3731_v3, %v10503_v12 }
 0xac5   :  { %v3694_v39 = vpop.f32.mrf.mxu2 }
 0xac6   :  { %v10507_v5 = vadd.f32 %v10397_v26, %v3694_v39 }
 0xac8   :  { %v3733_v56 = vadd.f32 %v3732_v13, %v10507_v5 }
 0xacd   :  { %v3697_v32 = vpop.f32.mrf.mxu2 }
 0xace   :  { %v10511_v55 = vadd.f32 %v10397_v26, %v3697_v32 }
 0xad0   :  { %v3734_v46 = vadd.f32 %v3733_v56, %v10511_v55 }
 0xad5   :  { %v3699_v14 = vpop.f32.mrf.mxu2 }
 0xad6   :  { %v10515_v59 = vadd.f32 %v10397_v26, %v3699_v14 }
 0xad8   :  { %v3735_v19 = vadd.f32 %v3734_v46, %v10515_v59 }
 0xadd   :  { %v3702_v53 = vpop.f32.mrf.mxu2 }
 0xade   :  { %v10519_v21 = vadd.f32 %v10397_v26, %v3702_v53 }
 0xae0   :  { %v3736_v44 = vadd.f32 %v3735_v19, %v10519_v21 }
 0xae5   :  { %v3704_v39 = vpop.f32.mrf.mxu2 }
 0xae6   :  { %v10524_v34 = vadd.f32 %v10397_v26, %v3704_v39 }
 0xae8   :  { %v3737_v63 = vadd.f32 %v3736_v44, %v10524_v34 }
 0xaea   :  { %v3738_v32 = vrot.slane %v3737_v63, 4 }
 0xaec   :  { %v3739_v6 = vadd.f32 %v3738_v32, %v3737_v63 }
 0xaee   :  { %v3740_v54 = vrot.slane %v3739_v6, 2 }
 0xaf0   :  { %v3741_v28 = vadd.f32 %v3740_v54, %v3739_v6 }
 0xaf2   :  { %v3742_v30 = vrot.slane %v3741_v28, 1 }
 0xaf4   :  { %v3743_v14 = vadd.f32 %v3742_v30, %v3741_v28 }
 0xaf6   :  { %v10528_v25 = vmul.f32 %v3743_v14, %v13838_v1 }
 0xaf8   :  { %v10532_v17 = vsub.f32 %v10403_v40, %v10528_v25  ;;  %v10536_v18 = vsub.f32 %v10400_v8, %v10528_v25  ;;  %v10540_v26 = vsub.f32 %v10406_v24, %v10528_v25  ;;  %v10548_v13 = vsub.f32 %v10411_v42, %v10528_v25 }
 0xaf9   :  { %v10552_v40 = vsub.f32 %v10415_v11, %v10528_v25  ;;  %v10558_v24 = vsub.f32 %v10419_v58, %v10528_v25  ;;  %v10564_v42 = vsub.f32 %v10423_v51, %v10528_v25  ;;  %v10570_v44 = vsub.f32 %v10427_v20, %v10528_v25 }
 0xafa   :  { %v3777_v3 = vmul.f32 %v10532_v17, %v10532_v17  ;;  %v3778_v53 = vmul.f32 %v10536_v18, %v10536_v18  ;;  %v3779_v8 = vmul.f32 %v10540_v26, %v10540_v26  ;;  %v3780_v46 = vmul.f32 %v10548_v13, %v10548_v13 }
 0xafb   :  { %v3781_v11 = vmul.f32 %v10552_v40, %v10552_v40  ;;  %v3782_v58 = vmul.f32 %v10558_v24, %v10558_v24  ;;  %v10576_v32 = vsub.f32 %v10431_v35, %v10528_v25  ;;  %v3783_v51 = vmul.f32 %v10564_v42, %v10564_v42 }
 0xafc   :  { %v3809_v56 = vadd.f32 %v3778_v53, %v3777_v3  ;;  %v10582_v54 = vsub.f32 %v10435_v36, %v10528_v25  ;;  %v3784_v20 = vmul.f32 %v10570_v44, %v10570_v44  ;;  %v10588_v30 = vsub.f32 %v10439_v45, %v10528_v25 }
 0xafd   :  { %v3785_v35 = vmul.f32 %v10576_v32, %v10576_v32  ;;  %v10594_v3 = vsub.f32 %v10443_v43, %v10528_v25 }
 0xafe   :  { %v3810_v19 = vadd.f32 %v3809_v56, %v3779_v8  ;;  %v3786_v36 = vmul.f32 %v10582_v54, %v10582_v54  ;;  %v10600_v8 = vsub.f32 %v10447_v60, %v10528_v25  ;;  %v3787_v45 = vmul.f32 %v10588_v30, %v10588_v30 }
 0xaff   :  { %v3788_v43 = vmul.f32 %v10594_v3, %v10594_v3 }
 0xb00   :  { %v3811_v39 = vadd.f32 %v3810_v19, %v3780_v46  ;;  %v10606_v46 = vsub.f32 %v10451_v33, %v10528_v25  ;;  %v3789_v60 = vmul.f32 %v10600_v8, %v10600_v8 }
 0xb02   :  { %v3812_v63 = vadd.f32 %v3811_v39, %v3781_v11  ;;  %v10612_v11 = vsub.f32 %v10455_v37, %v10528_v25  ;;  %v3790_v33 = vmul.f32 %v10606_v46, %v10606_v46 }
 0xb04   :  { %v3813_v6 = vadd.f32 %v3812_v63, %v3782_v58  ;;  %v10618_v58 = vsub.f32 %v10459_v0, %v10528_v25  ;;  %v3791_v37 = vmul.f32 %v10612_v11, %v10612_v11 }
 0xb06   :  { %v3814_v28 = vadd.f32 %v3813_v6, %v3783_v51  ;;  %v10624_v51 = vsub.f32 %v10463_v61, %v10528_v25  ;;  %v3792_v0 = vmul.f32 %v10618_v58, %v10618_v58 }
 0xb08   :  { %v3815_v14 = vadd.f32 %v3814_v28, %v3784_v20  ;;  %v10630_v20 = vsub.f32 %v10467_v23, %v10528_v25  ;;  %v3793_v61 = vmul.f32 %v10624_v51, %v10624_v51 }
 0xb0a   :  { %v3816_v53 = vadd.f32 %v3815_v14, %v3785_v35  ;;  %v10636_v35 = vsub.f32 %v10471_v62, %v10528_v25  ;;  %v3794_v23 = vmul.f32 %v10630_v20, %v10630_v20 }
 0xb0c   :  { %v3817_v56 = vadd.f32 %v3816_v53, %v3786_v36  ;;  %v10642_v36 = vsub.f32 %v10475_v15, %v10528_v25  ;;  %v3795_v62 = vmul.f32 %v10636_v35, %v10636_v35 }
 0xb0e   :  { %v3818_v19 = vadd.f32 %v3817_v56, %v3787_v45  ;;  %v10648_v45 = vsub.f32 %v10479_v47, %v10528_v25  ;;  %v3796_v15 = vmul.f32 %v10642_v36, %v10642_v36 }
 0xb10   :  { %v3819_v39 = vadd.f32 %v3818_v19, %v3788_v43  ;;  %v10654_v43 = vsub.f32 %v10483_v49, %v10528_v25  ;;  %v3797_v47 = vmul.f32 %v10648_v45, %v10648_v45 }
 0xb12   :  { %v3820_v63 = vadd.f32 %v3819_v39, %v3789_v60  ;;  %v10660_v60 = vsub.f32 %v10487_v50, %v10528_v25  ;;  %v3798_v49 = vmul.f32 %v10654_v43, %v10654_v43 }
 0xb14   :  { %v3821_v6 = vadd.f32 %v3820_v63, %v3790_v33  ;;  %v10666_v33 = vsub.f32 %v10491_v4, %v10528_v25  ;;  %v3799_v50 = vmul.f32 %v10660_v60, %v10660_v60 }
 0xb16   :  { %v3822_v28 = vadd.f32 %v3821_v6, %v3791_v37  ;;  %v10672_v37 = vsub.f32 %v10495_v57, %v10528_v25  ;;  %v3800_v4 = vmul.f32 %v10666_v33, %v10666_v33 }
 0xb18   :  { %v3823_v14 = vadd.f32 %v3822_v28, %v3792_v0  ;;  %v10678_v0 = vsub.f32 %v10499_v7, %v10528_v25  ;;  %v3801_v57 = vmul.f32 %v10672_v37, %v10672_v37 }
 0xb1a   :  { %v3824_v53 = vadd.f32 %v3823_v14, %v3793_v61  ;;  %v10684_v61 = vsub.f32 %v10503_v12, %v10528_v25  ;;  %v3802_v7 = vmul.f32 %v10678_v0, %v10678_v0 }
 0xb1c   :  { %v3825_v56 = vadd.f32 %v3824_v53, %v3794_v23  ;;  %v10690_v23 = vsub.f32 %v10507_v5, %v10528_v25  ;;  %v3803_v12 = vmul.f32 %v10684_v61, %v10684_v61 }
 0xb1e   :  { %v3826_v19 = vadd.f32 %v3825_v56, %v3795_v62  ;;  %v10696_v62 = vsub.f32 %v10511_v55, %v10528_v25  ;;  %v3804_v5 = vmul.f32 %v10690_v23, %v10690_v23 }
 0xb20   :  { %v3827_v39 = vadd.f32 %v3826_v19, %v3796_v15  ;;  %v10702_v15 = vsub.f32 %v10515_v59, %v10528_v25  ;;  %v3805_v55 = vmul.f32 %v10696_v62, %v10696_v62 }
 0xb22   :  { %v3828_v63 = vadd.f32 %v3827_v39, %v3797_v47  ;;  %v10708_v47 = vsub.f32 %v10519_v21, %v10528_v25 }
 0xb24   :  { %v3829_v6 = vadd.f32 %v3828_v63, %v3798_v49  ;;  %v3776_v49 = vsub.f32 %v10524_v34, %v10528_v25  ;;  %v3806_v63 = vmul.f32 %v10702_v15, %v10702_v15 }
 0xb26   :  { %v3830_v28 = vadd.f32 %v3829_v6, %v3799_v50  ;;  %v3807_v50 = vmul.f32 %v10708_v47, %v10708_v47 }
 0xb28   :  { %v3831_v14 = vadd.f32 %v3830_v28, %v3800_v4  ;;  %v3808_v4 = vmul.f32 %v3776_v49, %v3776_v49 }
 0xb2a   :  { %v3832_v53 = vadd.f32 %v3831_v14, %v3801_v57  ;;  %v7144_v57 = vld [vmem:[#allocation5 + $0x170] sm:$0xff] }
 0xb2b   :  { %4073 = vmatpush.bf16.msra.mxu3 %v7144_v57 }
 0xb2c   :  { %v3833_v56 = vadd.f32 %v3832_v53, %v3802_v7  ;;  %v7143_v7 = vld [vmem:[#allocation5 + $0x168] sm:$0xff] }
 0xb2e   :  { %v3834_v19 = vadd.f32 %v3833_v56, %v3803_v12  ;;  %v7142_v56 = vld [vmem:[#allocation5 + $0x160] sm:$0xff] }
 0xb2f   :  { %4074 = vmatpush.bf16.msra.mxu3 %v7143_v7 }
 0xb30   :  { %v3835_v39 = vadd.f32 %v3834_v19, %v3804_v5  ;;  %v7141_v5 = vld [vmem:[#allocation5 + $0x158] sm:$0xff] }
 0xb32   :  { %v3836_v59 = vadd.f32 %v3835_v39, %v3805_v55  ;;  %v7140_v39 = vld [vmem:[#allocation5 + $0x150] sm:$0xff] }
 0xb33   :  { %4075 = vmatpush.bf16.msra.mxu3 %v7142_v56  ;;  %v13844_v56 = vld [vmem:[#allocation45_spill] sm:$0xff] }
 0xb34   :  { %v3837_v6 = vadd.f32 %v3836_v59, %v3806_v63  ;;  %v7139_v59 = vld [vmem:[#allocation5 + $0x148] sm:$0xff] }
 0xb36   :  { %v3838_v28 = vadd.f32 %v3837_v6, %v3807_v50  ;;  %v7138_v50 = vld [vmem:[#allocation5 + $0x140] sm:$0xff]  ;;  %v10722_v6 = vld [vmem:[%s13568_s5 + $0x10] sm:$0x3f] }
 0xb37   :  { %4076 = vmatpush.bf16.msra.mxu3 %v7141_v5  ;;  %13842 = vst [vmem:[#allocation29_spill] sm:$0xff] %v10722_v6  ;;  %v786_v57 = vperm.slane %v10722_v6, 0 }
 0xb38   :  { %v3839_v21 = vadd.f32 %v3838_v28, %v3808_v4 }
 0xb3a   :  { %v3840_v14 = vrot.slane %v3839_v21, 4 }
 0xb3b   :  { %4077 = vmatpush.bf16.msra.mxu3 %v7140_v39 }
 0xb3c   :  { %v3841_v53 = vadd.f32 %v3840_v14, %v3839_v21  ;;  %v775_v21 = vperm.slane %v10222_v31, 5 }
 0xb3e   :  { %v3842_v12 = vrot.slane %v3841_v53, 2 }
 0xb3f   :  { %4078 = vmatpush.bf16.msra.mxu3 %v7139_v59 }
 0xb40   :  { %v3843_v34 = vadd.f32 %v3842_v12, %v3841_v53  ;;  %v13843_v53 = vld [vmem:[#allocation42_spill] sm:$0xff] }
 0xb41   :  { %v1256_v12 = vadd.f32 %v13843_v53, %v786_v57 }
 0xb42   :  { %v3844_v25 = vrot.slane %v3843_v34, 1 }
 0xb43   :  { %4079 = vmatpush.bf16.msra.mxu3 %v7138_v50 }
 0xb44   :  { %v3845_v19 = vadd.f32 %v3844_v25, %v3843_v34  ;;  %v1113_v34 = vadd.f32 %v13844_v56, %v775_v21 }
 0xb46   :  { %v3846_v55 = vmul.f32 %v3845_v19, %v13838_v1  ;;  %v10728_v19 = vperm.slane %v1256_v12, 0  ;;  %v1329_v39 = vperm.slane %v1113_v34, 0  ;;  %v10732_v59 = vperm.slane %v1113_v34, 1 }
 0xb48   :  { %v3847_v63 = vadd.f32 1e-05, %v3846_v55  ;;  %v10730_v55 = vperm.slane %v1256_v12, 1 }
 0xb4a   :  { %7274 = vrsqrt.f32 %v3847_v63  ;;  %vm3854_vm2 = vweird.f32 %v3847_v63 }
 0xb50   :  { %v7275_v4 = vpop.eup %7274 }
 0xb51   :  { %v3849_v28 = vmul.f32 %v7275_v4, %v3847_v63  ;;  %vm3855_vm1 = vweird.f32 %v7275_v4 }
 0xb52   :  { %vm3856_vm3 = vmor %vm3854_vm2, %vm3855_vm1 }
 0xb53   :  { %v3850_v14 = vmul.f32 %v7275_v4, %v3849_v28 }
 0xb55   :  { %v3851_v7 = vmul.f32 0.5, %v3850_v14 }
 0xb57   :  { %v3852_v25 = vsub.f32 1.5, %v3851_v7 }
 0xb59   :  { %v3853_v5 = vmul.f32 %v7275_v4, %v3852_v25 }
 0xb5b   :  { %v3857_v50 = vsel %vm3856_vm3, %v7275_v4, %v3853_v5  ;;  %vm6488_vm3 = vcmask 7168  }
 0xb5c   :  { %v3889_v31 = vmul.f32 %v3857_v50, %v3776_v49  ;;  %v3858_v28 = vmul.f32 %v3857_v50, %v10532_v17  ;;  %v3859_v57 = vmul.f32 %v3857_v50, %v10536_v18  ;;  %v3860_v21 = vmul.f32 %v3857_v50, %v10540_v26 }
 0xb5d   :  { %v3861_v14 = vmul.f32 %v3857_v50, %v10548_v13  ;;  %v3862_v63 = vmul.f32 %v3857_v50, %v10552_v40  ;;  %v3863_v7 = vmul.f32 %v3857_v50, %v10558_v24  ;;  %v3864_v53 = vmul.f32 %v3857_v50, %v10564_v42 }
 0xb5e   :  { %v10742_v12 = vmul.f32 %v3889_v31, %v10732_v59  ;;  %v3865_v4 = vmul.f32 %v3857_v50, %v10570_v44  ;;  %v3866_v49 = vmul.f32 %v3857_v50, %v10576_v32  ;;  %v3867_v17 = vmul.f32 %v3857_v50, %v10582_v54 }
 0xb5f   :  { %v3868_v18 = vmul.f32 %v3857_v50, %v10588_v30  ;;  %v3869_v26 = vmul.f32 %v3857_v50, %v10594_v3  ;;  %v3870_v13 = vmul.f32 %v3857_v50, %v10600_v8  ;;  %v3871_v40 = vmul.f32 %v3857_v50, %v10606_v46 }
 0xb60   :  { %v3872_v24 = vmul.f32 %v3857_v50, %v10612_v11  ;;  %v3873_v42 = vmul.f32 %v3857_v50, %v10618_v58  ;;  %v3874_v56 = vmul.f32 %v3857_v50, %v10624_v51  ;;  %v3875_v44 = vmul.f32 %v3857_v50, %v10630_v20 }
 0xb61   :  { %v3876_v32 = vmul.f32 %v3857_v50, %v10636_v35  ;;  %v3877_v54 = vmul.f32 %v3857_v50, %v10642_v36  ;;  %v3878_v30 = vmul.f32 %v3857_v50, %v10648_v45  ;;  %v3879_v3 = vmul.f32 %v3857_v50, %v10654_v43 }
 0xb62   :  { %v3880_v8 = vmul.f32 %v3857_v50, %v10660_v60  ;;  %v3881_v46 = vmul.f32 %v3857_v50, %v10666_v33  ;;  %v3882_v11 = vmul.f32 %v3857_v50, %v10672_v37  ;;  %v3883_v58 = vmul.f32 %v3857_v50, %v10678_v0 }
 0xb63   :  { %v3884_v51 = vmul.f32 %v3857_v50, %v10684_v61  ;;  %v3885_v20 = vmul.f32 %v3857_v50, %v10690_v23  ;;  %v3886_v35 = vmul.f32 %v3857_v50, %v10696_v62  ;;  %v3887_v36 = vmul.f32 %v3857_v50, %v10702_v15 }
 0xb64   :  { %v3888_v45 = vmul.f32 %v3857_v50, %v10708_v47  ;;  %v3890_v34 = vmul.f32 %v3858_v28, %v1329_v39  ;;  %v3891_v43 = vmul.f32 %v3859_v57, %v1329_v39  ;;  %v3892_v25 = vmul.f32 %v3860_v21, %v1329_v39 }
 0xb65   :  { %v3893_v60 = vmul.f32 %v3861_v14, %v1329_v39  ;;  %v3894_v5 = vmul.f32 %v3862_v63, %v1329_v39  ;;  %v3895_v33 = vmul.f32 %v3863_v7, %v1329_v39  ;;  %v3896_v31 = vmul.f32 %v3864_v53, %v1329_v39 }
 0xb66   :  { %v3897_v37 = vmul.f32 %v3865_v4, %v1329_v39  ;;  %v3898_v6 = vmul.f32 %v3866_v49, %v1329_v39  ;;  %v3899_v0 = vmul.f32 %v3867_v17, %v1329_v39  ;;  %v3900_v1 = vmul.f32 %v3868_v18, %v1329_v39 }
 0xb67   :  { %v3901_v61 = vmul.f32 %v3869_v26, %v1329_v39  ;;  %v3902_v2 = vmul.f32 %v3870_v13, %v1329_v39  ;;  %v3903_v23 = vmul.f32 %v3871_v40, %v1329_v39  ;;  %v3904_v9 = vmul.f32 %v3872_v24, %v1329_v39 }
 0xb68   :  { %v3905_v62 = vmul.f32 %v3873_v42, %v1329_v39  ;;  %v3906_v15 = vmul.f32 %v3874_v56, %v10732_v59  ;;  %v3907_v47 = vmul.f32 %v3875_v44, %v10732_v59  ;;  %v3908_v50 = vmul.f32 %v3876_v32, %v10732_v59 }
 0xb69   :  { %v3909_v28 = vmul.f32 %v3877_v54, %v10732_v59  ;;  %v3910_v57 = vmul.f32 %v3878_v30, %v10732_v59  ;;  %v3911_v21 = vmul.f32 %v3879_v3, %v10732_v59  ;;  %v3912_v14 = vmul.f32 %v3880_v8, %v10732_v59 }
 0xb6a   :  { %v3913_v63 = vmul.f32 %v3881_v46, %v10732_v59  ;;  %v10777_v7 = vmul.f32 %v3882_v11, %v10732_v59  ;;  %v10780_v39 = vmul.f32 %v3883_v58, %v10732_v59  ;;  %v10783_v53 = vmul.f32 %v3884_v51, %v10732_v59 }
 0xb6b   :  { %v10786_v4 = vmul.f32 %v3885_v20, %v10732_v59  ;;  %v10789_v49 = vmul.f32 %v3886_v35, %v10732_v59  ;;  %v10792_v17 = vmul.f32 %v3887_v36, %v10732_v59  ;;  %v10795_v18 = vmul.f32 %v3888_v45, %v10732_v59 }
 0xb6c   :  { %v3922_v26 = vadd.f32 %v3890_v34, %v10728_v19  ;;  %v3923_v13 = vadd.f32 %v3891_v43, %v10728_v19  ;;  %v3924_v40 = vadd.f32 %v3892_v25, %v10728_v19  ;;  %v3925_v24 = vadd.f32 %v3893_v60, %v10728_v19 }
 0xb6d   :  { %v3926_v42 = vadd.f32 %v3894_v5, %v10728_v19  ;;  %v3927_v56 = vadd.f32 %v3895_v33, %v10728_v19  ;;  %v3928_v44 = vadd.f32 %v3896_v31, %v10728_v19  ;;  %v3929_v32 = vadd.f32 %v3897_v37, %v10728_v19 }
 0xb6e   :  { %v3954_v54 = vmax.f32 %v3922_v26, 0.0  ;;  %v3955_v30 = vmax.f32 %v3923_v13, 0.0  ;;  %v3956_v59 = vmax.f32 %v3924_v40, 0.0  ;;  %v3957_v3 = vmax.f32 %v3925_v24, 0.0 }
 0xb6f   :  { %v3958_v8 = vmax.f32 %v3926_v42, 0.0  ;;  %v3959_v46 = vmax.f32 %v3927_v56, 0.0  ;;  %v3960_v11 = vmax.f32 %v3928_v44, 0.0  ;;  %v3961_v58 = vmax.f32 %v3929_v32, 0.0 }
 0xb70   :  { %v4005_v51 = vpack.c.bf16 %v3955_v30, %v3954_v54  ;;  %v10805_v20 = vpack.c.bf16 %v3957_v3, %v3956_v59  ;;  %v3930_v35 = vadd.f32 %v3898_v6, %v10728_v19  ;;  %v3931_v36 = vadd.f32 %v3899_v0, %v10728_v19 }
 0xb71   :  { %v4007_v45 = vpack.c.bf16 %v3959_v46, %v3958_v8  ;;  %v4008_v34 = vpack.c.bf16 %v3961_v58, %v3960_v11  ;;  %v3932_v43 = vadd.f32 %v3900_v1, %v10728_v19  ;;  %v3933_v25 = vadd.f32 %v3901_v61, %v10728_v19 }
 0xb72   :  { %4080 = vmatmul.bf16.vlgmr.msra.gmra.mxu3 %v4005_v51  ;;  %v3962_v60 = vmax.f32 %v3930_v35, 0.0  ;;  %v3963_v5 = vmax.f32 %v3931_v36, 0.0  ;;  %v3934_v33 = vadd.f32 %v3902_v2, %v10728_v19  ;;  %v3935_v31 = vadd.f32 %v3903_v23, %v10728_v19 }
 0xb73   :  { %v3964_v37 = vmax.f32 %v3932_v43, 0.0  ;;  %v3965_v26 = vmax.f32 %v3933_v25, 0.0  ;;  %v3936_v13 = vadd.f32 %v3904_v9, %v10728_v19  ;;  %v3937_v6 = vadd.f32 %v3905_v62, %v10728_v19 }
 0xb74   :  { %v4009_v0 = vpack.c.bf16 %v3963_v5, %v3962_v60  ;;  %v3966_v40 = vmax.f32 %v3934_v33, 0.0  ;;  %v3967_v24 = vmax.f32 %v3935_v31, 0.0  ;;  %v3938_v1 = vadd.f32 %v3906_v15, %v10730_v55 }
 0xb75   :  { %v4010_v42 = vpack.c.bf16 %v3965_v26, %v3964_v37  ;;  %v3968_v61 = vmax.f32 %v3936_v13, 0.0  ;;  %v3969_v56 = vmax.f32 %v3937_v6, 0.0  ;;  %v3939_v44 = vadd.f32 %v3907_v47, %v10730_v55 }
 0xb76   :  { %v4011_v32 = vpack.c.bf16 %v3967_v24, %v3966_v40  ;;  %v3970_v2 = vmax.f32 %v3938_v1, 0.0  ;;  %v3940_v23 = vadd.f32 %v3908_v50, %v10730_v55  ;;  %v3941_v54 = vadd.f32 %v3909_v28, %v10730_v55 }
 0xb77   :  { %v4012_v30 = vpack.c.bf16 %v3969_v56, %v3968_v61  ;;  %v3971_v9 = vmax.f32 %v3939_v44, 0.0  ;;  %v3942_v19 = vadd.f32 %v3910_v57, %v10730_v55  ;;  %v3943_v62 = vadd.f32 %v3911_v21, %v10730_v55 }
 0xb78   :  { %v3972_v59 = vmax.f32 %v3940_v23, 0.0  ;;  %v3973_v3 = vmax.f32 %v3941_v54, 0.0  ;;  %v3944_v15 = vadd.f32 %v3912_v14, %v10730_v55  ;;  %v3945_v8 = vadd.f32 %v3913_v63, %v10730_v55  ;;  %v7152_v23 = vld [vmem:[#allocation5 + $0x1b0] sm:$0xff] }
 0xb79   :  { %v4013_v46 = vpack.c.bf16 %v3971_v9, %v3970_v2  ;;  %v3974_v47 = vmax.f32 %v3942_v19, 0.0  ;;  %v3975_v11 = vmax.f32 %v3943_v62, 0.0  ;;  %v3946_v50 = vadd.f32 %v10777_v7, %v10730_v55  ;;  %v7151_v62 = vld [vmem:[#allocation5 + $0x1a8] sm:$0xff] }
 0xb7a   :  { %v4014_v58 = vpack.c.bf16 %v3973_v3, %v3972_v59  ;;  %v3976_v28 = vmax.f32 %v3944_v15, 0.0  ;;  %v3977_v51 = vmax.f32 %v3945_v8, 0.0  ;;  %v3947_v57 = vadd.f32 %v10780_v39, %v10730_v55  ;;  %v10853_v8 = vld [vmem:[%s13570_s7 + $0x5] ss:$0 sm:$0xff] }
 0xb7b   :  { %v4015_v35 = vpack.c.bf16 %v3975_v11, %v3974_v47  ;;  %v3978_v21 = vmax.f32 %v3946_v50, 0.0  ;;  %v3948_v36 = vadd.f32 %v10783_v53, %v10730_v55  ;;  %v3949_v14 = vadd.f32 %v10786_v4, %v10730_v55 }
 0xb7c   :  { %v4016_v63 = vpack.c.bf16 %v3977_v51, %v3976_v28  ;;  %v3979_v43 = vmax.f32 %v3947_v57, 0.0  ;;  %v3950_v25 = vadd.f32 %v10789_v49, %v10730_v55  ;;  %v3951_v7 = vadd.f32 %v10792_v17, %v10730_v55  ;;  %v7150_v51 = vld [vmem:[#allocation5 + $0x1a0] sm:$0xff] }
 0xb7d   :  { %v3980_v60 = vmax.f32 %v3948_v36, 0.0  ;;  %v3981_v5 = vmax.f32 %v3949_v14, 0.0  ;;  %v3952_v39 = vadd.f32 %v10795_v18, %v10730_v55  ;;  %v3953_v33 = vadd.f32 %v10742_v12, %v10730_v55 }
 0xb7e   :  { %v4017_v53 = vpack.c.bf16 %v3979_v43, %v3978_v21  ;;  %v3982_v31 = vmax.f32 %v3950_v25, 0.0  ;;  %v3983_v37 = vmax.f32 %v3951_v7, 0.0 }
 0xb7f   :  { %v4018_v4 = vpack.c.bf16 %v3981_v5, %v3980_v60  ;;  %v3984_v26 = vmax.f32 %v3952_v39, 0.0  ;;  %v3985_v13 = vmax.f32 %v3953_v33, 0.0 }
 0xb80   :  { %v4019_v6 = vpack.c.bf16 %v3983_v37, %v3982_v31 }
 0xb81   :  { %v4020_v40 = vpack.c.bf16 %v3985_v13, %v3984_v26  ;;  %v13845_v26 = vld [vmem:[#allocation36_spill] sm:$0xff] }
 0xb82   :  { %4085 = vmatmul.bf16.gmra.mxu3 %v10805_v20 }
 0xb92   :  { %4090 = vmatmul.bf16.gmra.mxu3 %v4007_v45 }
 0xba2   :  { %4095 = vmatmul.bf16.gmra.mxu3 %v4008_v34 }
 0xbb2   :  { %4100 = vmatmul.bf16.gmra.mxu3 %v4009_v0 }
 0xbc2   :  { %4105 = vmatmul.bf16.gmra.mxu3 %v4010_v42  ;;  %v7153_v42 = vld [vmem:[#allocation5 + $0x1b8] sm:$0xff] }
 0xbc3   :  { %4558 = vmatpush.bf16.msra.mxu0 %v7153_v42 }
 0xbc7   :  { %4559 = vmatpush.bf16.msra.mxu0 %v7152_v23 }
 0xbcb   :  { %4560 = vmatpush.bf16.msra.mxu0 %v7151_v62  ;;  %v13855_v62 = vld [vmem:[#allocation11_spill] sm:$0xff] }
 0xbcf   :  { %4561 = vmatpush.bf16.msra.mxu0 %v7150_v51 }
 0xbd2   :  { %4110 = vmatmul.bf16.gmra.mxu3 %v4011_v32 }
 0xbe2   :  { %4115 = vmatmul.bf16.gmra.mxu3 %v4012_v30 }
 0xbf2   :  { %4120 = vmatmul.bf16.gmra.mxu3 %v4013_v46 }
 0xbf5   :  { %v4081_v49 = vpop.f32.mrf.mxu3 }
 0xbf6   :  { %v4082_v11 = vadd.f32 %v10853_v8, %v4081_v49 }
 0xbf8   :  { %v10865_v57 = vadd.f32 %v4082_v11, %v9867_v10 }
 0xbfd   :  { %v4083_v17 = vpop.f32.mrf.mxu3 }
 0xbfe   :  { %v4084_v47 = vadd.f32 %v10853_v8, %v4083_v17 }
 0xc02   :  { %4125 = vmatmul.bf16.gmra.mxu3 %v4014_v58  ;;  %v10861_v58 = vadd.f32 %v4084_v47, %v9863_v38 }
 0xc04   :  { %v4193_v14 = vadd.f32 %v10861_v58, %v10865_v57 }
 0xc05   :  { %v4086_v55 = vpop.f32.mrf.mxu3 }
 0xc06   :  { %v4087_v50 = vadd.f32 %v10853_v8, %v4086_v55 }
 0xc0d   :  { %v4088_v12 = vpop.f32.mrf.mxu3 }
 0xc0e   :  { %v4089_v28 = vadd.f32 %v10853_v8, %v4088_v12  ;;  %v13849_v12 = vld [vmem:[#allocation41_spill] sm:$0xff] }
 0xc10   :  { %v10876_v38 = vadd.f32 %v4089_v28, %v9878_v16  ;;  %v13857_v28 = vld [vmem:[#allocation12_spill] sm:$0xff] }
 0xc12   :  { %4130 = vmatmul.bf16.gmra.mxu3 %v4015_v35  ;;  %v10868_v35 = vadd.f32 %v4087_v50, %v9870_v48 }
 0xc14   :  { %v4194_v43 = vadd.f32 %v4193_v14, %v10868_v35  ;;  %v13859_v14 = vld [vmem:[#allocation13_spill] sm:$0xff] }
 0xc15   :  { %v4091_v18 = vpop.f32.mrf.mxu3 }
 0xc16   :  { %v4092_v21 = vadd.f32 %v10853_v8, %v4091_v18  ;;  %v4195_v25 = vadd.f32 %v4194_v43, %v10876_v38 }
 0xc18   :  { %v10881_v10 = vadd.f32 %v4092_v21, %v9883_v29 }
 0xc1a   :  { %v4196_v5 = vadd.f32 %v4195_v25, %v10881_v10 }
 0xc1d   :  { %v4093_v24 = vpop.f32.mrf.mxu3 }
 0xc22   :  { %4135 = vmatmul.bf16.gmra.mxu3 %v4016_v63  ;;  %v4094_v63 = vadd.f32 %v10853_v8, %v4093_v24 }
 0xc24   :  { %v10886_v7 = vadd.f32 %v4094_v63, %v9888_v27 }
 0xc25   :  { %v4096_v1 = vpop.f32.mrf.mxu3 }
 0xc26   :  { %v4097_v48 = vadd.f32 %v10853_v8, %v4096_v1  ;;  %v4197_v29 = vadd.f32 %v4196_v5, %v10886_v7  ;;  %v13863_v5 = vld [vmem:[#allocation15_spill] sm:$0xff] }
 0xc28   :  { %v10891_v16 = vadd.f32 %v4097_v48, %v9893_v52  ;;  %v13861_v48 = vld [vmem:[#allocation14_spill] sm:$0xff] }
 0xc2a   :  { %v4198_v27 = vadd.f32 %v4197_v29, %v10891_v16 }
 0xc2d   :  { %v4098_v61 = vpop.f32.mrf.mxu3 }
 0xc2e   :  { %v4099_v60 = vadd.f32 %v10853_v8, %v4098_v61  ;;  %v13851_v61 = vld [vmem:[#allocation9_spill] sm:$0xff] }
 0xc32   :  { %4140 = vmatmul.bf16.gmra.mxu3 %v4017_v53  ;;  %v10896_v53 = vadd.f32 %v4099_v60, %v9898_v22  ;;  %v13847_v22 = vld [vmem:[#allocation34_spill] sm:$0xff] }
 0xc34   :  { %v4199_v52 = vadd.f32 %v4198_v27, %v10896_v53 }
 0xc35   :  { %v4101_v20 = vpop.f32.mrf.mxu3 }
 0xc36   :  { %v4102_v39 = vadd.f32 %v10853_v8, %v4101_v20 }
 0xc38   :  { %v10901_v37 = vadd.f32 %v4102_v39, %v9903_v41 }
 0xc3d   :  { %v4103_v45 = vpop.f32.mrf.mxu3 }
 0xc3e   :  { %v4104_v31 = vadd.f32 %v10853_v8, %v4103_v45 }
 0xc40   :  { %v10906_v13 = vadd.f32 %v4104_v31, %v13845_v26 }
 0xc42   :  { %4145 = vmatmul.bf16.gmra.mxu3 %v4018_v4  ;;  %13846 = vst [vmem:[#allocation30_spill] sm:$0xff] %v10906_v13 }
 0xc45   :  { %v4106_v34 = vpop.f32.mrf.mxu3 }
 0xc46   :  { %v4107_v4 = vadd.f32 %v10853_v8, %v4106_v34 }
 0xc48   :  { %v10911_v49 = vadd.f32 %v4107_v4, %v13847_v22 }
 0xc4a   :  { %13848 = vst [vmem:[#allocation31_spill] sm:$0xff] %v10911_v49 }
 0xc4d   :  { %v4108_v0 = vpop.f32.mrf.mxu3 }
 0xc52   :  { %4150 = vmatmul.bf16.gmra.mxu3 %v4019_v6  ;;  %v4109_v6 = vadd.f32 %v10853_v8, %v4108_v0  ;;  %v13853_v0 = vld [vmem:[#allocation10_spill] sm:$0xff] }
 0xc54   :  { %v10916_v18 = vadd.f32 %v4109_v6, %v13849_v12  ;;  %v13871_v12 = vld [vmem:[#allocation19_spill] sm:$0xff] }
 0xc55   :  { %v4111_v56 = vpop.f32.mrf.mxu3 }
 0xc56   :  { %v4112_v17 = vadd.f32 %v10853_v8, %v4111_v56  ;;  %13850 = vst [vmem:[#allocation32_spill] sm:$0xff] %v10916_v18 }
 0xc58   :  { %v10921_v20 = vadd.f32 %v4112_v17, %v13851_v61 }
 0xc5a   :  { %13852 = vst [vmem:[#allocation37_spill] sm:$0xff] %v10921_v20 }
 0xc5d   :  { %v4113_v44 = vpop.f32.mrf.mxu3 }
 0xc5e   :  { %v4114_v24 = vadd.f32 %v10853_v8, %v4113_v44 }
 0xc60   :  { %v10926_v42 = vadd.f32 %v4114_v24, %v13853_v0 }
 0xc62   :  { %4155 = vmatmul.bf16.gmra.mxu3 %v4020_v40  ;;  %v4200_v40 = vadd.f32 %v4199_v52, %v10901_v37  ;;  %13854 = vst [vmem:[#allocation48_spill] sm:$0xff] %v10926_v42 }
 0xc64   :  { %v4201_v41 = vadd.f32 %v4200_v40, %v10906_v13 }
 0xc65   :  { %v4116_v32 = vpop.f32.mrf.mxu3 }
 0xc66   :  { %v4202_v1 = vadd.f32 %v4201_v41, %v10911_v49  ;;  %v4117_v45 = vadd.f32 %v10853_v8, %v4116_v32 }
 0xc68   :  { %v4203_v34 = vadd.f32 %v4202_v1, %v10916_v18  ;;  %v10931_v47 = vadd.f32 %v4117_v45, %v13855_v62 }
 0xc6a   :  { %v4204_v23 = vadd.f32 %v4203_v34, %v10921_v20  ;;  %13856 = vst [vmem:[#allocation42_spill] sm:$0xff] %v10931_v47 }
 0xc6c   :  { %v4205_v50 = vadd.f32 %v4204_v23, %v10926_v42 }
 0xc6d   :  { %v4118_v2 = vpop.f32.mrf.mxu3 }
 0xc6e   :  { %v4119_v56 = vadd.f32 %v10853_v8, %v4118_v2  ;;  %v4206_v21 = vadd.f32 %v4205_v50, %v10931_v47 }
 0xc70   :  { %v10936_v51 = vadd.f32 %v4119_v56, %v13857_v28  ;;  %v13875_v56 = vld [vmem:[#allocation21_spill] sm:$0xff] }
 0xc72   :  { %13858 = vst [vmem:[#allocation45_spill] sm:$0xff] %v10936_v51  ;;  %v4207_v43 = vadd.f32 %v4206_v21, %v10936_v51 }
 0xc75   :  { %v4121_v54 = vpop.f32.mrf.mxu3 }
 0xc76   :  { %v4122_v44 = vadd.f32 %v10853_v8, %v4121_v54 }
 0xc78   :  { %v10941_v63 = vadd.f32 %v4122_v44, %v13859_v14  ;;  %v13877_v44 = vld [vmem:[#allocation22_spill] sm:$0xff] }
 0xc7a   :  { %13860 = vst [vmem:[#allocation36_spill] sm:$0xff] %v10941_v63  ;;  %v4208_v60 = vadd.f32 %v4207_v43, %v10941_v63  ;;  %v13881_v43 = vld [vmem:[#allocation24_spill] sm:$0xff] }
 0xc7d   :  { %v4123_v30 = vpop.f32.mrf.mxu3 }
 0xc7e   :  { %v4124_v32 = vadd.f32 %v10853_v8, %v4123_v30 }
 0xc80   :  { %v10947_v54 = vadd.f32 %v4124_v32, %v13861_v48  ;;  %v13879_v32 = vld [vmem:[#allocation23_spill] sm:$0xff] }
 0xc82   :  { %13862 = vst [vmem:[#allocation34_spill] sm:$0xff] %v10947_v54  ;;  %v4209_v31 = vadd.f32 %v4208_v60, %v10947_v54  ;;  %v13883_v60 = vld [vmem:[#allocation25_spill] sm:$0xff] }
 0xc85   :  { %v10840_v9 = vpop.f32.mrf.mxu3 }
 0xc86   :  { %v4127_v2 = vadd.f32 %v10853_v8, %v10840_v9  ;;  %v13865_v9 = vld [vmem:[#allocation16_spill] sm:$0xff] }
 0xc88   :  { %v10953_v30 = vadd.f32 %v4127_v2, %v13863_v5 }
 0xc8a   :  { %13864 = vst [vmem:[#allocation41_spill] sm:$0xff] %v10953_v30  ;;  %v4210_v52 = vadd.f32 %v4209_v31, %v10953_v30  ;;  %v13885_v31 = vld [vmem:[#allocation26_spill] sm:$0xff] }
 0xc8d   :  { %v10842_v19 = vpop.f32.mrf.mxu3 }
 0xc8e   :  { %v4129_v25 = vadd.f32 %v10853_v8, %v10842_v19  ;;  %v13867_v19 = vld [vmem:[#allocation17_spill] sm:$0xff] }
 0xc90   :  { %v10959_v27 = vadd.f32 %v4129_v25, %v13865_v9 }
 0xc92   :  { %13866 = vst [vmem:[#allocation9_spill] sm:$0xff] %v10959_v27  ;;  %v4211_v40 = vadd.f32 %v4210_v52, %v10959_v27 }
 0xc95   :  { %v10844_v59 = vpop.f32.mrf.mxu3 }
 0xc96   :  { %v4132_v39 = vadd.f32 %v10853_v8, %v10844_v59  ;;  %v13869_v59 = vld [vmem:[#allocation18_spill] sm:$0xff] }
 0xc98   :  { %v10965_v26 = vadd.f32 %v4132_v39, %v13867_v19 }
 0xc9a   :  { %13868 = vst [vmem:[#allocation10_spill] sm:$0xff] %v10965_v26  ;;  %v4212_v41 = vadd.f32 %v4211_v40, %v10965_v26 }
 0xc9d   :  { %v10846_v3 = vpop.f32.mrf.mxu3 }
 0xc9e   :  { %v4134_v4 = vadd.f32 %v10853_v8, %v10846_v3 }
 0xca0   :  { %v10971_v22 = vadd.f32 %v4134_v4, %v13869_v59  ;;  %v13887_v4 = vld [vmem:[#allocation27_spill] sm:$0xff] }
 0xca2   :  { %13870 = vst [vmem:[#allocation11_spill] sm:$0xff] %v10971_v22  ;;  %v4213_v61 = vadd.f32 %v4212_v41, %v10971_v22 }
 0xca5   :  { %v10848_v15 = vpop.f32.mrf.mxu3 }
 0xca6   :  { %v4137_v6 = vadd.f32 %v10853_v8, %v10848_v15  ;;  %v13873_v15 = vld [vmem:[#allocation20_spill] sm:$0xff] }
 0xca8   :  { %v10977_v3 = vadd.f32 %v4137_v6, %v13871_v12 }
 0xcaa   :  { %13872 = vst [vmem:[#allocation12_spill] sm:$0xff] %v10977_v3  ;;  %v4214_v0 = vadd.f32 %v4213_v61, %v10977_v3 }
 0xcad   :  { %v10855_v46 = vpop.f32.mrf.mxu3 }
 0xcae   :  { %v4139_v17 = vadd.f32 %v10853_v8, %v10855_v46 }
 0xcb0   :  { %v10983_v45 = vadd.f32 %v4139_v17, %v13873_v15  ;;  %v13889_v17 = vld [vmem:[#allocation28_spill] sm:$0xff] }
 0xcb2   :  { %13874 = vst [vmem:[#allocation13_spill] sm:$0xff] %v10983_v45  ;;  %v4215_v62 = vadd.f32 %v4214_v0, %v10983_v45 }
 0xcb5   :  { %v10871_v36 = vpop.f32.mrf.mxu3 }
 0xcb6   :  { %v4142_v24 = vadd.f32 %v10853_v8, %v10871_v36 }
 0xcb8   :  { %v10988_v46 = vadd.f32 %v4142_v24, %v13875_v56  ;;  %v13891_v56 = vld [vmem:[#allocation33_spill] sm:$0xff] }
 0xcba   :  { %13876 = vst [vmem:[#allocation14_spill] sm:$0xff] %v10988_v46  ;;  %v4216_v28 = vadd.f32 %v4215_v62, %v10988_v46 }
 0xcbd   :  { %v4143_v33 = vpop.f32.mrf.mxu3 }
 0xcbe   :  { %v4144_v34 = vadd.f32 %v10853_v8, %v4143_v33 }
 0xcc0   :  { %v10993_v50 = vadd.f32 %v4144_v34, %v13877_v44 }
 0xcc2   :  { %13878 = vst [vmem:[#allocation15_spill] sm:$0xff] %v10993_v50  ;;  %v4217_v2 = vadd.f32 %v4216_v28, %v10993_v50 }
 0xcc5   :  { %v4146_v55 = vpop.f32.mrf.mxu3 }
 0xcc6   :  { %v4147_v23 = vadd.f32 %v10853_v8, %v4146_v55 }
 0xcc8   :  { %v10998_v21 = vadd.f32 %v4147_v23, %v13879_v32 }
 0xcca   :  { %13880 = vst [vmem:[#allocation16_spill] sm:$0xff] %v10998_v21  ;;  %v4218_v25 = vadd.f32 %v4217_v2, %v10998_v21 }
 0xccd   :  { %v4148_v11 = vpop.f32.mrf.mxu3 }
 0xcce   :  { %v4149_v36 = vadd.f32 %v10853_v8, %v4148_v11 }
 0xcd0   :  { %v11003_v48 = vadd.f32 %v4149_v36, %v13881_v43 }
 0xcd2   :  { %13882 = vst [vmem:[#allocation17_spill] sm:$0xff] %v11003_v48  ;;  %v4219_v39 = vadd.f32 %v4218_v25, %v11003_v48 }
 0xcd5   :  { %v4151_v29 = vpop.f32.mrf.mxu3 }
 0xcd6   :  { %v4152_v33 = vadd.f32 %v10853_v8, %v4151_v29 }
 0xcd8   :  { %v11008_v5 = vadd.f32 %v4152_v33, %v13883_v60 }
 0xcda   :  { %13884 = vst [vmem:[#allocation18_spill] sm:$0xff] %v11008_v5  ;;  %v4220_v29 = vadd.f32 %v4219_v39, %v11008_v5 }
 0xcdd   :  { %v4153_v1 = vpop.f32.mrf.mxu3 }
 0xcde   :  { %v4154_v55 = vadd.f32 %v10853_v8, %v4153_v1 }
 0xce0   :  { %v11013_v9 = vadd.f32 %v4154_v55, %v13885_v31 }
 0xce2   :  { %13886 = vst [vmem:[#allocation19_spill] sm:$0xff] %v11013_v9  ;;  %v4221_v6 = vadd.f32 %v4220_v29, %v11013_v9 }
 0xce5   :  { %v4156_v14 = vpop.f32.mrf.mxu3 }
 0xce6   :  { %v4157_v11 = vadd.f32 %v10853_v8, %v4156_v14 }
 0xce8   :  { %v11017_v52 = vadd.f32 %v4157_v11, %v13887_v4 }
 0xcea   :  { %13888 = vst [vmem:[#allocation20_spill] sm:$0xff] %v11017_v52  ;;  %v4222_v59 = vadd.f32 %v4221_v6, %v11017_v52 }
 0xced   :  { %v4158_v19 = vpop.f32.mrf.mxu3 }
 0xcee   :  { %v4159_v40 = vadd.f32 %v10853_v8, %v4158_v19 }
 0xcf0   :  { %v11023_v41 = vadd.f32 %v4159_v40, %v13889_v17 }
 0xcf2   :  { %13890 = vst [vmem:[#allocation21_spill] sm:$0xff] %v11023_v41  ;;  %v4223_v12 = vadd.f32 %v4222_v59, %v11023_v41 }
 0xcf4   :  { %v4224_v24 = vrot.slane %v4223_v12, 4 }
 0xcf6   :  { %v4225_v1 = vadd.f32 %v4224_v24, %v4223_v12 }
 0xcf8   :  { %v4226_v61 = vrot.slane %v4225_v1, 2 }
 0xcfa   :  { %v4227_v15 = vadd.f32 %v4226_v61, %v4225_v1 }
 0xcfc   :  { %v4228_v34 = vrot.slane %v4227_v15, 1 }
 0xcfe   :  { %v4229_v0 = vadd.f32 %v4228_v34, %v4227_v15 }
 0xd00   :  { %v11027_v23 = vmul.f32 %v4229_v0, %v13891_v56 }
 0xd02   :  { %v11031_v62 = vsub.f32 %v10865_v57, %v11027_v23  ;;  %v11035_v8 = vsub.f32 %v10861_v58, %v11027_v23  ;;  %v11039_v44 = vsub.f32 %v10868_v35, %v11027_v23  ;;  %v11047_v32 = vsub.f32 %v10876_v38, %v11027_v23 }
 0xd03   :  { %v11051_v33 = vsub.f32 %v10881_v10, %v11027_v23  ;;  %v11057_v43 = vsub.f32 %v10886_v7, %v11027_v23  ;;  %v11063_v60 = vsub.f32 %v10891_v16, %v11027_v23  ;;  %v11069_v31 = vsub.f32 %v10896_v53, %v11027_v23 }
 0xd04   :  { %v4263_v36 = vmul.f32 %v11031_v62, %v11031_v62  ;;  %v4264_v28 = vmul.f32 %v11035_v8, %v11035_v8  ;;  %v4265_v14 = vmul.f32 %v11039_v44, %v11039_v44  ;;  %v4266_v55 = vmul.f32 %v11047_v32, %v11047_v32 }
 0xd05   :  { %v4267_v11 = vmul.f32 %v11051_v33, %v11051_v33  ;;  %v4268_v29 = vmul.f32 %v11057_v43, %v11057_v43  ;;  %v11075_v19 = vsub.f32 %v10901_v37, %v11027_v23  ;;  %v4269_v6 = vmul.f32 %v11063_v60, %v11063_v60 }
 0xd06   :  { %v4295_v2 = vadd.f32 %v4264_v28, %v4263_v36  ;;  %v11081_v59 = vsub.f32 %v10906_v13, %v11027_v23  ;;  %v4270_v17 = vmul.f32 %v11069_v31, %v11069_v31  ;;  %v11087_v24 = vsub.f32 %v10911_v49, %v11027_v23 }
 0xd07   :  { %v4271_v1 = vmul.f32 %v11075_v19, %v11075_v19  ;;  %v11093_v15 = vsub.f32 %v10916_v18, %v11027_v23  ;;  %v11099_v36 = vsub.f32 %v10921_v20, %v11027_v23  ;;  %v7146_v20 = vld [vmem:[#allocation5 + $0x180] sm:$0xff] }
 0xd08   :  { %v4296_v25 = vadd.f32 %v4295_v2, %v4265_v14  ;;  %v4272_v34 = vmul.f32 %v11081_v59, %v11081_v59  ;;  %v4273_v28 = vmul.f32 %v11087_v24, %v11087_v24  ;;  %v11105_v2 = vsub.f32 %v10926_v42, %v11027_v23 }
 0xd0a   :  { %v4297_v39 = vadd.f32 %v4296_v25, %v4266_v55  ;;  %v4274_v55 = vmul.f32 %v11093_v15, %v11093_v15 }
 0xd0c   :  { %v4298_v4 = vadd.f32 %v4297_v39, %v4267_v11  ;;  %v11111_v11 = vsub.f32 %v10931_v47, %v11027_v23  ;;  %v4275_v39 = vmul.f32 %v11099_v36, %v11099_v36 }
 0xd0e   :  { %v4299_v40 = vadd.f32 %v4298_v4, %v4268_v29  ;;  %v11117_v4 = vsub.f32 %v10936_v51, %v11027_v23  ;;  %v7149_v51 = vld [vmem:[#allocation5 + $0x198] sm:$0xff] }
 0xd0f   :  { %4562 = vmatpush.bf16.msra.mxu0 %v7149_v51  ;;  %v13892_v51 = vld [vmem:[#allocation29_spill] sm:$0xff] }
 0xd10   :  { %v4300_v12 = vadd.f32 %v4299_v40, %v4269_v6  ;;  %v4276_v6 = vmul.f32 %v11105_v2, %v11105_v2 }
 0xd12   :  { %v4301_v61 = vadd.f32 %v4300_v12, %v4270_v17  ;;  %v11123_v17 = vsub.f32 %v10941_v63, %v11027_v23  ;;  %v4277_v12 = vmul.f32 %v11111_v11, %v11111_v11 }
 0xd14   :  { %v4302_v0 = vadd.f32 %v4301_v61, %v4271_v1  ;;  %v11129_v61 = vsub.f32 %v10947_v54, %v11027_v23 }
 0xd16   :  { %v4303_v14 = vadd.f32 %v4302_v0, %v4272_v34  ;;  %v4278_v34 = vmul.f32 %v11117_v4, %v11117_v4 }
 0xd18   :  { %v4304_v25 = vadd.f32 %v4303_v14, %v4273_v28  ;;  %v11135_v28 = vsub.f32 %v10953_v30, %v11027_v23  ;;  %v4279_v14 = vmul.f32 %v11123_v17, %v11123_v17 }
 0xd1a   :  { %v4305_v29 = vadd.f32 %v4304_v25, %v4274_v55  ;;  %v11141_v25 = vsub.f32 %v10959_v27, %v11027_v23  ;;  %v11159_v27 = vsub.f32 %v10977_v3, %v11027_v23  ;;  %v11177_v3 = vsub.f32 %v10993_v50, %v11027_v23 }
 0xd1b   :  { %v11195_v50 = vsub.f32 %v11008_v5, %v11027_v23  ;;  %v4262_v5 = vsub.f32 %v11023_v41, %v11027_v23  ;;  %v7147_v41 = vld [vmem:[#allocation5 + $0x188] sm:$0xff] }
 0xd1c   :  { %v4306_v40 = vadd.f32 %v4305_v29, %v4275_v39  ;;  %v4280_v39 = vmul.f32 %v11129_v61, %v11129_v61 }
 0xd1e   :  { %v4307_v1 = vadd.f32 %v4306_v40, %v4276_v6  ;;  %v11147_v6 = vsub.f32 %v10965_v26, %v11027_v23  ;;  %v4281_v40 = vmul.f32 %v11135_v28, %v11135_v28  ;;  %v11165_v26 = vsub.f32 %v10983_v45, %v11027_v23 }
 0xd1f   :  { %v11183_v45 = vsub.f32 %v10998_v21, %v11027_v23  ;;  %v11201_v21 = vsub.f32 %v11013_v9, %v11027_v23 }
 0xd20   :  { %v4308_v0 = vadd.f32 %v4307_v1, %v4277_v12  ;;  %v11153_v1 = vsub.f32 %v10971_v22, %v11027_v23  ;;  %v11171_v22 = vsub.f32 %v10988_v46, %v11027_v23  ;;  %v11189_v46 = vsub.f32 %v11003_v48, %v11027_v23 }
 0xd21   :  { %v11207_v48 = vsub.f32 %v11017_v52, %v11027_v23 }
 0xd22   :  { %v4309_v55 = vadd.f32 %v4308_v0, %v4278_v34  ;;  %v4282_v34 = vmul.f32 %v11141_v25, %v11141_v25 }
 0xd23   :  { %v4293_v9 = vmul.f32 %v11207_v48, %v11207_v48 }
 0xd24   :  { %v4310_v29 = vadd.f32 %v4309_v55, %v4279_v14  ;;  %v4283_v14 = vmul.f32 %v11147_v6, %v11147_v6 }
 0xd26   :  { %v4311_v12 = vadd.f32 %v4310_v29, %v4280_v39  ;;  %v4284_v39 = vmul.f32 %v11153_v1, %v11153_v1 }
 0xd28   :  { %v4312_v0 = vadd.f32 %v4311_v12, %v4281_v40  ;;  %v4285_v40 = vmul.f32 %v11159_v27, %v11159_v27 }
 0xd2a   :  { %v4313_v55 = vadd.f32 %v4312_v0, %v4282_v34  ;;  %v4286_v34 = vmul.f32 %v11165_v26, %v11165_v26 }
 0xd2c   :  { %v4314_v29 = vadd.f32 %v4313_v55, %v4283_v14  ;;  %v4287_v14 = vmul.f32 %v11171_v22, %v11171_v22 }
 0xd2e   :  { %v4315_v12 = vadd.f32 %v4314_v29, %v4284_v39  ;;  %v4288_v39 = vmul.f32 %v11177_v3, %v11177_v3 }
 0xd30   :  { %v4316_v0 = vadd.f32 %v4315_v12, %v4285_v40  ;;  %v4289_v40 = vmul.f32 %v11183_v45, %v11183_v45 }
 0xd32   :  { %v4317_v55 = vadd.f32 %v4316_v0, %v4286_v34  ;;  %v4290_v34 = vmul.f32 %v11189_v46, %v11189_v46 }
 0xd34   :  { %v4318_v29 = vadd.f32 %v4317_v55, %v4287_v14  ;;  %v4291_v14 = vmul.f32 %v11195_v50, %v11195_v50 }
 0xd36   :  { %v4319_v12 = vadd.f32 %v4318_v29, %v4288_v39  ;;  %v4292_v39 = vmul.f32 %v11201_v21, %v11201_v21 }
 0xd38   :  { %v4320_v0 = vadd.f32 %v4319_v12, %v4289_v40  ;;  %v4294_v40 = vmul.f32 %v4262_v5, %v4262_v5 }
 0xd3a   :  { %v4321_v55 = vadd.f32 %v4320_v0, %v4290_v34  ;;  %v7148_v0 = vld [vmem:[#allocation5 + $0x190] sm:$0xff] }
 0xd3b   :  { %4563 = vmatpush.bf16.msra.mxu0 %v7148_v0 }
 0xd3c   :  { %v4322_v29 = vadd.f32 %v4321_v55, %v4291_v14 }
 0xd3e   :  { %v4323_v30 = vadd.f32 %v4322_v29, %v4292_v39  ;;  %v13893_v39 = vld [vmem:[#allocation38_spill] sm:$0xff] }
 0xd3f   :  { %4564 = vmatpush.bf16.msra.mxu0 %v7147_v41  ;;  %v13894_v41 = vld [vmem:[#allocation47_spill] sm:$0xff] }
 0xd40   :  { %v4324_v12 = vadd.f32 %v4323_v30, %v4293_v9 }
 0xd42   :  { %v4325_v54 = vadd.f32 %v4324_v12, %v4294_v40 }
 0xd43   :  { %4565 = vmatpush.bf16.msra.mxu0 %v7146_v20 }
 0xd44   :  { %v4326_v52 = vrot.slane %v4325_v54, 4 }
 0xd46   :  { %v4327_v63 = vadd.f32 %v4326_v52, %v4325_v54  ;;  %v11221_v54 = vld [vmem:[%s13568_s5] sm:$0xff] }
 0xd48   :  { %v4328_v47 = vrot.slane %v4327_v63, 2 }
 0xd4a   :  { %v4329_v34 = vadd.f32 %v4328_v47, %v4327_v63  ;;  %v776_v47 = vperm.slane %v11221_v54, 6  ;;  %v787_v63 = vperm.slane %v13892_v51, 1 }
 0xd4c   :  { %v4330_v42 = vrot.slane %v4329_v34, 1  ;;  %v1126_v29 = vadd.f32 %v13893_v39, %v776_v47  ;;  %v1269_v40 = vadd.f32 %v13894_v41, %v787_v63 }
 0xd4e   :  { %v4331_v23 = vadd.f32 %v4330_v42, %v4329_v34  ;;  %v11227_v34 = vperm.slane %v1126_v29, 0  ;;  %v11229_v0 = vperm.slane %v1126_v29, 1 }
 0xd50   :  { %v4332_v14 = vmul.f32 %v4331_v23, %v13891_v56  ;;  %v11231_v23 = vperm.slane %v1269_v40, 0 }
 0xd52   :  { %v4333_v55 = vadd.f32 1e-05, %v4332_v14  ;;  %v11233_v14 = vperm.slane %v1269_v40, 1 }
 0xd54   :  { %7276 = vrsqrt.f32 %v4333_v55  ;;  %vm4340_vm5 = vweird.f32 %v4333_v55 }
 0xd5a   :  { %v7277_v30 = vpop.eup %7276 }
 0xd5b   :  { %v4335_v9 = vmul.f32 %v7277_v30, %v4333_v55  ;;  %vm4341_vm4 = vweird.f32 %v7277_v30 }
 0xd5c   :  { %vm4342_vm6 = vmor %vm4340_vm5, %vm4341_vm4 }
 0xd5d   :  { %v4336_v42 = vmul.f32 %v7277_v30, %v4335_v9 }
 0xd5f   :  { %v4337_v52 = vmul.f32 0.5, %v4336_v42 }
 0xd61   :  { %v4338_v12 = vsub.f32 1.5, %v4337_v52 }
 0xd63   :  { %v4339_v20 = vmul.f32 %v7277_v30, %v4338_v12 }
 0xd65   :  { %v4343_v51 = vsel %vm4342_vm6, %v7277_v30, %v4339_v20 }
 0xd66   :  { %v11235_v9 = vmul.f32 %v4343_v51, %v4262_v5  ;;  %v4344_v47 = vmul.f32 %v4343_v51, %v11031_v62  ;;  %v4345_v63 = vmul.f32 %v4343_v51, %v11035_v8  ;;  %v4346_v42 = vmul.f32 %v4343_v51, %v11039_v44 }
 0xd67   :  { %v4347_v55 = vmul.f32 %v4343_v51, %v11047_v32  ;;  %v4348_v52 = vmul.f32 %v4343_v51, %v11051_v33  ;;  %v4349_v39 = vmul.f32 %v4343_v51, %v11057_v43  ;;  %v4350_v29 = vmul.f32 %v4343_v51, %v11063_v60 }
 0xd68   :  { %v4351_v41 = vmul.f32 %v4343_v51, %v11069_v31  ;;  %v4352_v30 = vmul.f32 %v4343_v51, %v11075_v19  ;;  %v4353_v5 = vmul.f32 %v4343_v51, %v11081_v59  ;;  %v4354_v62 = vmul.f32 %v4343_v51, %v11087_v24 }
 0xd69   :  { %v4355_v8 = vmul.f32 %v4343_v51, %v11093_v15  ;;  %v4356_v44 = vmul.f32 %v4343_v51, %v11099_v36  ;;  %v4357_v32 = vmul.f32 %v4343_v51, %v11105_v2  ;;  %v4358_v33 = vmul.f32 %v4343_v51, %v11111_v11 }
 0xd6a   :  { %v4359_v43 = vmul.f32 %v4343_v51, %v11117_v4  ;;  %v11254_v60 = vmul.f32 %v4343_v51, %v11123_v17  ;;  %v11257_v31 = vmul.f32 %v4343_v51, %v11129_v61  ;;  %v11260_v19 = vmul.f32 %v4343_v51, %v11135_v28 }
 0xd6b   :  { %v11263_v59 = vmul.f32 %v4343_v51, %v11141_v25  ;;  %v11266_v24 = vmul.f32 %v4343_v51, %v11147_v6  ;;  %v11269_v15 = vmul.f32 %v4343_v51, %v11153_v1  ;;  %v11272_v36 = vmul.f32 %v4343_v51, %v11159_v27 }
 0xd6c   :  { %v11275_v2 = vmul.f32 %v4343_v51, %v11165_v26  ;;  %v11278_v11 = vmul.f32 %v4343_v51, %v11171_v22  ;;  %v11281_v4 = vmul.f32 %v4343_v51, %v11177_v3  ;;  %v11284_v17 = vmul.f32 %v4343_v51, %v11183_v45 }
 0xd6d   :  { %v11287_v61 = vmul.f32 %v4343_v51, %v11189_v46  ;;  %v11290_v28 = vmul.f32 %v4343_v51, %v11195_v50  ;;  %v11293_v27 = vmul.f32 %v4343_v51, %v11201_v21  ;;  %v11296_v26 = vmul.f32 %v4343_v51, %v11207_v48 }
 0xd6e   :  { %v4376_v22 = vmul.f32 %v4344_v47, %v11227_v34  ;;  %v4377_v3 = vmul.f32 %v4345_v63, %v11227_v34  ;;  %v4378_v25 = vmul.f32 %v4346_v42, %v11227_v34  ;;  %v4379_v45 = vmul.f32 %v4347_v55, %v11227_v34 }
 0xd6f   :  { %v4380_v46 = vmul.f32 %v4348_v52, %v11227_v34  ;;  %v4381_v6 = vmul.f32 %v4349_v39, %v11227_v34  ;;  %v4382_v50 = vmul.f32 %v4350_v29, %v11227_v34  ;;  %v4383_v21 = vmul.f32 %v4351_v41, %v11227_v34 }
 0xd70   :  { %v4408_v1 = vadd.f32 %v4376_v22, %v11231_v23  ;;  %v4409_v48 = vadd.f32 %v4377_v3, %v11231_v23  ;;  %v4410_v40 = vadd.f32 %v4378_v25, %v11231_v23  ;;  %v4411_v12 = vadd.f32 %v4379_v45, %v11231_v23 }
 0xd71   :  { %v4412_v20 = vadd.f32 %v4380_v46, %v11231_v23  ;;  %v4413_v51 = vadd.f32 %v4381_v6, %v11231_v23  ;;  %v4414_v47 = vadd.f32 %v4382_v50, %v11231_v23  ;;  %v4415_v63 = vadd.f32 %v4383_v21, %v11231_v23 }
 0xd72   :  { %v4440_v42 = vmax.f32 %v4408_v1, 0.0  ;;  %v4441_v55 = vmax.f32 %v4409_v48, 0.0  ;;  %v4442_v52 = vmax.f32 %v4410_v40, 0.0  ;;  %v4443_v39 = vmax.f32 %v4411_v12, 0.0 }
 0xd73   :  { %v4444_v29 = vmax.f32 %v4412_v20, 0.0  ;;  %v4445_v41 = vmax.f32 %v4413_v51, 0.0  ;;  %v4446_v22 = vmax.f32 %v4414_v47, 0.0  ;;  %v4447_v3 = vmax.f32 %v4415_v63, 0.0 }
 0xd74   :  { %v4491_v18 = vpack.c.bf16 %v4441_v55, %v4440_v42  ;;  %v11314_v25 = vpack.c.bf16 %v4443_v39, %v4442_v52  ;;  %v4384_v45 = vmul.f32 %v4352_v30, %v11227_v34  ;;  %v4385_v46 = vmul.f32 %v4353_v5, %v11227_v34 }
 0xd75   :  { %v11318_v6 = vpack.c.bf16 %v4445_v41, %v4444_v29  ;;  %v11320_v50 = vpack.c.bf16 %v4447_v3, %v4446_v22  ;;  %v4386_v21 = vmul.f32 %v4354_v62, %v11227_v34  ;;  %v4387_v1 = vmul.f32 %v4355_v8, %v11227_v34 }
 0xd76   :  { %4566 = vmatmul.bf16.vlgmr.msra.gmra.mxu0 %v4491_v18  ;;  %v4416_v48 = vadd.f32 %v4384_v45, %v11231_v23  ;;  %v4417_v40 = vadd.f32 %v4385_v46, %v11231_v23  ;;  %v4388_v12 = vmul.f32 %v4356_v44, %v11227_v34  ;;  %v4389_v20 = vmul.f32 %v4357_v32, %v11227_v34 }
 0xd77   :  { %v4418_v30 = vadd.f32 %v4386_v21, %v11231_v23  ;;  %v4419_v5 = vadd.f32 %v4387_v1, %v11231_v23  ;;  %v4390_v51 = vmul.f32 %v4358_v33, %v11227_v34  ;;  %v4391_v47 = vmul.f32 %v4359_v43, %v11227_v34 }
 0xd78   :  { %v4448_v62 = vmax.f32 %v4416_v48, 0.0  ;;  %v4449_v63 = vmax.f32 %v4417_v40, 0.0  ;;  %v4420_v18 = vadd.f32 %v4388_v12, %v11231_v23  ;;  %v4421_v8 = vadd.f32 %v4389_v20, %v11231_v23 }
 0xd79   :  { %v4450_v42 = vmax.f32 %v4418_v30, 0.0  ;;  %v4451_v55 = vmax.f32 %v4419_v5, 0.0  ;;  %v4422_v44 = vadd.f32 %v4390_v51, %v11231_v23  ;;  %v4423_v32 = vadd.f32 %v4391_v47, %v11231_v23 }
 0xd7a   :  { %v11336_v52 = vpack.c.bf16 %v4449_v63, %v4448_v62  ;;  %v4452_v39 = vmax.f32 %v4420_v18, 0.0  ;;  %v4453_v29 = vmax.f32 %v4421_v8, 0.0  ;;  %v4392_v33 = vmul.f32 %v11254_v60, %v11229_v0 }
 0xd7b   :  { %v11340_v34 = vpack.c.bf16 %v4451_v55, %v4450_v42  ;;  %v4454_v43 = vmax.f32 %v4422_v44, 0.0  ;;  %v4455_v41 = vmax.f32 %v4423_v32, 0.0  ;;  %v4393_v22 = vmul.f32 %v11257_v31, %v11229_v0 }
 0xd7c   :  { %v4497_v3 = vpack.c.bf16 %v4453_v29, %v4452_v39  ;;  %v4424_v45 = vadd.f32 %v4392_v33, %v11233_v14  ;;  %v4394_v23 = vmul.f32 %v11260_v19, %v11229_v0  ;;  %v4395_v46 = vmul.f32 %v11263_v59, %v11229_v0 }
 0xd7d   :  { %v4498_v21 = vpack.c.bf16 %v4455_v41, %v4454_v43  ;;  %v4425_v1 = vadd.f32 %v4393_v22, %v11233_v14  ;;  %v4396_v60 = vmul.f32 %v11266_v24, %v11229_v0  ;;  %v4397_v48 = vmul.f32 %v11269_v15, %v11229_v0 }
 0xd7e   :  { %v4456_v40 = vmax.f32 %v4424_v45, 0.0  ;;  %v4426_v31 = vadd.f32 %v4394_v23, %v11233_v14  ;;  %v4427_v12 = vadd.f32 %v4395_v46, %v11233_v14  ;;  %v4398_v19 = vmul.f32 %v11272_v36, %v11229_v0 }
 0xd7f   :  { %v4457_v20 = vmax.f32 %v4425_v1, 0.0  ;;  %v4428_v59 = vadd.f32 %v4396_v60, %v11233_v14  ;;  %v4429_v30 = vadd.f32 %v4397_v48, %v11233_v14  ;;  %v4399_v5 = vmul.f32 %v11275_v2, %v11229_v0 }
 0xd80   :  { %v4458_v24 = vmax.f32 %v4426_v31, 0.0  ;;  %v4459_v51 = vmax.f32 %v4427_v12, 0.0  ;;  %v4430_v15 = vadd.f32 %v4398_v19, %v11233_v14  ;;  %v4400_v47 = vmul.f32 %v11278_v11, %v11229_v0 }
 0xd81   :  { %v4499_v62 = vpack.c.bf16 %v4457_v20, %v4456_v40  ;;  %v4460_v63 = vmax.f32 %v4428_v59, 0.0  ;;  %v4461_v18 = vmax.f32 %v4429_v30, 0.0  ;;  %v4431_v36 = vadd.f32 %v4399_v5, %v11233_v14 }
 0xd82   :  { %v4500_v8 = vpack.c.bf16 %v4459_v51, %v4458_v24  ;;  %v4462_v42 = vmax.f32 %v4430_v15, 0.0  ;;  %v4401_v55 = vmul.f32 %v11281_v4, %v11229_v0  ;;  %v4432_v44 = vadd.f32 %v4400_v47, %v11233_v14 }
 0xd83   :  { %v4501_v2 = vpack.c.bf16 %v4461_v18, %v4460_v63  ;;  %v4463_v32 = vmax.f32 %v4431_v36, 0.0  ;;  %v4402_v39 = vmul.f32 %v11284_v17, %v11229_v0  ;;  %v4403_v11 = vmul.f32 %v11287_v61, %v11229_v0  ;;  %v7160_v18 = vld [vmem:[#allocation5 + $0x1f0] sm:$0xff] }
 0xd84   :  { %v4433_v29 = vadd.f32 %v4401_v55, %v11233_v14  ;;  %v4464_v33 = vmax.f32 %v4432_v44, 0.0  ;;  %v4404_v43 = vmul.f32 %v11290_v28, %v11229_v0  ;;  %v4405_v41 = vmul.f32 %v11293_v27, %v11229_v0  ;;  %v7159_v44 = vld [vmem:[#allocation5 + $0x1e8] sm:$0xff] }
 0xd85   :  { %v4502_v4 = vpack.c.bf16 %v4463_v32, %v4462_v42  ;;  %v4434_v22 = vadd.f32 %v4402_v39, %v11233_v14  ;;  %v4435_v45 = vadd.f32 %v4403_v11, %v11233_v14  ;;  %v4406_v17 = vmul.f32 %v11296_v26, %v11229_v0 }
 0xd86   :  { %4571 = vmatmul.bf16.gmra.mxu0 %v11314_v25  ;;  %v4465_v61 = vmax.f32 %v4433_v29, 0.0  ;;  %v4436_v23 = vadd.f32 %v4404_v43, %v11233_v14  ;;  %v4437_v46 = vadd.f32 %v4405_v41, %v11233_v14  ;;  %v4407_v28 = vmul.f32 %v11235_v9, %v11229_v0  ;;  %v11396_v29 = vld [vmem:[%s13570_s7 + $0x6] ss:$0 sm:$0xff] }
 0xd87   :  { %v4466_v1 = vmax.f32 %v4434_v22, 0.0  ;;  %v4467_v27 = vmax.f32 %v4435_v45, 0.0  ;;  %v4438_v60 = vadd.f32 %v4406_v17, %v11233_v14  ;;  %v7158_v43 = vld [vmem:[#allocation5 + $0x1e0] sm:$0xff] }
 0xd88   :  { %v4503_v48 = vpack.c.bf16 %v4465_v61, %v4464_v33  ;;  %v4468_v40 = vmax.f32 %v4436_v23, 0.0  ;;  %v4469_v31 = vmax.f32 %v4437_v46, 0.0  ;;  %v4439_v12 = vadd.f32 %v4407_v28, %v11233_v14 }
 0xd89   :  { %v4504_v26 = vpack.c.bf16 %v4467_v27, %v4466_v1  ;;  %v4470_v19 = vmax.f32 %v4438_v60, 0.0 }
 0xd8a   :  { %v4505_v25 = vpack.c.bf16 %v4469_v31, %v4468_v40  ;;  %v4471_v20 = vmax.f32 %v4439_v12, 0.0 }
 0xd8c   :  { %v4506_v59 = vpack.c.bf16 %v4471_v20, %v4470_v19 }
 0xd96   :  { %4576 = vmatmul.bf16.gmra.mxu0 %v11318_v6 }
 0xda6   :  { %4581 = vmatmul.bf16.gmra.mxu0 %v11320_v50 }
 0xdb6   :  { %4586 = vmatmul.bf16.gmra.mxu0 %v11336_v52 }
 0xdc6   :  { %4591 = vmatmul.bf16.gmra.mxu0 %v11340_v34 }
 0xdd6   :  { %4596 = vmatmul.bf16.gmra.mxu0 %v4497_v3  ;;  %v7161_v3 = vld [vmem:[#allocation5 + $0x1f8] sm:$0xff] }
 0xdd7   :  { %5012 = vmatpush.bf16.msra.mxu1 %v7161_v3 }
 0xddb   :  { %5013 = vmatpush.bf16.msra.mxu1 %v7160_v18 }
 0xddf   :  { %5014 = vmatpush.bf16.msra.mxu1 %v7159_v44 }
 0xde3   :  { %5015 = vmatpush.bf16.msra.mxu1 %v7158_v43 }
 0xde6   :  { %4601 = vmatmul.bf16.gmra.mxu0 %v4498_v21 }
 0xdf3   :  { %v4567_v0 = vpop.f32.mrf.mxu0 }
 0xdf4   :  { %v11402_v41 = vadd.f32 %v11396_v29, %v4567_v0 }
 0xdf6   :  { %4606 = vmatmul.bf16.gmra.mxu0 %v4499_v62 }
 0xdfb   :  { %v4569_v9 = vpop.f32.mrf.mxu0 }
 0xdfc   :  { %v11399_v33 = vadd.f32 %v11396_v29, %v4569_v9 }
 0xdfe   :  { %v4647_v22 = vadd.f32 %v11399_v33, %v11402_v41 }
 0xe03   :  { %v4572_v30 = vpop.f32.mrf.mxu0 }
 0xe06   :  { %4611 = vmatmul.bf16.gmra.mxu0 %v4500_v8 }
 0xe0b   :  { %v4574_v14 = vpop.f32.mrf.mxu0 }
 0xe0c   :  { %v11410_v45 = vadd.f32 %v11396_v29, %v4574_v14 }
 0xe13   :  { %v4577_v5 = vpop.f32.mrf.mxu0 }
 0xe14   :  { %v11414_v23 = vadd.f32 %v11396_v29, %v4577_v5 }
 0xe16   :  { %4616 = vmatmul.bf16.gmra.mxu0 %v4501_v2 }
 0xe1b   :  { %v4579_v24 = vpop.f32.mrf.mxu0 }
 0xe1c   :  { %v11418_v28 = vadd.f32 %v11396_v29, %v4579_v24 }
 0xe23   :  { %v4582_v51 = vpop.f32.mrf.mxu0 }
 0xe24   :  { %v11422_v27 = vadd.f32 %v11396_v29, %v4582_v51 }
 0xe26   :  { %4621 = vmatmul.bf16.gmra.mxu0 %v4502_v4  ;;  %v11405_v4 = vadd.f32 %v11396_v29, %v4572_v30 }
 0xe28   :  { %v4648_v61 = vadd.f32 %v4647_v22, %v11405_v4 }
 0xe2a   :  { %v4649_v46 = vadd.f32 %v4648_v61, %v11410_v45 }
 0xe2b   :  { %v4584_v6 = vpop.f32.mrf.mxu0 }
 0xe2c   :  { %v4650_v1 = vadd.f32 %v4649_v46, %v11414_v23 }
 0xe2e   :  { %v4651_v60 = vadd.f32 %v4650_v1, %v11418_v28 }
 0xe30   :  { %v4652_v31 = vadd.f32 %v4651_v60, %v11422_v27 }
 0xe33   :  { %v4587_v15 = vpop.f32.mrf.mxu0 }
 0xe34   :  { %v11430_v12 = vadd.f32 %v11396_v29, %v4587_v15 }
 0xe36   :  { %4626 = vmatmul.bf16.gmra.mxu0 %v4503_v48  ;;  %v11426_v48 = vadd.f32 %v11396_v29, %v4584_v6 }
 0xe3b   :  { %v4589_v50 = vpop.f32.mrf.mxu0 }
 0xe3c   :  { %v11434_v19 = vadd.f32 %v11396_v29, %v4589_v50 }
 0xe43   :  { %v4592_v52 = vpop.f32.mrf.mxu0 }
 0xe44   :  { %v11438_v20 = vadd.f32 %v11396_v29, %v4592_v52 }
 0xe46   :  { %4631 = vmatmul.bf16.gmra.mxu0 %v4504_v26  ;;  %v4653_v26 = vadd.f32 %v4652_v31, %v11426_v48 }
 0xe4b   :  { %v4594_v34 = vpop.f32.mrf.mxu0 }
 0xe4c   :  { %v11442_v0 = vadd.f32 %v11396_v29, %v4594_v34 }
 0xe53   :  { %v4597_v21 = vpop.f32.mrf.mxu0 }
 0xe54   :  { %v11446_v14 = vadd.f32 %v11396_v29, %v4597_v21 }
 0xe56   :  { %4636 = vmatmul.bf16.gmra.mxu0 %v4505_v25  ;;  %v4654_v25 = vadd.f32 %v4653_v26, %v11430_v12 }
 0xe5b   :  { %v4599_v47 = vpop.f32.mrf.mxu0 }
 0xe5c   :  { %v11450_v24 = vadd.f32 %v11396_v29, %v4599_v47 }
 0xe63   :  { %v4602_v62 = vpop.f32.mrf.mxu0 }
 0xe64   :  { %v11454_v6 = vadd.f32 %v11396_v29, %v4602_v62 }
 0xe66   :  { %4641 = vmatmul.bf16.gmra.mxu0 %v4506_v59  ;;  %v4655_v59 = vadd.f32 %v4654_v25, %v11434_v19 }
 0xe68   :  { %v4656_v30 = vadd.f32 %v4655_v59, %v11438_v20 }
 0xe6a   :  { %v4657_v5 = vadd.f32 %v4656_v30, %v11442_v0 }
 0xe6b   :  { %v4604_v63 = vpop.f32.mrf.mxu0 }
 0xe6c   :  { %v4658_v51 = vadd.f32 %v4657_v5, %v11446_v14  ;;  %v11458_v50 = vadd.f32 %v11396_v29, %v4604_v63 }
 0xe6e   :  { %v4659_v15 = vadd.f32 %v4658_v51, %v11450_v24 }
 0xe70   :  { %v4660_v34 = vadd.f32 %v4659_v15, %v11454_v6 }
 0xe72   :  { %v4661_v21 = vadd.f32 %v4660_v34, %v11458_v50 }
 0xe73   :  { %v4607_v36 = vpop.f32.mrf.mxu0 }
 0xe74   :  { %v11462_v3 = vadd.f32 %v11396_v29, %v4607_v36 }
 0xe76   :  { %v4662_v18 = vadd.f32 %v4661_v21, %v11462_v3 }
 0xe7b   :  { %v4609_v8 = vpop.f32.mrf.mxu0 }
 0xe7c   :  { %v11466_v47 = vadd.f32 %v11396_v29, %v4609_v8 }
 0xe7e   :  { %v4663_v44 = vadd.f32 %v4662_v18, %v11466_v47 }
 0xe83   :  { %v4612_v42 = vpop.f32.mrf.mxu0 }
 0xe84   :  { %v11470_v62 = vadd.f32 %v11396_v29, %v4612_v42 }
 0xe86   :  { %v4664_v22 = vadd.f32 %v4663_v44, %v11470_v62 }
 0xe8b   :  { %v4614_v55 = vpop.f32.mrf.mxu0 }
 0xe8c   :  { %v11474_v63 = vadd.f32 %v11396_v29, %v4614_v55 }
 0xe8e   :  { %v4665_v61 = vadd.f32 %v4664_v22, %v11474_v63 }
 0xe93   :  { %v4617_v2 = vpop.f32.mrf.mxu0 }
 0xe94   :  { %v11478_v36 = vadd.f32 %v11396_v29, %v4617_v2 }
 0xe96   :  { %v4666_v46 = vadd.f32 %v4665_v61, %v11478_v36 }
 0xe9b   :  { %v4619_v32 = vpop.f32.mrf.mxu0 }
 0xe9c   :  { %v11482_v8 = vadd.f32 %v11396_v29, %v4619_v32 }
 0xe9e   :  { %v4667_v1 = vadd.f32 %v4666_v46, %v11482_v8 }
 0xea3   :  { %v4622_v39 = vpop.f32.mrf.mxu0 }
 0xea4   :  { %v11486_v42 = vadd.f32 %v11396_v29, %v4622_v39 }
 0xea6   :  { %v4668_v31 = vadd.f32 %v4667_v1, %v11486_v42 }
 0xeab   :  { %v4624_v11 = vpop.f32.mrf.mxu0 }
 0xeac   :  { %v11490_v55 = vadd.f32 %v11396_v29, %v4624_v11 }
 0xeae   :  { %v4669_v26 = vadd.f32 %v4668_v31, %v11490_v55 }
 0xeb3   :  { %v4627_v17 = vpop.f32.mrf.mxu0 }
 0xeb4   :  { %v11494_v2 = vadd.f32 %v11396_v29, %v4627_v17 }
 0xeb6   :  { %v4670_v25 = vadd.f32 %v4669_v26, %v11494_v2 }
 0xebb   :  { %v4629_v40 = vpop.f32.mrf.mxu0 }
 0xebc   :  { %v11498_v32 = vadd.f32 %v11396_v29, %v4629_v40 }
 0xebe   :  { %v4671_v59 = vadd.f32 %v4670_v25, %v11498_v32 }
 0xec3   :  { %v4632_v9 = vpop.f32.mrf.mxu0 }
 0xec4   :  { %v11502_v39 = vadd.f32 %v11396_v29, %v4632_v9 }
 0xec6   :  { %v4672_v5 = vadd.f32 %v4671_v59, %v11502_v39 }
 0xecb   :  { %v4634_v52 = vpop.f32.mrf.mxu0 }
 0xecc   :  { %v11506_v11 = vadd.f32 %v11396_v29, %v4634_v52 }
 0xece   :  { %v4673_v51 = vadd.f32 %v4672_v5, %v11506_v11 }
 0xed3   :  { %v4637_v43 = vpop.f32.mrf.mxu0 }
 0xed4   :  { %v11510_v17 = vadd.f32 %v11396_v29, %v4637_v43 }
 0xed6   :  { %v4674_v15 = vadd.f32 %v4673_v51, %v11510_v17 }
 0xedb   :  { %v4639_v60 = vpop.f32.mrf.mxu0 }
 0xedc   :  { %v11514_v40 = vadd.f32 %v11396_v29, %v4639_v60 }
 0xede   :  { %v4675_v34 = vadd.f32 %v4674_v15, %v11514_v40 }
 0xee3   :  { %v4642_v30 = vpop.f32.mrf.mxu0 }
 0xee4   :  { %v11518_v9 = vadd.f32 %v11396_v29, %v4642_v30 }
 0xee6   :  { %v4676_v21 = vadd.f32 %v4675_v34, %v11518_v9 }
 0xeeb   :  { %v4644_v52 = vpop.f32.mrf.mxu0 }
 0xeec   :  { %v11523_v18 = vadd.f32 %v11396_v29, %v4644_v52 }
 0xeee   :  { %v4677_v44 = vadd.f32 %v4676_v21, %v11523_v18 }
 0xef0   :  { %v4678_v43 = vrot.slane %v4677_v44, 4 }
 0xef2   :  { %v4679_v22 = vadd.f32 %v4678_v43, %v4677_v44 }
 0xef4   :  { %v4680_v61 = vrot.slane %v4679_v22, 2 }
 0xef6   :  { %v4681_v46 = vadd.f32 %v4680_v61, %v4679_v22 }
 0xef8   :  { %v4682_v1 = vrot.slane %v4681_v46, 1 }
 0xefa   :  { %v4683_v60 = vadd.f32 %v4682_v1, %v4681_v46 }
 0xefc   :  { %v11527_v31 = vmul.f32 %v4683_v60, %v13891_v56 }
 0xefe   :  { %v11531_v26 = vsub.f32 %v11402_v41, %v11527_v31  ;;  %v11535_v25 = vsub.f32 %v11399_v33, %v11527_v31  ;;  %v11539_v29 = vsub.f32 %v11405_v4, %v11527_v31  ;;  %v11547_v5 = vsub.f32 %v11410_v45, %v11527_v31 }
 0xeff   :  { %v11551_v41 = vsub.f32 %v11414_v23, %v11527_v31  ;;  %v11557_v4 = vsub.f32 %v11418_v28, %v11527_v31  ;;  %v11563_v45 = vsub.f32 %v11422_v27, %v11527_v31  ;;  %v11569_v21 = vsub.f32 %v11426_v48, %v11527_v31 }
 0xf00   :  { %v4717_v59 = vmul.f32 %v11531_v26, %v11531_v26  ;;  %v4718_v30 = vmul.f32 %v11535_v25, %v11535_v25  ;;  %v4719_v33 = vmul.f32 %v11539_v29, %v11539_v29  ;;  %v4720_v15 = vmul.f32 %v11547_v5, %v11547_v5 }
 0xf01   :  { %v4721_v23 = vmul.f32 %v11551_v41, %v11551_v41  ;;  %v4722_v28 = vmul.f32 %v11557_v4, %v11557_v4  ;;  %v11575_v43 = vsub.f32 %v11430_v12, %v11527_v31  ;;  %v4723_v27 = vmul.f32 %v11563_v45, %v11563_v45 }
 0xf02   :  { %v4749_v51 = vadd.f32 %v4718_v30, %v4717_v59  ;;  %v11581_v61 = vsub.f32 %v11434_v19, %v11527_v31  ;;  %v4724_v48 = vmul.f32 %v11569_v21, %v11569_v21  ;;  %v11587_v1 = vsub.f32 %v11438_v20, %v11527_v31 }
 0xf03   :  { %v4725_v12 = vmul.f32 %v11575_v43, %v11575_v43  ;;  %v11593_v59 = vsub.f32 %v11442_v0, %v11527_v31 }
 0xf04   :  { %v4750_v34 = vadd.f32 %v4749_v51, %v4719_v33  ;;  %v4726_v19 = vmul.f32 %v11581_v61, %v11581_v61  ;;  %v11599_v33 = vsub.f32 %v11446_v14, %v11527_v31  ;;  %v4727_v20 = vmul.f32 %v11587_v1, %v11587_v1 }
 0xf05   :  { %v4728_v0 = vmul.f32 %v11593_v59, %v11593_v59 }
 0xf06   :  { %v4751_v52 = vadd.f32 %v4750_v34, %v4720_v15  ;;  %v11605_v15 = vsub.f32 %v11450_v24, %v11527_v31  ;;  %v4729_v14 = vmul.f32 %v11599_v33, %v11599_v33 }
 0xf08   :  { %v4752_v44 = vadd.f32 %v4751_v52, %v4721_v23  ;;  %v11611_v23 = vsub.f32 %v11454_v6, %v11527_v31  ;;  %v4730_v24 = vmul.f32 %v11605_v15, %v11605_v15 }
 0xf0a   :  { %v4753_v22 = vadd.f32 %v4752_v44, %v4722_v28  ;;  %v11617_v28 = vsub.f32 %v11458_v50, %v11527_v31  ;;  %v4731_v6 = vmul.f32 %v11611_v23, %v11611_v23 }
 0xf0c   :  { %v4754_v46 = vadd.f32 %v4753_v22, %v4723_v27  ;;  %v11623_v27 = vsub.f32 %v11462_v3, %v11527_v31  ;;  %v4732_v50 = vmul.f32 %v11617_v28, %v11617_v28 }
 0xf0e   :  { %v4755_v60 = vadd.f32 %v4754_v46, %v4724_v48  ;;  %v11629_v48 = vsub.f32 %v11466_v47, %v11527_v31  ;;  %v4733_v3 = vmul.f32 %v11623_v27, %v11623_v27 }
 0xf10   :  { %v4756_v30 = vadd.f32 %v4755_v60, %v4725_v12  ;;  %v11635_v12 = vsub.f32 %v11470_v62, %v11527_v31  ;;  %v4734_v47 = vmul.f32 %v11629_v48, %v11629_v48 }
 0xf12   :  { %v4757_v51 = vadd.f32 %v4756_v30, %v4726_v19  ;;  %v11641_v19 = vsub.f32 %v11474_v63, %v11527_v31  ;;  %v4735_v62 = vmul.f32 %v11635_v12, %v11635_v12 }
 0xf14   :  { %v4758_v34 = vadd.f32 %v4757_v51, %v4727_v20  ;;  %v11647_v20 = vsub.f32 %v11478_v36, %v11527_v31  ;;  %v4736_v63 = vmul.f32 %v11641_v19, %v11641_v19 }
 0xf16   :  { %v4759_v52 = vadd.f32 %v4758_v34, %v4728_v0  ;;  %v11653_v0 = vsub.f32 %v11482_v8, %v11527_v31  ;;  %v4737_v36 = vmul.f32 %v11647_v20, %v11647_v20 }
 0xf18   :  { %v4760_v44 = vadd.f32 %v4759_v52, %v4729_v14  ;;  %v11659_v14 = vsub.f32 %v11486_v42, %v11527_v31  ;;  %v4738_v8 = vmul.f32 %v11653_v0, %v11653_v0 }
 0xf1a   :  { %v4761_v22 = vadd.f32 %v4760_v44, %v4730_v24  ;;  %v11665_v24 = vsub.f32 %v11490_v55, %v11527_v31  ;;  %v4739_v42 = vmul.f32 %v11659_v14, %v11659_v14 }
 0xf1c   :  { %v4762_v46 = vadd.f32 %v4761_v22, %v4731_v6  ;;  %v11671_v6 = vsub.f32 %v11494_v2, %v11527_v31  ;;  %v4740_v55 = vmul.f32 %v11665_v24, %v11665_v24 }
 0xf1e   :  { %v4763_v60 = vadd.f32 %v4762_v46, %v4732_v50  ;;  %v11677_v50 = vsub.f32 %v11498_v32, %v11527_v31  ;;  %v4741_v2 = vmul.f32 %v11671_v6, %v11671_v6 }
 0xf20   :  { %v4764_v30 = vadd.f32 %v4763_v60, %v4733_v3  ;;  %v11683_v3 = vsub.f32 %v11502_v39, %v11527_v31  ;;  %v4742_v32 = vmul.f32 %v11677_v50, %v11677_v50 }
 0xf22   :  { %v4765_v51 = vadd.f32 %v4764_v30, %v4734_v47  ;;  %v11689_v47 = vsub.f32 %v11506_v11, %v11527_v31  ;;  %v4743_v39 = vmul.f32 %v11683_v3, %v11683_v3 }
 0xf24   :  { %v4766_v34 = vadd.f32 %v4765_v51, %v4735_v62  ;;  %v11695_v62 = vsub.f32 %v11510_v17, %v11527_v31  ;;  %v4744_v11 = vmul.f32 %v11689_v47, %v11689_v47 }
 0xf26   :  { %v4767_v52 = vadd.f32 %v4766_v34, %v4736_v63  ;;  %v11701_v63 = vsub.f32 %v11514_v40, %v11527_v31  ;;  %v4745_v17 = vmul.f32 %v11695_v62, %v11695_v62 }
 0xf28   :  { %v4768_v44 = vadd.f32 %v4767_v52, %v4737_v36  ;;  %v11707_v36 = vsub.f32 %v11518_v9, %v11527_v31 }
 0xf2a   :  { %v4769_v22 = vadd.f32 %v4768_v44, %v4738_v8  ;;  %v4716_v8 = vsub.f32 %v11523_v18, %v11527_v31  ;;  %v4746_v44 = vmul.f32 %v11701_v63, %v11701_v63  ;;  %v7156_v31 = vld [vmem:[#allocation5 + $0x1d0] sm:$0xff] }
 0xf2c   :  { %v4770_v46 = vadd.f32 %v4769_v22, %v4739_v42  ;;  %v4747_v42 = vmul.f32 %v11707_v36, %v11707_v36 }
 0xf2e   :  { %v4771_v60 = vadd.f32 %v4770_v46, %v4740_v55  ;;  %v4748_v55 = vmul.f32 %v4716_v8, %v4716_v8 }
 0xf30   :  { %v4772_v30 = vadd.f32 %v4771_v60, %v4741_v2 }
 0xf32   :  { %v4773_v51 = vadd.f32 %v4772_v30, %v4742_v32 }
 0xf34   :  { %v4774_v34 = vadd.f32 %v4773_v51, %v4743_v39  ;;  %v7157_v51 = vld [vmem:[#allocation5 + $0x1d8] sm:$0xff] }
 0xf35   :  { %5016 = vmatpush.bf16.msra.mxu1 %v7157_v51 }
 0xf36   :  { %v4775_v52 = vadd.f32 %v4774_v34, %v4744_v11 }
 0xf38   :  { %v4776_v40 = vadd.f32 %v4775_v52, %v4745_v17  ;;  %v7155_v17 = vld [vmem:[#allocation5 + $0x1c8] sm:$0xff]  ;;  %v7154_v52 = vld [vmem:[#allocation5 + $0x1c0] sm:$0xff] }
 0xf39   :  { %5017 = vmatpush.bf16.msra.mxu1 %v7156_v31 }
 0xf3a   :  { %v4777_v22 = vadd.f32 %v4776_v40, %v4746_v44 }
 0xf3c   :  { %v4778_v46 = vadd.f32 %v4777_v22, %v4747_v42  ;;  %v777_v42 = vperm.slane %v11221_v54, 7  ;;  %v11722_v22 = vld [vmem:[%s13568_s5 + $0x10] sm:$0x3f] }
 0xf3d   :  { %5018 = vmatpush.bf16.msra.mxu1 %v7155_v17  ;;  %13895 = vst [vmem:[#allocation22_spill] sm:$0xff] %v11722_v22 }
 0xf3e   :  { %v4779_v2 = vadd.f32 %v4778_v46, %v4748_v55  ;;  %v788_v55 = vperm.slane %v11722_v22, 2 }
 0xf40   :  { %v4780_v9 = vrot.slane %v4779_v2, 4 }
 0xf41   :  { %5019 = vmatpush.bf16.msra.mxu1 %v7154_v52 }
 0xf42   :  { %v4781_v60 = vadd.f32 %v4780_v9, %v4779_v2  ;;  %v13896_v9 = vld [vmem:[#allocation35_spill] sm:$0xff] }
 0xf44   :  { %v4782_v32 = vrot.slane %v4781_v60, 2 }
 0xf46   :  { %v4783_v30 = vadd.f32 %v4782_v32, %v4781_v60  ;;  %v1139_v60 = vadd.f32 %v13896_v9, %v777_v42  ;;  %v13897_v32 = vld [vmem:[#allocation43_spill] sm:$0xff] }
 0xf48   :  { %v4784_v39 = vrot.slane %v4783_v30, 1  ;;  %v11727_v54 = vperm.slane %v1139_v60, 1 }
 0xf4a   :  { %v4785_v11 = vadd.f32 %v4784_v39, %v4783_v30  ;;  %v1282_v30 = vadd.f32 %v13897_v32, %v788_v55 }
 0xf4c   :  { %v4786_v18 = vmul.f32 %v4785_v11, %v13891_v56  ;;  %v1331_v11 = vperm.slane %v1139_v60, 0  ;;  %v11731_v31 = vperm.slane %v1282_v30, 1 }
 0xf4e   :  { %v4787_v34 = vadd.f32 1e-05, %v4786_v18  ;;  %v11729_v18 = vperm.slane %v1282_v30, 0 }
 0xf50   :  { %7278 = vrsqrt.f32 %v4787_v34  ;;  %vm4794_vm8 = vweird.f32 %v4787_v34 }
 0xf56   :  { %v7279_v44 = vpop.eup %7278 }
 0xf57   :  { %v4789_v40 = vmul.f32 %v7279_v44, %v4787_v34  ;;  %vm4795_vm7 = vweird.f32 %v7279_v44 }
 0xf58   :  { %vm4796_vm9 = vmor %vm4794_vm8, %vm4795_vm7 }
 0xf59   :  { %v4790_v46 = vmul.f32 %v7279_v44, %v4789_v40 }
 0xf5b   :  { %v4791_v2 = vmul.f32 0.5, %v4790_v46 }
 0xf5d   :  { %v4792_v39 = vsub.f32 1.5, %v4791_v2 }
 0xf5f   :  { %v4793_v51 = vmul.f32 %v7279_v44, %v4792_v39 }
 0xf61   :  { %v4797_v17 = vsel %vm4796_vm9, %v7279_v44, %v4793_v51 }
 0xf62   :  { %v4829_v52 = vmul.f32 %v4797_v17, %v4716_v8  ;;  %v4798_v40 = vmul.f32 %v4797_v17, %v11531_v26  ;;  %v4799_v42 = vmul.f32 %v4797_v17, %v11535_v25  ;;  %v4800_v55 = vmul.f32 %v4797_v17, %v11539_v29 }
 0xf63   :  { %v4801_v46 = vmul.f32 %v4797_v17, %v11547_v5  ;;  %v4802_v34 = vmul.f32 %v4797_v17, %v11551_v41  ;;  %v4803_v2 = vmul.f32 %v4797_v17, %v11557_v4  ;;  %v4804_v9 = vmul.f32 %v4797_v17, %v11563_v45 }
 0xf64   :  { %v11741_v60 = vmul.f32 %v4829_v52, %v11727_v54  ;;  %v4805_v44 = vmul.f32 %v4797_v17, %v11569_v21  ;;  %v4806_v8 = vmul.f32 %v4797_v17, %v11575_v43  ;;  %v4807_v26 = vmul.f32 %v4797_v17, %v11581_v61 }
 0xf65   :  { %v4808_v25 = vmul.f32 %v4797_v17, %v11587_v1  ;;  %v4809_v29 = vmul.f32 %v4797_v17, %v11593_v59  ;;  %v4810_v5 = vmul.f32 %v4797_v17, %v11599_v33  ;;  %v4811_v41 = vmul.f32 %v4797_v17, %v11605_v15 }
 0xf66   :  { %v4812_v4 = vmul.f32 %v4797_v17, %v11611_v23  ;;  %v4813_v45 = vmul.f32 %v4797_v17, %v11617_v28  ;;  %v4814_v32 = vmul.f32 %v4797_v17, %v11623_v27  ;;  %v4815_v21 = vmul.f32 %v4797_v17, %v11629_v48 }
 0xf67   :  { %v4816_v43 = vmul.f32 %v4797_v17, %v11635_v12  ;;  %v4817_v61 = vmul.f32 %v4797_v17, %v11641_v19  ;;  %v4818_v1 = vmul.f32 %v4797_v17, %v11647_v20  ;;  %v4819_v59 = vmul.f32 %v4797_v17, %v11653_v0 }
 0xf68   :  { %v4820_v33 = vmul.f32 %v4797_v17, %v11659_v14  ;;  %v4821_v15 = vmul.f32 %v4797_v17, %v11665_v24  ;;  %v4822_v23 = vmul.f32 %v4797_v17, %v11671_v6  ;;  %v4823_v28 = vmul.f32 %v4797_v17, %v11677_v50 }
 0xf69   :  { %v4824_v27 = vmul.f32 %v4797_v17, %v11683_v3  ;;  %v4825_v48 = vmul.f32 %v4797_v17, %v11689_v47  ;;  %v4826_v12 = vmul.f32 %v4797_v17, %v11695_v62  ;;  %v4827_v19 = vmul.f32 %v4797_v17, %v11701_v63 }
 0xf6a   :  { %v4828_v20 = vmul.f32 %v4797_v17, %v11707_v36  ;;  %v4830_v30 = vmul.f32 %v4798_v40, %v1331_v11  ;;  %v4831_v0 = vmul.f32 %v4799_v42, %v1331_v11  ;;  %v4832_v39 = vmul.f32 %v4800_v55, %v1331_v11 }
 0xf6b   :  { %v4833_v14 = vmul.f32 %v4801_v46, %v1331_v11  ;;  %v4834_v51 = vmul.f32 %v4802_v34, %v1331_v11  ;;  %v4835_v24 = vmul.f32 %v4803_v2, %v1331_v11  ;;  %v4836_v52 = vmul.f32 %v4804_v9, %v1331_v11 }
 0xf6c   :  { %v4837_v6 = vmul.f32 %v4805_v44, %v1331_v11  ;;  %v4838_v22 = vmul.f32 %v4806_v8, %v1331_v11  ;;  %v4839_v50 = vmul.f32 %v4807_v26, %v1331_v11  ;;  %v4840_v56 = vmul.f32 %v4808_v25, %v1331_v11 }
 0xf6d   :  { %v4841_v3 = vmul.f32 %v4809_v29, %v1331_v11  ;;  %v4842_v49 = vmul.f32 %v4810_v5, %v1331_v11  ;;  %v4843_v47 = vmul.f32 %v4811_v41, %v1331_v11  ;;  %v4844_v13 = vmul.f32 %v4812_v4, %v1331_v11 }
 0xf6e   :  { %v4845_v62 = vmul.f32 %v4813_v45, %v1331_v11  ;;  %v4846_v63 = vmul.f32 %v4814_v32, %v11727_v54  ;;  %v4847_v36 = vmul.f32 %v4815_v21, %v11727_v54  ;;  %v4848_v17 = vmul.f32 %v4816_v43, %v11727_v54 }
 0xf6f   :  { %v4849_v40 = vmul.f32 %v4817_v61, %v11727_v54  ;;  %v4850_v42 = vmul.f32 %v4818_v1, %v11727_v54  ;;  %v4851_v55 = vmul.f32 %v4819_v59, %v11727_v54  ;;  %v4852_v46 = vmul.f32 %v4820_v33, %v11727_v54 }
 0xf70   :  { %v4853_v34 = vmul.f32 %v4821_v15, %v11727_v54  ;;  %v11776_v2 = vmul.f32 %v4822_v23, %v11727_v54  ;;  %v11779_v11 = vmul.f32 %v4823_v28, %v11727_v54  ;;  %v11782_v9 = vmul.f32 %v4824_v27, %v11727_v54 }
 0xf71   :  { %v11785_v44 = vmul.f32 %v4825_v48, %v11727_v54  ;;  %v11788_v8 = vmul.f32 %v4826_v12, %v11727_v54  ;;  %v11791_v26 = vmul.f32 %v4827_v19, %v11727_v54  ;;  %v11794_v25 = vmul.f32 %v4828_v20, %v11727_v54 }
 0xf72   :  { %v4862_v29 = vadd.f32 %v4830_v30, %v11729_v18  ;;  %v4863_v5 = vadd.f32 %v4831_v0, %v11729_v18  ;;  %v4864_v41 = vadd.f32 %v4832_v39, %v11729_v18  ;;  %v4865_v4 = vadd.f32 %v4833_v14, %v11729_v18 }
 0xf73   :  { %v4866_v45 = vadd.f32 %v4834_v51, %v11729_v18  ;;  %v4867_v32 = vadd.f32 %v4835_v24, %v11729_v18  ;;  %v4868_v21 = vadd.f32 %v4836_v52, %v11729_v18  ;;  %v4869_v43 = vadd.f32 %v4837_v6, %v11729_v18 }
 0xf74   :  { %v4894_v61 = vmax.f32 %v4862_v29, 0.0  ;;  %v4895_v1 = vmax.f32 %v4863_v5, 0.0  ;;  %v4896_v54 = vmax.f32 %v4864_v41, 0.0  ;;  %v4897_v59 = vmax.f32 %v4865_v4, 0.0 }
 0xf75   :  { %v4898_v33 = vmax.f32 %v4866_v45, 0.0  ;;  %v4899_v15 = vmax.f32 %v4867_v32, 0.0  ;;  %v4900_v23 = vmax.f32 %v4868_v21, 0.0  ;;  %v4901_v28 = vmax.f32 %v4869_v43, 0.0 }
 0xf76   :  { %v4945_v27 = vpack.c.bf16 %v4895_v1, %v4894_v61  ;;  %v11804_v48 = vpack.c.bf16 %v4897_v59, %v4896_v54  ;;  %v4870_v12 = vadd.f32 %v4838_v22, %v11729_v18  ;;  %v4871_v19 = vadd.f32 %v4839_v50, %v11729_v18 }
 0xf77   :  { %v4947_v20 = vpack.c.bf16 %v4899_v15, %v4898_v33  ;;  %v4948_v30 = vpack.c.bf16 %v4901_v28, %v4900_v23  ;;  %v4872_v0 = vadd.f32 %v4840_v56, %v11729_v18  ;;  %v4873_v39 = vadd.f32 %v4841_v3, %v11729_v18 }
 0xf78   :  { %5020 = vmatmul.bf16.vlgmr.msra.gmra.mxu1 %v4945_v27  ;;  %v4902_v14 = vmax.f32 %v4870_v12, 0.0  ;;  %v4903_v51 = vmax.f32 %v4871_v19, 0.0  ;;  %v4874_v24 = vadd.f32 %v4842_v49, %v11729_v18  ;;  %v4875_v52 = vadd.f32 %v4843_v47, %v11729_v18 }
 0xf79   :  { %v4904_v6 = vmax.f32 %v4872_v0, 0.0  ;;  %v4905_v29 = vmax.f32 %v4873_v39, 0.0  ;;  %v4876_v5 = vadd.f32 %v4844_v13, %v11729_v18  ;;  %v4877_v22 = vadd.f32 %v4845_v62, %v11729_v18 }
 0xf7a   :  { %v4949_v50 = vpack.c.bf16 %v4903_v51, %v4902_v14  ;;  %v4906_v41 = vmax.f32 %v4874_v24, 0.0  ;;  %v4907_v4 = vmax.f32 %v4875_v52, 0.0  ;;  %v4878_v56 = vadd.f32 %v4846_v63, %v11731_v31 }
 0xf7b   :  { %v4950_v45 = vpack.c.bf16 %v4905_v29, %v4904_v6  ;;  %v4908_v3 = vmax.f32 %v4876_v5, 0.0  ;;  %v4909_v32 = vmax.f32 %v4877_v22, 0.0  ;;  %v4879_v21 = vadd.f32 %v4847_v36, %v11731_v31 }
 0xf7c   :  { %v4951_v43 = vpack.c.bf16 %v4907_v4, %v4906_v41  ;;  %v4910_v49 = vmax.f32 %v4878_v56, 0.0  ;;  %v4880_v47 = vadd.f32 %v4848_v17, %v11731_v31  ;;  %v4881_v61 = vadd.f32 %v4849_v40, %v11731_v31 }
 0xf7d   :  { %v4952_v1 = vpack.c.bf16 %v4909_v32, %v4908_v3  ;;  %v4911_v13 = vmax.f32 %v4879_v21, 0.0  ;;  %v4882_v18 = vadd.f32 %v4850_v42, %v11731_v31  ;;  %v4883_v62 = vadd.f32 %v4851_v55, %v11731_v31 }
 0xf7e   :  { %v4912_v54 = vmax.f32 %v4880_v47, 0.0  ;;  %v4913_v59 = vmax.f32 %v4881_v61, 0.0  ;;  %v4884_v63 = vadd.f32 %v4852_v46, %v11731_v31  ;;  %v4885_v33 = vadd.f32 %v4853_v34, %v11731_v31  ;;  %v7168_v47 = vld [vmem:[#allocation5 + $0x230] sm:$0xff] }
 0xf7f   :  { %v4953_v15 = vpack.c.bf16 %v4911_v13, %v4910_v49  ;;  %v4914_v36 = vmax.f32 %v4882_v18, 0.0  ;;  %v4915_v23 = vmax.f32 %v4883_v62, 0.0  ;;  %v4886_v17 = vadd.f32 %v11776_v2, %v11731_v31  ;;  %v7167_v62 = vld [vmem:[#allocation5 + $0x228] sm:$0xff] }
 0xf80   :  { %v4954_v28 = vpack.c.bf16 %v4913_v59, %v4912_v54  ;;  %v4916_v40 = vmax.f32 %v4884_v63, 0.0  ;;  %v4917_v27 = vmax.f32 %v4885_v33, 0.0  ;;  %v4887_v42 = vadd.f32 %v11779_v11, %v11731_v31  ;;  %v11852_v33 = vld [vmem:[%s13570_s7 + $0x7] ss:$0 sm:$0xff] }
 0xf81   :  { %v4955_v12 = vpack.c.bf16 %v4915_v23, %v4914_v36  ;;  %v4918_v55 = vmax.f32 %v4886_v17, 0.0  ;;  %v4888_v19 = vadd.f32 %v11782_v9, %v11731_v31  ;;  %v4889_v46 = vadd.f32 %v11785_v44, %v11731_v31 }
 0xf82   :  { %v4956_v34 = vpack.c.bf16 %v4917_v27, %v4916_v40  ;;  %v4919_v0 = vmax.f32 %v4887_v42, 0.0  ;;  %v4890_v39 = vadd.f32 %v11788_v8, %v11731_v31  ;;  %v4891_v2 = vadd.f32 %v11791_v26, %v11731_v31  ;;  %v7166_v27 = vld [vmem:[#allocation5 + $0x220] sm:$0xff] }
 0xf83   :  { %v4920_v14 = vmax.f32 %v4888_v19, 0.0  ;;  %v4921_v51 = vmax.f32 %v4889_v46, 0.0  ;;  %v4892_v11 = vadd.f32 %v11794_v25, %v11731_v31  ;;  %v4893_v24 = vadd.f32 %v11741_v60, %v11731_v31 }
 0xf84   :  { %v4957_v9 = vpack.c.bf16 %v4919_v0, %v4918_v55  ;;  %v4922_v52 = vmax.f32 %v4890_v39, 0.0  ;;  %v4923_v6 = vmax.f32 %v4891_v2, 0.0 }
 0xf85   :  { %v4958_v44 = vpack.c.bf16 %v4921_v51, %v4920_v14  ;;  %v4924_v29 = vmax.f32 %v4892_v11, 0.0  ;;  %v4925_v5 = vmax.f32 %v4893_v24, 0.0 }
 0xf86   :  { %v4959_v22 = vpack.c.bf16 %v4923_v6, %v4922_v52 }
 0xf87   :  { %v4960_v41 = vpack.c.bf16 %v4925_v5, %v4924_v29  ;;  %v13898_v29 = vld [vmem:[#allocation30_spill] sm:$0xff] }
 0xf88   :  { %5025 = vmatmul.bf16.gmra.mxu1 %v11804_v48 }
 0xf98   :  { %5030 = vmatmul.bf16.gmra.mxu1 %v4947_v20 }
 0xfa8   :  { %5035 = vmatmul.bf16.gmra.mxu1 %v4948_v30 }
 0xfb8   :  { %5040 = vmatmul.bf16.gmra.mxu1 %v4949_v50  ;;  %v7169_v50 = vld [vmem:[#allocation5 + $0x238] sm:$0xff] }
 0xfb9   :  { %5498 = vmatpush.bf16.msrb.mxu2 %v7169_v50 }
 0xfbd   :  { %5499 = vmatpush.bf16.msrb.mxu2 %v7168_v47 }
 0xfc1   :  { %5500 = vmatpush.bf16.msrb.mxu2 %v7167_v62  ;;  %v13908_v62 = vld [vmem:[#allocation42_spill] sm:$0xff] }
 0xfc5   :  { %5501 = vmatpush.bf16.msrb.mxu2 %v7166_v27 }
 0xfc8   :  { %5045 = vmatmul.bf16.gmra.mxu1 %v4950_v45 }
 0xfd8   :  { %5050 = vmatmul.bf16.gmra.mxu1 %v4951_v43 }
 0xfe8   :  { %5055 = vmatmul.bf16.gmra.mxu1 %v4952_v1 }
 0xff5   :  { %v5021_v8 = vpop.f32.mrf.mxu1 }
 0xff6   :  { %v5022_v23 = vadd.f32 %v11852_v33, %v5021_v8 }
 0xff8   :  { %5060 = vmatmul.bf16.gmra.mxu1 %v4953_v15  ;;  %v11864_v42 = vadd.f32 %v5022_v23, %v10865_v57 }
 0xffd   :  { %v5023_v26 = vpop.f32.mrf.mxu1 }
 0xffe   :  { %v5024_v36 = vadd.f32 %v11852_v33, %v5023_v26 }
0x1005   :  { %v5026_v31 = vpop.f32.mrf.mxu1 }
0x1006   :  { %v5027_v17 = vadd.f32 %v11852_v33, %v5026_v31 }
0x1008   :  { %5065 = vmatmul.bf16.gmra.mxu1 %v4954_v28  ;;  %v11860_v28 = vadd.f32 %v5024_v36, %v10861_v58 }
0x100a   :  { %v5133_v46 = vadd.f32 %v11860_v28, %v11864_v42 }
0x100d   :  { %v5028_v60 = vpop.f32.mrf.mxu1 }
0x100e   :  { %v5029_v40 = vadd.f32 %v11852_v33, %v5028_v60  ;;  %v13902_v60 = vld [vmem:[#allocation32_spill] sm:$0xff] }
0x1010   :  { %v11875_v58 = vadd.f32 %v5029_v40, %v10876_v38  ;;  %v13910_v40 = vld [vmem:[#allocation45_spill] sm:$0xff] }
0x1015   :  { %v5031_v25 = vpop.f32.mrf.mxu1 }
0x1016   :  { %v5032_v55 = vadd.f32 %v11852_v33, %v5031_v25 }
0x1018   :  { %5070 = vmatmul.bf16.gmra.mxu1 %v4955_v12  ;;  %v11867_v12 = vadd.f32 %v5027_v17, %v10868_v35  ;;  %v11880_v57 = vadd.f32 %v5032_v55, %v10881_v10 }
0x101a   :  { %v5134_v0 = vadd.f32 %v5133_v46, %v11867_v12  ;;  %v13912_v46 = vld [vmem:[#allocation36_spill] sm:$0xff] }
0x101c   :  { %v5135_v39 = vadd.f32 %v5134_v0, %v11875_v58 }
0x101d   :  { %v5033_v4 = vpop.f32.mrf.mxu1 }
0x101e   :  { %v5136_v51 = vadd.f32 %v5135_v39, %v11880_v57 }
0x1025   :  { %v5036_v56 = vpop.f32.mrf.mxu1 }
0x1026   :  { %v5037_v35 = vadd.f32 %v11852_v33, %v5036_v56 }
0x1028   :  { %5075 = vmatmul.bf16.gmra.mxu1 %v4956_v34  ;;  %v5034_v34 = vadd.f32 %v11852_v33, %v5033_v4  ;;  %v11890_v38 = vadd.f32 %v5037_v35, %v10891_v16  ;;  %v13914_v35 = vld [vmem:[#allocation34_spill] sm:$0xff] }
0x102a   :  { %v11885_v2 = vadd.f32 %v5034_v34, %v10886_v7 }
0x102c   :  { %v5137_v10 = vadd.f32 %v5136_v51, %v11885_v2  ;;  %v13916_v51 = vld [vmem:[#allocation41_spill] sm:$0xff] }
0x102d   :  { %v5038_v3 = vpop.f32.mrf.mxu1 }
0x102e   :  { %v5039_v14 = vadd.f32 %v11852_v33, %v5038_v3  ;;  %v5138_v7 = vadd.f32 %v5137_v10, %v11890_v38  ;;  %v13904_v3 = vld [vmem:[#allocation37_spill] sm:$0xff] }
0x1035   :  { %v5041_v32 = vpop.f32.mrf.mxu1 }
0x1036   :  { %v5042_v11 = vadd.f32 %v11852_v33, %v5041_v32 }
0x1038   :  { %5080 = vmatmul.bf16.gmra.mxu1 %v4957_v9  ;;  %v11895_v9 = vadd.f32 %v5039_v14, %v10896_v53  ;;  %v11900_v6 = vadd.f32 %v5042_v11, %v10901_v37  ;;  %v13900_v53 = vld [vmem:[#allocation31_spill] sm:$0xff] }
0x103a   :  { %v5139_v16 = vadd.f32 %v5138_v7, %v11895_v9 }
0x103d   :  { %v5043_v48 = vpop.f32.mrf.mxu1 }
0x103e   :  { %v5044_v52 = vadd.f32 %v11852_v33, %v5043_v48 }
0x1040   :  { %v11905_v5 = vadd.f32 %v5044_v52, %v13898_v29 }
0x1042   :  { %13899 = vst [vmem:[#allocation23_spill] sm:$0xff] %v11905_v5 }
0x1045   :  { %v5046_v20 = vpop.f32.mrf.mxu1 }
0x1048   :  { %5085 = vmatmul.bf16.gmra.mxu1 %v4958_v44  ;;  %v5047_v44 = vadd.f32 %v11852_v33, %v5046_v20 }
0x104a   :  { %v11910_v8 = vadd.f32 %v5047_v44, %v13900_v53 }
0x104c   :  { %13901 = vst [vmem:[#allocation24_spill] sm:$0xff] %v11910_v8 }
0x104d   :  { %v5048_v30 = vpop.f32.mrf.mxu1 }
0x1055   :  { %v5051_v45 = vpop.f32.mrf.mxu1 }
0x1056   :  { %v5052_v26 = vadd.f32 %v11852_v33, %v5051_v45 }
0x1058   :  { %5090 = vmatmul.bf16.gmra.mxu1 %v4959_v22  ;;  %v5049_v22 = vadd.f32 %v11852_v33, %v5048_v30  ;;  %v11920_v32 = vadd.f32 %v5052_v26, %v13904_v3  ;;  %v13906_v30 = vld [vmem:[#allocation48_spill] sm:$0xff] }
0x105a   :  { %v11915_v25 = vadd.f32 %v5049_v22, %v13902_v60  ;;  %13905 = vst [vmem:[#allocation26_spill] sm:$0xff] %v11920_v32  ;;  %v13924_v60 = vld [vmem:[#allocation12_spill] sm:$0xff] }
0x105c   :  { %13903 = vst [vmem:[#allocation25_spill] sm:$0xff] %v11915_v25 }
0x105d   :  { %v5053_v21 = vpop.f32.mrf.mxu1 }
0x105e   :  { %v5054_v4 = vadd.f32 %v11852_v33, %v5053_v21 }
0x1060   :  { %v11925_v50 = vadd.f32 %v5054_v4, %v13906_v30 }
0x1062   :  { %13907 = vst [vmem:[#allocation27_spill] sm:$0xff] %v11925_v50 }
0x1065   :  { %v5056_v43 = vpop.f32.mrf.mxu1 }
0x1066   :  { %v5057_v48 = vadd.f32 %v11852_v33, %v5056_v43 }
0x1068   :  { %5095 = vmatmul.bf16.gmra.mxu1 %v4960_v41  ;;  %v5140_v41 = vadd.f32 %v5139_v16, %v11900_v6  ;;  %v11930_v36 = vadd.f32 %v5057_v48, %v13908_v62 }
0x106a   :  { %v5141_v37 = vadd.f32 %v5140_v41, %v11905_v5  ;;  %13909 = vst [vmem:[#allocation28_spill] sm:$0xff] %v11930_v36 }
0x106c   :  { %v5142_v56 = vadd.f32 %v5141_v37, %v11910_v8 }
0x106d   :  { %v5058_v49 = vpop.f32.mrf.mxu1 }
0x106e   :  { %v5143_v20 = vadd.f32 %v5142_v56, %v11915_v25  ;;  %v5059_v45 = vadd.f32 %v11852_v33, %v5058_v49 }
0x1070   :  { %v5144_v47 = vadd.f32 %v5143_v20, %v11920_v32  ;;  %v11935_v27 = vadd.f32 %v5059_v45, %v13910_v40  ;;  %v13928_v45 = vld [vmem:[#allocation14_spill] sm:$0xff] }
0x1072   :  { %v5145_v17 = vadd.f32 %v5144_v47, %v11925_v50  ;;  %13911 = vst [vmem:[#allocation29_spill] sm:$0xff] %v11935_v27 }
0x1074   :  { %v5146_v55 = vadd.f32 %v5145_v17, %v11930_v36 }
0x1075   :  { %v5061_v61 = vpop.f32.mrf.mxu1 }
0x1076   :  { %v5062_v21 = vadd.f32 %v11852_v33, %v5061_v61  ;;  %v5147_v0 = vadd.f32 %v5146_v55, %v11935_v27 }
0x1078   :  { %v11940_v34 = vadd.f32 %v5062_v21, %v13912_v46  ;;  %v13930_v21 = vld [vmem:[#allocation15_spill] sm:$0xff] }
0x107a   :  { %13913 = vst [vmem:[#allocation38_spill] sm:$0xff] %v11940_v34  ;;  %v5148_v14 = vadd.f32 %v5147_v0, %v11940_v34  ;;  %v13934_v0 = vld [vmem:[#allocation17_spill] sm:$0xff] }
0x107d   :  { %v5063_v1 = vpop.f32.mrf.mxu1 }
0x107e   :  { %v5064_v43 = vadd.f32 %v11852_v33, %v5063_v1 }
0x1080   :  { %v11946_v61 = vadd.f32 %v5064_v43, %v13914_v35  ;;  %v13932_v43 = vld [vmem:[#allocation16_spill] sm:$0xff] }
0x1082   :  { %13915 = vst [vmem:[#allocation47_spill] sm:$0xff] %v11946_v61  ;;  %v5149_v52 = vadd.f32 %v5148_v14, %v11946_v61  ;;  %v13936_v14 = vld [vmem:[#allocation18_spill] sm:$0xff] }
0x1085   :  { %v11839_v13 = vpop.f32.mrf.mxu1 }
0x1086   :  { %v5067_v49 = vadd.f32 %v11852_v33, %v11839_v13  ;;  %v13918_v13 = vld [vmem:[#allocation9_spill] sm:$0xff] }
0x1088   :  { %v11952_v1 = vadd.f32 %v5067_v49, %v13916_v51 }
0x108a   :  { %13917 = vst [vmem:[#allocation35_spill] sm:$0xff] %v11952_v1  ;;  %v5150_v16 = vadd.f32 %v5149_v52, %v11952_v1  ;;  %v13938_v52 = vld [vmem:[#allocation19_spill] sm:$0xff] }
0x108d   :  { %v11841_v18 = vpop.f32.mrf.mxu1 }
0x108e   :  { %v5069_v39 = vadd.f32 %v11852_v33, %v11841_v18  ;;  %v13920_v18 = vld [vmem:[#allocation10_spill] sm:$0xff] }
0x1090   :  { %v11958_v7 = vadd.f32 %v5069_v39, %v13918_v13 }
0x1092   :  { %13919 = vst [vmem:[#allocation43_spill] sm:$0xff] %v11958_v7  ;;  %v5151_v41 = vadd.f32 %v5150_v16, %v11958_v7 }
0x1095   :  { %v11843_v54 = vpop.f32.mrf.mxu1 }
0x1096   :  { %v5072_v11 = vadd.f32 %v11852_v33, %v11843_v54  ;;  %v13922_v54 = vld [vmem:[#allocation11_spill] sm:$0xff] }
0x1098   :  { %v11964_v29 = vadd.f32 %v5072_v11, %v13920_v18 }
0x109a   :  { %13921 = vst [vmem:[#allocation30_spill] sm:$0xff] %v11964_v29  ;;  %v5152_v37 = vadd.f32 %v5151_v41, %v11964_v29 }
0x109d   :  { %v11845_v59 = vpop.f32.mrf.mxu1 }
0x109e   :  { %v5074_v44 = vadd.f32 %v11852_v33, %v11845_v59 }
0x10a0   :  { %v11970_v53 = vadd.f32 %v5074_v44, %v13922_v54  ;;  %v13940_v44 = vld [vmem:[#allocation20_spill] sm:$0xff] }
0x10a2   :  { %13923 = vst [vmem:[#allocation31_spill] sm:$0xff] %v11970_v53  ;;  %v5153_v3 = vadd.f32 %v5152_v37, %v11970_v53 }
0x10a5   :  { %v11847_v63 = vpop.f32.mrf.mxu1 }
0x10a6   :  { %v5077_v22 = vadd.f32 %v11852_v33, %v11847_v63  ;;  %v13926_v63 = vld [vmem:[#allocation13_spill] sm:$0xff] }
0x10a8   :  { %v11976_v59 = vadd.f32 %v5077_v22, %v13924_v60 }
0x10aa   :  { %13925 = vst [vmem:[#allocation32_spill] sm:$0xff] %v11976_v59  ;;  %v5154_v30 = vadd.f32 %v5153_v3, %v11976_v59 }
0x10ad   :  { %v11854_v15 = vpop.f32.mrf.mxu1 }
0x10ae   :  { %v5079_v26 = vadd.f32 %v11852_v33, %v11854_v15 }
0x10b0   :  { %v11982_v48 = vadd.f32 %v5079_v26, %v13926_v63  ;;  %v13942_v26 = vld [vmem:[#allocation21_spill] sm:$0xff] }
0x10b2   :  { %13927 = vst [vmem:[#allocation37_spill] sm:$0xff] %v11982_v48  ;;  %v5155_v62 = vadd.f32 %v5154_v30, %v11982_v48 }
0x10b5   :  { %v11870_v19 = vpop.f32.mrf.mxu1 }
0x10b6   :  { %v5082_v4 = vadd.f32 %v11852_v33, %v11870_v19 }
0x10b8   :  { %v11987_v15 = vadd.f32 %v5082_v4, %v13928_v45  ;;  %v13944_v45 = vld [vmem:[#allocation33_spill] sm:$0xff] }
0x10ba   :  { %13929 = vst [vmem:[#allocation48_spill] sm:$0xff] %v11987_v15  ;;  %v5156_v40 = vadd.f32 %v5155_v62, %v11987_v15 }
0x10bd   :  { %v5083_v24 = vpop.f32.mrf.mxu1 }
0x10be   :  { %v5084_v20 = vadd.f32 %v11852_v33, %v5083_v24 }
0x10c0   :  { %v11992_v17 = vadd.f32 %v5084_v20, %v13930_v21 }
0x10c2   :  { %13931 = vst [vmem:[#allocation42_spill] sm:$0xff] %v11992_v17  ;;  %v5157_v49 = vadd.f32 %v5156_v40, %v11992_v17 }
0x10c5   :  { %v5086_v31 = vpop.f32.mrf.mxu1 }
0x10c6   :  { %v5087_v47 = vadd.f32 %v11852_v33, %v5086_v31 }
0x10c8   :  { %v11997_v55 = vadd.f32 %v5087_v47, %v13932_v43 }
0x10ca   :  { %13933 = vst [vmem:[#allocation45_spill] sm:$0xff] %v11997_v55  ;;  %v5158_v39 = vadd.f32 %v5157_v49, %v11997_v55 }
0x10cd   :  { %v5088_v23 = vpop.f32.mrf.mxu1 }
0x10ce   :  { %v5089_v19 = vadd.f32 %v11852_v33, %v5088_v23 }
0x10d0   :  { %v12002_v35 = vadd.f32 %v5089_v19, %v13934_v0 }
0x10d2   :  { %13935 = vst [vmem:[#allocation36_spill] sm:$0xff] %v12002_v35  ;;  %v5159_v11 = vadd.f32 %v5158_v39, %v12002_v35 }
0x10d5   :  { %v5091_v10 = vpop.f32.mrf.mxu1 }
0x10d6   :  { %v5092_v24 = vadd.f32 %v11852_v33, %v5091_v10 }
0x10d8   :  { %v12007_v51 = vadd.f32 %v5092_v24, %v13936_v14 }
0x10da   :  { %13937 = vst [vmem:[#allocation34_spill] sm:$0xff] %v12007_v51  ;;  %v5160_v10 = vadd.f32 %v5159_v11, %v12007_v51 }
0x10dd   :  { %v5093_v56 = vpop.f32.mrf.mxu1 }
0x10de   :  { %v5094_v31 = vadd.f32 %v11852_v33, %v5093_v56 }
0x10e0   :  { %v12012_v13 = vadd.f32 %v5094_v31, %v13938_v52 }
0x10e2   :  { %13939 = vst [vmem:[#allocation41_spill] sm:$0xff] %v12012_v13  ;;  %v5161_v22 = vadd.f32 %v5160_v10, %v12012_v13 }
0x10e5   :  { %v5096_v46 = vpop.f32.mrf.mxu1 }
0x10e6   :  { %v5097_v23 = vadd.f32 %v11852_v33, %v5096_v46 }
0x10e8   :  { %v12016_v16 = vadd.f32 %v5097_v23, %v13940_v44 }
0x10ea   :  { %13941 = vst [vmem:[#allocation9_spill] sm:$0xff] %v12016_v16  ;;  %v5162_v54 = vadd.f32 %v5161_v22, %v12016_v16 }
0x10ed   :  { %v5098_v18 = vpop.f32.mrf.mxu1 }
0x10ee   :  { %v5099_v41 = vadd.f32 %v11852_v33, %v5098_v18 }
0x10f0   :  { %v12022_v37 = vadd.f32 %v5099_v41, %v13942_v26 }
0x10f2   :  { %13943 = vst [vmem:[#allocation10_spill] sm:$0xff] %v12022_v37  ;;  %v5163_v60 = vadd.f32 %v5162_v54, %v12022_v37 }
0x10f4   :  { %v5164_v4 = vrot.slane %v5163_v60, 4 }
0x10f6   :  { %v5165_v56 = vadd.f32 %v5164_v4, %v5163_v60 }
0x10f8   :  { %v5166_v3 = vrot.slane %v5165_v56, 2 }
0x10fa   :  { %v5167_v63 = vadd.f32 %v5166_v3, %v5165_v56 }
0x10fc   :  { %v5168_v20 = vrot.slane %v5167_v63, 1 }
0x10fe   :  { %v5169_v30 = vadd.f32 %v5168_v20, %v5167_v63 }
0x1100   :  { %v12026_v47 = vmul.f32 %v5169_v30, %v13944_v45 }
0x1102   :  { %v12030_v62 = vsub.f32 %v11864_v42, %v12026_v47  ;;  %v12034_v33 = vsub.f32 %v11860_v28, %v12026_v47  ;;  %v12038_v21 = vsub.f32 %v11867_v12, %v12026_v47  ;;  %v12046_v43 = vsub.f32 %v11875_v58, %v12026_v47 }
0x1103   :  { %v12050_v24 = vsub.f32 %v11880_v57, %v12026_v47  ;;  %v12056_v0 = vsub.f32 %v11885_v2, %v12026_v47  ;;  %v12062_v14 = vsub.f32 %v11890_v38, %v12026_v47  ;;  %v12068_v52 = vsub.f32 %v11895_v9, %v12026_v47 }
0x1104   :  { %v5203_v19 = vmul.f32 %v12030_v62, %v12030_v62  ;;  %v5204_v40 = vmul.f32 %v12034_v33, %v12034_v33  ;;  %v5205_v46 = vmul.f32 %v12038_v21, %v12038_v21  ;;  %v5206_v31 = vmul.f32 %v12046_v43, %v12046_v43 }
0x1105   :  { %v5207_v23 = vmul.f32 %v12050_v24, %v12050_v24  ;;  %v5208_v10 = vmul.f32 %v12056_v0, %v12056_v0  ;;  %v12074_v18 = vsub.f32 %v11900_v6, %v12026_v47  ;;  %v5209_v22 = vmul.f32 %v12062_v14, %v12062_v14 }
0x1106   :  { %v5235_v49 = vadd.f32 %v5204_v40, %v5203_v19  ;;  %v12080_v54 = vsub.f32 %v11905_v5, %v12026_v47  ;;  %v5210_v26 = vmul.f32 %v12068_v52, %v12068_v52  ;;  %v12086_v4 = vsub.f32 %v11910_v8, %v12026_v47 }
0x1107   :  { %v5211_v56 = vmul.f32 %v12074_v18, %v12074_v18  ;;  %v12092_v63 = vsub.f32 %v11915_v25, %v12026_v47  ;;  %v12098_v19 = vsub.f32 %v11920_v32, %v12026_v47  ;;  %v7162_v32 = vld [vmem:[#allocation5 + $0x200] sm:$0xff] }
0x1108   :  { %v5236_v39 = vadd.f32 %v5235_v49, %v5205_v46  ;;  %v5212_v20 = vmul.f32 %v12080_v54, %v12080_v54  ;;  %v5213_v40 = vmul.f32 %v12086_v4, %v12086_v4  ;;  %v12104_v49 = vsub.f32 %v11925_v50, %v12026_v47 }
0x110a   :  { %v5237_v11 = vadd.f32 %v5236_v39, %v5206_v31  ;;  %v5214_v31 = vmul.f32 %v12092_v63, %v12092_v63 }
0x110c   :  { %v5238_v44 = vadd.f32 %v5237_v11, %v5207_v23  ;;  %v12110_v23 = vsub.f32 %v11930_v36, %v12026_v47  ;;  %v5215_v11 = vmul.f32 %v12098_v19, %v12098_v19 }
0x110e   :  { %v5239_v41 = vadd.f32 %v5238_v44, %v5208_v10  ;;  %v12116_v44 = vsub.f32 %v11935_v27, %v12026_v47  ;;  %v7165_v27 = vld [vmem:[#allocation5 + $0x218] sm:$0xff] }
0x110f   :  { %5502 = vmatpush.bf16.msrb.mxu2 %v7165_v27  ;;  %v13945_v27 = vld [vmem:[#allocation22_spill] sm:$0xff] }
0x1110   :  { %v5240_v60 = vadd.f32 %v5239_v41, %v5209_v22  ;;  %v5216_v22 = vmul.f32 %v12104_v49, %v12104_v49 }
0x1112   :  { %v5241_v3 = vadd.f32 %v5240_v60, %v5210_v26  ;;  %v12122_v26 = vsub.f32 %v11940_v34, %v12026_v47  ;;  %v5217_v60 = vmul.f32 %v12110_v23, %v12110_v23 }
0x1114   :  { %v5242_v30 = vadd.f32 %v5241_v3, %v5211_v56  ;;  %v12128_v3 = vsub.f32 %v11946_v61, %v12026_v47 }
0x1116   :  { %v5243_v46 = vadd.f32 %v5242_v30, %v5212_v20  ;;  %v5218_v20 = vmul.f32 %v12116_v44, %v12116_v44 }
0x1118   :  { %v5244_v39 = vadd.f32 %v5243_v46, %v5213_v40  ;;  %v12134_v40 = vsub.f32 %v11952_v1, %v12026_v47  ;;  %v5219_v46 = vmul.f32 %v12122_v26, %v12122_v26 }
0x111a   :  { %v5245_v10 = vadd.f32 %v5244_v39, %v5214_v31  ;;  %v12140_v39 = vsub.f32 %v11958_v7, %v12026_v47  ;;  %v12158_v7 = vsub.f32 %v11976_v59, %v12026_v47  ;;  %v12176_v59 = vsub.f32 %v11992_v17, %v12026_v47 }
0x111b   :  { %v12194_v17 = vsub.f32 %v12007_v51, %v12026_v47  ;;  %v5202_v51 = vsub.f32 %v12022_v37, %v12026_v47  ;;  %v7163_v37 = vld [vmem:[#allocation5 + $0x208] sm:$0xff] }
0x111c   :  { %v5246_v41 = vadd.f32 %v5245_v10, %v5215_v11  ;;  %v5220_v11 = vmul.f32 %v12128_v3, %v12128_v3 }
0x111e   :  { %v5247_v56 = vadd.f32 %v5246_v41, %v5216_v22  ;;  %v12146_v22 = vsub.f32 %v11964_v29, %v12026_v47  ;;  %v5221_v41 = vmul.f32 %v12134_v40, %v12134_v40  ;;  %v12164_v29 = vsub.f32 %v11982_v48, %v12026_v47 }
0x111f   :  { %v12182_v48 = vsub.f32 %v11997_v55, %v12026_v47  ;;  %v12200_v55 = vsub.f32 %v12012_v13, %v12026_v47 }
0x1120   :  { %v5248_v30 = vadd.f32 %v5247_v56, %v5217_v60  ;;  %v12152_v56 = vsub.f32 %v11970_v53, %v12026_v47  ;;  %v12170_v53 = vsub.f32 %v11987_v15, %v12026_v47  ;;  %v12188_v15 = vsub.f32 %v12002_v35, %v12026_v47 }
0x1121   :  { %v12206_v35 = vsub.f32 %v12016_v16, %v12026_v47 }
0x1122   :  { %v5249_v31 = vadd.f32 %v5248_v30, %v5218_v20  ;;  %v5222_v20 = vmul.f32 %v12140_v39, %v12140_v39 }
0x1123   :  { %v5233_v13 = vmul.f32 %v12206_v35, %v12206_v35 }
0x1124   :  { %v5250_v10 = vadd.f32 %v5249_v31, %v5219_v46  ;;  %v5223_v46 = vmul.f32 %v12146_v22, %v12146_v22 }
0x1126   :  { %v5251_v60 = vadd.f32 %v5250_v10, %v5220_v11  ;;  %v5224_v11 = vmul.f32 %v12152_v56, %v12152_v56 }
0x1128   :  { %v5252_v30 = vadd.f32 %v5251_v60, %v5221_v41  ;;  %v5225_v41 = vmul.f32 %v12158_v7, %v12158_v7 }
0x112a   :  { %v5253_v31 = vadd.f32 %v5252_v30, %v5222_v20  ;;  %v5226_v20 = vmul.f32 %v12164_v29, %v12164_v29 }
0x112c   :  { %v5254_v10 = vadd.f32 %v5253_v31, %v5223_v46  ;;  %v5227_v46 = vmul.f32 %v12170_v53, %v12170_v53 }
0x112e   :  { %v5255_v60 = vadd.f32 %v5254_v10, %v5224_v11  ;;  %v5228_v11 = vmul.f32 %v12176_v59, %v12176_v59 }
0x1130   :  { %v5256_v30 = vadd.f32 %v5255_v60, %v5225_v41  ;;  %v5229_v41 = vmul.f32 %v12182_v48, %v12182_v48 }
0x1132   :  { %v5257_v31 = vadd.f32 %v5256_v30, %v5226_v20  ;;  %v5230_v20 = vmul.f32 %v12188_v15, %v12188_v15 }
0x1134   :  { %v5258_v10 = vadd.f32 %v5257_v31, %v5227_v46  ;;  %v5231_v46 = vmul.f32 %v12194_v17, %v12194_v17 }
0x1136   :  { %v5259_v60 = vadd.f32 %v5258_v10, %v5228_v11  ;;  %v5232_v11 = vmul.f32 %v12200_v55, %v12200_v55 }
0x1138   :  { %v5260_v30 = vadd.f32 %v5259_v60, %v5229_v41  ;;  %v5234_v41 = vmul.f32 %v5202_v51, %v5202_v51 }
0x113a   :  { %v5261_v31 = vadd.f32 %v5260_v30, %v5230_v20  ;;  %v7164_v30 = vld [vmem:[#allocation5 + $0x210] sm:$0xff] }
0x113b   :  { %5503 = vmatpush.bf16.msrb.mxu2 %v7164_v30 }
0x113c   :  { %v5262_v10 = vadd.f32 %v5261_v31, %v5231_v46 }
0x113e   :  { %v5263_v1 = vadd.f32 %v5262_v10, %v5232_v11  ;;  %v13946_v11 = vld [vmem:[#allocation39_spill] sm:$0xff] }
0x113f   :  { %5504 = vmatpush.bf16.msrb.mxu2 %v7163_v37  ;;  %v13947_v37 = vld [vmem:[#allocation50_spill] sm:$0xff] }
0x1140   :  { %v5264_v60 = vadd.f32 %v5263_v1, %v5233_v13 }
0x1142   :  { %v5265_v61 = vadd.f32 %v5264_v60, %v5234_v41 }
0x1143   :  { %5505 = vmatpush.bf16.msrb.mxu2 %v7162_v32 }
0x1144   :  { %v5266_v16 = vrot.slane %v5265_v61, 4 }
0x1146   :  { %v5267_v34 = vadd.f32 %v5266_v16, %v5265_v61  ;;  %v12220_v61 = vld [vmem:[%s13568_s5 + $0x8] sm:$0xff] }
0x1148   :  { %v5268_v36 = vrot.slane %v5267_v34, 2 }
0x114a   :  { %v5269_v20 = vadd.f32 %v5268_v36, %v5267_v34  ;;  %v778_v36 = vperm.slane %v12220_v61, 0  ;;  %v789_v34 = vperm.slane %v13945_v27, 3 }
0x114c   :  { %v5270_v50 = vrot.slane %v5269_v20, 1  ;;  %v1152_v10 = vadd.f32 %v13946_v11, %v778_v36  ;;  %v1295_v41 = vadd.f32 %v13947_v37, %v789_v34 }
0x114e   :  { %v5271_v47 = vadd.f32 %v5270_v50, %v5269_v20  ;;  %v12226_v20 = vperm.slane %v1152_v10, 0  ;;  %v12228_v30 = vperm.slane %v1152_v10, 1 }
0x1150   :  { %v5272_v46 = vmul.f32 %v5271_v47, %v13944_v45  ;;  %v12230_v47 = vperm.slane %v1295_v41, 0 }
0x1152   :  { %v5273_v31 = vadd.f32 1e-05, %v5272_v46  ;;  %v12232_v46 = vperm.slane %v1295_v41, 1 }
0x1154   :  { %7280 = vrsqrt.f32 %v5273_v31  ;;  %vm5280_vm11 = vweird.f32 %v5273_v31 }
0x115a   :  { %v7281_v1 = vpop.eup %7280 }
0x115b   :  { %v5275_v13 = vmul.f32 %v7281_v1, %v5273_v31  ;;  %vm5281_vm10 = vweird.f32 %v7281_v1 }
0x115c   :  { %vm5282_vm12 = vmor %vm5280_vm11, %vm5281_vm10 }
0x115d   :  { %v5276_v50 = vmul.f32 %v7281_v1, %v5275_v13 }
0x115f   :  { %v5277_v16 = vmul.f32 0.5, %v5276_v50 }
0x1161   :  { %v5278_v60 = vsub.f32 1.5, %v5277_v16 }
0x1163   :  { %v5279_v32 = vmul.f32 %v7281_v1, %v5278_v60 }
0x1165   :  { %v5283_v27 = vsel %vm5282_vm12, %v7281_v1, %v5279_v32 }
0x1166   :  { %v12234_v13 = vmul.f32 %v5283_v27, %v5202_v51  ;;  %v5284_v36 = vmul.f32 %v5283_v27, %v12030_v62  ;;  %v5285_v34 = vmul.f32 %v5283_v27, %v12034_v33  ;;  %v5286_v50 = vmul.f32 %v5283_v27, %v12038_v21 }
0x1167   :  { %v5287_v31 = vmul.f32 %v5283_v27, %v12046_v43  ;;  %v5288_v16 = vmul.f32 %v5283_v27, %v12050_v24  ;;  %v5289_v11 = vmul.f32 %v5283_v27, %v12056_v0  ;;  %v5290_v10 = vmul.f32 %v5283_v27, %v12062_v14 }
0x1168   :  { %v5291_v37 = vmul.f32 %v5283_v27, %v12068_v52  ;;  %v5292_v1 = vmul.f32 %v5283_v27, %v12074_v18  ;;  %v5293_v51 = vmul.f32 %v5283_v27, %v12080_v54  ;;  %v5294_v62 = vmul.f32 %v5283_v27, %v12086_v4 }
0x1169   :  { %v5295_v33 = vmul.f32 %v5283_v27, %v12092_v63  ;;  %v5296_v21 = vmul.f32 %v5283_v27, %v12098_v19  ;;  %v5297_v43 = vmul.f32 %v5283_v27, %v12104_v49  ;;  %v5298_v24 = vmul.f32 %v5283_v27, %v12110_v23 }
0x116a   :  { %v5299_v0 = vmul.f32 %v5283_v27, %v12116_v44  ;;  %v12253_v14 = vmul.f32 %v5283_v27, %v12122_v26  ;;  %v12256_v52 = vmul.f32 %v5283_v27, %v12128_v3  ;;  %v12259_v18 = vmul.f32 %v5283_v27, %v12134_v40 }
0x116b   :  { %v12262_v54 = vmul.f32 %v5283_v27, %v12140_v39  ;;  %v12265_v4 = vmul.f32 %v5283_v27, %v12146_v22  ;;  %v12268_v63 = vmul.f32 %v5283_v27, %v12152_v56  ;;  %v12271_v19 = vmul.f32 %v5283_v27, %v12158_v7 }
0x116c   :  { %v12274_v49 = vmul.f32 %v5283_v27, %v12164_v29  ;;  %v12277_v23 = vmul.f32 %v5283_v27, %v12170_v53  ;;  %v12280_v44 = vmul.f32 %v5283_v27, %v12176_v59  ;;  %v12283_v26 = vmul.f32 %v5283_v27, %v12182_v48 }
0x116d   :  { %v12286_v3 = vmul.f32 %v5283_v27, %v12188_v15  ;;  %v12289_v40 = vmul.f32 %v5283_v27, %v12194_v17  ;;  %v12292_v7 = vmul.f32 %v5283_v27, %v12200_v55  ;;  %v12295_v29 = vmul.f32 %v5283_v27, %v12206_v35 }
0x116e   :  { %v5316_v53 = vmul.f32 %v5284_v36, %v12226_v20  ;;  %v5317_v59 = vmul.f32 %v5285_v34, %v12226_v20  ;;  %v5318_v39 = vmul.f32 %v5286_v50, %v12226_v20  ;;  %v5319_v48 = vmul.f32 %v5287_v31, %v12226_v20 }
0x116f   :  { %v5320_v15 = vmul.f32 %v5288_v16, %v12226_v20  ;;  %v5321_v22 = vmul.f32 %v5289_v11, %v12226_v20  ;;  %v5322_v17 = vmul.f32 %v5290_v10, %v12226_v20  ;;  %v5323_v55 = vmul.f32 %v5291_v37, %v12226_v20 }
0x1170   :  { %v5348_v56 = vadd.f32 %v5316_v53, %v12230_v47  ;;  %v5349_v35 = vadd.f32 %v5317_v59, %v12230_v47  ;;  %v5350_v41 = vadd.f32 %v5318_v39, %v12230_v47  ;;  %v5351_v60 = vadd.f32 %v5319_v48, %v12230_v47 }
0x1171   :  { %v5352_v32 = vadd.f32 %v5320_v15, %v12230_v47  ;;  %v5353_v27 = vadd.f32 %v5321_v22, %v12230_v47  ;;  %v5354_v36 = vadd.f32 %v5322_v17, %v12230_v47  ;;  %v5355_v34 = vadd.f32 %v5323_v55, %v12230_v47 }
0x1172   :  { %v5380_v50 = vmax.f32 %v5348_v56, 0.0  ;;  %v5381_v31 = vmax.f32 %v5349_v35, 0.0  ;;  %v5382_v16 = vmax.f32 %v5350_v41, 0.0  ;;  %v5383_v11 = vmax.f32 %v5351_v60, 0.0 }
0x1173   :  { %v5384_v10 = vmax.f32 %v5352_v32, 0.0  ;;  %v5385_v37 = vmax.f32 %v5353_v27, 0.0  ;;  %v5386_v53 = vmax.f32 %v5354_v36, 0.0  ;;  %v5387_v59 = vmax.f32 %v5355_v34, 0.0 }
0x1174   :  { %v5431_v25 = vpack.c.bf16 %v5381_v31, %v5380_v50  ;;  %v12313_v39 = vpack.c.bf16 %v5383_v11, %v5382_v16  ;;  %v5324_v48 = vmul.f32 %v5292_v1, %v12226_v20  ;;  %v5325_v15 = vmul.f32 %v5293_v51, %v12226_v20 }
0x1175   :  { %v12317_v22 = vpack.c.bf16 %v5385_v37, %v5384_v10  ;;  %v12319_v17 = vpack.c.bf16 %v5387_v59, %v5386_v53  ;;  %v5326_v55 = vmul.f32 %v5294_v62, %v12226_v20  ;;  %v5327_v56 = vmul.f32 %v5295_v33, %v12226_v20 }
0x1176   :  { %5506 = vmatmul.bf16.vlgmr.msrb.gmra.mxu2 %v5431_v25  ;;  %v5356_v35 = vadd.f32 %v5324_v48, %v12230_v47  ;;  %v5357_v41 = vadd.f32 %v5325_v15, %v12230_v47  ;;  %v5328_v60 = vmul.f32 %v5296_v21, %v12226_v20  ;;  %v5329_v32 = vmul.f32 %v5297_v43, %v12226_v20 }
0x1177   :  { %v5358_v1 = vadd.f32 %v5326_v55, %v12230_v47  ;;  %v5359_v51 = vadd.f32 %v5327_v56, %v12230_v47  ;;  %v5330_v27 = vmul.f32 %v5298_v24, %v12226_v20  ;;  %v5331_v36 = vmul.f32 %v5299_v0, %v12226_v20 }
0x1178   :  { %v5388_v62 = vmax.f32 %v5356_v35, 0.0  ;;  %v5389_v34 = vmax.f32 %v5357_v41, 0.0  ;;  %v5360_v25 = vadd.f32 %v5328_v60, %v12230_v47  ;;  %v5361_v33 = vadd.f32 %v5329_v32, %v12230_v47 }
0x1179   :  { %v5390_v50 = vmax.f32 %v5358_v1, 0.0  ;;  %v5391_v31 = vmax.f32 %v5359_v51, 0.0  ;;  %v5362_v21 = vadd.f32 %v5330_v27, %v12230_v47  ;;  %v5363_v43 = vadd.f32 %v5331_v36, %v12230_v47 }
0x117a   :  { %v12335_v16 = vpack.c.bf16 %v5389_v34, %v5388_v62  ;;  %v5392_v11 = vmax.f32 %v5360_v25, 0.0  ;;  %v5393_v10 = vmax.f32 %v5361_v33, 0.0  ;;  %v5332_v24 = vmul.f32 %v12253_v14, %v12228_v30 }
0x117b   :  { %v12339_v20 = vpack.c.bf16 %v5391_v31, %v5390_v50  ;;  %v5394_v0 = vmax.f32 %v5362_v21, 0.0  ;;  %v5395_v37 = vmax.f32 %v5363_v43, 0.0  ;;  %v5333_v53 = vmul.f32 %v12256_v52, %v12228_v30 }
0x117c   :  { %v5437_v59 = vpack.c.bf16 %v5393_v10, %v5392_v11  ;;  %v5364_v48 = vadd.f32 %v5332_v24, %v12232_v46  ;;  %v5334_v47 = vmul.f32 %v12259_v18, %v12228_v30  ;;  %v5335_v15 = vmul.f32 %v12262_v54, %v12228_v30 }
0x117d   :  { %v5438_v55 = vpack.c.bf16 %v5395_v37, %v5394_v0  ;;  %v5365_v56 = vadd.f32 %v5333_v53, %v12232_v46  ;;  %v5336_v14 = vmul.f32 %v12265_v4, %v12228_v30  ;;  %v5337_v35 = vmul.f32 %v12268_v63, %v12228_v30 }
0x117e   :  { %v5396_v41 = vmax.f32 %v5364_v48, 0.0  ;;  %v5366_v52 = vadd.f32 %v5334_v47, %v12232_v46  ;;  %v5367_v60 = vadd.f32 %v5335_v15, %v12232_v46  ;;  %v5338_v18 = vmul.f32 %v12271_v19, %v12228_v30 }
0x117f   :  { %v5397_v32 = vmax.f32 %v5365_v56, 0.0  ;;  %v5368_v54 = vadd.f32 %v5336_v14, %v12232_v46  ;;  %v5369_v1 = vadd.f32 %v5337_v35, %v12232_v46  ;;  %v5339_v51 = vmul.f32 %v12274_v49, %v12228_v30 }
0x1180   :  { %v5398_v4 = vmax.f32 %v5366_v52, 0.0  ;;  %v5399_v27 = vmax.f32 %v5367_v60, 0.0  ;;  %v5370_v63 = vadd.f32 %v5338_v18, %v12232_v46  ;;  %v5340_v36 = vmul.f32 %v12277_v23, %v12228_v30 }
0x1181   :  { %v5439_v62 = vpack.c.bf16 %v5397_v32, %v5396_v41  ;;  %v5400_v34 = vmax.f32 %v5368_v54, 0.0  ;;  %v5401_v25 = vmax.f32 %v5369_v1, 0.0  ;;  %v5371_v19 = vadd.f32 %v5339_v51, %v12232_v46 }
0x1182   :  { %v5440_v33 = vpack.c.bf16 %v5399_v27, %v5398_v4  ;;  %v5402_v50 = vmax.f32 %v5370_v63, 0.0  ;;  %v5341_v31 = vmul.f32 %v12280_v44, %v12228_v30  ;;  %v5372_v21 = vadd.f32 %v5340_v36, %v12232_v46 }
0x1183   :  { %v5441_v49 = vpack.c.bf16 %v5401_v25, %v5400_v34  ;;  %v5403_v43 = vmax.f32 %v5371_v19, 0.0  ;;  %v5342_v11 = vmul.f32 %v12283_v26, %v12228_v30  ;;  %v5343_v23 = vmul.f32 %v12286_v3, %v12228_v30  ;;  %v7176_v25 = vld [vmem:[#allocation5 + $0x270] sm:$0xff] }
0x1184   :  { %v5373_v10 = vadd.f32 %v5341_v31, %v12232_v46  ;;  %v5404_v24 = vmax.f32 %v5372_v21, 0.0  ;;  %v5344_v0 = vmul.f32 %v12289_v40, %v12228_v30  ;;  %v5345_v37 = vmul.f32 %v12292_v7, %v12228_v30  ;;  %v7175_v21 = vld [vmem:[#allocation5 + $0x268] sm:$0xff] }
0x1185   :  { %v5442_v44 = vpack.c.bf16 %v5403_v43, %v5402_v50  ;;  %v5374_v53 = vadd.f32 %v5342_v11, %v12232_v46  ;;  %v5375_v48 = vadd.f32 %v5343_v23, %v12232_v46  ;;  %v5346_v26 = vmul.f32 %v12295_v29, %v12228_v30 }
0x1186   :  { %5511 = vmatmul.bf16.gmra.mxu2 %v12313_v39  ;;  %v5405_v3 = vmax.f32 %v5373_v10, 0.0  ;;  %v5376_v47 = vadd.f32 %v5344_v0, %v12232_v46  ;;  %v5377_v15 = vadd.f32 %v5345_v37, %v12232_v46  ;;  %v5347_v40 = vmul.f32 %v12234_v13, %v12228_v30  ;;  %v12395_v10 = vld [vmem:[%s13570_s7 + $0x8] ss:$0 sm:$0xff] }
0x1187   :  { %v5406_v56 = vmax.f32 %v5374_v53, 0.0  ;;  %v5407_v7 = vmax.f32 %v5375_v48, 0.0  ;;  %v5378_v14 = vadd.f32 %v5346_v26, %v12232_v46  ;;  %v7174_v0 = vld [vmem:[#allocation5 + $0x260] sm:$0xff] }
0x1188   :  { %v5443_v35 = vpack.c.bf16 %v5405_v3, %v5404_v24  ;;  %v5408_v41 = vmax.f32 %v5376_v47, 0.0  ;;  %v5409_v52 = vmax.f32 %v5377_v15, 0.0  ;;  %v5379_v60 = vadd.f32 %v5347_v40, %v12232_v46 }
0x1189   :  { %v5444_v29 = vpack.c.bf16 %v5407_v7, %v5406_v56  ;;  %v5410_v18 = vmax.f32 %v5378_v14, 0.0 }
0x118a   :  { %v5445_v39 = vpack.c.bf16 %v5409_v52, %v5408_v41  ;;  %v5411_v32 = vmax.f32 %v5379_v60, 0.0 }
0x118c   :  { %v5446_v54 = vpack.c.bf16 %v5411_v32, %v5410_v18 }
0x1196   :  { %5516 = vmatmul.bf16.gmra.mxu2 %v12317_v22 }
0x11a6   :  { %5521 = vmatmul.bf16.gmra.mxu2 %v12319_v17 }
0x11b6   :  { %5526 = vmatmul.bf16.gmra.mxu2 %v12335_v16 }
0x11c6   :  { %5531 = vmatmul.bf16.gmra.mxu2 %v12339_v20 }
0x11d6   :  { %5536 = vmatmul.bf16.gmra.mxu2 %v5437_v59  ;;  %v7177_v59 = vld [vmem:[#allocation5 + $0x278] sm:$0xff] }
0x11d7   :  { %5952 = vmatpush.bf16.msrb.mxu3 %v7177_v59 }
0x11db   :  { %5953 = vmatpush.bf16.msrb.mxu3 %v7176_v25 }
0x11df   :  { %5954 = vmatpush.bf16.msrb.mxu3 %v7175_v21 }
0x11e3   :  { %5955 = vmatpush.bf16.msrb.mxu3 %v7174_v0 }
0x11e6   :  { %5541 = vmatmul.bf16.gmra.mxu2 %v5438_v55 }
0x11f6   :  { %5546 = vmatmul.bf16.gmra.mxu2 %v5439_v62 }
0x11f9   :  { %v5507_v30 = vpop.f32.mrf.mxu2 }
0x11fa   :  { %v12401_v37 = vadd.f32 %v12395_v10, %v5507_v30 }
0x1201   :  { %v5509_v13 = vpop.f32.mrf.mxu2 }
0x1202   :  { %v12398_v24 = vadd.f32 %v12395_v10, %v5509_v13 }
0x1204   :  { %v5587_v53 = vadd.f32 %v12398_v24, %v12401_v37 }
0x1206   :  { %5551 = vmatmul.bf16.gmra.mxu2 %v5440_v33 }
0x1209   :  { %v5512_v46 = vpop.f32.mrf.mxu2 }
0x1211   :  { %v5514_v1 = vpop.f32.mrf.mxu2 }
0x1212   :  { %v12409_v48 = vadd.f32 %v12395_v10, %v5514_v1 }
0x1216   :  { %5556 = vmatmul.bf16.gmra.mxu2 %v5441_v49 }
0x1219   :  { %v5517_v51 = vpop.f32.mrf.mxu2 }
0x121a   :  { %v12413_v47 = vadd.f32 %v12395_v10, %v5517_v51 }
0x1221   :  { %v5519_v4 = vpop.f32.mrf.mxu2 }
0x1222   :  { %v12417_v40 = vadd.f32 %v12395_v10, %v5519_v4 }
0x1226   :  { %5561 = vmatmul.bf16.gmra.mxu2 %v5442_v44  ;;  %v12404_v44 = vadd.f32 %v12395_v10, %v5512_v46 }
0x1228   :  { %v5588_v3 = vadd.f32 %v5587_v53, %v12404_v44 }
0x1229   :  { %v5522_v27 = vpop.f32.mrf.mxu2 }
0x122a   :  { %v5589_v15 = vadd.f32 %v5588_v3, %v12409_v48  ;;  %v12421_v7 = vadd.f32 %v12395_v10, %v5522_v27 }
0x122c   :  { %v5590_v56 = vadd.f32 %v5589_v15, %v12413_v47 }
0x122e   :  { %v5591_v14 = vadd.f32 %v5590_v56, %v12417_v40 }
0x1230   :  { %v5592_v52 = vadd.f32 %v5591_v14, %v12421_v7 }
0x1231   :  { %v5524_v22 = vpop.f32.mrf.mxu2 }
0x1236   :  { %5566 = vmatmul.bf16.gmra.mxu2 %v5443_v35  ;;  %v12425_v35 = vadd.f32 %v12395_v10, %v5524_v22 }
0x1239   :  { %v5527_v17 = vpop.f32.mrf.mxu2 }
0x123a   :  { %v12429_v60 = vadd.f32 %v12395_v10, %v5527_v17 }
0x1241   :  { %v5529_v63 = vpop.f32.mrf.mxu2 }
0x1242   :  { %v12433_v18 = vadd.f32 %v12395_v10, %v5529_v63 }
0x1246   :  { %5571 = vmatmul.bf16.gmra.mxu2 %v5444_v29  ;;  %v5593_v29 = vadd.f32 %v5592_v52, %v12425_v35 }
0x1249   :  { %v5532_v16 = vpop.f32.mrf.mxu2 }
0x124a   :  { %v12437_v32 = vadd.f32 %v12395_v10, %v5532_v16 }
0x1251   :  { %v5534_v20 = vpop.f32.mrf.mxu2 }
0x1252   :  { %v12441_v30 = vadd.f32 %v12395_v10, %v5534_v20 }
0x1256   :  { %5576 = vmatmul.bf16.gmra.mxu2 %v5445_v39  ;;  %v5594_v39 = vadd.f32 %v5593_v29, %v12429_v60 }
0x1259   :  { %v5537_v55 = vpop.f32.mrf.mxu2 }
0x125a   :  { %v12445_v1 = vadd.f32 %v12395_v10, %v5537_v55 }
0x1261   :  { %v5539_v36 = vpop.f32.mrf.mxu2 }
0x1262   :  { %v12449_v4 = vadd.f32 %v12395_v10, %v5539_v36 }
0x1266   :  { %5581 = vmatmul.bf16.gmra.mxu2 %v5446_v54  ;;  %v5595_v54 = vadd.f32 %v5594_v39, %v12433_v18 }
0x1268   :  { %v5596_v46 = vadd.f32 %v5595_v54, %v12437_v32 }
0x1269   :  { %v5542_v62 = vpop.f32.mrf.mxu2 }
0x126a   :  { %v5597_v51 = vadd.f32 %v5596_v46, %v12441_v30  ;;  %v12453_v22 = vadd.f32 %v12395_v10, %v5542_v62 }
0x126c   :  { %v5598_v27 = vadd.f32 %v5597_v51, %v12445_v1 }
0x126e   :  { %v5599_v17 = vadd.f32 %v5598_v27, %v12449_v4 }
0x1270   :  { %v5600_v20 = vadd.f32 %v5599_v17, %v12453_v22 }
0x1271   :  { %v5544_v34 = vpop.f32.mrf.mxu2 }
0x1272   :  { %v12457_v63 = vadd.f32 %v12395_v10, %v5544_v34 }
0x1274   :  { %v5601_v55 = vadd.f32 %v5600_v20, %v12457_v63 }
0x1279   :  { %v5547_v19 = vpop.f32.mrf.mxu2 }
0x127a   :  { %v12461_v59 = vadd.f32 %v12395_v10, %v5547_v19 }
0x127c   :  { %v5602_v25 = vadd.f32 %v5601_v55, %v12461_v59 }
0x1281   :  { %v5549_v33 = vpop.f32.mrf.mxu2 }
0x1282   :  { %v12465_v36 = vadd.f32 %v12395_v10, %v5549_v33 }
0x1284   :  { %v5603_v21 = vadd.f32 %v5602_v25, %v12465_v36 }
0x1289   :  { %v5552_v50 = vpop.f32.mrf.mxu2 }
0x128a   :  { %v12469_v62 = vadd.f32 %v12395_v10, %v5552_v50 }
0x128c   :  { %v5604_v53 = vadd.f32 %v5603_v21, %v12469_v62 }
0x1291   :  { %v5554_v31 = vpop.f32.mrf.mxu2 }
0x1292   :  { %v12473_v34 = vadd.f32 %v12395_v10, %v5554_v31 }
0x1294   :  { %v5605_v3 = vadd.f32 %v5604_v53, %v12473_v34 }
0x1299   :  { %v5557_v49 = vpop.f32.mrf.mxu2 }
0x129a   :  { %v12477_v19 = vadd.f32 %v12395_v10, %v5557_v49 }
0x129c   :  { %v5606_v15 = vadd.f32 %v5605_v3, %v12477_v19 }
0x12a1   :  { %v5559_v43 = vpop.f32.mrf.mxu2 }
0x12a2   :  { %v12481_v33 = vadd.f32 %v12395_v10, %v5559_v43 }
0x12a4   :  { %v5607_v56 = vadd.f32 %v5606_v15, %v12481_v33 }
0x12a9   :  { %v5562_v11 = vpop.f32.mrf.mxu2 }
0x12aa   :  { %v12485_v50 = vadd.f32 %v12395_v10, %v5562_v11 }
0x12ac   :  { %v5608_v52 = vadd.f32 %v5607_v56, %v12485_v50 }
0x12b1   :  { %v5564_v23 = vpop.f32.mrf.mxu2 }
0x12b2   :  { %v12489_v31 = vadd.f32 %v12395_v10, %v5564_v23 }
0x12b4   :  { %v5609_v29 = vadd.f32 %v5608_v52, %v12489_v31 }
0x12b9   :  { %v5567_v26 = vpop.f32.mrf.mxu2 }
0x12ba   :  { %v12493_v49 = vadd.f32 %v12395_v10, %v5567_v26 }
0x12bc   :  { %v5610_v39 = vadd.f32 %v5609_v29, %v12493_v49 }
0x12c1   :  { %v5569_v41 = vpop.f32.mrf.mxu2 }
0x12c2   :  { %v12497_v43 = vadd.f32 %v12395_v10, %v5569_v41 }
0x12c4   :  { %v5611_v54 = vadd.f32 %v5610_v39, %v12497_v43 }
0x12c9   :  { %v5572_v13 = vpop.f32.mrf.mxu2 }
0x12ca   :  { %v12501_v11 = vadd.f32 %v12395_v10, %v5572_v13 }
0x12cc   :  { %v5612_v51 = vadd.f32 %v5611_v54, %v12501_v11 }
0x12d1   :  { %v5574_v16 = vpop.f32.mrf.mxu2 }
0x12d2   :  { %v12505_v23 = vadd.f32 %v12395_v10, %v5574_v16 }
0x12d4   :  { %v5613_v27 = vadd.f32 %v5612_v51, %v12505_v23 }
0x12d9   :  { %v5577_v0 = vpop.f32.mrf.mxu2 }
0x12da   :  { %v12509_v26 = vadd.f32 %v12395_v10, %v5577_v0 }
0x12dc   :  { %v5614_v17 = vadd.f32 %v5613_v27, %v12509_v26 }
0x12e1   :  { %v5579_v14 = vpop.f32.mrf.mxu2 }
0x12e2   :  { %v12513_v41 = vadd.f32 %v12395_v10, %v5579_v14 }
0x12e4   :  { %v5615_v20 = vadd.f32 %v5614_v17, %v12513_v41 }
0x12e9   :  { %v5582_v46 = vpop.f32.mrf.mxu2 }
0x12ea   :  { %v12517_v13 = vadd.f32 %v12395_v10, %v5582_v46 }
0x12ec   :  { %v5616_v55 = vadd.f32 %v5615_v20, %v12517_v13 }
0x12f1   :  { %v5584_v16 = vpop.f32.mrf.mxu2 }
0x12f2   :  { %v12522_v25 = vadd.f32 %v12395_v10, %v5584_v16 }
0x12f4   :  { %v5617_v21 = vadd.f32 %v5616_v55, %v12522_v25 }
0x12f6   :  { %v5618_v0 = vrot.slane %v5617_v21, 4 }
0x12f8   :  { %v5619_v53 = vadd.f32 %v5618_v0, %v5617_v21 }
0x12fa   :  { %v5620_v3 = vrot.slane %v5619_v53, 2 }
0x12fc   :  { %v5621_v15 = vadd.f32 %v5620_v3, %v5619_v53 }
0x12fe   :  { %v5622_v56 = vrot.slane %v5621_v15, 1 }
0x1300   :  { %v5623_v14 = vadd.f32 %v5622_v56, %v5621_v15 }
0x1302   :  { %v12526_v52 = vmul.f32 %v5623_v14, %v13944_v45 }
0x1304   :  { %v12530_v29 = vsub.f32 %v12401_v37, %v12526_v52  ;;  %v12534_v39 = vsub.f32 %v12398_v24, %v12526_v52  ;;  %v12538_v10 = vsub.f32 %v12404_v44, %v12526_v52  ;;  %v12546_v51 = vsub.f32 %v12409_v48, %v12526_v52 }
0x1305   :  { %v12550_v37 = vsub.f32 %v12413_v47, %v12526_v52  ;;  %v12556_v44 = vsub.f32 %v12417_v40, %v12526_v52  ;;  %v12562_v48 = vsub.f32 %v12421_v7, %v12526_v52  ;;  %v12568_v55 = vsub.f32 %v12425_v35, %v12526_v52 }
0x1306   :  { %v5657_v54 = vmul.f32 %v12530_v29, %v12530_v29  ;;  %v5658_v46 = vmul.f32 %v12534_v39, %v12534_v39  ;;  %v5659_v24 = vmul.f32 %v12538_v10, %v12538_v10  ;;  %v5660_v17 = vmul.f32 %v12546_v51, %v12546_v51 }
0x1307   :  { %v5661_v47 = vmul.f32 %v12550_v37, %v12550_v37  ;;  %v5662_v40 = vmul.f32 %v12556_v44, %v12556_v44  ;;  %v12574_v0 = vsub.f32 %v12429_v60, %v12526_v52  ;;  %v5663_v7 = vmul.f32 %v12562_v48, %v12562_v48 }
0x1308   :  { %v5689_v27 = vadd.f32 %v5658_v46, %v5657_v54  ;;  %v12580_v3 = vsub.f32 %v12433_v18, %v12526_v52  ;;  %v5664_v35 = vmul.f32 %v12568_v55, %v12568_v55  ;;  %v12586_v56 = vsub.f32 %v12437_v32, %v12526_v52 }
0x1309   :  { %v5665_v60 = vmul.f32 %v12574_v0, %v12574_v0  ;;  %v12592_v54 = vsub.f32 %v12441_v30, %v12526_v52 }
0x130a   :  { %v5690_v20 = vadd.f32 %v5689_v27, %v5659_v24  ;;  %v5666_v18 = vmul.f32 %v12580_v3, %v12580_v3  ;;  %v12598_v24 = vsub.f32 %v12445_v1, %v12526_v52  ;;  %v5667_v32 = vmul.f32 %v12586_v56, %v12586_v56 }
0x130b   :  { %v5668_v30 = vmul.f32 %v12592_v54, %v12592_v54 }
0x130c   :  { %v5691_v16 = vadd.f32 %v5690_v20, %v5660_v17  ;;  %v12604_v17 = vsub.f32 %v12449_v4, %v12526_v52  ;;  %v5669_v1 = vmul.f32 %v12598_v24, %v12598_v24 }
0x130e   :  { %v5692_v21 = vadd.f32 %v5691_v16, %v5661_v47  ;;  %v12610_v47 = vsub.f32 %v12453_v22, %v12526_v52  ;;  %v5670_v4 = vmul.f32 %v12604_v17, %v12604_v17 }
0x1310   :  { %v5693_v53 = vadd.f32 %v5692_v21, %v5662_v40  ;;  %v12616_v40 = vsub.f32 %v12457_v63, %v12526_v52  ;;  %v5671_v22 = vmul.f32 %v12610_v47, %v12610_v47 }
0x1312   :  { %v5694_v15 = vadd.f32 %v5693_v53, %v5663_v7  ;;  %v12622_v7 = vsub.f32 %v12461_v59, %v12526_v52  ;;  %v5672_v63 = vmul.f32 %v12616_v40, %v12616_v40 }
0x1314   :  { %v5695_v14 = vadd.f32 %v5694_v15, %v5664_v35  ;;  %v12628_v35 = vsub.f32 %v12465_v36, %v12526_v52  ;;  %v5673_v59 = vmul.f32 %v12622_v7, %v12622_v7 }
0x1316   :  { %v5696_v46 = vadd.f32 %v5695_v14, %v5665_v60  ;;  %v12634_v60 = vsub.f32 %v12469_v62, %v12526_v52  ;;  %v5674_v36 = vmul.f32 %v12628_v35, %v12628_v35 }
0x1318   :  { %v5697_v27 = vadd.f32 %v5696_v46, %v5666_v18  ;;  %v12640_v18 = vsub.f32 %v12473_v34, %v12526_v52  ;;  %v5675_v62 = vmul.f32 %v12634_v60, %v12634_v60 }
0x131a   :  { %v5698_v20 = vadd.f32 %v5697_v27, %v5667_v32  ;;  %v12646_v32 = vsub.f32 %v12477_v19, %v12526_v52  ;;  %v5676_v34 = vmul.f32 %v12640_v18, %v12640_v18 }
0x131c   :  { %v5699_v16 = vadd.f32 %v5698_v20, %v5668_v30  ;;  %v12652_v30 = vsub.f32 %v12481_v33, %v12526_v52  ;;  %v5677_v19 = vmul.f32 %v12646_v32, %v12646_v32 }
0x131e   :  { %v5700_v21 = vadd.f32 %v5699_v16, %v5669_v1  ;;  %v12658_v1 = vsub.f32 %v12485_v50, %v12526_v52  ;;  %v5678_v33 = vmul.f32 %v12652_v30, %v12652_v30 }
0x1320   :  { %v5701_v53 = vadd.f32 %v5700_v21, %v5670_v4  ;;  %v12664_v4 = vsub.f32 %v12489_v31, %v12526_v52  ;;  %v5679_v50 = vmul.f32 %v12658_v1, %v12658_v1 }
0x1322   :  { %v5702_v15 = vadd.f32 %v5701_v53, %v5671_v22  ;;  %v12670_v22 = vsub.f32 %v12493_v49, %v12526_v52  ;;  %v5680_v31 = vmul.f32 %v12664_v4, %v12664_v4 }
0x1324   :  { %v5703_v14 = vadd.f32 %v5702_v15, %v5672_v63  ;;  %v12676_v63 = vsub.f32 %v12497_v43, %v12526_v52  ;;  %v5681_v49 = vmul.f32 %v12670_v22, %v12670_v22 }
0x1326   :  { %v5704_v46 = vadd.f32 %v5703_v14, %v5673_v59  ;;  %v12682_v59 = vsub.f32 %v12501_v11, %v12526_v52  ;;  %v5682_v43 = vmul.f32 %v12676_v63, %v12676_v63 }
0x1328   :  { %v5705_v27 = vadd.f32 %v5704_v46, %v5674_v36  ;;  %v12688_v36 = vsub.f32 %v12505_v23, %v12526_v52  ;;  %v5683_v11 = vmul.f32 %v12682_v59, %v12682_v59 }
0x132a   :  { %v5706_v20 = vadd.f32 %v5705_v27, %v5675_v62  ;;  %v12694_v62 = vsub.f32 %v12509_v26, %v12526_v52  ;;  %v5684_v23 = vmul.f32 %v12688_v36, %v12688_v36 }
0x132c   :  { %v5707_v16 = vadd.f32 %v5706_v20, %v5676_v34  ;;  %v12700_v34 = vsub.f32 %v12513_v41, %v12526_v52  ;;  %v5685_v26 = vmul.f32 %v12694_v62, %v12694_v62 }
0x132e   :  { %v5708_v21 = vadd.f32 %v5707_v16, %v5677_v19  ;;  %v12706_v19 = vsub.f32 %v12517_v13, %v12526_v52 }
0x1330   :  { %v5709_v53 = vadd.f32 %v5708_v21, %v5678_v33  ;;  %v5656_v33 = vsub.f32 %v12522_v25, %v12526_v52  ;;  %v5686_v21 = vmul.f32 %v12700_v34, %v12700_v34  ;;  %v7172_v52 = vld [vmem:[#allocation5 + $0x250] sm:$0xff] }
0x1332   :  { %v5710_v15 = vadd.f32 %v5709_v53, %v5679_v50  ;;  %v5687_v50 = vmul.f32 %v12706_v19, %v12706_v19 }
0x1334   :  { %v5711_v14 = vadd.f32 %v5710_v15, %v5680_v31  ;;  %v5688_v31 = vmul.f32 %v5656_v33, %v5656_v33 }
0x1336   :  { %v5712_v46 = vadd.f32 %v5711_v14, %v5681_v49 }
0x1338   :  { %v5713_v27 = vadd.f32 %v5712_v46, %v5682_v43 }
0x133a   :  { %v5714_v20 = vadd.f32 %v5713_v27, %v5683_v11  ;;  %v7173_v27 = vld [vmem:[#allocation5 + $0x258] sm:$0xff] }
0x133b   :  { %5956 = vmatpush.bf16.msrb.mxu3 %v7173_v27 }
0x133c   :  { %v5715_v16 = vadd.f32 %v5714_v20, %v5684_v23 }
0x133e   :  { %v5716_v41 = vadd.f32 %v5715_v16, %v5685_v26  ;;  %v7171_v26 = vld [vmem:[#allocation5 + $0x248] sm:$0xff]  ;;  %v7170_v16 = vld [vmem:[#allocation5 + $0x240] sm:$0xff] }
0x133f   :  { %5957 = vmatpush.bf16.msrb.mxu3 %v7172_v52 }
0x1340   :  { %v5717_v53 = vadd.f32 %v5716_v41, %v5686_v21 }
0x1342   :  { %v5718_v15 = vadd.f32 %v5717_v53, %v5687_v50  ;;  %v12720_v50 = vld [vmem:[%s13568_s5 + $0x10] sm:$0x3f] }
0x1343   :  { %5958 = vmatpush.bf16.msrb.mxu3 %v7171_v26  ;;  %13948 = vst [vmem:[#allocation11_spill] sm:$0xff] %v12720_v50  ;;  %v790_v53 = vperm.slane %v12720_v50, 4 }
0x1344   :  { %v5719_v49 = vadd.f32 %v5718_v15, %v5688_v31  ;;  %v779_v31 = vperm.slane %v12220_v61, 1 }
0x1346   :  { %v5720_v13 = vrot.slane %v5719_v49, 4 }
0x1347   :  { %5959 = vmatpush.bf16.msrb.mxu3 %v7170_v16 }
0x1348   :  { %v5721_v14 = vadd.f32 %v5720_v13, %v5719_v49  ;;  %v13949_v13 = vld [vmem:[#allocation44_spill] sm:$0xff] }
0x134a   :  { %v5722_v43 = vrot.slane %v5721_v14, 2 }
0x134c   :  { %v5723_v46 = vadd.f32 %v5722_v43, %v5721_v14  ;;  %v1308_v14 = vadd.f32 %v13949_v13, %v790_v53  ;;  %v13950_v43 = vld [vmem:[#allocation46_spill] sm:$0xff] }
0x134e   :  { %v5724_v11 = vrot.slane %v5723_v46, 1 }
0x1350   :  { %v5725_v23 = vadd.f32 %v5724_v11, %v5723_v46  ;;  %v1165_v46 = vadd.f32 %v13950_v43, %v779_v31 }
0x1352   :  { %v5726_v25 = vmul.f32 %v5725_v23, %v13944_v45  ;;  %v12726_v23 = vperm.slane %v1308_v14, 0  ;;  %v1333_v52 = vperm.slane %v1165_v46, 0  ;;  %v12730_v26 = vperm.slane %v1165_v46, 1 }
0x1354   :  { %v5727_v20 = vadd.f32 1e-05, %v5726_v25  ;;  %v12728_v25 = vperm.slane %v1308_v14, 1 }
0x1356   :  { %7282 = vrsqrt.f32 %v5727_v20  ;;  %vm5734_vm14 = vweird.f32 %v5727_v20 }
0x135c   :  { %v7283_v21 = vpop.eup %7282 }
0x135d   :  { %v5729_v41 = vmul.f32 %v7283_v21, %v5727_v20  ;;  %vm5735_vm13 = vweird.f32 %v7283_v21 }
0x135e   :  { %vm5736_vm15 = vmor %vm5734_vm14, %vm5735_vm13 }
0x135f   :  { %v5730_v15 = vmul.f32 %v7283_v21, %v5729_v41 }
0x1361   :  { %v5731_v49 = vmul.f32 0.5, %v5730_v15 }
0x1363   :  { %v5732_v11 = vsub.f32 1.5, %v5731_v49 }
0x1365   :  { %v5733_v27 = vmul.f32 %v7283_v21, %v5732_v11 }
0x1367   :  { %v5737_v16 = vsel %vm5736_vm15, %v7283_v21, %v5733_v27 }
0x1368   :  { %v5769_v61 = vmul.f32 %v5737_v16, %v5656_v33  ;;  %v5738_v41 = vmul.f32 %v5737_v16, %v12530_v29  ;;  %v5739_v53 = vmul.f32 %v5737_v16, %v12534_v39  ;;  %v5740_v31 = vmul.f32 %v5737_v16, %v12538_v10 }
0x1369   :  { %v5741_v15 = vmul.f32 %v5737_v16, %v12546_v51  ;;  %v5742_v20 = vmul.f32 %v5737_v16, %v12550_v37  ;;  %v5743_v49 = vmul.f32 %v5737_v16, %v12556_v44  ;;  %v5744_v13 = vmul.f32 %v5737_v16, %v12562_v48 }
0x136a   :  { %v12740_v14 = vmul.f32 %v5769_v61, %v12730_v26  ;;  %v5745_v21 = vmul.f32 %v5737_v16, %v12568_v55  ;;  %v5746_v33 = vmul.f32 %v5737_v16, %v12574_v0  ;;  %v5747_v29 = vmul.f32 %v5737_v16, %v12580_v3 }
0x136b   :  { %v5748_v39 = vmul.f32 %v5737_v16, %v12586_v56  ;;  %v5749_v10 = vmul.f32 %v5737_v16, %v12592_v54  ;;  %v5750_v51 = vmul.f32 %v5737_v16, %v12598_v24  ;;  %v5751_v37 = vmul.f32 %v5737_v16, %v12604_v17 }
0x136c   :  { %v5752_v44 = vmul.f32 %v5737_v16, %v12610_v47  ;;  %v5753_v48 = vmul.f32 %v5737_v16, %v12616_v40  ;;  %v5754_v43 = vmul.f32 %v5737_v16, %v12622_v7  ;;  %v5755_v55 = vmul.f32 %v5737_v16, %v12628_v35 }
0x136d   :  { %v5756_v0 = vmul.f32 %v5737_v16, %v12634_v60  ;;  %v5757_v3 = vmul.f32 %v5737_v16, %v12640_v18  ;;  %v5758_v56 = vmul.f32 %v5737_v16, %v12646_v32  ;;  %v5759_v54 = vmul.f32 %v5737_v16, %v12652_v30 }
0x136e   :  { %v5760_v24 = vmul.f32 %v5737_v16, %v12658_v1  ;;  %v5761_v17 = vmul.f32 %v5737_v16, %v12664_v4  ;;  %v5762_v47 = vmul.f32 %v5737_v16, %v12670_v22  ;;  %v5763_v40 = vmul.f32 %v5737_v16, %v12676_v63 }
0x136f   :  { %v5764_v7 = vmul.f32 %v5737_v16, %v12682_v59  ;;  %v5765_v35 = vmul.f32 %v5737_v16, %v12688_v36  ;;  %v5766_v60 = vmul.f32 %v5737_v16, %v12694_v62  ;;  %v5767_v18 = vmul.f32 %v5737_v16, %v12700_v34 }
0x1370   :  { %v5768_v32 = vmul.f32 %v5737_v16, %v12706_v19  ;;  %v5770_v46 = vmul.f32 %v5738_v41, %v1333_v52  ;;  %v5771_v30 = vmul.f32 %v5739_v53, %v1333_v52  ;;  %v5772_v11 = vmul.f32 %v5740_v31, %v1333_v52 }
0x1371   :  { %v5773_v1 = vmul.f32 %v5741_v15, %v1333_v52  ;;  %v5774_v27 = vmul.f32 %v5742_v20, %v1333_v52  ;;  %v5775_v4 = vmul.f32 %v5743_v49, %v1333_v52  ;;  %v5776_v61 = vmul.f32 %v5744_v13, %v1333_v52 }
0x1372   :  { %v5777_v22 = vmul.f32 %v5745_v21, %v1333_v52  ;;  %v5778_v50 = vmul.f32 %v5746_v33, %v1333_v52  ;;  %v5779_v63 = vmul.f32 %v5747_v29, %v1333_v52  ;;  %v5780_v45 = vmul.f32 %v5748_v39, %v1333_v52 }
0x1373   :  { %v5781_v59 = vmul.f32 %v5749_v10, %v1333_v52  ;;  %v5782_v8 = vmul.f32 %v5750_v51, %v1333_v52  ;;  %v5783_v36 = vmul.f32 %v5751_v37, %v1333_v52  ;;  %v5784_v5 = vmul.f32 %v5752_v44, %v1333_v52 }
0x1374   :  { %v5785_v62 = vmul.f32 %v5753_v48, %v1333_v52  ;;  %v5786_v34 = vmul.f32 %v5754_v43, %v12730_v26  ;;  %v5787_v19 = vmul.f32 %v5755_v55, %v12730_v26  ;;  %v5788_v16 = vmul.f32 %v5756_v0, %v12730_v26 }
0x1375   :  { %v5789_v41 = vmul.f32 %v5757_v3, %v12730_v26  ;;  %v5790_v53 = vmul.f32 %v5758_v56, %v12730_v26  ;;  %v5791_v31 = vmul.f32 %v5759_v54, %v12730_v26  ;;  %v5792_v15 = vmul.f32 %v5760_v24, %v12730_v26 }
0x1376   :  { %v5793_v20 = vmul.f32 %v5761_v17, %v12730_v26  ;;  %v12775_v49 = vmul.f32 %v5762_v47, %v12730_v26  ;;  %v12778_v52 = vmul.f32 %v5763_v40, %v12730_v26  ;;  %v12781_v13 = vmul.f32 %v5764_v7, %v12730_v26 }
0x1377   :  { %v12784_v21 = vmul.f32 %v5765_v35, %v12730_v26  ;;  %v12787_v33 = vmul.f32 %v5766_v60, %v12730_v26  ;;  %v12790_v29 = vmul.f32 %v5767_v18, %v12730_v26  ;;  %v12793_v39 = vmul.f32 %v5768_v32, %v12730_v26 }
0x1378   :  { %v5802_v10 = vadd.f32 %v5770_v46, %v12726_v23  ;;  %v5803_v51 = vadd.f32 %v5771_v30, %v12726_v23  ;;  %v5804_v37 = vadd.f32 %v5772_v11, %v12726_v23  ;;  %v5805_v44 = vadd.f32 %v5773_v1, %v12726_v23 }
0x1379   :  { %v5806_v48 = vadd.f32 %v5774_v27, %v12726_v23  ;;  %v5807_v43 = vadd.f32 %v5775_v4, %v12726_v23  ;;  %v5808_v55 = vadd.f32 %v5776_v61, %v12726_v23  ;;  %v5809_v0 = vadd.f32 %v5777_v22, %v12726_v23 }
0x137a   :  { %v5834_v3 = vmax.f32 %v5802_v10, 0.0  ;;  %v5835_v56 = vmax.f32 %v5803_v51, 0.0  ;;  %v5836_v26 = vmax.f32 %v5804_v37, 0.0  ;;  %v5837_v54 = vmax.f32 %v5805_v44, 0.0 }
0x137b   :  { %v5838_v24 = vmax.f32 %v5806_v48, 0.0  ;;  %v5839_v17 = vmax.f32 %v5807_v43, 0.0  ;;  %v5840_v47 = vmax.f32 %v5808_v55, 0.0  ;;  %v5841_v40 = vmax.f32 %v5809_v0, 0.0 }
0x137c   :  { %v5885_v7 = vpack.c.bf16 %v5835_v56, %v5834_v3  ;;  %v12803_v35 = vpack.c.bf16 %v5837_v54, %v5836_v26  ;;  %v5810_v60 = vadd.f32 %v5778_v50, %v12726_v23  ;;  %v5811_v18 = vadd.f32 %v5779_v63, %v12726_v23 }
0x137d   :  { %v5887_v32 = vpack.c.bf16 %v5839_v17, %v5838_v24  ;;  %v5888_v46 = vpack.c.bf16 %v5841_v40, %v5840_v47  ;;  %v5812_v30 = vadd.f32 %v5780_v45, %v12726_v23  ;;  %v5813_v11 = vadd.f32 %v5781_v59, %v12726_v23 }
0x137e   :  { %5960 = vmatmul.bf16.vlgmr.msrb.gmra.mxu3 %v5885_v7  ;;  %v5842_v1 = vmax.f32 %v5810_v60, 0.0  ;;  %v5843_v27 = vmax.f32 %v5811_v18, 0.0  ;;  %v5814_v4 = vadd.f32 %v5782_v8, %v12726_v23  ;;  %v5815_v61 = vadd.f32 %v5783_v36, %v12726_v23 }
0x137f   :  { %v5844_v22 = vmax.f32 %v5812_v30, 0.0  ;;  %v5845_v10 = vmax.f32 %v5813_v11, 0.0  ;;  %v5816_v51 = vadd.f32 %v5784_v5, %v12726_v23  ;;  %v5817_v50 = vadd.f32 %v5785_v62, %v12726_v23 }
0x1380   :  { %v5889_v63 = vpack.c.bf16 %v5843_v27, %v5842_v1  ;;  %v5846_v37 = vmax.f32 %v5814_v4, 0.0  ;;  %v5847_v44 = vmax.f32 %v5815_v61, 0.0  ;;  %v5818_v45 = vadd.f32 %v5786_v34, %v12728_v25 }
0x1381   :  { %v5890_v48 = vpack.c.bf16 %v5845_v10, %v5844_v22  ;;  %v5848_v59 = vmax.f32 %v5816_v51, 0.0  ;;  %v5849_v43 = vmax.f32 %v5817_v50, 0.0  ;;  %v5819_v55 = vadd.f32 %v5787_v19, %v12728_v25 }
0x1382   :  { %v5891_v0 = vpack.c.bf16 %v5847_v44, %v5846_v37  ;;  %v5850_v8 = vmax.f32 %v5818_v45, 0.0  ;;  %v5820_v36 = vadd.f32 %v5788_v16, %v12728_v25  ;;  %v5821_v3 = vadd.f32 %v5789_v41, %v12728_v25 }
0x1383   :  { %v5892_v56 = vpack.c.bf16 %v5849_v43, %v5848_v59  ;;  %v5851_v5 = vmax.f32 %v5819_v55, 0.0  ;;  %v5822_v23 = vadd.f32 %v5790_v53, %v12728_v25  ;;  %v5823_v62 = vadd.f32 %v5791_v31, %v12728_v25 }
0x1384   :  { %v5852_v26 = vmax.f32 %v5820_v36, 0.0  ;;  %v5853_v54 = vmax.f32 %v5821_v3, 0.0  ;;  %v5824_v34 = vadd.f32 %v5792_v15, %v12728_v25  ;;  %v5825_v24 = vadd.f32 %v5793_v20, %v12728_v25 }
0x1385   :  { %v5893_v17 = vpack.c.bf16 %v5851_v5, %v5850_v8  ;;  %v5854_v19 = vmax.f32 %v5822_v23, 0.0  ;;  %v5855_v47 = vmax.f32 %v5823_v62, 0.0  ;;  %v5826_v16 = vadd.f32 %v12775_v49, %v12728_v25 }
0x1386   :  { %v5894_v40 = vpack.c.bf16 %v5853_v54, %v5852_v26  ;;  %v5856_v41 = vmax.f32 %v5824_v34, 0.0  ;;  %v5857_v7 = vmax.f32 %v5825_v24, 0.0  ;;  %v5827_v53 = vadd.f32 %v12778_v52, %v12728_v25  ;;  %v12847_v26 = vld [vmem:[%s13570_s7 + $0x9] ss:$0 sm:$0xff] }
0x1387   :  { %v5895_v60 = vpack.c.bf16 %v5855_v47, %v5854_v19  ;;  %v5858_v31 = vmax.f32 %v5826_v16, 0.0  ;;  %v5828_v18 = vadd.f32 %v12781_v13, %v12728_v25  ;;  %v5829_v15 = vadd.f32 %v12784_v21, %v12728_v25 }
0x1388   :  { %v5896_v20 = vpack.c.bf16 %v5857_v7, %v5856_v41  ;;  %v5859_v30 = vmax.f32 %v5827_v53, 0.0  ;;  %v5830_v11 = vadd.f32 %v12787_v33, %v12728_v25  ;;  %v5831_v49 = vadd.f32 %v12790_v29, %v12728_v25 }
0x1389   :  { %v5860_v1 = vmax.f32 %v5828_v18, 0.0  ;;  %v5861_v27 = vmax.f32 %v5829_v15, 0.0  ;;  %v5832_v52 = vadd.f32 %v12793_v39, %v12728_v25  ;;  %v5833_v4 = vadd.f32 %v12740_v14, %v12728_v25 }
0x138a   :  { %v5897_v13 = vpack.c.bf16 %v5859_v30, %v5858_v31  ;;  %v5862_v61 = vmax.f32 %v5830_v11, 0.0  ;;  %v5863_v22 = vmax.f32 %v5831_v49, 0.0 }
0x138b   :  { %v5898_v21 = vpack.c.bf16 %v5861_v27, %v5860_v1  ;;  %v5864_v10 = vmax.f32 %v5832_v52, 0.0  ;;  %v5865_v51 = vmax.f32 %v5833_v4, 0.0 }
0x138c   :  { %v5899_v50 = vpack.c.bf16 %v5863_v22, %v5862_v61 }
0x138d   :  { %v5900_v37 = vpack.c.bf16 %v5865_v51, %v5864_v10 }
0x138e   :  { %5965 = vmatmul.bf16.gmra.mxu3 %v12803_v35 }
0x139e   :  { %5970 = vmatmul.bf16.gmra.mxu3 %v5887_v32 }
0x13ae   :  { %5975 = vmatmul.bf16.gmra.mxu3 %v5888_v46 }
0x13be   :  { %5980 = vmatmul.bf16.gmra.mxu3 %v5889_v63 }
0x13ce   :  { %5985 = vmatmul.bf16.gmra.mxu3 %v5890_v48 }
0x13de   :  { %5990 = vmatmul.bf16.gmra.mxu3 %v5891_v0 }
0x13ee   :  { %5995 = vmatmul.bf16.gmra.mxu3 %v5892_v56 }
0x13fe   :  { %6000 = vmatmul.bf16.gmra.mxu3 %v5893_v17 }
0x1401   :  { %v5961_v33 = vpop.f32.mrf.mxu3 }
0x1402   :  { %v5962_v24 = vadd.f32 %v12847_v26, %v5961_v33 }
0x1404   :  { %v12859_v16 = vadd.f32 %v5962_v24, %v11864_v42 }
0x1409   :  { %v5963_v29 = vpop.f32.mrf.mxu3 }
0x140a   :  { %v5964_v34 = vadd.f32 %v12847_v26, %v5963_v29 }
0x140c   :  { %v12855_v19 = vadd.f32 %v5964_v34, %v11860_v28 }
0x140e   :  { %6005 = vmatmul.bf16.gmra.mxu3 %v5894_v40  ;;  %v6073_v53 = vadd.f32 %v12855_v19, %v12859_v16 }
0x1411   :  { %v5966_v25 = vpop.f32.mrf.mxu3 }
0x1412   :  { %v5967_v17 = vadd.f32 %v12847_v26, %v5966_v25 }
0x1414   :  { %v12862_v40 = vadd.f32 %v5967_v17, %v11867_v12  ;;  %v13957_v17 = vld [vmem:[#allocation29_spill] sm:$0xff] }
0x1416   :  { %v6074_v31 = vadd.f32 %v6073_v53, %v12862_v40  ;;  %v13958_v53 = vld [vmem:[#allocation38_spill] sm:$0xff] }
0x1419   :  { %v5968_v14 = vpop.f32.mrf.mxu3 }
0x141a   :  { %v5969_v47 = vadd.f32 %v12847_v26, %v5968_v14  ;;  %v13954_v14 = vld [vmem:[#allocation26_spill] sm:$0xff] }
0x141e   :  { %6010 = vmatmul.bf16.gmra.mxu3 %v5895_v60  ;;  %v12870_v60 = vadd.f32 %v5969_v47, %v11875_v58 }
0x1420   :  { %v6075_v18 = vadd.f32 %v6074_v31, %v12870_v60 }
0x1421   :  { %v5971_v39 = vpop.f32.mrf.mxu3 }
0x1422   :  { %v5972_v41 = vadd.f32 %v12847_v26, %v5971_v39 }
0x1424   :  { %v12875_v42 = vadd.f32 %v5972_v41, %v11880_v57 }
0x1426   :  { %v6076_v30 = vadd.f32 %v6075_v18, %v12875_v42 }
0x1429   :  { %v5973_v44 = vpop.f32.mrf.mxu3 }
0x142a   :  { %v5974_v28 = vadd.f32 %v12847_v26, %v5973_v44 }
0x142c   :  { %v12880_v15 = vadd.f32 %v5974_v28, %v11885_v2 }
0x142e   :  { %6015 = vmatmul.bf16.gmra.mxu3 %v5896_v20  ;;  %v6077_v57 = vadd.f32 %v6076_v30, %v12880_v15  ;;  %v13960_v30 = vld [vmem:[#allocation35_spill] sm:$0xff] }
0x1431   :  { %v5976_v45 = vpop.f32.mrf.mxu3 }
0x1432   :  { %v5977_v12 = vadd.f32 %v12847_v26, %v5976_v45 }
0x1434   :  { %v12885_v58 = vadd.f32 %v5977_v12, %v11890_v38  ;;  %v13959_v12 = vld [vmem:[#allocation47_spill] sm:$0xff] }
0x1436   :  { %v6078_v2 = vadd.f32 %v6077_v57, %v12885_v58 }
0x1439   :  { %v5978_v59 = vpop.f32.mrf.mxu3 }
0x143a   :  { %v5979_v20 = vadd.f32 %v12847_v26, %v5978_v59  ;;  %v13955_v59 = vld [vmem:[#allocation27_spill] sm:$0xff] }
0x143c   :  { %v12890_v1 = vadd.f32 %v5979_v20, %v11895_v9  ;;  %v13952_v9 = vld [vmem:[#allocation24_spill] sm:$0xff] }
0x143e   :  { %6020 = vmatmul.bf16.gmra.mxu3 %v5897_v13  ;;  %v6079_v38 = vadd.f32 %v6078_v2, %v12890_v1  ;;  %v13951_v13 = vld [vmem:[#allocation23_spill] sm:$0xff] }
0x143f   :  { %v13961_v2 = vld [vmem:[#allocation43_spill] sm:$0xff] }
0x1441   :  { %v5981_v35 = vpop.f32.mrf.mxu3 }
0x1442   :  { %v5982_v11 = vadd.f32 %v12847_v26, %v5981_v35 }
0x1444   :  { %v12895_v52 = vadd.f32 %v5982_v11, %v11900_v6 }
0x1449   :  { %v5983_v32 = vpop.f32.mrf.mxu3 }
0x144a   :  { %v5984_v27 = vadd.f32 %v12847_v26, %v5983_v32 }
0x144c   :  { %v12900_v61 = vadd.f32 %v5984_v27, %v13951_v13 }
0x144e   :  { %6025 = vmatmul.bf16.gmra.mxu3 %v5898_v21  ;;  %v6080_v21 = vadd.f32 %v6079_v38, %v12895_v52 }
0x1450   :  { %v6081_v6 = vadd.f32 %v6080_v21, %v12900_v61 }
0x1451   :  { %v5986_v46 = vpop.f32.mrf.mxu3 }
0x1452   :  { %v5987_v4 = vadd.f32 %v12847_v26, %v5986_v46 }
0x1454   :  { %v12905_v10 = vadd.f32 %v5987_v4, %v13952_v9 }
0x1456   :  { %v6082_v25 = vadd.f32 %v6081_v6, %v12905_v10 }
0x1459   :  { %v5988_v63 = vpop.f32.mrf.mxu3 }
0x145a   :  { %v5989_v22 = vadd.f32 %v12847_v26, %v5988_v63  ;;  %v13956_v63 = vld [vmem:[#allocation28_spill] sm:$0xff] }
0x145e   :  { %6030 = vmatmul.bf16.gmra.mxu3 %v5899_v50 }
0x1461   :  { %v5991_v48 = vpop.f32.mrf.mxu3 }
0x1462   :  { %v5992_v51 = vadd.f32 %v12847_v26, %v5991_v48 }
0x1464   :  { %v12915_v39 = vadd.f32 %v5992_v51, %v13954_v14 }
0x1469   :  { %v5993_v43 = vpop.f32.mrf.mxu3 }
0x146a   :  { %v5994_v29 = vadd.f32 %v12847_v26, %v5993_v43 }
0x146c   :  { %v12920_v35 = vadd.f32 %v5994_v29, %v13955_v59 }
0x146e   :  { %6035 = vmatmul.bf16.gmra.mxu3 %v5900_v37  ;;  %v13953_v37 = vld [vmem:[#allocation25_spill] sm:$0xff] }
0x146f   :  { %v12910_v33 = vadd.f32 %v5989_v22, %v13953_v37  ;;  %v13964_v37 = vld [vmem:[#allocation32_spill] sm:$0xff] }
0x1471   :  { %v5996_v55 = vpop.f32.mrf.mxu3  ;;  %v6083_v45 = vadd.f32 %v6082_v25, %v12910_v33 }
0x1472   :  { %v5997_v44 = vadd.f32 %v12847_v26, %v5996_v55 }
0x1473   :  { %v6084_v46 = vadd.f32 %v6083_v45, %v12915_v39 }
0x1474   :  { %v12925_v48 = vadd.f32 %v5997_v44, %v13956_v63 }
0x1475   :  { %v6085_v24 = vadd.f32 %v6084_v46, %v12920_v35 }
0x1477   :  { %v6086_v41 = vadd.f32 %v6085_v24, %v12925_v48 }
0x1479   :  { %v5998_v0 = vpop.f32.mrf.mxu3 }
0x147a   :  { %v5999_v32 = vadd.f32 %v12847_v26, %v5998_v0 }
0x147c   :  { %v12930_v47 = vadd.f32 %v5999_v32, %v13957_v17  ;;  %v13966_v32 = vld [vmem:[#allocation48_spill] sm:$0xff] }
0x147e   :  { %v6087_v31 = vadd.f32 %v6086_v41, %v12930_v47 }
0x1481   :  { %v6001_v8 = vpop.f32.mrf.mxu3 }
0x1482   :  { %v6002_v43 = vadd.f32 %v12847_v26, %v6001_v8 }
0x1484   :  { %v12935_v28 = vadd.f32 %v6002_v43, %v13958_v53  ;;  %v13967_v43 = vld [vmem:[#allocation42_spill] sm:$0xff] }
0x1486   :  { %v6088_v20 = vadd.f32 %v6087_v31, %v12935_v28  ;;  %v13969_v31 = vld [vmem:[#allocation36_spill] sm:$0xff] }
0x1489   :  { %v6003_v36 = vpop.f32.mrf.mxu3 }
0x148a   :  { %v6004_v55 = vadd.f32 %v12847_v26, %v6003_v36 }
0x148c   :  { %v12940_v18 = vadd.f32 %v6004_v55, %v13959_v12  ;;  %v13968_v55 = vld [vmem:[#allocation45_spill] sm:$0xff] }
0x148e   :  { %v6089_v27 = vadd.f32 %v6088_v20, %v12940_v18  ;;  %v13970_v20 = vld [vmem:[#allocation34_spill] sm:$0xff] }
0x1491   :  { %v6006_v3 = vpop.f32.mrf.mxu3 }
0x1492   :  { %v6007_v0 = vadd.f32 %v12847_v26, %v6006_v3 }
0x1494   :  { %v12945_v11 = vadd.f32 %v6007_v0, %v13960_v30 }
0x1496   :  { %v6090_v38 = vadd.f32 %v6089_v27, %v12945_v11  ;;  %v13971_v27 = vld [vmem:[#allocation41_spill] sm:$0xff] }
0x1499   :  { %v6008_v56 = vpop.f32.mrf.mxu3 }
0x149a   :  { %v6009_v8 = vadd.f32 %v12847_v26, %v6008_v56  ;;  %v13962_v56 = vld [vmem:[#allocation30_spill] sm:$0xff] }
0x149c   :  { %v12951_v3 = vadd.f32 %v6009_v8, %v13961_v2 }
0x149e   :  { %v6091_v21 = vadd.f32 %v6090_v38, %v12951_v3 }
0x14a1   :  { %v12838_v5 = vpop.f32.mrf.mxu3 }
0x14a2   :  { %v6012_v36 = vadd.f32 %v12847_v26, %v12838_v5  ;;  %v13963_v5 = vld [vmem:[#allocation31_spill] sm:$0xff] }
0x14a4   :  { %v12957_v13 = vadd.f32 %v6012_v36, %v13962_v56 }
0x14a6   :  { %v6092_v6 = vadd.f32 %v6091_v21, %v12957_v13 }
0x14a9   :  { %v12840_v23 = vpop.f32.mrf.mxu3 }
0x14aa   :  { %v6014_v4 = vadd.f32 %v12847_v26, %v12840_v23 }
0x14ac   :  { %v12963_v9 = vadd.f32 %v6014_v4, %v13963_v5  ;;  %v13972_v4 = vld [vmem:[#allocation9_spill] sm:$0xff] }
0x14ae   :  { %v6093_v14 = vadd.f32 %v6092_v6, %v12963_v9 }
0x14b1   :  { %v12842_v62 = vpop.f32.mrf.mxu3 }
0x14b2   :  { %v6017_v22 = vadd.f32 %v12847_v26, %v12842_v62  ;;  %v13965_v62 = vld [vmem:[#allocation37_spill] sm:$0xff] }
0x14b4   :  { %v12969_v23 = vadd.f32 %v6017_v22, %v13964_v37 }
0x14b6   :  { %v6094_v59 = vadd.f32 %v6093_v14, %v12969_v23 }
0x14b9   :  { %v12849_v54 = vpop.f32.mrf.mxu3 }
0x14ba   :  { %v6019_v51 = vadd.f32 %v12847_v26, %v12849_v54 }
0x14bc   :  { %v12975_v44 = vadd.f32 %v6019_v51, %v13965_v62  ;;  %v13973_v51 = vld [vmem:[#allocation10_spill] sm:$0xff] }
0x14be   :  { %v6095_v63 = vadd.f32 %v6094_v59, %v12975_v44 }
0x14c1   :  { %v12865_v7 = vpop.f32.mrf.mxu3 }
0x14c2   :  { %v6022_v29 = vadd.f32 %v12847_v26, %v12865_v7 }
0x14c4   :  { %v12980_v54 = vadd.f32 %v6022_v29, %v13966_v32  ;;  %v13974_v32 = vld [vmem:[#allocation33_spill] sm:$0xff] }
0x14c6   :  { %v6096_v17 = vadd.f32 %v6095_v63, %v12980_v54 }
0x14c9   :  { %v6023_v49 = vpop.f32.mrf.mxu3 }
0x14ca   :  { %v6024_v45 = vadd.f32 %v12847_v26, %v6023_v49 }
0x14cc   :  { %v12985_v24 = vadd.f32 %v6024_v45, %v13967_v43 }
0x14ce   :  { %v6097_v0 = vadd.f32 %v6096_v17, %v12985_v24 }
0x14d1   :  { %v6026_v50 = vpop.f32.mrf.mxu3 }
0x14d2   :  { %v6027_v46 = vadd.f32 %v12847_v26, %v6026_v50 }
0x14d4   :  { %v12990_v41 = vadd.f32 %v6027_v46, %v13968_v55 }
0x14d6   :  { %v6098_v8 = vadd.f32 %v6097_v0, %v12990_v41 }
0x14d9   :  { %v6028_v34 = vpop.f32.mrf.mxu3 }
0x14da   :  { %v6029_v7 = vadd.f32 %v12847_v26, %v6028_v34 }
0x14dc   :  { %v12995_v12 = vadd.f32 %v6029_v7, %v13969_v31 }
0x14de   :  { %v6099_v36 = vadd.f32 %v6098_v8, %v12995_v12 }
0x14e1   :  { %v6031_v57 = vpop.f32.mrf.mxu3 }
0x14e2   :  { %v6032_v49 = vadd.f32 %v12847_v26, %v6031_v57 }
0x14e4   :  { %v13000_v30 = vadd.f32 %v6032_v49, %v13970_v20 }
0x14e6   :  { %v6100_v57 = vadd.f32 %v6099_v36, %v13000_v30 }
0x14e9   :  { %v6033_v25 = vpop.f32.mrf.mxu3 }
0x14ea   :  { %v6034_v50 = vadd.f32 %v12847_v26, %v6033_v25 }
0x14ec   :  { %v13005_v2 = vadd.f32 %v6034_v50, %v13971_v27 }
0x14ee   :  { %v6101_v22 = vadd.f32 %v6100_v57, %v13005_v2 }
0x14f1   :  { %v6036_v53 = vpop.f32.mrf.mxu3 }
0x14f2   :  { %v6037_v34 = vadd.f32 %v12847_v26, %v6036_v53 }
0x14f4   :  { %v13009_v38 = vadd.f32 %v6037_v34, %v13972_v4 }
0x14f6   :  { %v6102_v5 = vadd.f32 %v6101_v22, %v13009_v38 }
0x14f9   :  { %v6038_v56 = vpop.f32.mrf.mxu3 }
0x14fa   :  { %v6039_v21 = vadd.f32 %v12847_v26, %v6038_v56 }
0x14fc   :  { %v13015_v6 = vadd.f32 %v6039_v21, %v13973_v51 }
0x14fe   :  { %v6103_v37 = vadd.f32 %v6102_v5, %v13015_v6 }
0x1500   :  { %v6104_v29 = vrot.slane %v6103_v37, 4 }
0x1502   :  { %v6105_v25 = vadd.f32 %v6104_v29, %v6103_v37 }
0x1504   :  { %v6106_v14 = vrot.slane %v6105_v25, 2 }
0x1506   :  { %v6107_v62 = vadd.f32 %v6106_v14, %v6105_v25 }
0x1508   :  { %v6108_v45 = vrot.slane %v6107_v62, 1 }
0x150a   :  { %v6109_v59 = vadd.f32 %v6108_v45, %v6107_v62 }
0x150c   :  { %v13019_v46 = vmul.f32 %v6109_v59, %v13974_v32 }
0x150e   :  { %v13023_v63 = vsub.f32 %v12859_v16, %v13019_v46  ;;  %v13027_v26 = vsub.f32 %v12855_v19, %v13019_v46  ;;  %v13031_v43 = vsub.f32 %v12862_v40, %v13019_v46  ;;  %v13039_v55 = vsub.f32 %v12870_v60, %v13019_v46 }
0x150f   :  { %v13043_v16 = vsub.f32 %v12875_v42, %v13019_v46  ;;  %v13049_v40 = vsub.f32 %v12880_v15, %v13019_v46  ;;  %v13055_v60 = vsub.f32 %v12885_v58, %v13019_v46  ;;  %v13061_v50 = vsub.f32 %v12890_v1, %v13019_v46 }
0x1510   :  { %v6143_v7 = vmul.f32 %v13023_v63, %v13023_v63  ;;  %v6144_v17 = vmul.f32 %v13027_v26, %v13027_v26  ;;  %v6145_v19 = vmul.f32 %v13031_v43, %v13031_v43  ;;  %v6146_v53 = vmul.f32 %v13039_v55, %v13039_v55 }
0x1511   :  { %v6147_v42 = vmul.f32 %v13043_v16, %v13043_v16  ;;  %v6148_v15 = vmul.f32 %v13049_v40, %v13049_v40  ;;  %v13067_v20 = vsub.f32 %v12895_v52, %v13019_v46  ;;  %v6149_v58 = vmul.f32 %v13055_v60, %v13055_v60 }
0x1512   :  { %v6175_v49 = vadd.f32 %v6144_v17, %v6143_v7  ;;  %v13073_v36 = vsub.f32 %v12900_v61, %v13019_v46  ;;  %v6150_v1 = vmul.f32 %v13061_v50, %v13061_v50  ;;  %v13079_v57 = vsub.f32 %v12905_v10, %v13019_v46 }
0x1513   :  { %v6151_v52 = vmul.f32 %v13067_v20, %v13067_v20  ;;  %v13085_v56 = vsub.f32 %v12910_v33, %v13019_v46  ;;  %v13091_v21 = vsub.f32 %v12915_v39, %v13019_v46  ;;  %v13097_v51 = vsub.f32 %v12920_v35, %v13019_v46 }
0x1514   :  { %v6176_v0 = vadd.f32 %v6175_v49, %v6145_v19  ;;  %v6152_v61 = vmul.f32 %v13073_v36, %v13073_v36  ;;  %v6153_v10 = vmul.f32 %v13079_v57, %v13079_v57  ;;  %v13103_v29 = vsub.f32 %v12925_v48, %v13019_v46 }
0x1515   :  { %v6154_v33 = vmul.f32 %v13085_v56, %v13085_v56  ;;  %v6155_v39 = vmul.f32 %v13091_v21, %v13091_v21  ;;  %v13109_v14 = vsub.f32 %v12930_v47, %v13019_v46  ;;  %v6156_v35 = vmul.f32 %v13097_v51, %v13097_v51 }
0x1516   :  { %v6177_v31 = vadd.f32 %v6176_v0, %v6146_v53  ;;  %v13115_v45 = vsub.f32 %v12935_v28, %v13019_v46  ;;  %v6157_v48 = vmul.f32 %v13103_v29, %v13103_v29  ;;  %v13121_v7 = vsub.f32 %v12940_v18, %v13019_v46 }
0x1517   :  { %v6158_v47 = vmul.f32 %v13109_v14, %v13109_v14  ;;  %v13127_v19 = vsub.f32 %v12945_v11, %v13019_v46  ;;  %v13133_v53 = vsub.f32 %v12951_v3, %v13019_v46 }
0x1518   :  { %v6178_v8 = vadd.f32 %v6177_v31, %v6147_v42  ;;  %v6159_v28 = vmul.f32 %v13115_v45, %v13115_v45  ;;  %v6160_v18 = vmul.f32 %v13121_v7, %v13121_v7  ;;  %v13139_v42 = vsub.f32 %v12957_v13, %v13019_v46 }
0x1519   :  { %v6161_v11 = vmul.f32 %v13127_v19, %v13127_v19  ;;  %v6162_v3 = vmul.f32 %v13133_v53, %v13133_v53 }
0x151a   :  { %v6179_v34 = vadd.f32 %v6178_v8, %v6148_v15  ;;  %v13145_v15 = vsub.f32 %v12963_v9, %v13019_v46  ;;  %v6163_v13 = vmul.f32 %v13139_v42, %v13139_v42 }
0x151c   :  { %v6180_v27 = vadd.f32 %v6179_v34, %v6149_v58  ;;  %v13151_v58 = vsub.f32 %v12969_v23, %v13019_v46  ;;  %v6164_v9 = vmul.f32 %v13145_v15, %v13145_v15 }
0x151e   :  { %v6181_v4 = vadd.f32 %v6180_v27, %v6150_v1  ;;  %v13157_v1 = vsub.f32 %v12975_v44, %v13019_v46  ;;  %v6165_v23 = vmul.f32 %v13151_v58, %v13151_v58 }
0x1520   :  { %v6182_v22 = vadd.f32 %v6181_v4, %v6151_v52  ;;  %v13163_v52 = vsub.f32 %v12980_v54, %v13019_v46  ;;  %v6166_v44 = vmul.f32 %v13157_v1, %v13157_v1 }
0x1522   :  { %v6183_v5 = vadd.f32 %v6182_v22, %v6152_v61  ;;  %v13169_v61 = vsub.f32 %v12985_v24, %v13019_v46  ;;  %v6167_v54 = vmul.f32 %v13163_v52, %v13163_v52 }
0x1524   :  { %v6184_v37 = vadd.f32 %v6183_v5, %v6153_v10  ;;  %v13175_v10 = vsub.f32 %v12990_v41, %v13019_v46  ;;  %v6168_v24 = vmul.f32 %v13169_v61, %v13169_v61 }
0x1526   :  { %v6185_v25 = vadd.f32 %v6184_v37, %v6154_v33  ;;  %v13181_v33 = vsub.f32 %v12995_v12, %v13019_v46  ;;  %v6169_v41 = vmul.f32 %v13175_v10, %v13175_v10 }
0x1528   :  { %v6186_v62 = vadd.f32 %v6185_v25, %v6155_v39  ;;  %v13187_v39 = vsub.f32 %v13000_v30, %v13019_v46  ;;  %v6170_v12 = vmul.f32 %v13181_v33, %v13181_v33 }
0x152a   :  { %v6187_v59 = vadd.f32 %v6186_v62, %v6156_v35  ;;  %v13193_v35 = vsub.f32 %v13005_v2, %v13019_v46  ;;  %v6171_v30 = vmul.f32 %v13187_v39, %v13187_v39 }
0x152c   :  { %v6188_v17 = vadd.f32 %v6187_v59, %v6157_v48  ;;  %v13199_v48 = vsub.f32 %v13009_v38, %v13019_v46  ;;  %v6172_v2 = vmul.f32 %v13193_v35, %v13193_v35 }
0x152e   :  { %v6189_v49 = vadd.f32 %v6188_v17, %v6158_v47  ;;  %v13205_v47 = vsub.f32 %v13015_v6, %v13019_v46 }
0x1530   :  { %v6190_v0 = vadd.f32 %v6189_v49, %v6159_v28  ;;  %v6173_v28 = vmul.f32 %v13199_v48, %v13199_v48  ;;  %v6174_v38 = vmul.f32 %v13205_v47, %v13205_v47 }
0x1532   :  { %v6191_v31 = vadd.f32 %v6190_v0, %v6160_v18 }
0x1534   :  { %v6192_v8 = vadd.f32 %v6191_v31, %v6161_v11 }
0x1536   :  { %v6193_v34 = vadd.f32 %v6192_v8, %v6162_v3 }
0x1538   :  { %v6194_v27 = vadd.f32 %v6193_v34, %v6163_v13 }
0x153a   :  { %v6195_v4 = vadd.f32 %v6194_v27, %v6164_v9 }
0x153c   :  { %v6196_v22 = vadd.f32 %v6195_v4, %v6165_v23 }
0x153e   :  { %v6197_v5 = vadd.f32 %v6196_v22, %v6166_v44 }
0x1540   :  { %v6198_v37 = vadd.f32 %v6197_v5, %v6167_v54  ;;  %v7294_v54 = vld [vmem:[%s13568_s5 + $0x8] sm:$0xff] }
0x1541   :  { %v780_v5 = vperm.slane %v7294_v54, 2 }
0x1542   :  { %v6199_v25 = vadd.f32 %v6198_v37, %v6168_v24  ;;  %v13975_v24 = vld [vmem:[#allocation11_spill] sm:$0xff] }
0x1543   :  { %v791_v37 = vperm.slane %v13975_v24, 5 }
0x1544   :  { %v6200_v62 = vadd.f32 %v6199_v25, %v6169_v41 }
0x1546   :  { %v6201_v59 = vadd.f32 %v6200_v62, %v6170_v12  ;;  %v13977_v12 = vld [vmem:[#allocation49_spill] sm:$0xff] }
0x1547   :  { %v1321_v62 = vadd.f32 %v13977_v12, %v791_v37 }
0x1548   :  { %v6202_v17 = vadd.f32 %v6201_v59, %v6171_v30 }
0x154a   :  { %v6203_v49 = vadd.f32 %v6202_v17, %v6172_v2 }
0x154c   :  { %v6204_v18 = vadd.f32 %v6203_v49, %v6173_v28 }
0x154e   :  { %v6205_v0 = vadd.f32 %v6204_v18, %v6174_v38 }
0x1550   :  { %v6206_v11 = vrot.slane %v6205_v0, 4 }
0x1552   :  { %v6207_v31 = vadd.f32 %v6206_v11, %v6205_v0 }
0x1554   :  { %v6208_v3 = vrot.slane %v6207_v31, 2 }
0x1556   :  { %v6209_v8 = vadd.f32 %v6208_v3, %v6207_v31 }
0x1558   :  { %v6210_v13 = vrot.slane %v6209_v8, 1 }
0x155a   :  { %v6211_v6 = vadd.f32 %v6210_v13, %v6209_v8 }
0x155c   :  { %v6212_v46 = vmul.f32 %v6211_v6, %v13974_v32  ;;  %v13976_v32 = vld [vmem:[#allocation40_spill] sm:$0xff] }
0x155d   :  { %v1178_v25 = vadd.f32 %v13976_v32, %v780_v5 }
0x155e   :  { %v6213_v34 = vadd.f32 1e-05, %v6212_v46 }
0x155f   :  { %v1334_v18 = vperm.slane %v1178_v25, 0 }
0x1560   :  { %7284 = vrsqrt.f32 %v6213_v34  ;;  %vm6220_vm1 = vweird.f32 %v6213_v34 }
0x1566   :  { %v7285_v9 = vpop.eup %7284 }
0x1567   :  { %v6215_v27 = vmul.f32 %v7285_v9, %v6213_v34  ;;  %vm6221_vm0 = vweird.f32 %v7285_v9 }
0x1568   :  { %vm6222_vm2 = vmor %vm6220_vm1, %vm6221_vm0 }
0x1569   :  { %v6216_v23 = vmul.f32 %v7285_v9, %v6215_v27 }
0x156b   :  { %v6217_v4 = vmul.f32 0.5, %v6216_v23 }
0x156d   :  { %v6218_v44 = vsub.f32 1.5, %v6217_v4 }
0x156f   :  { %v6219_v22 = vmul.f32 %v7285_v9, %v6218_v44 }
0x1571   :  { %v13218_v41 = vsel %vm6222_vm2, %v7285_v9, %v6219_v22 }
0x1572   :  { %v6224_v30 = vmul.f32 %v13218_v41, %v13023_v63  ;;  %v6225_v59 = vmul.f32 %v13218_v41, %v13027_v26  ;;  %v6226_v2 = vmul.f32 %v13218_v41, %v13031_v43  ;;  %v6227_v17 = vmul.f32 %v13218_v41, %v13039_v55 }
0x1573   :  { %v6228_v28 = vmul.f32 %v13218_v41, %v13043_v16  ;;  %v6229_v49 = vmul.f32 %v13218_v41, %v13049_v40  ;;  %v6230_v38 = vmul.f32 %v13218_v41, %v13055_v60  ;;  %v6232_v63 = vmul.f32 %v13218_v41, %v13067_v20  ;;  %v13245_v20 = vld [vmem:[%s13571_s8] ss:$0 sm:$0xff] }
0x1574   :  { %v1345_v26 = vperm.slane %v1321_v62, 0  ;;  %v6231_v43 = vmul.f32 %v13218_v41, %v13061_v50  ;;  %v6233_v55 = vmul.f32 %v13218_v41, %v13073_v36  ;;  %v6258_v0 = vmul.f32 %v6226_v2, %v1334_v18 }
0x1575   :  { %v6257_v11 = vmul.f32 %v6225_v59, %v1334_v18  ;;  %v6256_v16 = vmul.f32 %v6224_v30, %v1334_v18  ;;  %v6259_v31 = vmul.f32 %v6227_v17, %v1334_v18  ;;  %v6261_v3 = vmul.f32 %v6229_v49, %v1334_v18 }
0x1576   :  { %v6260_v40 = vmul.f32 %v6228_v28, %v1334_v18  ;;  %v6262_v8 = vmul.f32 %v6230_v38, %v1334_v18  ;;  %v6264_v13 = vmul.f32 %v6232_v63, %v1334_v18  ;;  %v6290_v60 = vadd.f32 %v6258_v0, %v1345_v26 }
0x1577   :  { %v6289_v6 = vadd.f32 %v6257_v11, %v1345_v26  ;;  %v6288_v46 = vadd.f32 %v6256_v16, %v1345_v26  ;;  %v6291_v50 = vadd.f32 %v6259_v31, %v1345_v26  ;;  %v6293_v34 = vadd.f32 %v6261_v3, %v1345_v26 }
0x1578   :  { %v6292_v9 = vadd.f32 %v6260_v40, %v1345_v26  ;;  %v13247_v36 = vadd.f32 %v6262_v8, %v1345_v26  ;;  %v13249_v27 = vadd.f32 %v6264_v13, %v1345_v26  ;;  %v6235_v23 = vmul.f32 %v13218_v41, %v13085_v56 }
0x1579   :  { %v6322_v4 = vmax.f32 %v6290_v60, 0.0  ;;  %v6321_v44 = vmax.f32 %v6289_v6, 0.0  ;;  %v6320_v22 = vmax.f32 %v6288_v46, 0.0  ;;  %v6234_v54 = vmul.f32 %v13218_v41, %v13079_v57 }
0x157a   :  { %v6236_v5 = vmul.f32 %v13218_v41, %v13091_v21  ;;  %v6237_v24 = vmul.f32 %v13218_v41, %v13097_v51  ;;  %v6238_v37 = vmul.f32 %v13218_v41, %v13103_v29  ;;  %v6239_v32 = vmul.f32 %v13218_v41, %v13109_v14 }
0x157b   :  { %v6358_v56 = vmul.f32 %v13245_v20, %v6322_v4  ;;  %v6357_v12 = vmul.f32 %v13245_v20, %v6321_v44  ;;  %v6356_v30 = vmul.f32 %v13245_v20, %v6320_v22  ;;  %v13266_v59 = vperm.slane %v1178_v25, 1 }
0x157c   :  { %v13268_v57 = vperm.slane %v1321_v62, 1  ;;  %v6323_v21 = vmax.f32 %v6291_v50, 0.0  ;;  %v6325_v2 = vmax.f32 %v6293_v34, 0.0  ;;  %v6324_v51 = vmax.f32 %v6292_v9, 0.0 }
0x157d   :  { %6392 = vadd.xlane.f32.xlu2 %v6358_v56  ;;  %6390 = vadd.xlane.f32.xlu1 %v6357_v12  ;;  %v6263_v17 = vmul.f32 %v6231_v43, %v1334_v18  ;;  %v6265_v29 = vmul.f32 %v6233_v55, %v1334_v18  ;;  %v6267_v28 = vmul.f32 %v6235_v23, %v1334_v18  ;;  %v6328_v50 = vmax.f32 %v13249_v27, 0.0 }
0x157e   :  { %6388 = vadd.xlane.f32.xlu0 %v6356_v30  ;;  %v6266_v14 = vmul.f32 %v6234_v54, %v1334_v18  ;;  %v6268_v49 = vmul.f32 %v6236_v5, %v1334_v18  ;;  %v6270_v38 = vmul.f32 %v6238_v37, %v1334_v18  ;;  %v6269_v63 = vmul.f32 %v6237_v24, %v1334_v18 }
0x157f   :  { %v6295_v0 = vadd.f32 %v6263_v17, %v1345_v26  ;;  %v6297_v11 = vadd.f32 %v6265_v29, %v1345_v26  ;;  %v6299_v16 = vadd.f32 %v6267_v28, %v1345_v26  ;;  %v6271_v25 = vmul.f32 %v6239_v32, %v1334_v18 }
0x1580   :  { %v6298_v31 = vadd.f32 %v6266_v14, %v1345_v26  ;;  %v13270_v62 = vadd.f32 %v6268_v49, %v1345_v26  ;;  %v13272_v3 = vadd.f32 %v6270_v38, %v1345_v26  ;;  %v13274_v40 = vadd.f32 %v6269_v63, %v1345_v26 }
0x1581   :  { %v6255_v43 = vmul.f32 %v13218_v41, %v13205_v47  ;;  %v6240_v55 = vmul.f32 %v13218_v41, %v13115_v45  ;;  %v6241_v8 = vmul.f32 %v13218_v41, %v13121_v7  ;;  %v13282_v13 = vadd.f32 %v6271_v25, %v1345_v26 }
0x1582   :  { %v6242_v18 = vmul.f32 %v13218_v41, %v13127_v19  ;;  %v6243_v60 = vmul.f32 %v13218_v41, %v13133_v53  ;;  %v6244_v6 = vmul.f32 %v13218_v41, %v13139_v42  ;;  %v6245_v47 = vmul.f32 %v13218_v41, %v13145_v15 }
0x1583   :  { %v6246_v45 = vmul.f32 %v13218_v41, %v13151_v58  ;;  %v6247_v7 = vmul.f32 %v13218_v41, %v13157_v1  ;;  %v6359_v26 = vmul.f32 %v13245_v20, %v6323_v21  ;;  %v6361_v46 = vmul.f32 %v13245_v20, %v6325_v2 }
0x1584   :  { %v6248_v19 = vmul.f32 %v13218_v41, %v13163_v52  ;;  %v6360_v53 = vmul.f32 %v13245_v20, %v6324_v51  ;;  %v6326_v42 = vmax.f32 %v13247_v36, 0.0  ;;  %v6327_v15 = vmax.f32 %v6295_v0, 0.0 }
0x1585   :  { %6394 = vadd.xlane.f32.xlu2 %v6359_v26  ;;  %6398 = vadd.xlane.f32.xlu1 %v6361_v46  ;;  %v6329_v58 = vmax.f32 %v6297_v11, 0.0  ;;  %v6273_v34 = vmul.f32 %v6241_v8, %v13266_v59  ;;  %v6272_v1 = vmul.f32 %v6240_v55, %v13266_v59  ;;  %v6274_v9 = vmul.f32 %v6242_v18, %v13266_v59 }
0x1586   :  { %6396 = vadd.xlane.f32.xlu0 %v6360_v53  ;;  %v6276_v23 = vmul.f32 %v6244_v6, %v13266_v59  ;;  %v6275_v52 = vmul.f32 %v6243_v60, %v13266_v59  ;;  %v6277_v4 = vmul.f32 %v6245_v47, %v13266_v59  ;;  %v6279_v44 = vmul.f32 %v6247_v7, %v13266_v59 }
0x1587   :  { %v13310_v36 = vadd.f32 %v6273_v34, %v13268_v57  ;;  %v13313_v27 = vadd.f32 %v6272_v1, %v13268_v57  ;;  %v6278_v22 = vmul.f32 %v6246_v45, %v13266_v59  ;;  %v13318_v54 = vadd.f32 %v6274_v9, %v13268_v57 }
0x1588   :  { %v13321_v5 = vadd.f32 %v6276_v23, %v13268_v57  ;;  %v13324_v24 = vadd.f32 %v6275_v52, %v13268_v57  ;;  %v13327_v37 = vadd.f32 %v6277_v4, %v13268_v57  ;;  %v6331_v32 = vmax.f32 %v6299_v16, 0.0 }
0x1589   :  { %v6330_v56 = vmax.f32 %v6298_v31, 0.0  ;;  %v13330_v12 = vadd.f32 %v6279_v44, %v13268_v57  ;;  %v13333_v30 = vadd.f32 %v6278_v22, %v13268_v57  ;;  %v6249_v21 = vmul.f32 %v13218_v41, %v13169_v61 }
0x158a   :  { %v6250_v2 = vmul.f32 %v13218_v41, %v13175_v10  ;;  %v6251_v51 = vmul.f32 %v13218_v41, %v13181_v33  ;;  %v6253_v17 = vmul.f32 %v13218_v41, %v13193_v35  ;;  %v6252_v29 = vmul.f32 %v13218_v41, %v13187_v39 }
0x158b   :  { %v6254_v28 = vmul.f32 %v13218_v41, %v13199_v48  ;;  %v6362_v14 = vmul.f32 %v13245_v20, %v6326_v42  ;;  %v6364_v49 = vmul.f32 %v13245_v20, %v6328_v50  ;;  %v6363_v61 = vmul.f32 %v13245_v20, %v6327_v15 }
0x158c   :  { %v6365_v10 = vmul.f32 %v13245_v20, %v6329_v58  ;;  %v6367_v33 = vmul.f32 %v13245_v20, %v6331_v32  ;;  %v6366_v35 = vmul.f32 %v13245_v20, %v6330_v56  ;;  %v6280_v38 = vmul.f32 %v6248_v19, %v13266_v59 }
0x158d   :  { %6400 = vadd.xlane.f32.xlu2 %v6362_v14  ;;  %6404 = vadd.xlane.f32.xlu1 %v6364_v49  ;;  %v6282_v39 = vmul.f32 %v6250_v2, %v13266_v59  ;;  %v6281_v48 = vmul.f32 %v6249_v21, %v13266_v59  ;;  %v6283_v41 = vmul.f32 %v6251_v51, %v13266_v59  ;;  %v6332_v23 = vmax.f32 %v13270_v62, 0.0 }
0x158e   :  { %6402 = vadd.xlane.f32.xlu0 %v6363_v61  ;;  %v6285_v63 = vmul.f32 %v6253_v17, %v13266_v59  ;;  %v6312_v0 = vadd.f32 %v6280_v38, %v13268_v57  ;;  %v6284_v11 = vmul.f32 %v6252_v29, %v13266_v59  ;;  %v6286_v16 = vmul.f32 %v6254_v28, %v13266_v59 }
0x158f   :  { %v6287_v25 = vmul.f32 %v6255_v43, %v13266_v59  ;;  %v6314_v31 = vadd.f32 %v6282_v39, %v13268_v57  ;;  %v6313_v55 = vadd.f32 %v6281_v48, %v13268_v57  ;;  %v6315_v8 = vadd.f32 %v6283_v41, %v13268_v57 }
0x1590   :  { %v6317_v18 = vadd.f32 %v6285_v63, %v13268_v57  ;;  %v6344_v60 = vmax.f32 %v6312_v0, 0.0  ;;  %v6316_v6 = vadd.f32 %v6284_v11, %v13268_v57  ;;  %v6318_v47 = vadd.f32 %v6286_v16, %v13268_v57 }
0x1591   :  { %v6319_v45 = vadd.f32 %v6287_v25, %v13268_v57  ;;  %v6346_v7 = vmax.f32 %v6314_v31, 0.0  ;;  %v6345_v26 = vmax.f32 %v6313_v55, 0.0  ;;  %v6347_v46 = vmax.f32 %v6315_v8, 0.0 }
0x1592   :  { %v6349_v19 = vmax.f32 %v6317_v18, 0.0  ;;  %v6380_v59 = vmul.f32 %v13245_v20, %v6344_v60  ;;  %v6348_v43 = vmax.f32 %v6316_v6, 0.0  ;;  %v6350_v53 = vmax.f32 %v6318_v47, 0.0 }
0x1593   :  { %v6351_v42 = vmax.f32 %v6319_v45, 0.0  ;;  %v6382_v50 = vmul.f32 %v13245_v20, %v6346_v7  ;;  %v6381_v15 = vmul.f32 %v13245_v20, %v6345_v26  ;;  %v6383_v58 = vmul.f32 %v13245_v20, %v6347_v46 }
0x1594   :  { %v6385_v34 = vmul.f32 %v13245_v20, %v6349_v19  ;;  %v6384_v57 = vmul.f32 %v13245_v20, %v6348_v43  ;;  %v6386_v1 = vmul.f32 %v13245_v20, %v6350_v53  ;;  %v6334_v52 = vmax.f32 %v13272_v3, 0.0 }
0x1595   :  { %6406 = vadd.xlane.f32.xlu2 %v6365_v10  ;;  %6410 = vadd.xlane.f32.xlu1 %v6367_v33  ;;  %v6387_v9 = vmul.f32 %v13245_v20, %v6351_v42  ;;  %v6333_v4 = vmax.f32 %v13274_v40, 0.0  ;;  %v6368_v44 = vmul.f32 %v13245_v20, %v6332_v23  ;;  %v6335_v56 = vmax.f32 %v13282_v13, 0.0 }
0x1596   :  { %6408 = vadd.xlane.f32.xlu0 %v6366_v35  ;;  %v6370_v22 = vmul.f32 %v13245_v20, %v6334_v52  ;;  %v6337_v21 = vmax.f32 %v13310_v36, 0.0  ;;  %v6336_v2 = vmax.f32 %v13313_v27, 0.0  ;;  %v6338_v51 = vmax.f32 %v13318_v54, 0.0 }
0x1597   :  { %v6369_v32 = vmul.f32 %v13245_v20, %v6333_v4  ;;  %v6371_v62 = vmul.f32 %v13245_v20, %v6335_v56  ;;  %v6340_v17 = vmax.f32 %v13321_v5, 0.0  ;;  %v6339_v29 = vmax.f32 %v13324_v24, 0.0 }
0x1598   :  { %v6373_v3 = vmul.f32 %v13245_v20, %v6337_v21  ;;  %v6372_v40 = vmul.f32 %v13245_v20, %v6336_v2  ;;  %v6374_v13 = vmul.f32 %v13245_v20, %v6338_v51  ;;  %v6341_v28 = vmax.f32 %v13327_v37, 0.0  ;;  %v13401_v37 = vld [vmem:[#allocation2] ss:$0 sm:$0xff] }
0x1599   :  { %v6376_v36 = vmul.f32 %v13245_v20, %v6340_v17  ;;  %v6375_v27 = vmul.f32 %v13245_v20, %v6339_v29  ;;  %v6343_v14 = vmax.f32 %v13330_v12, 0.0  ;;  %v6342_v49 = vmax.f32 %v13333_v30, 0.0 }
0x159a   :  { %v6377_v54 = vmul.f32 %v13245_v20, %v6341_v28 }
0x159b   :  { %v6379_v5 = vmul.f32 %v13245_v20, %v6343_v14  ;;  %v6378_v24 = vmul.f32 %v13245_v20, %v6342_v49 }
0x159d   :  { %6412 = vadd.xlane.f32.xlu2 %v6368_v44  ;;  %6416 = vadd.xlane.f32.xlu1 %v6370_v22 }
0x159e   :  { %6414 = vadd.xlane.f32.xlu0 %v6369_v32 }
0x15a5   :  { %6418 = vadd.xlane.f32.xlu2 %v6371_v62  ;;  %6422 = vadd.xlane.f32.xlu1 %v6373_v3 }
0x15a6   :  { %6420 = vadd.xlane.f32.xlu0 %v6372_v40 }
0x15ad   :  { %6424 = vadd.xlane.f32.xlu2 %v6374_v13  ;;  %6428 = vadd.xlane.f32.xlu1 %v6376_v36 }
0x15ae   :  { %6426 = vadd.xlane.f32.xlu0 %v6375_v27 }
0x15b5   :  { %6430 = vadd.xlane.f32.xlu2 %v6377_v54  ;;  %6434 = vadd.xlane.f32.xlu1 %v6379_v5 }
0x15b6   :  { %6432 = vadd.xlane.f32.xlu0 %v6378_v24 }
0x15bd   :  { %6436 = vadd.xlane.f32.xlu2 %v6380_v59  ;;  %6440 = vadd.xlane.f32.xlu1 %v6382_v50 }
0x15be   :  { %6438 = vadd.xlane.f32.xlu0 %v6381_v15 }
0x15c5   :  { %6442 = vadd.xlane.f32.xlu2 %v6383_v58  ;;  %6446 = vadd.xlane.f32.xlu1 %v6385_v34 }
0x15c6   :  { %6444 = vadd.xlane.f32.xlu0 %v6384_v57 }
0x15cd   :  { %6448 = vadd.xlane.f32.xlu2 %v6386_v1 }
0x15ce   :  { %6450 = vadd.xlane.f32.xlu0 %v6387_v9 }
0x15f0   :  { %v6393_v12 = vpop.xlane.xlu2 %6392  ;;  %v6391_v30 = vpop.xlane.xlu1 %6390 }
0x15f1   :  { %v6458_v61 = vadd.f32 %v13401_v37, %v6393_v12  ;;  %v6457_v20 = vadd.f32 %v13401_v37, %v6391_v30  ;;  %v6389_v10 = vpop.xlane.xlu0 %6388 }
0x15f2   :  { %v6456_v33 = vadd.f32 %v13401_v37, %v6389_v10 }
0x15f3   :  { %6491 = vst.msk [vmem:[%s13573_s10 + $0x10] sm:$0xff] %vm6488_vm3, %v6458_v61 }
0x15f4   :  { %6490 = vst.msk [vmem:[%s13573_s10 + $0x8] sm:$0xff] %vm6488_vm3, %v6457_v20 }
0x15f5   :  { %6489 = vst.msk [vmem:[%s13573_s10] sm:$0xff] %vm6488_vm3, %v6456_v33 }
0x15f8   :  { %v6395_v35 = vpop.xlane.xlu2 %6394  ;;  %v6399_v38 = vpop.xlane.xlu1 %6398 }
0x15f9   :  { %v6459_v39 = vadd.f32 %v13401_v37, %v6395_v35  ;;  %v6461_v48 = vadd.f32 %v13401_v37, %v6399_v38  ;;  %v6397_v41 = vpop.xlane.xlu0 %6396 }
0x15fa   :  { %v6460_v63 = vadd.f32 %v13401_v37, %v6397_v41 }
0x15fb   :  { %6492 = vst.msk [vmem:[%s13573_s10 + $0x18] sm:$0xff] %vm6488_vm3, %v6459_v39 }
0x15fc   :  { %6494 = vst.msk [vmem:[%s13573_s10 + $0x28] sm:$0xff] %vm6488_vm3, %v6461_v48 }
0x15fd   :  { %6493 = vst.msk [vmem:[%s13573_s10 + $0x20] sm:$0xff] %vm6488_vm3, %v6460_v63 }
0x1600   :  { %v6401_v0 = vpop.xlane.xlu2 %6400  ;;  %v6405_v11 = vpop.xlane.xlu1 %6404 }
0x1601   :  { %v6462_v16 = vadd.f32 %v13401_v37, %v6401_v0  ;;  %v6464_v25 = vadd.f32 %v13401_v37, %v6405_v11  ;;  %v6403_v31 = vpop.xlane.xlu0 %6402 }
0x1602   :  { %v6463_v55 = vadd.f32 %v13401_v37, %v6403_v31 }
0x1603   :  { %6495 = vst.msk [vmem:[%s13573_s10 + $0x30] sm:$0xff] %vm6488_vm3, %v6462_v16 }
0x1604   :  { %6497 = vst.msk [vmem:[%s13573_s10 + $0x40] sm:$0xff] %vm6488_vm3, %v6464_v25 }
0x1605   :  { %6496 = vst.msk [vmem:[%s13573_s10 + $0x38] sm:$0xff] %vm6488_vm3, %v6463_v55 }
0x1608   :  { %v6407_v8 = vpop.xlane.xlu2 %6406  ;;  %v6411_v18 = vpop.xlane.xlu1 %6410 }
0x1609   :  { %v6465_v60 = vadd.f32 %v13401_v37, %v6407_v8  ;;  %v6467_v6 = vadd.f32 %v13401_v37, %v6411_v18  ;;  %v6409_v47 = vpop.xlane.xlu0 %6408 }
0x160a   :  { %v6466_v45 = vadd.f32 %v13401_v37, %v6409_v47 }
0x160b   :  { %6498 = vst.msk [vmem:[%s13573_s10 + $0x48] sm:$0xff] %vm6488_vm3, %v6465_v60 }
0x160c   :  { %6500 = vst.msk [vmem:[%s13573_s10 + $0x58] sm:$0xff] %vm6488_vm3, %v6467_v6 }
0x160d   :  { %6499 = vst.msk [vmem:[%s13573_s10 + $0x50] sm:$0xff] %vm6488_vm3, %v6466_v45 }
0x1610   :  { %v6413_v7 = vpop.xlane.xlu2 %6412  ;;  %v6417_v26 = vpop.xlane.xlu1 %6416 }
0x1611   :  { %v6468_v46 = vadd.f32 %v13401_v37, %v6413_v7  ;;  %v6470_v19 = vadd.f32 %v13401_v37, %v6417_v26  ;;  %v6415_v59 = vpop.xlane.xlu0 %6414 }
0x1612   :  { %v6469_v43 = vadd.f32 %v13401_v37, %v6415_v59 }
0x1613   :  { %6501 = vst.msk [vmem:[%s13573_s10 + $0x60] sm:$0xff] %vm6488_vm3, %v6468_v46 }
0x1614   :  { %6503 = vst.msk [vmem:[%s13573_s10 + $0x70] sm:$0xff] %vm6488_vm3, %v6470_v19 }
0x1615   :  { %6502 = vst.msk [vmem:[%s13573_s10 + $0x68] sm:$0xff] %vm6488_vm3, %v6469_v43 }
0x1618   :  { %v6419_v53 = vpop.xlane.xlu2 %6418  ;;  %v6423_v42 = vpop.xlane.xlu1 %6422 }
0x1619   :  { %v6471_v50 = vadd.f32 %v13401_v37, %v6419_v53  ;;  %v6473_v15 = vadd.f32 %v13401_v37, %v6423_v42  ;;  %v6421_v58 = vpop.xlane.xlu0 %6420 }
0x161a   :  { %v6472_v34 = vadd.f32 %v13401_v37, %v6421_v58 }
0x161b   :  { %6504 = vst.msk [vmem:[%s13573_s10 + $0x78] sm:$0xff] %vm6488_vm3, %v6471_v50 }
0x161c   :  { %6506 = vst.msk [vmem:[%s13573_s10 + $0x88] sm:$0xff] %vm6488_vm3, %v6473_v15 }
0x161d   :  { %6505 = vst.msk [vmem:[%s13573_s10 + $0x80] sm:$0xff] %vm6488_vm3, %v6472_v34 }
0x1620   :  { %v6425_v57 = vpop.xlane.xlu2 %6424  ;;  %v6429_v1 = vpop.xlane.xlu1 %6428 }
0x1621   :  { %v6474_v9 = vadd.f32 %v13401_v37, %v6425_v57  ;;  %v6476_v23 = vadd.f32 %v13401_v37, %v6429_v1  ;;  %v6427_v52 = vpop.xlane.xlu0 %6426 }
0x1622   :  { %v6475_v4 = vadd.f32 %v13401_v37, %v6427_v52 }
0x1623   :  { %6507 = vst.msk [vmem:[%s13573_s10 + $0x90] sm:$0xff] %vm6488_vm3, %v6474_v9 }
0x1624   :  { %6509 = vst.msk [vmem:[%s13573_s10 + $0xa0] sm:$0xff] %vm6488_vm3, %v6476_v23 }
0x1625   :  { %6508 = vst.msk [vmem:[%s13573_s10 + $0x98] sm:$0xff] %vm6488_vm3, %v6475_v4 }
0x1628   :  { %v6431_v44 = vpop.xlane.xlu2 %6430  ;;  %v6435_v22 = vpop.xlane.xlu1 %6434 }
0x1629   :  { %v6477_v32 = vadd.f32 %v13401_v37, %v6431_v44  ;;  %v6479_v56 = vadd.f32 %v13401_v37, %v6435_v22  ;;  %v6433_v21 = vpop.xlane.xlu0 %6432 }
0x162a   :  { %v6478_v2 = vadd.f32 %v13401_v37, %v6433_v21 }
0x162b   :  { %6510 = vst.msk [vmem:[%s13573_s10 + $0xa8] sm:$0xff] %vm6488_vm3, %v6477_v32 }
0x162c   :  { %6512 = vst.msk [vmem:[%s13573_s10 + $0xb8] sm:$0xff] %vm6488_vm3, %v6479_v56 }
0x162d   :  { %6511 = vst.msk [vmem:[%s13573_s10 + $0xb0] sm:$0xff] %vm6488_vm3, %v6478_v2 }
0x1630   :  { %v6437_v62 = vpop.xlane.xlu2 %6436  ;;  %v6441_v3 = vpop.xlane.xlu1 %6440 }
0x1631   :  { %v6480_v40 = vadd.f32 %v13401_v37, %v6437_v62  ;;  %v6482_v51 = vadd.f32 %v13401_v37, %v6441_v3  ;;  %v6439_v17 = vpop.xlane.xlu0 %6438 }
0x1632   :  { %v6481_v29 = vadd.f32 %v13401_v37, %v6439_v17 }
0x1633   :  { %6513 = vst.msk [vmem:[%s13573_s10 + $0xc0] sm:$0xff] %vm6488_vm3, %v6480_v40 }
0x1634   :  { %6515 = vst.msk [vmem:[%s13573_s10 + $0xd0] sm:$0xff] %vm6488_vm3, %v6482_v51 }
0x1635   :  { %6514 = vst.msk [vmem:[%s13573_s10 + $0xc8] sm:$0xff] %vm6488_vm3, %v6481_v29 }
0x1638   :  { %v6443_v13 = vpop.xlane.xlu2 %6442  ;;  %v6447_v36 = vpop.xlane.xlu1 %6446 }
0x1639   :  { %v6483_v27 = vadd.f32 %v13401_v37, %v6443_v13  ;;  %v6485_v28 = vadd.f32 %v13401_v37, %v6447_v36  ;;  %v6445_v14 = vpop.xlane.xlu0 %6444 }
0x163a   :  { %v6484_v49 = vadd.f32 %v13401_v37, %v6445_v14 }
0x163b   :  { %6516 = vst.msk [vmem:[%s13573_s10 + $0xd8] sm:$0xff] %vm6488_vm3, %v6483_v27 }
0x163c   :  { %6518 = vst.msk [vmem:[%s13573_s10 + $0xe8] sm:$0xff] %vm6488_vm3, %v6485_v28 }
0x163d   :  { %6517 = vst.msk [vmem:[%s13573_s10 + $0xe0] sm:$0xff] %vm6488_vm3, %v6484_v49 }
0x1640   :  { %v6449_v54 = vpop.xlane.xlu2 %6448 }
0x1641   :  { %v6486_v5 = vadd.f32 %v13401_v37, %v6449_v54  ;;  %v6451_v24 = vpop.xlane.xlu0 %6450 }
0x1642   :  { %v6487_v12 = vadd.f32 %v13401_v37, %v6451_v24 }
0x1643   :  { %6519 = vst.msk [vmem:[%s13573_s10 + $0xf0] sm:$0xff] %vm6488_vm3, %v6486_v5 }
0x1644   :  { %6520 = vst.msk [vmem:[%s13573_s10 + $0xf8] sm:$0xff] %vm6488_vm3, %v6487_v12 }
0x1645   :  { %6525 = vsyncpa [#allocation4], 1 }
0x1646   :  { %6526 = vsyncpa [#allocation6], 1 }

</bundles_post_ra>
